<compile_context>
chip_gen: v7x
topology: tpu7x:2x2x1
jax: 0.10.0
libtpu: 0.0.40
codegen_flags: <defaults>
</compile_context>

<pallas_src>
import functools

import jax
import jax.numpy as jnp
from jax.experimental import pallas as pl
from jax.experimental.pallas import tpu as pltpu

LN_EPS = 1e-5
LANES = 128   # packed parameter blob lane width


# ----------------------------------------------------------------------------
# One-time parameter packing (done OUTSIDE jit): everything into one (R,128)
# blob; offsets[name] = (row_start, n_rows, n_cols) are static Python ints.
# ----------------------------------------------------------------------------
def pack_params(params):
    parts, offs = [], {}
    r = 0

    def _align(m=8):
        nonlocal r
        pad = (-r) % m
        if pad:
            parts.append(jnp.zeros((pad, LANES), jnp.float32))
            r += pad

    def _add(name, a, align=False):
        nonlocal r
        if align:
            _align()
        a = jnp.asarray(a, jnp.float32)
        nr, nc = a.shape
        offs[name] = (r, nr, nc)
        parts.append(jnp.pad(a, ((0, 0), (0, LANES - nc))))
        r += nr

    _add('cpw', params['condition_proj']['w'], align=True)
    _add('qpw', params['query_proj']['w'], align=True)
    _add('cp2w', params['condition_proj2']['w'], align=True)
    _add('omw', params['output_mlp']['w'], align=True)
    _add('emb1', params['embedding1'], align=True)   # full table; kernel slices rows
    _add('emb2', params['embedding2'], align=True)
    _add('cpb', params['condition_proj']['b'])
    _add('qpb', params['query_proj']['b'])
    _add('cp2b', params['condition_proj2']['b'])
    _add('omb', params['output_mlp']['b'])
    for ei, enc in ((1, params['encoder1']), (2, params['encoder2'])):
        for l, lp in enumerate(enc['layers']):
            pfx = f'e{ei}l{l}_'
            for wn in ('wq', 'wk', 'wv', 'wo', 'w1', 'w2'):
                _add(pfx + wn, lp[wn], align=True)     # matmul weights 8-row aligned
            for vn in ('bq', 'bk', 'bv', 'bo', 'b1', 'b2',
                       'ln1g', 'ln1b', 'ln2g', 'ln2b'):
                _add(pfx + vn, lp[vn])                 # vectors packed densely
        _add(f'e{ei}_ng', enc['norm_g'])
        _add(f'e{ei}_nb', enc['norm_b'])
    _align()
    return jnp.concatenate(parts, axis=0), offs


# ----------------------------------------------------------------------------
# In-kernel building blocks
# ----------------------------------------------------------------------------
def _rd(blob_ref, entry):
    r0, nr, nc = entry
    return blob_ref[r0:r0 + nr, :nc]


def _ln(x, g, b):
    mu = jnp.mean(x, axis=-1, keepdims=True)
    xc = x - mu
    var = jnp.mean(xc * xc, axis=-1, keepdims=True)
    return xc * jax.lax.rsqrt(var + LN_EPS) * g + b


def _head_masks(d, nhead):
    """Per-head lane masks (scale folded in) — avoids lane-offset head slices."""
    dh = d // nhead
    scale = 1.0 / (dh ** 0.5)
    lane = jax.lax.broadcasted_iota(jnp.int32, (1, 1, d), 2)
    masks_scaled, masks_01 = [], []
    for h in range(nhead):
        m = jnp.logical_and(lane >= h * dh, lane < (h + 1) * dh)
        masks_01.append(m.astype(jnp.float32))
        masks_scaled.append(jnp.where(m, jnp.float32(scale), jnp.float32(0.0)))
    return masks_scaled, masks_01


def _encoder_layer(x, blob_ref, offs, pfx, nhead, masks_scaled, masks_01):
    """One post-norm nn.TransformerEncoderLayer (relu FFN, dropout=identity)."""
    n, s, d = x.shape
    x2d = x.reshape(n * s, d)

    def w(name):
        return _rd(blob_ref, offs[pfx + name])

    # Three separate projections (no lane-offset slices of a packed QKV result).
    q = (jnp.dot(x2d, w('wq'), preferred_element_type=jnp.float32) + w('bq')).reshape(n, s, d)
    k = (jnp.dot(x2d, w('wk'), preferred_element_type=jnp.float32) + w('bk')).reshape(n, s, d)
    v = (jnp.dot(x2d, w('wv'), preferred_element_type=jnp.float32) + w('bv')).reshape(n, s, d)

    # Per-head attention via lane masks; disjoint-head partial outputs sum to the
    # concatenated-heads tensor, so a single Wo matmul after the loop is exact.
    attn = jnp.zeros((n, s, d), jnp.float32)
    for h in range(nhead):                       # static, small head count
        sc = jnp.einsum('nsd,ntd->nst', q * masks_scaled[h], k,
                        preferred_element_type=jnp.float32)        # (n, s, s)
        sc = sc - jnp.max(sc, axis=-1, keepdims=True)
        pexp = jnp.exp(sc)
        pnorm = pexp / jnp.sum(pexp, axis=-1, keepdims=True)       # exact division
        attn = attn + jnp.einsum('nst,ntd->nsd', pnorm, v * masks_01[h],
                                 preferred_element_type=jnp.float32)

    ao = jnp.dot(attn.reshape(n * s, d), w('wo'),
                 preferred_element_type=jnp.float32) + w('bo')
    x1 = _ln(x2d + ao, w('ln1g'), w('ln1b'))

    h1 = jnp.maximum(jnp.dot(x1, w('w1'), preferred_element_type=jnp.float32) + w('b1'), 0.0)
    h2 = jnp.dot(h1, w('w2'), preferred_element_type=jnp.float32) + w('b2')
    x2 = _ln(x1 + h2, w('ln2g'), w('ln2b'))
    return x2.reshape(n, s, d)


def _run_encoder(x, blob_ref, offs, pre, num_layers, nhead):
    """nn.TransformerEncoder: stacked layers + final LayerNorm on token 0 only."""
    d = x.shape[-1]
    masks_scaled, masks_01 = _head_masks(d, nhead)   # hoisted out of layer loop
    for l in range(num_layers):                      # statically unrolled
        x = _encoder_layer(x, blob_ref, offs, f'{pre}l{l}_', nhead,
                           masks_scaled, masks_01)
    g = _rd(blob_ref, offs[f'{pre}_ng'])
    b = _rd(blob_ref, offs[f'{pre}_nb'])
    return _ln(x[:, 0, :], g, b)                     # (n, d)


# ----------------------------------------------------------------------------
# Fused forward kernel — one grid step per batch element
# ----------------------------------------------------------------------------
def _fused_kernel(cc_ref, pe_ref, xyz_in_ref, blob_ref,
                  xyz_out_ref, off_out_ref, x2_sc,
                  *, offs, nhead1, nhead2, nl1, nl2):
    _, n_seq, s1, dc = cc_ref.shape
    s2 = n_seq + 1
    d1 = offs['cpw'][2]
    d2 = offs['qpw'][2]

    cc = cc_ref[0].astype(jnp.float32)                           # (n_seq, S1, Dc)

    # ---------------- encoder 1: temporal attention over all joints ----------
    x = jnp.dot(cc.reshape(n_seq * s1, dc), _rd(blob_ref, offs['cpw']),
                preferred_element_type=jnp.float32) + _rd(blob_ref, offs['cpb'])
    e1r0 = offs['emb1'][0]
    x = x.reshape(n_seq, s1, d1) + blob_ref[e1r0:e1r0 + s1, :d1][None]
    out1 = _run_encoder(x, blob_ref, offs, 'e1', nl1, nhead1)    # (n_seq, d1)

    # ---------------- encoder 2: query token + projected joint features ------
    pe = pe_ref[0].astype(jnp.float32)                           # (1, Dq)
    query = jnp.dot(pe, _rd(blob_ref, offs['qpw']),
                    preferred_element_type=jnp.float32) + _rd(blob_ref, offs['qpb'])
    out12 = jnp.dot(out1, _rd(blob_ref, offs['cp2w']),
                    preferred_element_type=jnp.float32) + _rd(blob_ref, offs['cp2b'])
    # assemble [query; out12] via slice-stores into VMEM scratch (no concat)
    x2_sc[0:1, :] = query
    x2_sc[1:1 + n_seq, :] = out12
    e2r0 = offs['emb2'][0]
    x2 = (x2_sc[0:s2, :] + blob_ref[e2r0:e2r0 + s2, :d2])[None]  # (1, S2, d2)
    out2 = _run_encoder(x2, blob_ref, offs, 'e2', nl2, nhead2)   # (1, d2)

    trans = jnp.dot(out2, _rd(blob_ref, offs['omw']),
                    preferred_element_type=jnp.float32) + _rd(blob_ref, offs['omb'])
    off_out_ref[0] = trans.astype(off_out_ref.dtype)
    xyz_out_ref[0] = (xyz_in_ref[0].astype(jnp.float32) + trans).astype(xyz_out_ref.dtype)


# ----------------------------------------------------------------------------
# Wrapper
# ----------------------------------------------------------------------------
def forward(blob, pos_embed, pos_xyz, condition_code, *, offs, cfg):
    B, T, J, Dc = condition_code.shape
    if cfg['attention_order'] == 'TS':
        # attend over time per joint: one tiny XLA relayout outside the kernel
        cc = jnp.transpose(condition_code, (0, 2, 1, 3))         # (B, J, T, Dc)
        n_seq, S1 = J, T
    else:
        cc = condition_code                                      # (B, T, J, Dc)
        n_seq, S1 = T, J
    S2 = n_seq + 1
    d2 = offs['qpw'][2]
    Dq = pos_embed.shape[-1]

    assert S1 <= offs['emb1'][1], "encoder1 sequence longer than embedding table"
    assert S2 <= offs['emb2'][1], "encoder2 sequence longer than embedding table"

    pe = pos_embed.reshape(B, 1, Dq)
    px = pos_xyz.reshape(B, 1, 3)
    s2_pad = S2 + ((-S2) % 8)

    kernel = functools.partial(_fused_kernel, offs=offs,
                               nhead1=cfg['enc1']['nhead'],
                               nhead2=cfg['enc2']['nhead'],
                               nl1=cfg['enc1']['num_encoder_layers'],
                               nl2=cfg['enc2']['num_encoder_layers'])

    xyz, offsets = pl.pallas_call(
        kernel,
        out_shape=(jax.ShapeDtypeStruct((B, 1, 3), pos_xyz.dtype),
                   jax.ShapeDtypeStruct((B, 1, 3), pos_xyz.dtype)),
        grid=(B,),
        in_specs=[
            pl.BlockSpec((1, n_seq, S1, Dc), lambda b: (b, 0, 0, 0)),   # per-batch cc
            pl.BlockSpec((1, 1, Dq), lambda b: (b, 0, 0)),              # pos_embed
            pl.BlockSpec((1, 1, 3), lambda b: (b, 0, 0)),               # pos_xyz
            pl.BlockSpec(blob.shape, lambda b: (0, 0)),                 # params blob (resident)
        ],
        out_specs=(pl.BlockSpec((1, 1, 3), lambda b: (b, 0, 0)),
                   pl.BlockSpec((1, 1, 3), lambda b: (b, 0, 0))),
        scratch_shapes=[pltpu.VMEM((s2_pad, d2), jnp.float32)],
        compiler_params=pltpu.CompilerParams(
            dimension_semantics=("parallel",)),
    )(cc, pe, px, blob)

    return {'xyz': xyz.reshape(B, 3), 'offsets': offsets.reshape(B, 3)}


# ----------------------------------------------------------------------------
# Parameter construction (deterministic, synthetic).  Linear weights stored
# pre-transposed as (in, out).
# ----------------------------------------------------------------------------
def _init_linear(key, din, dout, scale=0.05):
    kw, kb = jax.random.split(key)
    return {'w': jax.random.normal(kw, (din, dout), jnp.float32) * scale,
            'b': jax.random.normal(kb, (1, dout), jnp.float32) * 0.01}


def _init_encoder(key, d, ff, num_layers, scale=0.05):
    layers = []
    for lk in jax.random.split(key, num_layers):
        k0, k1, k2, k3, k4, k5 = jax.random.split(lk, 6)
        layers.append(dict(
            wq=jax.random.normal(k0, (d, d), jnp.float32) * scale,
            wk=jax.random.normal(k1, (d, d), jnp.float32) * scale,
            wv=jax.random.normal(k2, (d, d), jnp.float32) * scale,
            wo=jax.random.normal(k3, (d, d), jnp.float32) * scale,
            w1=jax.random.normal(k4, (d, ff), jnp.float32) * scale,
            w2=jax.random.normal(k5, (ff, d), jnp.float32) * scale,
            bq=jnp.zeros((1, d), jnp.float32), bk=jnp.zeros((1, d), jnp.float32),
            bv=jnp.zeros((1, d), jnp.float32), bo=jnp.zeros((1, d), jnp.float32),
            b1=jnp.zeros((1, ff), jnp.float32), b2=jnp.zeros((1, d), jnp.float32),
            ln1g=jnp.ones((1, d), jnp.float32), ln1b=jnp.zeros((1, d), jnp.float32),
            ln2g=jnp.ones((1, d), jnp.float32), ln2b=jnp.zeros((1, d), jnp.float32)))
    return dict(layers=layers,
                norm_g=jnp.ones((1, d), jnp.float32),
                norm_b=jnp.zeros((1, d), jnp.float32))


def init_params(key, query_input_dim, cond_input_dim, cfg):
    d1, d2 = cfg['enc1']['d_model'], cfg['enc2']['d_model']
    ks = jax.random.split(key, 8)
    return {
        'query_proj': _init_linear(ks[0], query_input_dim, d2),
        'condition_proj': _init_linear(ks[1], cond_input_dim, d1),
        'condition_proj2': _init_linear(ks[2], d1, d2),
        # output_mlp: uniform(-1e-5, 1e-5) weight, zero bias (as in the module)
        'output_mlp': {'w': jax.random.uniform(ks[3], (d2, 3), jnp.float32,
                                               minval=-1e-5, maxval=1e-5),
                       'b': jnp.zeros((1, 3), jnp.float32)},
        'embedding1': jax.random.normal(
            ks[4], (cfg['enc1']['embedding_max_length'] + 1, d1), jnp.float32) * 0.02,
        'embedding2': jax.random.normal(
            ks[5], (cfg['enc2']['embedding_max_length'] + 1, d2), jnp.float32) * 0.02,
        'encoder1': _init_encoder(ks[6], d1, cfg['enc1']['dim_feedforward'],
                                  cfg['enc1']['num_encoder_layers']),
        'encoder2': _init_encoder(ks[7], d2, cfg['enc2']['dim_feedforward'],
                                  cfg['enc2']['num_encoder_layers']),
    }


# ----------------------------------------------------------------------------
# Pure-JAX reference (standard attention layout) for a correctness cross-check
# ----------------------------------------------------------------------------
def _ref_encoder_layer(x, lp, nhead):
    N, S, d = x.shape
    dh = d // nhead
    scale = 1.0 / (dh ** 0.5)
    q = (x @ lp['wq'] + lp['bq']).reshape(N, S, nhead, dh).transpose(0, 2, 1, 3)
    k = (x @ lp['wk'] + lp['bk']).reshape(N, S, nhead, dh).transpose(0, 2, 1, 3)
    v = (x @ lp['wv'] + lp['bv']).reshape(N, S, nhead, dh).transpose(0, 2, 1, 3)
    s = jnp.einsum('nhsd,nhtd->nhst', q, k) * scale
    p = jax.nn.softmax(s, axis=-1)
    a = jnp.einsum('nhst,nhtd->nhsd', p, v).transpose(0, 2, 1, 3).reshape(N, S, d)
    a = a @ lp['wo'] + lp['bo']
    x = _ln(x + a, lp['ln1g'], lp['ln1b'])
    h = jnp.maximum(x @ lp['w1'] + lp['b1'], 0.0)
    h = h @ lp['w2'] + lp['b2']
    return _ln(x + h, lp['ln2g'], lp['ln2b'])


def _ref_forward(params, pos_embed, pos_xyz, condition_code, cfg):
    B, T, J, Dc = condition_code.shape
    cc = jnp.transpose(condition_code, (0, 2, 1, 3)) \
        if cfg['attention_order'] == 'TS' else condition_code
    _, n_seq, S1, _ = cc.shape
    x = cc.reshape(B * n_seq, S1, Dc) @ params['condition_proj']['w'] \
        + params['condition_proj']['b']
    x = x + params['embedding1'][:S1][None]
    for lp in params['encoder1']['layers']:
        x = _ref_encoder_layer(x, lp, cfg['enc1']['nhead'])
    x = _ln(x, params['encoder1']['norm_g'], params['encoder1']['norm_b'])
    out1 = x[:, 0, :].reshape(B, n_seq, -1)
    query = pos_embed @ params['query_proj']['w'] + params['query_proj']['b']
    out12 = out1 @ params['condition_proj2']['w'] + params['condition_proj2']['b']
    x2 = jnp.concatenate([query[:, None, :], out12], axis=1)
    x2 = x2 + params['embedding2'][:n_seq + 1][None]
    for lp in params['encoder2']['layers']:
        x2 = _ref_encoder_layer(x2, lp, cfg['enc2']['nhead'])
    x2 = _ln(x2, params['encoder2']['norm_g'], params['encoder2']['norm_b'])
    trans = x2[:, 0, :] @ params['output_mlp']['w'] + params['output_mlp']['b']
    return {'xyz': pos_xyz + trans, 'offsets': trans}


# ----------------------------------------------------------------------------
# Main
# ----------------------------------------------------------------------------
if __name__ == "__main__":
    B, T, J = 2, 4, 6
    cond_input_dim = 16
    query_input_dim = 32

    cfg = {
        'attention_order': 'TS',
        'enc1': dict(d_model=32, nhead=4, dim_feedforward=64,
                     num_encoder_layers=2, embedding_max_length=16),
        'enc2': dict(d_model=32, nhead=4, dim_feedforward=64,
                     num_encoder_layers=2, embedding_max_length=16),
    }

    key = jax.random.PRNGKey(0)
    k_params, k_cc, k_pe, k_xyz = jax.random.split(key, 4)
    params = init_params(k_params, query_input_dim, cond_input_dim, cfg)
    blob, offs = pack_params(params)          # one-time packing, outside jit

    condition_code = jax.random.normal(k_cc, (B, T, J, cond_input_dim), jnp.float32)
    pos_embed = jax.random.normal(k_pe, (B, query_input_dim), jnp.float32)
    pos_xyz = jax.random.normal(k_xyz, (B, 3), jnp.float32)

    fwd = jax.jit(functools.partial(forward, offs=offs, cfg=cfg))
    out = jax.block_until_ready(fwd(blob, pos_embed, pos_xyz, condition_code))

    ref_fn = jax.jit(functools.partial(_ref_forward, cfg=cfg))
    ref = jax.block_until_ready(ref_fn(params, pos_embed, pos_xyz, condition_code))

    assert out['xyz'].shape == (B, 3) and out['offsets'].shape == (B, 3)
    assert bool(jnp.all(jnp.isfinite(out['xyz'])))
    assert bool(jnp.all(jnp.isfinite(out['offsets'])))
    assert bool(jnp.allclose(out['offsets'], ref['offsets'], rtol=2e-3, atol=1e-6)), \
        f"offsets mismatch: {out['offsets']} vs {ref['offsets']}"
    assert bool(jnp.allclose(out['xyz'], ref['xyz'], rtol=1e-3, atol=1e-4)), \
        f"xyz mismatch: {out['xyz']} vs {ref['xyz']}"
    print("KERNEL_OK")
</pallas_src>

<mosaic_0001>
module attributes {stable_mosaic.version = 11 : i64} {
  func.func @_fused_kernel(%arg0: i32, %arg1: memref<1x6x4x16xf32, #tpu.memory_space<vmem>>, %arg2: memref<1x1x32xf32, #tpu.memory_space<vmem>>, %arg3: memref<1x1x3xf32, #tpu.memory_space<vmem>>, %arg4: memref<1120x128xf32, #tpu.memory_space<vmem>>, %arg5: memref<1x1x3xf32, #tpu.memory_space<vmem>>, %arg6: memref<1x1x3xf32, #tpu.memory_space<vmem>>, %arg7: memref<8x32xf32, #tpu.memory_space<vmem>>) attributes {dimension_semantics = [#tpu.dimension_semantics<parallel>], iteration_bounds = array<i64: 2>, scalar_prefetch = 0 : i64, scratch_operands = 1 : i64, tpu.core_type = #tpu.core_type<tc>, window_params = [{transform_indices = @transform_0, window_bounds = array<i64: 1, 6, 4, 16>}, {transform_indices = @transform_1, window_bounds = array<i64: 1, 1, 32>}, {transform_indices = @transform_2, window_bounds = array<i64: 1, 1, 3>}, {pipeline_mode = #tpu.pipeline_mode<synchronous>, transform_indices = @transform_3, window_bounds = array<i64: 1120, 128>}, {transform_indices = @transform_4, window_bounds = array<i64: 1, 1, 3>}, {transform_indices = @transform_5, window_bounds = array<i64: 1, 1, 3>}]} {
    %c0 = arith.constant 0 : index
    %c0_0 = arith.constant 0 : index
    %c0_1 = arith.constant 0 : index
    %c0_2 = arith.constant 0 : index
    %0 = vector.load %arg1[%c0, %c0_0, %c0_1, %c0_2] : memref<1x6x4x16xf32, #tpu.memory_space<vmem>>, vector<1x6x4x16xf32>
    %1 = vector.shape_cast %0 : vector<1x6x4x16xf32> to vector<6x4x16xf32>
    %2 = vector.shape_cast %1 : vector<6x4x16xf32> to vector<24x16xf32>
    %c0_3 = arith.constant 0 : index
    %c0_4 = arith.constant 0 : index
    %3 = vector.load %arg4[%c0_3, %c0_4] : memref<1120x128xf32, #tpu.memory_space<vmem>>, vector<16x32xf32>
    %cst = arith.constant dense<0.000000e+00> : vector<24x32xf32>
    %4 = tpu.matmul %2, %3, %cst {dimension_numbers = #tpu.dot_dimension_numbers<[1], [0], [0], [1], [0, 0, 1, 1], [], []>} : vector<24x16xf32>, vector<16x32xf32>, vector<24x32xf32> -> vector<24x32xf32>
    %c153 = arith.constant 153 : index
    %c0_5 = arith.constant 0 : index
    %5 = vector.load %arg4[%c153, %c0_5] : memref<1120x128xf32, #tpu.memory_space<vmem>>, vector<1x32xf32>
    %6 = vector.broadcast %5 : vector<1x32xf32> to vector<24x32xf32>
    %7 = arith.addf %4, %6 : vector<24x32xf32>
    %8 = vector.shape_cast %7 : vector<24x32xf32> to vector<6x4x32xf32>
    %c112 = arith.constant 112 : index
    %c0_6 = arith.constant 0 : index
    %9 = vector.load %arg4[%c112, %c0_6] : memref<1120x128xf32, #tpu.memory_space<vmem>>, vector<4x32xf32>
    %10 = vector.shape_cast %9 : vector<4x32xf32> to vector<1x4x32xf32>
    %11 = vector.broadcast %10 : vector<1x4x32xf32> to vector<6x4x32xf32>
    %12 = arith.addf %8, %11 : vector<6x4x32xf32>
    %13 = tpu.iota {dimensions = array<i32: 2>} : vector<1x1x32xi32>
    %c0_i32 = arith.constant 0 : i32
    %14 = vector.broadcast %c0_i32 : i32 to vector<1x1x32xi32>
    %15 = arith.cmpi sge, %13, %14 : vector<1x1x32xi32>
    %c8_i32 = arith.constant 8 : i32
    %16 = vector.broadcast %c8_i32 : i32 to vector<1x1x32xi32>
    %17 = arith.cmpi slt, %13, %16 : vector<1x1x32xi32>
    %18 = arith.andi %15, %17 : vector<1x1x32xi1>
    %19 = arith.extui %18 : vector<1x1x32xi1> to vector<1x1x32xi32>
    %20 = arith.sitofp %19 : vector<1x1x32xi32> to vector<1x1x32xf32>
    %cst_7 = arith.constant 0.353553385 : f32
    %cst_8 = arith.constant 0.000000e+00 : f32
    %21 = vector.broadcast %cst_7 : f32 to vector<1x1x32xf32>
    %22 = vector.broadcast %cst_8 : f32 to vector<1x1x32xf32>
    %23 = arith.select %18, %21, %22 : vector<1x1x32xi1>, vector<1x1x32xf32>
    %c8_i32_9 = arith.constant 8 : i32
    %24 = vector.broadcast %c8_i32_9 : i32 to vector<1x1x32xi32>
    %25 = arith.cmpi sge, %13, %24 : vector<1x1x32xi32>
    %c16_i32 = arith.constant 16 : i32
    %26 = vector.broadcast %c16_i32 : i32 to vector<1x1x32xi32>
    %27 = arith.cmpi slt, %13, %26 : vector<1x1x32xi32>
    %28 = arith.andi %25, %27 : vector<1x1x32xi1>
    %29 = arith.extui %28 : vector<1x1x32xi1> to vector<1x1x32xi32>
    %30 = arith.sitofp %29 : vector<1x1x32xi32> to vector<1x1x32xf32>
    %cst_10 = arith.constant 0.353553385 : f32
    %cst_11 = arith.constant 0.000000e+00 : f32
    %31 = vector.broadcast %cst_10 : f32 to vector<1x1x32xf32>
    %32 = vector.broadcast %cst_11 : f32 to vector<1x1x32xf32>
    %33 = arith.select %28, %31, %32 : vector<1x1x32xi1>, vector<1x1x32xf32>
    %c16_i32_12 = arith.constant 16 : i32
    %34 = vector.broadcast %c16_i32_12 : i32 to vector<1x1x32xi32>
    %35 = arith.cmpi sge, %13, %34 : vector<1x1x32xi32>
    %c24_i32 = arith.constant 24 : i32
    %36 = vector.broadcast %c24_i32 : i32 to vector<1x1x32xi32>
    %37 = arith.cmpi slt, %13, %36 : vector<1x1x32xi32>
    %38 = arith.andi %35, %37 : vector<1x1x32xi1>
    %39 = arith.extui %38 : vector<1x1x32xi1> to vector<1x1x32xi32>
    %40 = arith.sitofp %39 : vector<1x1x32xi32> to vector<1x1x32xf32>
    %cst_13 = arith.constant 0.353553385 : f32
    %cst_14 = arith.constant 0.000000e+00 : f32
    %41 = vector.broadcast %cst_13 : f32 to vector<1x1x32xf32>
    %42 = vector.broadcast %cst_14 : f32 to vector<1x1x32xf32>
    %43 = arith.select %38, %41, %42 : vector<1x1x32xi1>, vector<1x1x32xf32>
    %c24_i32_15 = arith.constant 24 : i32
    %44 = vector.broadcast %c24_i32_15 : i32 to vector<1x1x32xi32>
    %45 = arith.cmpi sge, %13, %44 : vector<1x1x32xi32>
    %c32_i32 = arith.constant 32 : i32
    %46 = vector.broadcast %c32_i32 : i32 to vector<1x1x32xi32>
    %47 = arith.cmpi slt, %13, %46 : vector<1x1x32xi32>
    %48 = arith.andi %45, %47 : vector<1x1x32xi1>
    %49 = arith.extui %48 : vector<1x1x32xi1> to vector<1x1x32xi32>
    %50 = arith.sitofp %49 : vector<1x1x32xi32> to vector<1x1x32xf32>
    %cst_16 = arith.constant 0.353553385 : f32
    %cst_17 = arith.constant 0.000000e+00 : f32
    %51 = vector.broadcast %cst_16 : f32 to vector<1x1x32xf32>
    %52 = vector.broadcast %cst_17 : f32 to vector<1x1x32xf32>
    %53 = arith.select %48, %51, %52 : vector<1x1x32xi1>, vector<1x1x32xf32>
    %54 = vector.shape_cast %12 : vector<6x4x32xf32> to vector<24x32xf32>
    %c160 = arith.constant 160 : index
    %c0_18 = arith.constant 0 : index
    %55 = vector.load %arg4[%c160, %c0_18] : memref<1120x128xf32, #tpu.memory_space<vmem>>, vector<32x32xf32>
    %cst_19 = arith.constant dense<0.000000e+00> : vector<24x32xf32>
    %56 = tpu.matmul %54, %55, %cst_19 {dimension_numbers = #tpu.dot_dimension_numbers<[1], [0], [0], [1], [0, 0, 1, 1], [], []>} : vector<24x32xf32>, vector<32x32xf32>, vector<24x32xf32> -> vector<24x32xf32>
    %c384 = arith.constant 384 : index
    %c0_20 = arith.constant 0 : index
    %57 = vector.load %arg4[%c384, %c0_20] : memref<1120x128xf32, #tpu.memory_space<vmem>>, vector<1x32xf32>
    %58 = vector.broadcast %57 : vector<1x32xf32> to vector<24x32xf32>
    %59 = arith.addf %56, %58 : vector<24x32xf32>
    %60 = vector.shape_cast %59 : vector<24x32xf32> to vector<6x4x32xf32>
    %c192 = arith.constant 192 : index
    %c0_21 = arith.constant 0 : index
    %61 = vector.load %arg4[%c192, %c0_21] : memref<1120x128xf32, #tpu.memory_space<vmem>>, vector<32x32xf32>
    %cst_22 = arith.constant dense<0.000000e+00> : vector<24x32xf32>
    %62 = tpu.matmul %54, %61, %cst_22 {dimension_numbers = #tpu.dot_dimension_numbers<[1], [0], [0], [1], [0, 0, 1, 1], [], []>} : vector<24x32xf32>, vector<32x32xf32>, vector<24x32xf32> -> vector<24x32xf32>
    %c385 = arith.constant 385 : index
    %c0_23 = arith.constant 0 : index
    %63 = vector.load %arg4[%c385, %c0_23] : memref<1120x128xf32, #tpu.memory_space<vmem>>, vector<1x32xf32>
    %64 = vector.broadcast %63 : vector<1x32xf32> to vector<24x32xf32>
    %65 = arith.addf %62, %64 : vector<24x32xf32>
    %66 = vector.shape_cast %65 : vector<24x32xf32> to vector<6x4x32xf32>
    %c224 = arith.constant 224 : index
    %c0_24 = arith.constant 0 : index
    %67 = vector.load %arg4[%c224, %c0_24] : memref<1120x128xf32, #tpu.memory_space<vmem>>, vector<32x32xf32>
    %cst_25 = arith.constant dense<0.000000e+00> : vector<24x32xf32>
    %68 = tpu.matmul %54, %67, %cst_25 {dimension_numbers = #tpu.dot_dimension_numbers<[1], [0], [0], [1], [0, 0, 1, 1], [], []>} : vector<24x32xf32>, vector<32x32xf32>, vector<24x32xf32> -> vector<24x32xf32>
    %c386 = arith.constant 386 : index
    %c0_26 = arith.constant 0 : index
    %69 = vector.load %arg4[%c386, %c0_26] : memref<1120x128xf32, #tpu.memory_space<vmem>>, vector<1x32xf32>
    %70 = vector.broadcast %69 : vector<1x32xf32> to vector<24x32xf32>
    %71 = arith.addf %68, %70 : vector<24x32xf32>
    %72 = vector.shape_cast %71 : vector<24x32xf32> to vector<6x4x32xf32>
    %cst_27 = arith.constant 0.000000e+00 : f32
    %73 = vector.broadcast %cst_27 : f32 to vector<6x4x32xf32>
    %74 = vector.broadcast %23 : vector<1x1x32xf32> to vector<6x4x32xf32>
    %75 = arith.mulf %60, %74 : vector<6x4x32xf32>
    "tpu.trace_start"() <{level = 10 : i32, message = "nsd,ntd->nst"}> : () -> ()
    %cst_28 = arith.constant dense<0.000000e+00> : vector<6x4x4xf32>
    %76 = tpu.matmul %75, %66, %cst_28 {dimension_numbers = #tpu.dot_dimension_numbers<[2], [2], [1], [1], [0, 0, 0, 1, 1, 1], [0], [0]>} : vector<6x4x32xf32>, vector<6x4x32xf32>, vector<6x4x4xf32> -> vector<6x4x4xf32>
    "tpu.trace_stop"() : () -> ()
    %cst_29 = arith.constant dense<0xFF800000> : vector<6x4xf32>
    %77 = vector.multi_reduction <maximumf>, %76, %cst_29 [2] : vector<6x4x4xf32> to vector<6x4xf32>
    %78 = vector.shape_cast %77 : vector<6x4xf32> to vector<6x4x1xf32>
    %79 = vector.broadcast %78 : vector<6x4x1xf32> to vector<6x4x4xf32>
    %80 = arith.subf %76, %79 : vector<6x4x4xf32>
    %81 = math.exp %80 : vector<6x4x4xf32>
    %cst_30 = arith.constant dense<0.000000e+00> : vector<6x4xf32>
    %82 = vector.multi_reduction <add>, %81, %cst_30 [2] : vector<6x4x4xf32> to vector<6x4xf32>
    %83 = vector.shape_cast %82 : vector<6x4xf32> to vector<6x4x1xf32>
    %84 = vector.broadcast %83 : vector<6x4x1xf32> to vector<6x4x4xf32>
    %85 = arith.divf %81, %84 : vector<6x4x4xf32>
    %86 = vector.broadcast %20 : vector<1x1x32xf32> to vector<6x4x32xf32>
    %87 = arith.mulf %72, %86 : vector<6x4x32xf32>
    "tpu.trace_start"() <{level = 10 : i32, message = "nst,ntd->nsd"}> : () -> ()
    %cst_31 = arith.constant dense<0.000000e+00> : vector<6x4x32xf32>
    %88 = tpu.matmul %85, %87, %cst_31 {dimension_numbers = #tpu.dot_dimension_numbers<[2], [1], [1], [2], [0, 0, 0, 1, 1, 2], [0], [0]>} : vector<6x4x4xf32>, vector<6x4x32xf32>, vector<6x4x32xf32> -> vector<6x4x32xf32>
    "tpu.trace_stop"() : () -> ()
    %89 = arith.addf %73, %88 : vector<6x4x32xf32>
    %90 = vector.broadcast %33 : vector<1x1x32xf32> to vector<6x4x32xf32>
    %91 = arith.mulf %60, %90 : vector<6x4x32xf32>
    "tpu.trace_start"() <{level = 10 : i32, message = "nsd,ntd->nst"}> : () -> ()
    %cst_32 = arith.constant dense<0.000000e+00> : vector<6x4x4xf32>
    %92 = tpu.matmul %91, %66, %cst_32 {dimension_numbers = #tpu.dot_dimension_numbers<[2], [2], [1], [1], [0, 0, 0, 1, 1, 1], [0], [0]>} : vector<6x4x32xf32>, vector<6x4x32xf32>, vector<6x4x4xf32> -> vector<6x4x4xf32>
    "tpu.trace_stop"() : () -> ()
    %cst_33 = arith.constant dense<0xFF800000> : vector<6x4xf32>
    %93 = vector.multi_reduction <maximumf>, %92, %cst_33 [2] : vector<6x4x4xf32> to vector<6x4xf32>
    %94 = vector.shape_cast %93 : vector<6x4xf32> to vector<6x4x1xf32>
    %95 = vector.broadcast %94 : vector<6x4x1xf32> to vector<6x4x4xf32>
    %96 = arith.subf %92, %95 : vector<6x4x4xf32>
    %97 = math.exp %96 : vector<6x4x4xf32>
    %cst_34 = arith.constant dense<0.000000e+00> : vector<6x4xf32>
    %98 = vector.multi_reduction <add>, %97, %cst_34 [2] : vector<6x4x4xf32> to vector<6x4xf32>
    %99 = vector.shape_cast %98 : vector<6x4xf32> to vector<6x4x1xf32>
    %100 = vector.broadcast %99 : vector<6x4x1xf32> to vector<6x4x4xf32>
    %101 = arith.divf %97, %100 : vector<6x4x4xf32>
    %102 = vector.broadcast %30 : vector<1x1x32xf32> to vector<6x4x32xf32>
    %103 = arith.mulf %72, %102 : vector<6x4x32xf32>
    "tpu.trace_start"() <{level = 10 : i32, message = "nst,ntd->nsd"}> : () -> ()
    %cst_35 = arith.constant dense<0.000000e+00> : vector<6x4x32xf32>
    %104 = tpu.matmul %101, %103, %cst_35 {dimension_numbers = #tpu.dot_dimension_numbers<[2], [1], [1], [2], [0, 0, 0, 1, 1, 2], [0], [0]>} : vector<6x4x4xf32>, vector<6x4x32xf32>, vector<6x4x32xf32> -> vector<6x4x32xf32>
    "tpu.trace_stop"() : () -> ()
    %105 = arith.addf %89, %104 : vector<6x4x32xf32>
    %106 = vector.broadcast %43 : vector<1x1x32xf32> to vector<6x4x32xf32>
    %107 = arith.mulf %60, %106 : vector<6x4x32xf32>
    "tpu.trace_start"() <{level = 10 : i32, message = "nsd,ntd->nst"}> : () -> ()
    %cst_36 = arith.constant dense<0.000000e+00> : vector<6x4x4xf32>
    %108 = tpu.matmul %107, %66, %cst_36 {dimension_numbers = #tpu.dot_dimension_numbers<[2], [2], [1], [1], [0, 0, 0, 1, 1, 1], [0], [0]>} : vector<6x4x32xf32>, vector<6x4x32xf32>, vector<6x4x4xf32> -> vector<6x4x4xf32>
    "tpu.trace_stop"() : () -> ()
    %cst_37 = arith.constant dense<0xFF800000> : vector<6x4xf32>
    %109 = vector.multi_reduction <maximumf>, %108, %cst_37 [2] : vector<6x4x4xf32> to vector<6x4xf32>
    %110 = vector.shape_cast %109 : vector<6x4xf32> to vector<6x4x1xf32>
    %111 = vector.broadcast %110 : vector<6x4x1xf32> to vector<6x4x4xf32>
    %112 = arith.subf %108, %111 : vector<6x4x4xf32>
    %113 = math.exp %112 : vector<6x4x4xf32>
    %cst_38 = arith.constant dense<0.000000e+00> : vector<6x4xf32>
    %114 = vector.multi_reduction <add>, %113, %cst_38 [2] : vector<6x4x4xf32> to vector<6x4xf32>
    %115 = vector.shape_cast %114 : vector<6x4xf32> to vector<6x4x1xf32>
    %116 = vector.broadcast %115 : vector<6x4x1xf32> to vector<6x4x4xf32>
    %117 = arith.divf %113, %116 : vector<6x4x4xf32>
    %118 = vector.broadcast %40 : vector<1x1x32xf32> to vector<6x4x32xf32>
    %119 = arith.mulf %72, %118 : vector<6x4x32xf32>
    "tpu.trace_start"() <{level = 10 : i32, message = "nst,ntd->nsd"}> : () -> ()
    %cst_39 = arith.constant dense<0.000000e+00> : vector<6x4x32xf32>
    %120 = tpu.matmul %117, %119, %cst_39 {dimension_numbers = #tpu.dot_dimension_numbers<[2], [1], [1], [2], [0, 0, 0, 1, 1, 2], [0], [0]>} : vector<6x4x4xf32>, vector<6x4x32xf32>, vector<6x4x32xf32> -> vector<6x4x32xf32>
    "tpu.trace_stop"() : () -> ()
    %121 = arith.addf %105, %120 : vector<6x4x32xf32>
    %122 = vector.broadcast %53 : vector<1x1x32xf32> to vector<6x4x32xf32>
    %123 = arith.mulf %60, %122 : vector<6x4x32xf32>
    "tpu.trace_start"() <{level = 10 : i32, message = "nsd,ntd->nst"}> : () -> ()
    %cst_40 = arith.constant dense<0.000000e+00> : vector<6x4x4xf32>
    %124 = tpu.matmul %123, %66, %cst_40 {dimension_numbers = #tpu.dot_dimension_numbers<[2], [2], [1], [1], [0, 0, 0, 1, 1, 1], [0], [0]>} : vector<6x4x32xf32>, vector<6x4x32xf32>, vector<6x4x4xf32> -> vector<6x4x4xf32>
    "tpu.trace_stop"() : () -> ()
    %cst_41 = arith.constant dense<0xFF800000> : vector<6x4xf32>
    %125 = vector.multi_reduction <maximumf>, %124, %cst_41 [2] : vector<6x4x4xf32> to vector<6x4xf32>
    %126 = vector.shape_cast %125 : vector<6x4xf32> to vector<6x4x1xf32>
    %127 = vector.broadcast %126 : vector<6x4x1xf32> to vector<6x4x4xf32>
    %128 = arith.subf %124, %127 : vector<6x4x4xf32>
    %129 = math.exp %128 : vector<6x4x4xf32>
    %cst_42 = arith.constant dense<0.000000e+00> : vector<6x4xf32>
    %130 = vector.multi_reduction <add>, %129, %cst_42 [2] : vector<6x4x4xf32> to vector<6x4xf32>
    %131 = vector.shape_cast %130 : vector<6x4xf32> to vector<6x4x1xf32>
    %132 = vector.broadcast %131 : vector<6x4x1xf32> to vector<6x4x4xf32>
    %133 = arith.divf %129, %132 : vector<6x4x4xf32>
    %134 = vector.broadcast %50 : vector<1x1x32xf32> to vector<6x4x32xf32>
    %135 = arith.mulf %72, %134 : vector<6x4x32xf32>
    "tpu.trace_start"() <{level = 10 : i32, message = "nst,ntd->nsd"}> : () -> ()
    %cst_43 = arith.constant dense<0.000000e+00> : vector<6x4x32xf32>
    %136 = tpu.matmul %133, %135, %cst_43 {dimension_numbers = #tpu.dot_dimension_numbers<[2], [1], [1], [2], [0, 0, 0, 1, 1, 2], [0], [0]>} : vector<6x4x4xf32>, vector<6x4x32xf32>, vector<6x4x32xf32> -> vector<6x4x32xf32>
    "tpu.trace_stop"() : () -> ()
    %137 = arith.addf %121, %136 : vector<6x4x32xf32>
    %138 = vector.shape_cast %137 : vector<6x4x32xf32> to vector<24x32xf32>
    %c256 = arith.constant 256 : index
    %c0_44 = arith.constant 0 : index
    %139 = vector.load %arg4[%c256, %c0_44] : memref<1120x128xf32, #tpu.memory_space<vmem>>, vector<32x32xf32>
    %cst_45 = arith.constant dense<0.000000e+00> : vector<24x32xf32>
    %140 = tpu.matmul %138, %139, %cst_45 {dimension_numbers = #tpu.dot_dimension_numbers<[1], [0], [0], [1], [0, 0, 1, 1], [], []>} : vector<24x32xf32>, vector<32x32xf32>, vector<24x32xf32> -> vector<24x32xf32>
    %c387 = arith.constant 387 : index
    %c0_46 = arith.constant 0 : index
    %141 = vector.load %arg4[%c387, %c0_46] : memref<1120x128xf32, #tpu.memory_space<vmem>>, vector<1x32xf32>
    %142 = vector.broadcast %141 : vector<1x32xf32> to vector<24x32xf32>
    %143 = arith.addf %140, %142 : vector<24x32xf32>
    %144 = arith.addf %54, %143 : vector<24x32xf32>
    %c390 = arith.constant 390 : index
    %c0_47 = arith.constant 0 : index
    %145 = vector.load %arg4[%c390, %c0_47] : memref<1120x128xf32, #tpu.memory_space<vmem>>, vector<1x32xf32>
    %c391 = arith.constant 391 : index
    %c0_48 = arith.constant 0 : index
    %146 = vector.load %arg4[%c391, %c0_48] : memref<1120x128xf32, #tpu.memory_space<vmem>>, vector<1x32xf32>
    %cst_49 = arith.constant dense<0.000000e+00> : vector<24xf32>
    %147 = vector.multi_reduction <add>, %144, %cst_49 [1] : vector<24x32xf32> to vector<24xf32>
    %148 = vector.shape_cast %147 : vector<24xf32> to vector<24x1xf32>
    %cst_50 = arith.constant 3.200000e+01 : f32
    %149 = vector.broadcast %cst_50 : f32 to vector<24x1xf32>
    %150 = arith.divf %148, %149 : vector<24x1xf32>
    %151 = vector.broadcast %150 : vector<24x1xf32> to vector<24x32xf32>
    %152 = arith.subf %144, %151 : vector<24x32xf32>
    %153 = arith.mulf %152, %152 : vector<24x32xf32>
    %cst_51 = arith.constant dense<0.000000e+00> : vector<24xf32>
    %154 = vector.multi_reduction <add>, %153, %cst_51 [1] : vector<24x32xf32> to vector<24xf32>
    %155 = vector.shape_cast %154 : vector<24xf32> to vector<24x1xf32>
    %cst_52 = arith.constant 3.200000e+01 : f32
    %156 = vector.broadcast %cst_52 : f32 to vector<24x1xf32>
    %157 = arith.divf %155, %156 : vector<24x1xf32>
    %cst_53 = arith.constant 9.99999974E-6 : f32
    %158 = vector.broadcast %cst_53 : f32 to vector<24x1xf32>
    %159 = arith.addf %157, %158 : vector<24x1xf32>
    %160 = math.rsqrt %159 : vector<24x1xf32>
    %161 = vector.broadcast %160 : vector<24x1xf32> to vector<24x32xf32>
    %162 = arith.mulf %152, %161 : vector<24x32xf32>
    %163 = vector.broadcast %145 : vector<1x32xf32> to vector<24x32xf32>
    %164 = arith.mulf %162, %163 : vector<24x32xf32>
    %165 = vector.broadcast %146 : vector<1x32xf32> to vector<24x32xf32>
    %166 = arith.addf %164, %165 : vector<24x32xf32>
    %c288 = arith.constant 288 : index
    %c0_54 = arith.constant 0 : index
    %167 = vector.load %arg4[%c288, %c0_54] : memref<1120x128xf32, #tpu.memory_space<vmem>>, vector<32x64xf32>
    %cst_55 = arith.constant dense<0.000000e+00> : vector<24x64xf32>
    %168 = tpu.matmul %166, %167, %cst_55 {dimension_numbers = #tpu.dot_dimension_numbers<[1], [0], [0], [1], [0, 0, 1, 1], [], []>} : vector<24x32xf32>, vector<32x64xf32>, vector<24x64xf32> -> vector<24x64xf32>
    %c388 = arith.constant 388 : index
    %c0_56 = arith.constant 0 : index
    %169 = vector.load %arg4[%c388, %c0_56] : memref<1120x128xf32, #tpu.memory_space<vmem>>, vector<1x64xf32>
    %170 = vector.broadcast %169 : vector<1x64xf32> to vector<24x64xf32>
    %171 = arith.addf %168, %170 : vector<24x64xf32>
    %cst_57 = arith.constant 0.000000e+00 : f32
    %172 = vector.broadcast %cst_57 : f32 to vector<24x64xf32>
    %173 = arith.maximumf %171, %172 : vector<24x64xf32>
    %c320 = arith.constant 320 : index
    %c0_58 = arith.constant 0 : index
    %174 = vector.load %arg4[%c320, %c0_58] : memref<1120x128xf32, #tpu.memory_space<vmem>>, vector<64x32xf32>
    %cst_59 = arith.constant dense<0.000000e+00> : vector<24x32xf32>
    %175 = tpu.matmul %173, %174, %cst_59 {dimension_numbers = #tpu.dot_dimension_numbers<[1], [0], [0], [1], [0, 0, 1, 1], [], []>} : vector<24x64xf32>, vector<64x32xf32>, vector<24x32xf32> -> vector<24x32xf32>
    %c389 = arith.constant 389 : index
    %c0_60 = arith.constant 0 : index
    %176 = vector.load %arg4[%c389, %c0_60] : memref<1120x128xf32, #tpu.memory_space<vmem>>, vector<1x32xf32>
    %177 = vector.broadcast %176 : vector<1x32xf32> to vector<24x32xf32>
    %178 = arith.addf %175, %177 : vector<24x32xf32>
    %179 = arith.addf %166, %178 : vector<24x32xf32>
    %c392 = arith.constant 392 : index
    %c0_61 = arith.constant 0 : index
    %180 = vector.load %arg4[%c392, %c0_61] : memref<1120x128xf32, #tpu.memory_space<vmem>>, vector<1x32xf32>
    %c393 = arith.constant 393 : index
    %c0_62 = arith.constant 0 : index
    %181 = vector.load %arg4[%c393, %c0_62] : memref<1120x128xf32, #tpu.memory_space<vmem>>, vector<1x32xf32>
    %cst_63 = arith.constant dense<0.000000e+00> : vector<24xf32>
    %182 = vector.multi_reduction <add>, %179, %cst_63 [1] : vector<24x32xf32> to vector<24xf32>
    %183 = vector.shape_cast %182 : vector<24xf32> to vector<24x1xf32>
    %cst_64 = arith.constant 3.200000e+01 : f32
    %184 = vector.broadcast %cst_64 : f32 to vector<24x1xf32>
    %185 = arith.divf %183, %184 : vector<24x1xf32>
    %186 = vector.broadcast %185 : vector<24x1xf32> to vector<24x32xf32>
    %187 = arith.subf %179, %186 : vector<24x32xf32>
    %188 = arith.mulf %187, %187 : vector<24x32xf32>
    %cst_65 = arith.constant dense<0.000000e+00> : vector<24xf32>
    %189 = vector.multi_reduction <add>, %188, %cst_65 [1] : vector<24x32xf32> to vector<24xf32>
    %190 = vector.shape_cast %189 : vector<24xf32> to vector<24x1xf32>
    %cst_66 = arith.constant 3.200000e+01 : f32
    %191 = vector.broadcast %cst_66 : f32 to vector<24x1xf32>
    %192 = arith.divf %190, %191 : vector<24x1xf32>
    %cst_67 = arith.constant 9.99999974E-6 : f32
    %193 = vector.broadcast %cst_67 : f32 to vector<24x1xf32>
    %194 = arith.addf %192, %193 : vector<24x1xf32>
    %195 = math.rsqrt %194 : vector<24x1xf32>
    %196 = vector.broadcast %195 : vector<24x1xf32> to vector<24x32xf32>
    %197 = arith.mulf %187, %196 : vector<24x32xf32>
    %198 = vector.broadcast %180 : vector<1x32xf32> to vector<24x32xf32>
    %199 = arith.mulf %197, %198 : vector<24x32xf32>
    %200 = vector.broadcast %181 : vector<1x32xf32> to vector<24x32xf32>
    %201 = arith.addf %199, %200 : vector<24x32xf32>
    %202 = vector.shape_cast %201 : vector<24x32xf32> to vector<6x4x32xf32>
    %203 = vector.shape_cast %202 : vector<6x4x32xf32> to vector<24x32xf32>
    %c400 = arith.constant 400 : index
    %c0_68 = arith.constant 0 : index
    %204 = vector.load %arg4[%c400, %c0_68] : memref<1120x128xf32, #tpu.memory_space<vmem>>, vector<32x32xf32>
    %cst_69 = arith.constant dense<0.000000e+00> : vector<24x32xf32>
    %205 = tpu.matmul %203, %204, %cst_69 {dimension_numbers = #tpu.dot_dimension_numbers<[1], [0], [0], [1], [0, 0, 1, 1], [], []>} : vector<24x32xf32>, vector<32x32xf32>, vector<24x32xf32> -> vector<24x32xf32>
    %c624 = arith.constant 624 : index
    %c0_70 = arith.constant 0 : index
    %206 = vector.load %arg4[%c624, %c0_70] : memref<1120x128xf32, #tpu.memory_space<vmem>>, vector<1x32xf32>
    %207 = vector.broadcast %206 : vector<1x32xf32> to vector<24x32xf32>
    %208 = arith.addf %205, %207 : vector<24x32xf32>
    %209 = vector.shape_cast %208 : vector<24x32xf32> to vector<6x4x32xf32>
    %c432 = arith.constant 432 : index
    %c0_71 = arith.constant 0 : index
    %210 = vector.load %arg4[%c432, %c0_71] : memref<1120x128xf32, #tpu.memory_space<vmem>>, vector<32x32xf32>
    %cst_72 = arith.constant dense<0.000000e+00> : vector<24x32xf32>
    %211 = tpu.matmul %203, %210, %cst_72 {dimension_numbers = #tpu.dot_dimension_numbers<[1], [0], [0], [1], [0, 0, 1, 1], [], []>} : vector<24x32xf32>, vector<32x32xf32>, vector<24x32xf32> -> vector<24x32xf32>
    %c625 = arith.constant 625 : index
    %c0_73 = arith.constant 0 : index
    %212 = vector.load %arg4[%c625, %c0_73] : memref<1120x128xf32, #tpu.memory_space<vmem>>, vector<1x32xf32>
    %213 = vector.broadcast %212 : vector<1x32xf32> to vector<24x32xf32>
    %214 = arith.addf %211, %213 : vector<24x32xf32>
    %215 = vector.shape_cast %214 : vector<24x32xf32> to vector<6x4x32xf32>
    %c464 = arith.constant 464 : index
    %c0_74 = arith.constant 0 : index
    %216 = vector.load %arg4[%c464, %c0_74] : memref<1120x128xf32, #tpu.memory_space<vmem>>, vector<32x32xf32>
    %cst_75 = arith.constant dense<0.000000e+00> : vector<24x32xf32>
    %217 = tpu.matmul %203, %216, %cst_75 {dimension_numbers = #tpu.dot_dimension_numbers<[1], [0], [0], [1], [0, 0, 1, 1], [], []>} : vector<24x32xf32>, vector<32x32xf32>, vector<24x32xf32> -> vector<24x32xf32>
    %c626 = arith.constant 626 : index
    %c0_76 = arith.constant 0 : index
    %218 = vector.load %arg4[%c626, %c0_76] : memref<1120x128xf32, #tpu.memory_space<vmem>>, vector<1x32xf32>
    %219 = vector.broadcast %218 : vector<1x32xf32> to vector<24x32xf32>
    %220 = arith.addf %217, %219 : vector<24x32xf32>
    %221 = vector.shape_cast %220 : vector<24x32xf32> to vector<6x4x32xf32>
    %cst_77 = arith.constant 0.000000e+00 : f32
    %222 = vector.broadcast %cst_77 : f32 to vector<6x4x32xf32>
    %223 = vector.broadcast %23 : vector<1x1x32xf32> to vector<6x4x32xf32>
    %224 = arith.mulf %209, %223 : vector<6x4x32xf32>
    "tpu.trace_start"() <{level = 10 : i32, message = "nsd,ntd->nst"}> : () -> ()
    %cst_78 = arith.constant dense<0.000000e+00> : vector<6x4x4xf32>
    %225 = tpu.matmul %224, %215, %cst_78 {dimension_numbers = #tpu.dot_dimension_numbers<[2], [2], [1], [1], [0, 0, 0, 1, 1, 1], [0], [0]>} : vector<6x4x32xf32>, vector<6x4x32xf32>, vector<6x4x4xf32> -> vector<6x4x4xf32>
    "tpu.trace_stop"() : () -> ()
    %cst_79 = arith.constant dense<0xFF800000> : vector<6x4xf32>
    %226 = vector.multi_reduction <maximumf>, %225, %cst_79 [2] : vector<6x4x4xf32> to vector<6x4xf32>
    %227 = vector.shape_cast %226 : vector<6x4xf32> to vector<6x4x1xf32>
    %228 = vector.broadcast %227 : vector<6x4x1xf32> to vector<6x4x4xf32>
    %229 = arith.subf %225, %228 : vector<6x4x4xf32>
    %230 = math.exp %229 : vector<6x4x4xf32>
    %cst_80 = arith.constant dense<0.000000e+00> : vector<6x4xf32>
    %231 = vector.multi_reduction <add>, %230, %cst_80 [2] : vector<6x4x4xf32> to vector<6x4xf32>
    %232 = vector.shape_cast %231 : vector<6x4xf32> to vector<6x4x1xf32>
    %233 = vector.broadcast %232 : vector<6x4x1xf32> to vector<6x4x4xf32>
    %234 = arith.divf %230, %233 : vector<6x4x4xf32>
    %235 = vector.broadcast %20 : vector<1x1x32xf32> to vector<6x4x32xf32>
    %236 = arith.mulf %221, %235 : vector<6x4x32xf32>
    "tpu.trace_start"() <{level = 10 : i32, message = "nst,ntd->nsd"}> : () -> ()
    %cst_81 = arith.constant dense<0.000000e+00> : vector<6x4x32xf32>
    %237 = tpu.matmul %234, %236, %cst_81 {dimension_numbers = #tpu.dot_dimension_numbers<[2], [1], [1], [2], [0, 0, 0, 1, 1, 2], [0], [0]>} : vector<6x4x4xf32>, vector<6x4x32xf32>, vector<6x4x32xf32> -> vector<6x4x32xf32>
    "tpu.trace_stop"() : () -> ()
    %238 = arith.addf %222, %237 : vector<6x4x32xf32>
    %239 = vector.broadcast %33 : vector<1x1x32xf32> to vector<6x4x32xf32>
    %240 = arith.mulf %209, %239 : vector<6x4x32xf32>
    "tpu.trace_start"() <{level = 10 : i32, message = "nsd,ntd->nst"}> : () -> ()
    %cst_82 = arith.constant dense<0.000000e+00> : vector<6x4x4xf32>
    %241 = tpu.matmul %240, %215, %cst_82 {dimension_numbers = #tpu.dot_dimension_numbers<[2], [2], [1], [1], [0, 0, 0, 1, 1, 1], [0], [0]>} : vector<6x4x32xf32>, vector<6x4x32xf32>, vector<6x4x4xf32> -> vector<6x4x4xf32>
    "tpu.trace_stop"() : () -> ()
    %cst_83 = arith.constant dense<0xFF800000> : vector<6x4xf32>
    %242 = vector.multi_reduction <maximumf>, %241, %cst_83 [2] : vector<6x4x4xf32> to vector<6x4xf32>
    %243 = vector.shape_cast %242 : vector<6x4xf32> to vector<6x4x1xf32>
    %244 = vector.broadcast %243 : vector<6x4x1xf32> to vector<6x4x4xf32>
    %245 = arith.subf %241, %244 : vector<6x4x4xf32>
    %246 = math.exp %245 : vector<6x4x4xf32>
    %cst_84 = arith.constant dense<0.000000e+00> : vector<6x4xf32>
    %247 = vector.multi_reduction <add>, %246, %cst_84 [2] : vector<6x4x4xf32> to vector<6x4xf32>
    %248 = vector.shape_cast %247 : vector<6x4xf32> to vector<6x4x1xf32>
    %249 = vector.broadcast %248 : vector<6x4x1xf32> to vector<6x4x4xf32>
    %250 = arith.divf %246, %249 : vector<6x4x4xf32>
    %251 = vector.broadcast %30 : vector<1x1x32xf32> to vector<6x4x32xf32>
    %252 = arith.mulf %221, %251 : vector<6x4x32xf32>
    "tpu.trace_start"() <{level = 10 : i32, message = "nst,ntd->nsd"}> : () -> ()
    %cst_85 = arith.constant dense<0.000000e+00> : vector<6x4x32xf32>
    %253 = tpu.matmul %250, %252, %cst_85 {dimension_numbers = #tpu.dot_dimension_numbers<[2], [1], [1], [2], [0, 0, 0, 1, 1, 2], [0], [0]>} : vector<6x4x4xf32>, vector<6x4x32xf32>, vector<6x4x32xf32> -> vector<6x4x32xf32>
    "tpu.trace_stop"() : () -> ()
    %254 = arith.addf %238, %253 : vector<6x4x32xf32>
    %255 = vector.broadcast %43 : vector<1x1x32xf32> to vector<6x4x32xf32>
    %256 = arith.mulf %209, %255 : vector<6x4x32xf32>
    "tpu.trace_start"() <{level = 10 : i32, message = "nsd,ntd->nst"}> : () -> ()
    %cst_86 = arith.constant dense<0.000000e+00> : vector<6x4x4xf32>
    %257 = tpu.matmul %256, %215, %cst_86 {dimension_numbers = #tpu.dot_dimension_numbers<[2], [2], [1], [1], [0, 0, 0, 1, 1, 1], [0], [0]>} : vector<6x4x32xf32>, vector<6x4x32xf32>, vector<6x4x4xf32> -> vector<6x4x4xf32>
    "tpu.trace_stop"() : () -> ()
    %cst_87 = arith.constant dense<0xFF800000> : vector<6x4xf32>
    %258 = vector.multi_reduction <maximumf>, %257, %cst_87 [2] : vector<6x4x4xf32> to vector<6x4xf32>
    %259 = vector.shape_cast %258 : vector<6x4xf32> to vector<6x4x1xf32>
    %260 = vector.broadcast %259 : vector<6x4x1xf32> to vector<6x4x4xf32>
    %261 = arith.subf %257, %260 : vector<6x4x4xf32>
    %262 = math.exp %261 : vector<6x4x4xf32>
    %cst_88 = arith.constant dense<0.000000e+00> : vector<6x4xf32>
    %263 = vector.multi_reduction <add>, %262, %cst_88 [2] : vector<6x4x4xf32> to vector<6x4xf32>
    %264 = vector.shape_cast %263 : vector<6x4xf32> to vector<6x4x1xf32>
    %265 = vector.broadcast %264 : vector<6x4x1xf32> to vector<6x4x4xf32>
    %266 = arith.divf %262, %265 : vector<6x4x4xf32>
    %267 = vector.broadcast %40 : vector<1x1x32xf32> to vector<6x4x32xf32>
    %268 = arith.mulf %221, %267 : vector<6x4x32xf32>
    "tpu.trace_start"() <{level = 10 : i32, message = "nst,ntd->nsd"}> : () -> ()
    %cst_89 = arith.constant dense<0.000000e+00> : vector<6x4x32xf32>
    %269 = tpu.matmul %266, %268, %cst_89 {dimension_numbers = #tpu.dot_dimension_numbers<[2], [1], [1], [2], [0, 0, 0, 1, 1, 2], [0], [0]>} : vector<6x4x4xf32>, vector<6x4x32xf32>, vector<6x4x32xf32> -> vector<6x4x32xf32>
    "tpu.trace_stop"() : () -> ()
    %270 = arith.addf %254, %269 : vector<6x4x32xf32>
    %271 = vector.broadcast %53 : vector<1x1x32xf32> to vector<6x4x32xf32>
    %272 = arith.mulf %209, %271 : vector<6x4x32xf32>
    "tpu.trace_start"() <{level = 10 : i32, message = "nsd,ntd->nst"}> : () -> ()
    %cst_90 = arith.constant dense<0.000000e+00> : vector<6x4x4xf32>
    %273 = tpu.matmul %272, %215, %cst_90 {dimension_numbers = #tpu.dot_dimension_numbers<[2], [2], [1], [1], [0, 0, 0, 1, 1, 1], [0], [0]>} : vector<6x4x32xf32>, vector<6x4x32xf32>, vector<6x4x4xf32> -> vector<6x4x4xf32>
    "tpu.trace_stop"() : () -> ()
    %cst_91 = arith.constant dense<0xFF800000> : vector<6x4xf32>
    %274 = vector.multi_reduction <maximumf>, %273, %cst_91 [2] : vector<6x4x4xf32> to vector<6x4xf32>
    %275 = vector.shape_cast %274 : vector<6x4xf32> to vector<6x4x1xf32>
    %276 = vector.broadcast %275 : vector<6x4x1xf32> to vector<6x4x4xf32>
    %277 = arith.subf %273, %276 : vector<6x4x4xf32>
    %278 = math.exp %277 : vector<6x4x4xf32>
    %cst_92 = arith.constant dense<0.000000e+00> : vector<6x4xf32>
    %279 = vector.multi_reduction <add>, %278, %cst_92 [2] : vector<6x4x4xf32> to vector<6x4xf32>
    %280 = vector.shape_cast %279 : vector<6x4xf32> to vector<6x4x1xf32>
    %281 = vector.broadcast %280 : vector<6x4x1xf32> to vector<6x4x4xf32>
    %282 = arith.divf %278, %281 : vector<6x4x4xf32>
    %283 = vector.broadcast %50 : vector<1x1x32xf32> to vector<6x4x32xf32>
    %284 = arith.mulf %221, %283 : vector<6x4x32xf32>
    "tpu.trace_start"() <{level = 10 : i32, message = "nst,ntd->nsd"}> : () -> ()
    %cst_93 = arith.constant dense<0.000000e+00> : vector<6x4x32xf32>
    %285 = tpu.matmul %282, %284, %cst_93 {dimension_numbers = #tpu.dot_dimension_numbers<[2], [1], [1], [2], [0, 0, 0, 1, 1, 2], [0], [0]>} : vector<6x4x4xf32>, vector<6x4x32xf32>, vector<6x4x32xf32> -> vector<6x4x32xf32>
    "tpu.trace_stop"() : () -> ()
    %286 = arith.addf %270, %285 : vector<6x4x32xf32>
    %287 = vector.shape_cast %286 : vector<6x4x32xf32> to vector<24x32xf32>
    %c496 = arith.constant 496 : index
    %c0_94 = arith.constant 0 : index
    %288 = vector.load %arg4[%c496, %c0_94] : memref<1120x128xf32, #tpu.memory_space<vmem>>, vector<32x32xf32>
    %cst_95 = arith.constant dense<0.000000e+00> : vector<24x32xf32>
    %289 = tpu.matmul %287, %288, %cst_95 {dimension_numbers = #tpu.dot_dimension_numbers<[1], [0], [0], [1], [0, 0, 1, 1], [], []>} : vector<24x32xf32>, vector<32x32xf32>, vector<24x32xf32> -> vector<24x32xf32>
    %c627 = arith.constant 627 : index
    %c0_96 = arith.constant 0 : index
    %290 = vector.load %arg4[%c627, %c0_96] : memref<1120x128xf32, #tpu.memory_space<vmem>>, vector<1x32xf32>
    %291 = vector.broadcast %290 : vector<1x32xf32> to vector<24x32xf32>
    %292 = arith.addf %289, %291 : vector<24x32xf32>
    %293 = arith.addf %203, %292 : vector<24x32xf32>
    %c630 = arith.constant 630 : index
    %c0_97 = arith.constant 0 : index
    %294 = vector.load %arg4[%c630, %c0_97] : memref<1120x128xf32, #tpu.memory_space<vmem>>, vector<1x32xf32>
    %c631 = arith.constant 631 : index
    %c0_98 = arith.constant 0 : index
    %295 = vector.load %arg4[%c631, %c0_98] : memref<1120x128xf32, #tpu.memory_space<vmem>>, vector<1x32xf32>
    %cst_99 = arith.constant dense<0.000000e+00> : vector<24xf32>
    %296 = vector.multi_reduction <add>, %293, %cst_99 [1] : vector<24x32xf32> to vector<24xf32>
    %297 = vector.shape_cast %296 : vector<24xf32> to vector<24x1xf32>
    %cst_100 = arith.constant 3.200000e+01 : f32
    %298 = vector.broadcast %cst_100 : f32 to vector<24x1xf32>
    %299 = arith.divf %297, %298 : vector<24x1xf32>
    %300 = vector.broadcast %299 : vector<24x1xf32> to vector<24x32xf32>
    %301 = arith.subf %293, %300 : vector<24x32xf32>
    %302 = arith.mulf %301, %301 : vector<24x32xf32>
    %cst_101 = arith.constant dense<0.000000e+00> : vector<24xf32>
    %303 = vector.multi_reduction <add>, %302, %cst_101 [1] : vector<24x32xf32> to vector<24xf32>
    %304 = vector.shape_cast %303 : vector<24xf32> to vector<24x1xf32>
    %cst_102 = arith.constant 3.200000e+01 : f32
    %305 = vector.broadcast %cst_102 : f32 to vector<24x1xf32>
    %306 = arith.divf %304, %305 : vector<24x1xf32>
    %cst_103 = arith.constant 9.99999974E-6 : f32
    %307 = vector.broadcast %cst_103 : f32 to vector<24x1xf32>
    %308 = arith.addf %306, %307 : vector<24x1xf32>
    %309 = math.rsqrt %308 : vector<24x1xf32>
    %310 = vector.broadcast %309 : vector<24x1xf32> to vector<24x32xf32>
    %311 = arith.mulf %301, %310 : vector<24x32xf32>
    %312 = vector.broadcast %294 : vector<1x32xf32> to vector<24x32xf32>
    %313 = arith.mulf %311, %312 : vector<24x32xf32>
    %314 = vector.broadcast %295 : vector<1x32xf32> to vector<24x32xf32>
    %315 = arith.addf %313, %314 : vector<24x32xf32>
    %c528 = arith.constant 528 : index
    %c0_104 = arith.constant 0 : index
    %316 = vector.load %arg4[%c528, %c0_104] : memref<1120x128xf32, #tpu.memory_space<vmem>>, vector<32x64xf32>
    %cst_105 = arith.constant dense<0.000000e+00> : vector<24x64xf32>
    %317 = tpu.matmul %315, %316, %cst_105 {dimension_numbers = #tpu.dot_dimension_numbers<[1], [0], [0], [1], [0, 0, 1, 1], [], []>} : vector<24x32xf32>, vector<32x64xf32>, vector<24x64xf32> -> vector<24x64xf32>
    %c628 = arith.constant 628 : index
    %c0_106 = arith.constant 0 : index
    %318 = vector.load %arg4[%c628, %c0_106] : memref<1120x128xf32, #tpu.memory_space<vmem>>, vector<1x64xf32>
    %319 = vector.broadcast %318 : vector<1x64xf32> to vector<24x64xf32>
    %320 = arith.addf %317, %319 : vector<24x64xf32>
    %cst_107 = arith.constant 0.000000e+00 : f32
    %321 = vector.broadcast %cst_107 : f32 to vector<24x64xf32>
    %322 = arith.maximumf %320, %321 : vector<24x64xf32>
    %c560 = arith.constant 560 : index
    %c0_108 = arith.constant 0 : index
    %323 = vector.load %arg4[%c560, %c0_108] : memref<1120x128xf32, #tpu.memory_space<vmem>>, vector<64x32xf32>
    %cst_109 = arith.constant dense<0.000000e+00> : vector<24x32xf32>
    %324 = tpu.matmul %322, %323, %cst_109 {dimension_numbers = #tpu.dot_dimension_numbers<[1], [0], [0], [1], [0, 0, 1, 1], [], []>} : vector<24x64xf32>, vector<64x32xf32>, vector<24x32xf32> -> vector<24x32xf32>
    %c629 = arith.constant 629 : index
    %c0_110 = arith.constant 0 : index
    %325 = vector.load %arg4[%c629, %c0_110] : memref<1120x128xf32, #tpu.memory_space<vmem>>, vector<1x32xf32>
    %326 = vector.broadcast %325 : vector<1x32xf32> to vector<24x32xf32>
    %327 = arith.addf %324, %326 : vector<24x32xf32>
    %328 = arith.addf %315, %327 : vector<24x32xf32>
    %c632 = arith.constant 632 : index
    %c0_111 = arith.constant 0 : index
    %329 = vector.load %arg4[%c632, %c0_111] : memref<1120x128xf32, #tpu.memory_space<vmem>>, vector<1x32xf32>
    %c633 = arith.constant 633 : index
    %c0_112 = arith.constant 0 : index
    %330 = vector.load %arg4[%c633, %c0_112] : memref<1120x128xf32, #tpu.memory_space<vmem>>, vector<1x32xf32>
    %cst_113 = arith.constant dense<0.000000e+00> : vector<24xf32>
    %331 = vector.multi_reduction <add>, %328, %cst_113 [1] : vector<24x32xf32> to vector<24xf32>
    %332 = vector.shape_cast %331 : vector<24xf32> to vector<24x1xf32>
    %cst_114 = arith.constant 3.200000e+01 : f32
    %333 = vector.broadcast %cst_114 : f32 to vector<24x1xf32>
    %334 = arith.divf %332, %333 : vector<24x1xf32>
    %335 = vector.broadcast %334 : vector<24x1xf32> to vector<24x32xf32>
    %336 = arith.subf %328, %335 : vector<24x32xf32>
    %337 = arith.mulf %336, %336 : vector<24x32xf32>
    %cst_115 = arith.constant dense<0.000000e+00> : vector<24xf32>
    %338 = vector.multi_reduction <add>, %337, %cst_115 [1] : vector<24x32xf32> to vector<24xf32>
    %339 = vector.shape_cast %338 : vector<24xf32> to vector<24x1xf32>
    %cst_116 = arith.constant 3.200000e+01 : f32
    %340 = vector.broadcast %cst_116 : f32 to vector<24x1xf32>
    %341 = arith.divf %339, %340 : vector<24x1xf32>
    %cst_117 = arith.constant 9.99999974E-6 : f32
    %342 = vector.broadcast %cst_117 : f32 to vector<24x1xf32>
    %343 = arith.addf %341, %342 : vector<24x1xf32>
    %344 = math.rsqrt %343 : vector<24x1xf32>
    %345 = vector.broadcast %344 : vector<24x1xf32> to vector<24x32xf32>
    %346 = arith.mulf %336, %345 : vector<24x32xf32>
    %347 = vector.broadcast %329 : vector<1x32xf32> to vector<24x32xf32>
    %348 = arith.mulf %346, %347 : vector<24x32xf32>
    %349 = vector.broadcast %330 : vector<1x32xf32> to vector<24x32xf32>
    %350 = arith.addf %348, %349 : vector<24x32xf32>
    %351 = vector.shape_cast %350 : vector<24x32xf32> to vector<6x4x32xf32>
    %c634 = arith.constant 634 : index
    %c0_118 = arith.constant 0 : index
    %352 = vector.load %arg4[%c634, %c0_118] : memref<1120x128xf32, #tpu.memory_space<vmem>>, vector<1x32xf32>
    %c635 = arith.constant 635 : index
    %c0_119 = arith.constant 0 : index
    %353 = vector.load %arg4[%c635, %c0_119] : memref<1120x128xf32, #tpu.memory_space<vmem>>, vector<1x32xf32>
    %354 = vector.extract_strided_slice %351 {offsets = [0, 0, 0], sizes = [6, 1, 32], strides = [1, 1, 1]} : vector<6x4x32xf32> to vector<6x1x32xf32>
    %355 = vector.shape_cast %354 : vector<6x1x32xf32> to vector<6x32xf32>
    %cst_120 = arith.constant dense<0.000000e+00> : vector<6xf32>
    %356 = vector.multi_reduction <add>, %355, %cst_120 [1] : vector<6x32xf32> to vector<6xf32>
    %357 = vector.shape_cast %356 : vector<6xf32> to vector<6x1xf32>
    %cst_121 = arith.constant 3.200000e+01 : f32
    %358 = vector.broadcast %cst_121 : f32 to vector<6x1xf32>
    %359 = arith.divf %357, %358 : vector<6x1xf32>
    %360 = vector.broadcast %359 : vector<6x1xf32> to vector<6x32xf32>
    %361 = arith.subf %355, %360 : vector<6x32xf32>
    %362 = arith.mulf %361, %361 : vector<6x32xf32>
    %cst_122 = arith.constant dense<0.000000e+00> : vector<6xf32>
    %363 = vector.multi_reduction <add>, %362, %cst_122 [1] : vector<6x32xf32> to vector<6xf32>
    %364 = vector.shape_cast %363 : vector<6xf32> to vector<6x1xf32>
    %cst_123 = arith.constant 3.200000e+01 : f32
    %365 = vector.broadcast %cst_123 : f32 to vector<6x1xf32>
    %366 = arith.divf %364, %365 : vector<6x1xf32>
    %cst_124 = arith.constant 9.99999974E-6 : f32
    %367 = vector.broadcast %cst_124 : f32 to vector<6x1xf32>
    %368 = arith.addf %366, %367 : vector<6x1xf32>
    %369 = math.rsqrt %368 : vector<6x1xf32>
    %370 = vector.broadcast %369 : vector<6x1xf32> to vector<6x32xf32>
    %371 = arith.mulf %361, %370 : vector<6x32xf32>
    %372 = vector.broadcast %352 : vector<1x32xf32> to vector<6x32xf32>
    %373 = arith.mulf %371, %372 : vector<6x32xf32>
    %374 = vector.broadcast %353 : vector<1x32xf32> to vector<6x32xf32>
    %375 = arith.addf %373, %374 : vector<6x32xf32>
    %c0_125 = arith.constant 0 : index
    %c0_126 = arith.constant 0 : index
    %c0_127 = arith.constant 0 : index
    %376 = vector.load %arg2[%c0_125, %c0_126, %c0_127] : memref<1x1x32xf32, #tpu.memory_space<vmem>>, vector<1x1x32xf32>
    %377 = vector.shape_cast %376 : vector<1x1x32xf32> to vector<1x32xf32>
    %c16 = arith.constant 16 : index
    %c0_128 = arith.constant 0 : index
    %378 = vector.load %arg4[%c16, %c0_128] : memref<1120x128xf32, #tpu.memory_space<vmem>>, vector<32x32xf32>
    %cst_129 = arith.constant dense<0.000000e+00> : vector<1x32xf32>
    %379 = tpu.matmul %377, %378, %cst_129 {dimension_numbers = #tpu.dot_dimension_numbers<[1], [0], [0], [1], [0, 0, 1, 1], [], []>} : vector<1x32xf32>, vector<32x32xf32>, vector<1x32xf32> -> vector<1x32xf32>
    %c154 = arith.constant 154 : index
    %c0_130 = arith.constant 0 : index
    %380 = vector.load %arg4[%c154, %c0_130] : memref<1120x128xf32, #tpu.memory_space<vmem>>, vector<1x32xf32>
    %381 = arith.addf %379, %380 : vector<1x32xf32>
    %c48 = arith.constant 48 : index
    %c0_131 = arith.constant 0 : index
    %382 = vector.load %arg4[%c48, %c0_131] : memref<1120x128xf32, #tpu.memory_space<vmem>>, vector<32x32xf32>
    %cst_132 = arith.constant dense<0.000000e+00> : vector<6x32xf32>
    %383 = tpu.matmul %375, %382, %cst_132 {dimension_numbers = #tpu.dot_dimension_numbers<[1], [0], [0], [1], [0, 0, 1, 1], [], []>} : vector<6x32xf32>, vector<32x32xf32>, vector<6x32xf32> -> vector<6x32xf32>
    %c155 = arith.constant 155 : index
    %c0_133 = arith.constant 0 : index
    %384 = vector.load %arg4[%c155, %c0_133] : memref<1120x128xf32, #tpu.memory_space<vmem>>, vector<1x32xf32>
    %385 = vector.broadcast %384 : vector<1x32xf32> to vector<6x32xf32>
    %386 = arith.addf %383, %385 : vector<6x32xf32>
    %c0_134 = arith.constant 0 : index
    %c0_135 = arith.constant 0 : index
    %387 = vector.load %arg7[%c0_134, %c0_135] : memref<8x32xf32, #tpu.memory_space<vmem>>, vector<1x32xf32>
    tpu.vector_store %arg7[%c0_134, %c0_135], %381 {strides = array<i32>} : memref<8x32xf32, #tpu.memory_space<vmem>>, vector<1x32xf32>,
    %c1 = arith.constant 1 : index
    %c0_136 = arith.constant 0 : index
    %388 = vector.load %arg7[%c1, %c0_136] : memref<8x32xf32, #tpu.memory_space<vmem>>, vector<6x32xf32>
    tpu.vector_store %arg7[%c1, %c0_136], %386 {strides = array<i32>} : memref<8x32xf32, #tpu.memory_space<vmem>>, vector<6x32xf32>,
    %c0_137 = arith.constant 0 : index
    %c0_138 = arith.constant 0 : index
    %389 = vector.load %arg7[%c0_137, %c0_138] : memref<8x32xf32, #tpu.memory_space<vmem>>, vector<7x32xf32>
    %c136 = arith.constant 136 : index
    %c0_139 = arith.constant 0 : index
    %390 = vector.load %arg4[%c136, %c0_139] : memref<1120x128xf32, #tpu.memory_space<vmem>>, vector<7x32xf32>
    %391 = arith.addf %389, %390 : vector<7x32xf32>
    %392 = vector.shape_cast %391 : vector<7x32xf32> to vector<1x7x32xf32>
    %393 = tpu.iota {dimensions = array<i32: 2>} : vector<1x1x32xi32>
    %c0_i32_140 = arith.constant 0 : i32
    %394 = vector.broadcast %c0_i32_140 : i32 to vector<1x1x32xi32>
    %395 = arith.cmpi sge, %393, %394 : vector<1x1x32xi32>
    %c8_i32_141 = arith.constant 8 : i32
    %396 = vector.broadcast %c8_i32_141 : i32 to vector<1x1x32xi32>
    %397 = arith.cmpi slt, %393, %396 : vector<1x1x32xi32>
    %398 = arith.andi %395, %397 : vector<1x1x32xi1>
    %399 = arith.extui %398 : vector<1x1x32xi1> to vector<1x1x32xi32>
    %400 = arith.sitofp %399 : vector<1x1x32xi32> to vector<1x1x32xf32>
    %cst_142 = arith.constant 0.353553385 : f32
    %cst_143 = arith.constant 0.000000e+00 : f32
    %401 = vector.broadcast %cst_142 : f32 to vector<1x1x32xf32>
    %402 = vector.broadcast %cst_143 : f32 to vector<1x1x32xf32>
    %403 = arith.select %398, %401, %402 : vector<1x1x32xi1>, vector<1x1x32xf32>
    %c8_i32_144 = arith.constant 8 : i32
    %404 = vector.broadcast %c8_i32_144 : i32 to vector<1x1x32xi32>
    %405 = arith.cmpi sge, %393, %404 : vector<1x1x32xi32>
    %c16_i32_145 = arith.constant 16 : i32
    %406 = vector.broadcast %c16_i32_145 : i32 to vector<1x1x32xi32>
    %407 = arith.cmpi slt, %393, %406 : vector<1x1x32xi32>
    %408 = arith.andi %405, %407 : vector<1x1x32xi1>
    %409 = arith.extui %408 : vector<1x1x32xi1> to vector<1x1x32xi32>
    %410 = arith.sitofp %409 : vector<1x1x32xi32> to vector<1x1x32xf32>
    %cst_146 = arith.constant 0.353553385 : f32
    %cst_147 = arith.constant 0.000000e+00 : f32
    %411 = vector.broadcast %cst_146 : f32 to vector<1x1x32xf32>
    %412 = vector.broadcast %cst_147 : f32 to vector<1x1x32xf32>
    %413 = arith.select %408, %411, %412 : vector<1x1x32xi1>, vector<1x1x32xf32>
    %c16_i32_148 = arith.constant 16 : i32
    %414 = vector.broadcast %c16_i32_148 : i32 to vector<1x1x32xi32>
    %415 = arith.cmpi sge, %393, %414 : vector<1x1x32xi32>
    %c24_i32_149 = arith.constant 24 : i32
    %416 = vector.broadcast %c24_i32_149 : i32 to vector<1x1x32xi32>
    %417 = arith.cmpi slt, %393, %416 : vector<1x1x32xi32>
    %418 = arith.andi %415, %417 : vector<1x1x32xi1>
    %419 = arith.extui %418 : vector<1x1x32xi1> to vector<1x1x32xi32>
    %420 = arith.sitofp %419 : vector<1x1x32xi32> to vector<1x1x32xf32>
    %cst_150 = arith.constant 0.353553385 : f32
    %cst_151 = arith.constant 0.000000e+00 : f32
    %421 = vector.broadcast %cst_150 : f32 to vector<1x1x32xf32>
    %422 = vector.broadcast %cst_151 : f32 to vector<1x1x32xf32>
    %423 = arith.select %418, %421, %422 : vector<1x1x32xi1>, vector<1x1x32xf32>
    %c24_i32_152 = arith.constant 24 : i32
    %424 = vector.broadcast %c24_i32_152 : i32 to vector<1x1x32xi32>
    %425 = arith.cmpi sge, %393, %424 : vector<1x1x32xi32>
    %c32_i32_153 = arith.constant 32 : i32
    %426 = vector.broadcast %c32_i32_153 : i32 to vector<1x1x32xi32>
    %427 = arith.cmpi slt, %393, %426 : vector<1x1x32xi32>
    %428 = arith.andi %425, %427 : vector<1x1x32xi1>
    %429 = arith.extui %428 : vector<1x1x32xi1> to vector<1x1x32xi32>
    %430 = arith.sitofp %429 : vector<1x1x32xi32> to vector<1x1x32xf32>
    %cst_154 = arith.constant 0.353553385 : f32
    %cst_155 = arith.constant 0.000000e+00 : f32
    %431 = vector.broadcast %cst_154 : f32 to vector<1x1x32xf32>
    %432 = vector.broadcast %cst_155 : f32 to vector<1x1x32xf32>
    %433 = arith.select %428, %431, %432 : vector<1x1x32xi1>, vector<1x1x32xf32>
    %434 = vector.shape_cast %392 : vector<1x7x32xf32> to vector<7x32xf32>
    %c640 = arith.constant 640 : index
    %c0_156 = arith.constant 0 : index
    %435 = vector.load %arg4[%c640, %c0_156] : memref<1120x128xf32, #tpu.memory_space<vmem>>, vector<32x32xf32>
    %cst_157 = arith.constant dense<0.000000e+00> : vector<7x32xf32>
    %436 = tpu.matmul %434, %435, %cst_157 {dimension_numbers = #tpu.dot_dimension_numbers<[1], [0], [0], [1], [0, 0, 1, 1], [], []>} : vector<7x32xf32>, vector<32x32xf32>, vector<7x32xf32> -> vector<7x32xf32>
    %c864 = arith.constant 864 : index
    %c0_158 = arith.constant 0 : index
    %437 = vector.load %arg4[%c864, %c0_158] : memref<1120x128xf32, #tpu.memory_space<vmem>>, vector<1x32xf32>
    %438 = vector.broadcast %437 : vector<1x32xf32> to vector<7x32xf32>
    %439 = arith.addf %436, %438 : vector<7x32xf32>
    %440 = vector.shape_cast %439 : vector<7x32xf32> to vector<1x7x32xf32>
    %c672 = arith.constant 672 : index
    %c0_159 = arith.constant 0 : index
    %441 = vector.load %arg4[%c672, %c0_159] : memref<1120x128xf32, #tpu.memory_space<vmem>>, vector<32x32xf32>
    %cst_160 = arith.constant dense<0.000000e+00> : vector<7x32xf32>
    %442 = tpu.matmul %434, %441, %cst_160 {dimension_numbers = #tpu.dot_dimension_numbers<[1], [0], [0], [1], [0, 0, 1, 1], [], []>} : vector<7x32xf32>, vector<32x32xf32>, vector<7x32xf32> -> vector<7x32xf32>
    %c865 = arith.constant 865 : index
    %c0_161 = arith.constant 0 : index
    %443 = vector.load %arg4[%c865, %c0_161] : memref<1120x128xf32, #tpu.memory_space<vmem>>, vector<1x32xf32>
    %444 = vector.broadcast %443 : vector<1x32xf32> to vector<7x32xf32>
    %445 = arith.addf %442, %444 : vector<7x32xf32>
    %446 = vector.shape_cast %445 : vector<7x32xf32> to vector<1x7x32xf32>
    %c704 = arith.constant 704 : index
    %c0_162 = arith.constant 0 : index
    %447 = vector.load %arg4[%c704, %c0_162] : memref<1120x128xf32, #tpu.memory_space<vmem>>, vector<32x32xf32>
    %cst_163 = arith.constant dense<0.000000e+00> : vector<7x32xf32>
    %448 = tpu.matmul %434, %447, %cst_163 {dimension_numbers = #tpu.dot_dimension_numbers<[1], [0], [0], [1], [0, 0, 1, 1], [], []>} : vector<7x32xf32>, vector<32x32xf32>, vector<7x32xf32> -> vector<7x32xf32>
    %c866 = arith.constant 866 : index
    %c0_164 = arith.constant 0 : index
    %449 = vector.load %arg4[%c866, %c0_164] : memref<1120x128xf32, #tpu.memory_space<vmem>>, vector<1x32xf32>
    %450 = vector.broadcast %449 : vector<1x32xf32> to vector<7x32xf32>
    %451 = arith.addf %448, %450 : vector<7x32xf32>
    %452 = vector.shape_cast %451 : vector<7x32xf32> to vector<1x7x32xf32>
    %cst_165 = arith.constant 0.000000e+00 : f32
    %453 = vector.broadcast %cst_165 : f32 to vector<1x7x32xf32>
    %454 = vector.broadcast %403 : vector<1x1x32xf32> to vector<1x7x32xf32>
    %455 = arith.mulf %440, %454 : vector<1x7x32xf32>
    "tpu.trace_start"() <{level = 10 : i32, message = "nsd,ntd->nst"}> : () -> ()
    %cst_166 = arith.constant dense<0.000000e+00> : vector<1x7x7xf32>
    %456 = tpu.matmul %455, %446, %cst_166 {dimension_numbers = #tpu.dot_dimension_numbers<[2], [2], [1], [1], [0, 0, 0, 1, 1, 1], [0], [0]>} : vector<1x7x32xf32>, vector<1x7x32xf32>, vector<1x7x7xf32> -> vector<1x7x7xf32>
    "tpu.trace_stop"() : () -> ()
    %cst_167 = arith.constant dense<0xFF800000> : vector<1x7xf32>
    %457 = vector.multi_reduction <maximumf>, %456, %cst_167 [2] : vector<1x7x7xf32> to vector<1x7xf32>
    %458 = vector.shape_cast %457 : vector<1x7xf32> to vector<1x7x1xf32>
    %459 = vector.broadcast %458 : vector<1x7x1xf32> to vector<1x7x7xf32>
    %460 = arith.subf %456, %459 : vector<1x7x7xf32>
    %461 = math.exp %460 : vector<1x7x7xf32>
    %cst_168 = arith.constant dense<0.000000e+00> : vector<1x7xf32>
    %462 = vector.multi_reduction <add>, %461, %cst_168 [2] : vector<1x7x7xf32> to vector<1x7xf32>
    %463 = vector.shape_cast %462 : vector<1x7xf32> to vector<1x7x1xf32>
    %464 = vector.broadcast %463 : vector<1x7x1xf32> to vector<1x7x7xf32>
    %465 = arith.divf %461, %464 : vector<1x7x7xf32>
    %466 = vector.broadcast %400 : vector<1x1x32xf32> to vector<1x7x32xf32>
    %467 = arith.mulf %452, %466 : vector<1x7x32xf32>
    "tpu.trace_start"() <{level = 10 : i32, message = "nst,ntd->nsd"}> : () -> ()
    %cst_169 = arith.constant dense<0.000000e+00> : vector<1x7x32xf32>
    %468 = tpu.matmul %465, %467, %cst_169 {dimension_numbers = #tpu.dot_dimension_numbers<[2], [1], [1], [2], [0, 0, 0, 1, 1, 2], [0], [0]>} : vector<1x7x7xf32>, vector<1x7x32xf32>, vector<1x7x32xf32> -> vector<1x7x32xf32>
    "tpu.trace_stop"() : () -> ()
    %469 = arith.addf %453, %468 : vector<1x7x32xf32>
    %470 = vector.broadcast %413 : vector<1x1x32xf32> to vector<1x7x32xf32>
    %471 = arith.mulf %440, %470 : vector<1x7x32xf32>
    "tpu.trace_start"() <{level = 10 : i32, message = "nsd,ntd->nst"}> : () -> ()
    %cst_170 = arith.constant dense<0.000000e+00> : vector<1x7x7xf32>
    %472 = tpu.matmul %471, %446, %cst_170 {dimension_numbers = #tpu.dot_dimension_numbers<[2], [2], [1], [1], [0, 0, 0, 1, 1, 1], [0], [0]>} : vector<1x7x32xf32>, vector<1x7x32xf32>, vector<1x7x7xf32> -> vector<1x7x7xf32>
    "tpu.trace_stop"() : () -> ()
    %cst_171 = arith.constant dense<0xFF800000> : vector<1x7xf32>
    %473 = vector.multi_reduction <maximumf>, %472, %cst_171 [2] : vector<1x7x7xf32> to vector<1x7xf32>
    %474 = vector.shape_cast %473 : vector<1x7xf32> to vector<1x7x1xf32>
    %475 = vector.broadcast %474 : vector<1x7x1xf32> to vector<1x7x7xf32>
    %476 = arith.subf %472, %475 : vector<1x7x7xf32>
    %477 = math.exp %476 : vector<1x7x7xf32>
    %cst_172 = arith.constant dense<0.000000e+00> : vector<1x7xf32>
    %478 = vector.multi_reduction <add>, %477, %cst_172 [2] : vector<1x7x7xf32> to vector<1x7xf32>
    %479 = vector.shape_cast %478 : vector<1x7xf32> to vector<1x7x1xf32>
    %480 = vector.broadcast %479 : vector<1x7x1xf32> to vector<1x7x7xf32>
    %481 = arith.divf %477, %480 : vector<1x7x7xf32>
    %482 = vector.broadcast %410 : vector<1x1x32xf32> to vector<1x7x32xf32>
    %483 = arith.mulf %452, %482 : vector<1x7x32xf32>
    "tpu.trace_start"() <{level = 10 : i32, message = "nst,ntd->nsd"}> : () -> ()
    %cst_173 = arith.constant dense<0.000000e+00> : vector<1x7x32xf32>
    %484 = tpu.matmul %481, %483, %cst_173 {dimension_numbers = #tpu.dot_dimension_numbers<[2], [1], [1], [2], [0, 0, 0, 1, 1, 2], [0], [0]>} : vector<1x7x7xf32>, vector<1x7x32xf32>, vector<1x7x32xf32> -> vector<1x7x32xf32>
    "tpu.trace_stop"() : () -> ()
    %485 = arith.addf %469, %484 : vector<1x7x32xf32>
    %486 = vector.broadcast %423 : vector<1x1x32xf32> to vector<1x7x32xf32>
    %487 = arith.mulf %440, %486 : vector<1x7x32xf32>
    "tpu.trace_start"() <{level = 10 : i32, message = "nsd,ntd->nst"}> : () -> ()
    %cst_174 = arith.constant dense<0.000000e+00> : vector<1x7x7xf32>
    %488 = tpu.matmul %487, %446, %cst_174 {dimension_numbers = #tpu.dot_dimension_numbers<[2], [2], [1], [1], [0, 0, 0, 1, 1, 1], [0], [0]>} : vector<1x7x32xf32>, vector<1x7x32xf32>, vector<1x7x7xf32> -> vector<1x7x7xf32>
    "tpu.trace_stop"() : () -> ()
    %cst_175 = arith.constant dense<0xFF800000> : vector<1x7xf32>
    %489 = vector.multi_reduction <maximumf>, %488, %cst_175 [2] : vector<1x7x7xf32> to vector<1x7xf32>
    %490 = vector.shape_cast %489 : vector<1x7xf32> to vector<1x7x1xf32>
    %491 = vector.broadcast %490 : vector<1x7x1xf32> to vector<1x7x7xf32>
    %492 = arith.subf %488, %491 : vector<1x7x7xf32>
    %493 = math.exp %492 : vector<1x7x7xf32>
    %cst_176 = arith.constant dense<0.000000e+00> : vector<1x7xf32>
    %494 = vector.multi_reduction <add>, %493, %cst_176 [2] : vector<1x7x7xf32> to vector<1x7xf32>
    %495 = vector.shape_cast %494 : vector<1x7xf32> to vector<1x7x1xf32>
    %496 = vector.broadcast %495 : vector<1x7x1xf32> to vector<1x7x7xf32>
    %497 = arith.divf %493, %496 : vector<1x7x7xf32>
    %498 = vector.broadcast %420 : vector<1x1x32xf32> to vector<1x7x32xf32>
    %499 = arith.mulf %452, %498 : vector<1x7x32xf32>
    "tpu.trace_start"() <{level = 10 : i32, message = "nst,ntd->nsd"}> : () -> ()
    %cst_177 = arith.constant dense<0.000000e+00> : vector<1x7x32xf32>
    %500 = tpu.matmul %497, %499, %cst_177 {dimension_numbers = #tpu.dot_dimension_numbers<[2], [1], [1], [2], [0, 0, 0, 1, 1, 2], [0], [0]>} : vector<1x7x7xf32>, vector<1x7x32xf32>, vector<1x7x32xf32> -> vector<1x7x32xf32>
    "tpu.trace_stop"() : () -> ()
    %501 = arith.addf %485, %500 : vector<1x7x32xf32>
    %502 = vector.broadcast %433 : vector<1x1x32xf32> to vector<1x7x32xf32>
    %503 = arith.mulf %440, %502 : vector<1x7x32xf32>
    "tpu.trace_start"() <{level = 10 : i32, message = "nsd,ntd->nst"}> : () -> ()
    %cst_178 = arith.constant dense<0.000000e+00> : vector<1x7x7xf32>
    %504 = tpu.matmul %503, %446, %cst_178 {dimension_numbers = #tpu.dot_dimension_numbers<[2], [2], [1], [1], [0, 0, 0, 1, 1, 1], [0], [0]>} : vector<1x7x32xf32>, vector<1x7x32xf32>, vector<1x7x7xf32> -> vector<1x7x7xf32>
    "tpu.trace_stop"() : () -> ()
    %cst_179 = arith.constant dense<0xFF800000> : vector<1x7xf32>
    %505 = vector.multi_reduction <maximumf>, %504, %cst_179 [2] : vector<1x7x7xf32> to vector<1x7xf32>
    %506 = vector.shape_cast %505 : vector<1x7xf32> to vector<1x7x1xf32>
    %507 = vector.broadcast %506 : vector<1x7x1xf32> to vector<1x7x7xf32>
    %508 = arith.subf %504, %507 : vector<1x7x7xf32>
    %509 = math.exp %508 : vector<1x7x7xf32>
    %cst_180 = arith.constant dense<0.000000e+00> : vector<1x7xf32>
    %510 = vector.multi_reduction <add>, %509, %cst_180 [2] : vector<1x7x7xf32> to vector<1x7xf32>
    %511 = vector.shape_cast %510 : vector<1x7xf32> to vector<1x7x1xf32>
    %512 = vector.broadcast %511 : vector<1x7x1xf32> to vector<1x7x7xf32>
    %513 = arith.divf %509, %512 : vector<1x7x7xf32>
    %514 = vector.broadcast %430 : vector<1x1x32xf32> to vector<1x7x32xf32>
    %515 = arith.mulf %452, %514 : vector<1x7x32xf32>
    "tpu.trace_start"() <{level = 10 : i32, message = "nst,ntd->nsd"}> : () -> ()
    %cst_181 = arith.constant dense<0.000000e+00> : vector<1x7x32xf32>
    %516 = tpu.matmul %513, %515, %cst_181 {dimension_numbers = #tpu.dot_dimension_numbers<[2], [1], [1], [2], [0, 0, 0, 1, 1, 2], [0], [0]>} : vector<1x7x7xf32>, vector<1x7x32xf32>, vector<1x7x32xf32> -> vector<1x7x32xf32>
    "tpu.trace_stop"() : () -> ()
    %517 = arith.addf %501, %516 : vector<1x7x32xf32>
    %518 = vector.shape_cast %517 : vector<1x7x32xf32> to vector<7x32xf32>
    %c736 = arith.constant 736 : index
    %c0_182 = arith.constant 0 : index
    %519 = vector.load %arg4[%c736, %c0_182] : memref<1120x128xf32, #tpu.memory_space<vmem>>, vector<32x32xf32>
    %cst_183 = arith.constant dense<0.000000e+00> : vector<7x32xf32>
    %520 = tpu.matmul %518, %519, %cst_183 {dimension_numbers = #tpu.dot_dimension_numbers<[1], [0], [0], [1], [0, 0, 1, 1], [], []>} : vector<7x32xf32>, vector<32x32xf32>, vector<7x32xf32> -> vector<7x32xf32>
    %c867 = arith.constant 867 : index
    %c0_184 = arith.constant 0 : index
    %521 = vector.load %arg4[%c867, %c0_184] : memref<1120x128xf32, #tpu.memory_space<vmem>>, vector<1x32xf32>
    %522 = vector.broadcast %521 : vector<1x32xf32> to vector<7x32xf32>
    %523 = arith.addf %520, %522 : vector<7x32xf32>
    %524 = arith.addf %434, %523 : vector<7x32xf32>
    %c870 = arith.constant 870 : index
    %c0_185 = arith.constant 0 : index
    %525 = vector.load %arg4[%c870, %c0_185] : memref<1120x128xf32, #tpu.memory_space<vmem>>, vector<1x32xf32>
    %c871 = arith.constant 871 : index
    %c0_186 = arith.constant 0 : index
    %526 = vector.load %arg4[%c871, %c0_186] : memref<1120x128xf32, #tpu.memory_space<vmem>>, vector<1x32xf32>
    %cst_187 = arith.constant dense<0.000000e+00> : vector<7xf32>
    %527 = vector.multi_reduction <add>, %524, %cst_187 [1] : vector<7x32xf32> to vector<7xf32>
    %528 = vector.shape_cast %527 : vector<7xf32> to vector<7x1xf32>
    %cst_188 = arith.constant 3.200000e+01 : f32
    %529 = vector.broadcast %cst_188 : f32 to vector<7x1xf32>
    %530 = arith.divf %528, %529 : vector<7x1xf32>
    %531 = vector.broadcast %530 : vector<7x1xf32> to vector<7x32xf32>
    %532 = arith.subf %524, %531 : vector<7x32xf32>
    %533 = arith.mulf %532, %532 : vector<7x32xf32>
    %cst_189 = arith.constant dense<0.000000e+00> : vector<7xf32>
    %534 = vector.multi_reduction <add>, %533, %cst_189 [1] : vector<7x32xf32> to vector<7xf32>
    %535 = vector.shape_cast %534 : vector<7xf32> to vector<7x1xf32>
    %cst_190 = arith.constant 3.200000e+01 : f32
    %536 = vector.broadcast %cst_190 : f32 to vector<7x1xf32>
    %537 = arith.divf %535, %536 : vector<7x1xf32>
    %cst_191 = arith.constant 9.99999974E-6 : f32
    %538 = vector.broadcast %cst_191 : f32 to vector<7x1xf32>
    %539 = arith.addf %537, %538 : vector<7x1xf32>
    %540 = math.rsqrt %539 : vector<7x1xf32>
    %541 = vector.broadcast %540 : vector<7x1xf32> to vector<7x32xf32>
    %542 = arith.mulf %532, %541 : vector<7x32xf32>
    %543 = vector.broadcast %525 : vector<1x32xf32> to vector<7x32xf32>
    %544 = arith.mulf %542, %543 : vector<7x32xf32>
    %545 = vector.broadcast %526 : vector<1x32xf32> to vector<7x32xf32>
    %546 = arith.addf %544, %545 : vector<7x32xf32>
    %c768 = arith.constant 768 : index
    %c0_192 = arith.constant 0 : index
    %547 = vector.load %arg4[%c768, %c0_192] : memref<1120x128xf32, #tpu.memory_space<vmem>>, vector<32x64xf32>
    %cst_193 = arith.constant dense<0.000000e+00> : vector<7x64xf32>
    %548 = tpu.matmul %546, %547, %cst_193 {dimension_numbers = #tpu.dot_dimension_numbers<[1], [0], [0], [1], [0, 0, 1, 1], [], []>} : vector<7x32xf32>, vector<32x64xf32>, vector<7x64xf32> -> vector<7x64xf32>
    %c868 = arith.constant 868 : index
    %c0_194 = arith.constant 0 : index
    %549 = vector.load %arg4[%c868, %c0_194] : memref<1120x128xf32, #tpu.memory_space<vmem>>, vector<1x64xf32>
    %550 = vector.broadcast %549 : vector<1x64xf32> to vector<7x64xf32>
    %551 = arith.addf %548, %550 : vector<7x64xf32>
    %cst_195 = arith.constant 0.000000e+00 : f32
    %552 = vector.broadcast %cst_195 : f32 to vector<7x64xf32>
    %553 = arith.maximumf %551, %552 : vector<7x64xf32>
    %c800 = arith.constant 800 : index
    %c0_196 = arith.constant 0 : index
    %554 = vector.load %arg4[%c800, %c0_196] : memref<1120x128xf32, #tpu.memory_space<vmem>>, vector<64x32xf32>
    %cst_197 = arith.constant dense<0.000000e+00> : vector<7x32xf32>
    %555 = tpu.matmul %553, %554, %cst_197 {dimension_numbers = #tpu.dot_dimension_numbers<[1], [0], [0], [1], [0, 0, 1, 1], [], []>} : vector<7x64xf32>, vector<64x32xf32>, vector<7x32xf32> -> vector<7x32xf32>
    %c869 = arith.constant 869 : index
    %c0_198 = arith.constant 0 : index
    %556 = vector.load %arg4[%c869, %c0_198] : memref<1120x128xf32, #tpu.memory_space<vmem>>, vector<1x32xf32>
    %557 = vector.broadcast %556 : vector<1x32xf32> to vector<7x32xf32>
    %558 = arith.addf %555, %557 : vector<7x32xf32>
    %559 = arith.addf %546, %558 : vector<7x32xf32>
    %c872 = arith.constant 872 : index
    %c0_199 = arith.constant 0 : index
    %560 = vector.load %arg4[%c872, %c0_199] : memref<1120x128xf32, #tpu.memory_space<vmem>>, vector<1x32xf32>
    %c873 = arith.constant 873 : index
    %c0_200 = arith.constant 0 : index
    %561 = vector.load %arg4[%c873, %c0_200] : memref<1120x128xf32, #tpu.memory_space<vmem>>, vector<1x32xf32>
    %cst_201 = arith.constant dense<0.000000e+00> : vector<7xf32>
    %562 = vector.multi_reduction <add>, %559, %cst_201 [1] : vector<7x32xf32> to vector<7xf32>
    %563 = vector.shape_cast %562 : vector<7xf32> to vector<7x1xf32>
    %cst_202 = arith.constant 3.200000e+01 : f32
    %564 = vector.broadcast %cst_202 : f32 to vector<7x1xf32>
    %565 = arith.divf %563, %564 : vector<7x1xf32>
    %566 = vector.broadcast %565 : vector<7x1xf32> to vector<7x32xf32>
    %567 = arith.subf %559, %566 : vector<7x32xf32>
    %568 = arith.mulf %567, %567 : vector<7x32xf32>
    %cst_203 = arith.constant dense<0.000000e+00> : vector<7xf32>
    %569 = vector.multi_reduction <add>, %568, %cst_203 [1] : vector<7x32xf32> to vector<7xf32>
    %570 = vector.shape_cast %569 : vector<7xf32> to vector<7x1xf32>
    %cst_204 = arith.constant 3.200000e+01 : f32
    %571 = vector.broadcast %cst_204 : f32 to vector<7x1xf32>
    %572 = arith.divf %570, %571 : vector<7x1xf32>
    %cst_205 = arith.constant 9.99999974E-6 : f32
    %573 = vector.broadcast %cst_205 : f32 to vector<7x1xf32>
    %574 = arith.addf %572, %573 : vector<7x1xf32>
    %575 = math.rsqrt %574 : vector<7x1xf32>
    %576 = vector.broadcast %575 : vector<7x1xf32> to vector<7x32xf32>
    %577 = arith.mulf %567, %576 : vector<7x32xf32>
    %578 = vector.broadcast %560 : vector<1x32xf32> to vector<7x32xf32>
    %579 = arith.mulf %577, %578 : vector<7x32xf32>
    %580 = vector.broadcast %561 : vector<1x32xf32> to vector<7x32xf32>
    %581 = arith.addf %579, %580 : vector<7x32xf32>
    %582 = vector.shape_cast %581 : vector<7x32xf32> to vector<1x7x32xf32>
    %583 = vector.shape_cast %582 : vector<1x7x32xf32> to vector<7x32xf32>
    %c880 = arith.constant 880 : index
    %c0_206 = arith.constant 0 : index
    %584 = vector.load %arg4[%c880, %c0_206] : memref<1120x128xf32, #tpu.memory_space<vmem>>, vector<32x32xf32>
    %cst_207 = arith.constant dense<0.000000e+00> : vector<7x32xf32>
    %585 = tpu.matmul %583, %584, %cst_207 {dimension_numbers = #tpu.dot_dimension_numbers<[1], [0], [0], [1], [0, 0, 1, 1], [], []>} : vector<7x32xf32>, vector<32x32xf32>, vector<7x32xf32> -> vector<7x32xf32>
    %c1104 = arith.constant 1104 : index
    %c0_208 = arith.constant 0 : index
    %586 = vector.load %arg4[%c1104, %c0_208] : memref<1120x128xf32, #tpu.memory_space<vmem>>, vector<1x32xf32>
    %587 = vector.broadcast %586 : vector<1x32xf32> to vector<7x32xf32>
    %588 = arith.addf %585, %587 : vector<7x32xf32>
    %589 = vector.shape_cast %588 : vector<7x32xf32> to vector<1x7x32xf32>
    %c912 = arith.constant 912 : index
    %c0_209 = arith.constant 0 : index
    %590 = vector.load %arg4[%c912, %c0_209] : memref<1120x128xf32, #tpu.memory_space<vmem>>, vector<32x32xf32>
    %cst_210 = arith.constant dense<0.000000e+00> : vector<7x32xf32>
    %591 = tpu.matmul %583, %590, %cst_210 {dimension_numbers = #tpu.dot_dimension_numbers<[1], [0], [0], [1], [0, 0, 1, 1], [], []>} : vector<7x32xf32>, vector<32x32xf32>, vector<7x32xf32> -> vector<7x32xf32>
    %c1105 = arith.constant 1105 : index
    %c0_211 = arith.constant 0 : index
    %592 = vector.load %arg4[%c1105, %c0_211] : memref<1120x128xf32, #tpu.memory_space<vmem>>, vector<1x32xf32>
    %593 = vector.broadcast %592 : vector<1x32xf32> to vector<7x32xf32>
    %594 = arith.addf %591, %593 : vector<7x32xf32>
    %595 = vector.shape_cast %594 : vector<7x32xf32> to vector<1x7x32xf32>
    %c944 = arith.constant 944 : index
    %c0_212 = arith.constant 0 : index
    %596 = vector.load %arg4[%c944, %c0_212] : memref<1120x128xf32, #tpu.memory_space<vmem>>, vector<32x32xf32>
    %cst_213 = arith.constant dense<0.000000e+00> : vector<7x32xf32>
    %597 = tpu.matmul %583, %596, %cst_213 {dimension_numbers = #tpu.dot_dimension_numbers<[1], [0], [0], [1], [0, 0, 1, 1], [], []>} : vector<7x32xf32>, vector<32x32xf32>, vector<7x32xf32> -> vector<7x32xf32>
    %c1106 = arith.constant 1106 : index
    %c0_214 = arith.constant 0 : index
    %598 = vector.load %arg4[%c1106, %c0_214] : memref<1120x128xf32, #tpu.memory_space<vmem>>, vector<1x32xf32>
    %599 = vector.broadcast %598 : vector<1x32xf32> to vector<7x32xf32>
    %600 = arith.addf %597, %599 : vector<7x32xf32>
    %601 = vector.shape_cast %600 : vector<7x32xf32> to vector<1x7x32xf32>
    %cst_215 = arith.constant 0.000000e+00 : f32
    %602 = vector.broadcast %cst_215 : f32 to vector<1x7x32xf32>
    %603 = vector.broadcast %403 : vector<1x1x32xf32> to vector<1x7x32xf32>
    %604 = arith.mulf %589, %603 : vector<1x7x32xf32>
    "tpu.trace_start"() <{level = 10 : i32, message = "nsd,ntd->nst"}> : () -> ()
    %cst_216 = arith.constant dense<0.000000e+00> : vector<1x7x7xf32>
    %605 = tpu.matmul %604, %595, %cst_216 {dimension_numbers = #tpu.dot_dimension_numbers<[2], [2], [1], [1], [0, 0, 0, 1, 1, 1], [0], [0]>} : vector<1x7x32xf32>, vector<1x7x32xf32>, vector<1x7x7xf32> -> vector<1x7x7xf32>
    "tpu.trace_stop"() : () -> ()
    %cst_217 = arith.constant dense<0xFF800000> : vector<1x7xf32>
    %606 = vector.multi_reduction <maximumf>, %605, %cst_217 [2] : vector<1x7x7xf32> to vector<1x7xf32>
    %607 = vector.shape_cast %606 : vector<1x7xf32> to vector<1x7x1xf32>
    %608 = vector.broadcast %607 : vector<1x7x1xf32> to vector<1x7x7xf32>
    %609 = arith.subf %605, %608 : vector<1x7x7xf32>
    %610 = math.exp %609 : vector<1x7x7xf32>
    %cst_218 = arith.constant dense<0.000000e+00> : vector<1x7xf32>
    %611 = vector.multi_reduction <add>, %610, %cst_218 [2] : vector<1x7x7xf32> to vector<1x7xf32>
    %612 = vector.shape_cast %611 : vector<1x7xf32> to vector<1x7x1xf32>
    %613 = vector.broadcast %612 : vector<1x7x1xf32> to vector<1x7x7xf32>
    %614 = arith.divf %610, %613 : vector<1x7x7xf32>
    %615 = vector.broadcast %400 : vector<1x1x32xf32> to vector<1x7x32xf32>
    %616 = arith.mulf %601, %615 : vector<1x7x32xf32>
    "tpu.trace_start"() <{level = 10 : i32, message = "nst,ntd->nsd"}> : () -> ()
    %cst_219 = arith.constant dense<0.000000e+00> : vector<1x7x32xf32>
    %617 = tpu.matmul %614, %616, %cst_219 {dimension_numbers = #tpu.dot_dimension_numbers<[2], [1], [1], [2], [0, 0, 0, 1, 1, 2], [0], [0]>} : vector<1x7x7xf32>, vector<1x7x32xf32>, vector<1x7x32xf32> -> vector<1x7x32xf32>
    "tpu.trace_stop"() : () -> ()
    %618 = arith.addf %602, %617 : vector<1x7x32xf32>
    %619 = vector.broadcast %413 : vector<1x1x32xf32> to vector<1x7x32xf32>
    %620 = arith.mulf %589, %619 : vector<1x7x32xf32>
    "tpu.trace_start"() <{level = 10 : i32, message = "nsd,ntd->nst"}> : () -> ()
    %cst_220 = arith.constant dense<0.000000e+00> : vector<1x7x7xf32>
    %621 = tpu.matmul %620, %595, %cst_220 {dimension_numbers = #tpu.dot_dimension_numbers<[2], [2], [1], [1], [0, 0, 0, 1, 1, 1], [0], [0]>} : vector<1x7x32xf32>, vector<1x7x32xf32>, vector<1x7x7xf32> -> vector<1x7x7xf32>
    "tpu.trace_stop"() : () -> ()
    %cst_221 = arith.constant dense<0xFF800000> : vector<1x7xf32>
    %622 = vector.multi_reduction <maximumf>, %621, %cst_221 [2] : vector<1x7x7xf32> to vector<1x7xf32>
    %623 = vector.shape_cast %622 : vector<1x7xf32> to vector<1x7x1xf32>
    %624 = vector.broadcast %623 : vector<1x7x1xf32> to vector<1x7x7xf32>
    %625 = arith.subf %621, %624 : vector<1x7x7xf32>
    %626 = math.exp %625 : vector<1x7x7xf32>
    %cst_222 = arith.constant dense<0.000000e+00> : vector<1x7xf32>
    %627 = vector.multi_reduction <add>, %626, %cst_222 [2] : vector<1x7x7xf32> to vector<1x7xf32>
    %628 = vector.shape_cast %627 : vector<1x7xf32> to vector<1x7x1xf32>
    %629 = vector.broadcast %628 : vector<1x7x1xf32> to vector<1x7x7xf32>
    %630 = arith.divf %626, %629 : vector<1x7x7xf32>
    %631 = vector.broadcast %410 : vector<1x1x32xf32> to vector<1x7x32xf32>
    %632 = arith.mulf %601, %631 : vector<1x7x32xf32>
    "tpu.trace_start"() <{level = 10 : i32, message = "nst,ntd->nsd"}> : () -> ()
    %cst_223 = arith.constant dense<0.000000e+00> : vector<1x7x32xf32>
    %633 = tpu.matmul %630, %632, %cst_223 {dimension_numbers = #tpu.dot_dimension_numbers<[2], [1], [1], [2], [0, 0, 0, 1, 1, 2], [0], [0]>} : vector<1x7x7xf32>, vector<1x7x32xf32>, vector<1x7x32xf32> -> vector<1x7x32xf32>
    "tpu.trace_stop"() : () -> ()
    %634 = arith.addf %618, %633 : vector<1x7x32xf32>
    %635 = vector.broadcast %423 : vector<1x1x32xf32> to vector<1x7x32xf32>
    %636 = arith.mulf %589, %635 : vector<1x7x32xf32>
    "tpu.trace_start"() <{level = 10 : i32, message = "nsd,ntd->nst"}> : () -> ()
    %cst_224 = arith.constant dense<0.000000e+00> : vector<1x7x7xf32>
    %637 = tpu.matmul %636, %595, %cst_224 {dimension_numbers = #tpu.dot_dimension_numbers<[2], [2], [1], [1], [0, 0, 0, 1, 1, 1], [0], [0]>} : vector<1x7x32xf32>, vector<1x7x32xf32>, vector<1x7x7xf32> -> vector<1x7x7xf32>
    "tpu.trace_stop"() : () -> ()
    %cst_225 = arith.constant dense<0xFF800000> : vector<1x7xf32>
    %638 = vector.multi_reduction <maximumf>, %637, %cst_225 [2] : vector<1x7x7xf32> to vector<1x7xf32>
    %639 = vector.shape_cast %638 : vector<1x7xf32> to vector<1x7x1xf32>
    %640 = vector.broadcast %639 : vector<1x7x1xf32> to vector<1x7x7xf32>
    %641 = arith.subf %637, %640 : vector<1x7x7xf32>
    %642 = math.exp %641 : vector<1x7x7xf32>
    %cst_226 = arith.constant dense<0.000000e+00> : vector<1x7xf32>
    %643 = vector.multi_reduction <add>, %642, %cst_226 [2] : vector<1x7x7xf32> to vector<1x7xf32>
    %644 = vector.shape_cast %643 : vector<1x7xf32> to vector<1x7x1xf32>
    %645 = vector.broadcast %644 : vector<1x7x1xf32> to vector<1x7x7xf32>
    %646 = arith.divf %642, %645 : vector<1x7x7xf32>
    %647 = vector.broadcast %420 : vector<1x1x32xf32> to vector<1x7x32xf32>
    %648 = arith.mulf %601, %647 : vector<1x7x32xf32>
    "tpu.trace_start"() <{level = 10 : i32, message = "nst,ntd->nsd"}> : () -> ()
    %cst_227 = arith.constant dense<0.000000e+00> : vector<1x7x32xf32>
    %649 = tpu.matmul %646, %648, %cst_227 {dimension_numbers = #tpu.dot_dimension_numbers<[2], [1], [1], [2], [0, 0, 0, 1, 1, 2], [0], [0]>} : vector<1x7x7xf32>, vector<1x7x32xf32>, vector<1x7x32xf32> -> vector<1x7x32xf32>
    "tpu.trace_stop"() : () -> ()
    %650 = arith.addf %634, %649 : vector<1x7x32xf32>
    %651 = vector.broadcast %433 : vector<1x1x32xf32> to vector<1x7x32xf32>
    %652 = arith.mulf %589, %651 : vector<1x7x32xf32>
    "tpu.trace_start"() <{level = 10 : i32, message = "nsd,ntd->nst"}> : () -> ()
    %cst_228 = arith.constant dense<0.000000e+00> : vector<1x7x7xf32>
    %653 = tpu.matmul %652, %595, %cst_228 {dimension_numbers = #tpu.dot_dimension_numbers<[2], [2], [1], [1], [0, 0, 0, 1, 1, 1], [0], [0]>} : vector<1x7x32xf32>, vector<1x7x32xf32>, vector<1x7x7xf32> -> vector<1x7x7xf32>
    "tpu.trace_stop"() : () -> ()
    %cst_229 = arith.constant dense<0xFF800000> : vector<1x7xf32>
    %654 = vector.multi_reduction <maximumf>, %653, %cst_229 [2] : vector<1x7x7xf32> to vector<1x7xf32>
    %655 = vector.shape_cast %654 : vector<1x7xf32> to vector<1x7x1xf32>
    %656 = vector.broadcast %655 : vector<1x7x1xf32> to vector<1x7x7xf32>
    %657 = arith.subf %653, %656 : vector<1x7x7xf32>
    %658 = math.exp %657 : vector<1x7x7xf32>
    %cst_230 = arith.constant dense<0.000000e+00> : vector<1x7xf32>
    %659 = vector.multi_reduction <add>, %658, %cst_230 [2] : vector<1x7x7xf32> to vector<1x7xf32>
    %660 = vector.shape_cast %659 : vector<1x7xf32> to vector<1x7x1xf32>
    %661 = vector.broadcast %660 : vector<1x7x1xf32> to vector<1x7x7xf32>
    %662 = arith.divf %658, %661 : vector<1x7x7xf32>
    %663 = vector.broadcast %430 : vector<1x1x32xf32> to vector<1x7x32xf32>
    %664 = arith.mulf %601, %663 : vector<1x7x32xf32>
    "tpu.trace_start"() <{level = 10 : i32, message = "nst,ntd->nsd"}> : () -> ()
    %cst_231 = arith.constant dense<0.000000e+00> : vector<1x7x32xf32>
    %665 = tpu.matmul %662, %664, %cst_231 {dimension_numbers = #tpu.dot_dimension_numbers<[2], [1], [1], [2], [0, 0, 0, 1, 1, 2], [0], [0]>} : vector<1x7x7xf32>, vector<1x7x32xf32>, vector<1x7x32xf32> -> vector<1x7x32xf32>
    "tpu.trace_stop"() : () -> ()
    %666 = arith.addf %650, %665 : vector<1x7x32xf32>
    %667 = vector.shape_cast %666 : vector<1x7x32xf32> to vector<7x32xf32>
    %c976 = arith.constant 976 : index
    %c0_232 = arith.constant 0 : index
    %668 = vector.load %arg4[%c976, %c0_232] : memref<1120x128xf32, #tpu.memory_space<vmem>>, vector<32x32xf32>
    %cst_233 = arith.constant dense<0.000000e+00> : vector<7x32xf32>
    %669 = tpu.matmul %667, %668, %cst_233 {dimension_numbers = #tpu.dot_dimension_numbers<[1], [0], [0], [1], [0, 0, 1, 1], [], []>} : vector<7x32xf32>, vector<32x32xf32>, vector<7x32xf32> -> vector<7x32xf32>
    %c1107 = arith.constant 1107 : index
    %c0_234 = arith.constant 0 : index
    %670 = vector.load %arg4[%c1107, %c0_234] : memref<1120x128xf32, #tpu.memory_space<vmem>>, vector<1x32xf32>
    %671 = vector.broadcast %670 : vector<1x32xf32> to vector<7x32xf32>
    %672 = arith.addf %669, %671 : vector<7x32xf32>
    %673 = arith.addf %583, %672 : vector<7x32xf32>
    %c1110 = arith.constant 1110 : index
    %c0_235 = arith.constant 0 : index
    %674 = vector.load %arg4[%c1110, %c0_235] : memref<1120x128xf32, #tpu.memory_space<vmem>>, vector<1x32xf32>
    %c1111 = arith.constant 1111 : index
    %c0_236 = arith.constant 0 : index
    %675 = vector.load %arg4[%c1111, %c0_236] : memref<1120x128xf32, #tpu.memory_space<vmem>>, vector<1x32xf32>
    %cst_237 = arith.constant dense<0.000000e+00> : vector<7xf32>
    %676 = vector.multi_reduction <add>, %673, %cst_237 [1] : vector<7x32xf32> to vector<7xf32>
    %677 = vector.shape_cast %676 : vector<7xf32> to vector<7x1xf32>
    %cst_238 = arith.constant 3.200000e+01 : f32
    %678 = vector.broadcast %cst_238 : f32 to vector<7x1xf32>
    %679 = arith.divf %677, %678 : vector<7x1xf32>
    %680 = vector.broadcast %679 : vector<7x1xf32> to vector<7x32xf32>
    %681 = arith.subf %673, %680 : vector<7x32xf32>
    %682 = arith.mulf %681, %681 : vector<7x32xf32>
    %cst_239 = arith.constant dense<0.000000e+00> : vector<7xf32>
    %683 = vector.multi_reduction <add>, %682, %cst_239 [1] : vector<7x32xf32> to vector<7xf32>
    %684 = vector.shape_cast %683 : vector<7xf32> to vector<7x1xf32>
    %cst_240 = arith.constant 3.200000e+01 : f32
    %685 = vector.broadcast %cst_240 : f32 to vector<7x1xf32>
    %686 = arith.divf %684, %685 : vector<7x1xf32>
    %cst_241 = arith.constant 9.99999974E-6 : f32
    %687 = vector.broadcast %cst_241 : f32 to vector<7x1xf32>
    %688 = arith.addf %686, %687 : vector<7x1xf32>
    %689 = math.rsqrt %688 : vector<7x1xf32>
    %690 = vector.broadcast %689 : vector<7x1xf32> to vector<7x32xf32>
    %691 = arith.mulf %681, %690 : vector<7x32xf32>
    %692 = vector.broadcast %674 : vector<1x32xf32> to vector<7x32xf32>
    %693 = arith.mulf %691, %692 : vector<7x32xf32>
    %694 = vector.broadcast %675 : vector<1x32xf32> to vector<7x32xf32>
    %695 = arith.addf %693, %694 : vector<7x32xf32>
    %c1008 = arith.constant 1008 : index
    %c0_242 = arith.constant 0 : index
    %696 = vector.load %arg4[%c1008, %c0_242] : memref<1120x128xf32, #tpu.memory_space<vmem>>, vector<32x64xf32>
    %cst_243 = arith.constant dense<0.000000e+00> : vector<7x64xf32>
    %697 = tpu.matmul %695, %696, %cst_243 {dimension_numbers = #tpu.dot_dimension_numbers<[1], [0], [0], [1], [0, 0, 1, 1], [], []>} : vector<7x32xf32>, vector<32x64xf32>, vector<7x64xf32> -> vector<7x64xf32>
    %c1108 = arith.constant 1108 : index
    %c0_244 = arith.constant 0 : index
    %698 = vector.load %arg4[%c1108, %c0_244] : memref<1120x128xf32, #tpu.memory_space<vmem>>, vector<1x64xf32>
    %699 = vector.broadcast %698 : vector<1x64xf32> to vector<7x64xf32>
    %700 = arith.addf %697, %699 : vector<7x64xf32>
    %cst_245 = arith.constant 0.000000e+00 : f32
    %701 = vector.broadcast %cst_245 : f32 to vector<7x64xf32>
    %702 = arith.maximumf %700, %701 : vector<7x64xf32>
    %c1040 = arith.constant 1040 : index
    %c0_246 = arith.constant 0 : index
    %703 = vector.load %arg4[%c1040, %c0_246] : memref<1120x128xf32, #tpu.memory_space<vmem>>, vector<64x32xf32>
    %cst_247 = arith.constant dense<0.000000e+00> : vector<7x32xf32>
    %704 = tpu.matmul %702, %703, %cst_247 {dimension_numbers = #tpu.dot_dimension_numbers<[1], [0], [0], [1], [0, 0, 1, 1], [], []>} : vector<7x64xf32>, vector<64x32xf32>, vector<7x32xf32> -> vector<7x32xf32>
    %c1109 = arith.constant 1109 : index
    %c0_248 = arith.constant 0 : index
    %705 = vector.load %arg4[%c1109, %c0_248] : memref<1120x128xf32, #tpu.memory_space<vmem>>, vector<1x32xf32>
    %706 = vector.broadcast %705 : vector<1x32xf32> to vector<7x32xf32>
    %707 = arith.addf %704, %706 : vector<7x32xf32>
    %708 = arith.addf %695, %707 : vector<7x32xf32>
    %c1112 = arith.constant 1112 : index
    %c0_249 = arith.constant 0 : index
    %709 = vector.load %arg4[%c1112, %c0_249] : memref<1120x128xf32, #tpu.memory_space<vmem>>, vector<1x32xf32>
    %c1113 = arith.constant 1113 : index
    %c0_250 = arith.constant 0 : index
    %710 = vector.load %arg4[%c1113, %c0_250] : memref<1120x128xf32, #tpu.memory_space<vmem>>, vector<1x32xf32>
    %cst_251 = arith.constant dense<0.000000e+00> : vector<7xf32>
    %711 = vector.multi_reduction <add>, %708, %cst_251 [1] : vector<7x32xf32> to vector<7xf32>
    %712 = vector.shape_cast %711 : vector<7xf32> to vector<7x1xf32>
    %cst_252 = arith.constant 3.200000e+01 : f32
    %713 = vector.broadcast %cst_252 : f32 to vector<7x1xf32>
    %714 = arith.divf %712, %713 : vector<7x1xf32>
    %715 = vector.broadcast %714 : vector<7x1xf32> to vector<7x32xf32>
    %716 = arith.subf %708, %715 : vector<7x32xf32>
    %717 = arith.mulf %716, %716 : vector<7x32xf32>
    %cst_253 = arith.constant dense<0.000000e+00> : vector<7xf32>
    %718 = vector.multi_reduction <add>, %717, %cst_253 [1] : vector<7x32xf32> to vector<7xf32>
    %719 = vector.shape_cast %718 : vector<7xf32> to vector<7x1xf32>
    %cst_254 = arith.constant 3.200000e+01 : f32
    %720 = vector.broadcast %cst_254 : f32 to vector<7x1xf32>
    %721 = arith.divf %719, %720 : vector<7x1xf32>
    %cst_255 = arith.constant 9.99999974E-6 : f32
    %722 = vector.broadcast %cst_255 : f32 to vector<7x1xf32>
    %723 = arith.addf %721, %722 : vector<7x1xf32>
    %724 = math.rsqrt %723 : vector<7x1xf32>
    %725 = vector.broadcast %724 : vector<7x1xf32> to vector<7x32xf32>
    %726 = arith.mulf %716, %725 : vector<7x32xf32>
    %727 = vector.broadcast %709 : vector<1x32xf32> to vector<7x32xf32>
    %728 = arith.mulf %726, %727 : vector<7x32xf32>
    %729 = vector.broadcast %710 : vector<1x32xf32> to vector<7x32xf32>
    %730 = arith.addf %728, %729 : vector<7x32xf32>
    %731 = vector.shape_cast %730 : vector<7x32xf32> to vector<1x7x32xf32>
    %c1114 = arith.constant 1114 : index
    %c0_256 = arith.constant 0 : index
    %732 = vector.load %arg4[%c1114, %c0_256] : memref<1120x128xf32, #tpu.memory_space<vmem>>, vector<1x32xf32>
    %c1115 = arith.constant 1115 : index
    %c0_257 = arith.constant 0 : index
    %733 = vector.load %arg4[%c1115, %c0_257] : memref<1120x128xf32, #tpu.memory_space<vmem>>, vector<1x32xf32>
    %734 = vector.extract_strided_slice %731 {offsets = [0, 0, 0], sizes = [1, 1, 32], strides = [1, 1, 1]} : vector<1x7x32xf32> to vector<1x1x32xf32>
    %735 = vector.shape_cast %734 : vector<1x1x32xf32> to vector<1x32xf32>
    %cst_258 = arith.constant dense<0.000000e+00> : vector<1xf32>
    %736 = vector.multi_reduction <add>, %735, %cst_258 [1] : vector<1x32xf32> to vector<1xf32>
    %737 = vector.shape_cast %736 : vector<1xf32> to vector<1x1xf32>
    %cst_259 = arith.constant 3.200000e+01 : f32
    %738 = vector.broadcast %cst_259 : f32 to vector<1x1xf32>
    %739 = arith.divf %737, %738 : vector<1x1xf32>
    %740 = vector.broadcast %739 : vector<1x1xf32> to vector<1x32xf32>
    %741 = arith.subf %735, %740 : vector<1x32xf32>
    %742 = arith.mulf %741, %741 : vector<1x32xf32>
    %cst_260 = arith.constant dense<0.000000e+00> : vector<1xf32>
    %743 = vector.multi_reduction <add>, %742, %cst_260 [1] : vector<1x32xf32> to vector<1xf32>
    %744 = vector.shape_cast %743 : vector<1xf32> to vector<1x1xf32>
    %cst_261 = arith.constant 3.200000e+01 : f32
    %745 = vector.broadcast %cst_261 : f32 to vector<1x1xf32>
    %746 = arith.divf %744, %745 : vector<1x1xf32>
    %cst_262 = arith.constant 9.99999974E-6 : f32
    %747 = vector.broadcast %cst_262 : f32 to vector<1x1xf32>
    %748 = arith.addf %746, %747 : vector<1x1xf32>
    %749 = math.rsqrt %748 : vector<1x1xf32>
    %750 = vector.broadcast %749 : vector<1x1xf32> to vector<1x32xf32>
    %751 = arith.mulf %741, %750 : vector<1x32xf32>
    %752 = arith.mulf %751, %732 : vector<1x32xf32>
    %753 = arith.addf %752, %733 : vector<1x32xf32>
    %c80 = arith.constant 80 : index
    %c0_263 = arith.constant 0 : index
    %754 = vector.load %arg4[%c80, %c0_263] : memref<1120x128xf32, #tpu.memory_space<vmem>>, vector<32x3xf32>
    %cst_264 = arith.constant dense<0.000000e+00> : vector<1x3xf32>
    %755 = tpu.matmul %753, %754, %cst_264 {dimension_numbers = #tpu.dot_dimension_numbers<[1], [0], [0], [1], [0, 0, 1, 1], [], []>} : vector<1x32xf32>, vector<32x3xf32>, vector<1x3xf32> -> vector<1x3xf32>
    %c156 = arith.constant 156 : index
    %c0_265 = arith.constant 0 : index
    %756 = vector.load %arg4[%c156, %c0_265] : memref<1120x128xf32, #tpu.memory_space<vmem>>, vector<1x3xf32>
    %757 = arith.addf %755, %756 : vector<1x3xf32>
    %c0_266 = arith.constant 0 : index
    %c0_267 = arith.constant 0 : index
    %c0_268 = arith.constant 0 : index
    %758 = vector.load %arg6[%c0_266, %c0_267, %c0_268] : memref<1x1x3xf32, #tpu.memory_space<vmem>>, vector<1x1x3xf32>
    %759 = vector.shape_cast %758 : vector<1x1x3xf32> to vector<1x3xf32>
    %760 = vector.shape_cast %757 : vector<1x3xf32> to vector<1x1x3xf32>
    tpu.vector_store %arg6[%c0_266, %c0_267, %c0_268], %760 {strides = array<i32>} : memref<1x1x3xf32, #tpu.memory_space<vmem>>, vector<1x1x3xf32>,
    %c0_269 = arith.constant 0 : index
    %c0_270 = arith.constant 0 : index
    %c0_271 = arith.constant 0 : index
    %761 = vector.load %arg3[%c0_269, %c0_270, %c0_271] : memref<1x1x3xf32, #tpu.memory_space<vmem>>, vector<1x1x3xf32>
    %762 = vector.shape_cast %761 : vector<1x1x3xf32> to vector<1x3xf32>
    %763 = arith.addf %762, %757 : vector<1x3xf32>
    %c0_272 = arith.constant 0 : index
    %c0_273 = arith.constant 0 : index
    %c0_274 = arith.constant 0 : index
    %764 = vector.load %arg5[%c0_272, %c0_273, %c0_274] : memref<1x1x3xf32, #tpu.memory_space<vmem>>, vector<1x1x3xf32>
    %765 = vector.shape_cast %764 : vector<1x1x3xf32> to vector<1x3xf32>
    %766 = vector.shape_cast %763 : vector<1x3xf32> to vector<1x1x3xf32>
    tpu.vector_store %arg5[%c0_272, %c0_273, %c0_274], %766 {strides = array<i32>} : memref<1x1x3xf32, #tpu.memory_space<vmem>>, vector<1x1x3xf32>,
    return
  }
  func.func @transform_0(%arg0: i32) -> (i32, i32, i32, i32) {
    %c0_i32 = arith.constant 0 : i32
    %c0_i32_0 = arith.constant 0 : i32
    %c0_i32_1 = arith.constant 0 : i32
    %c0_i32_2 = arith.constant 0 : i32
    return %arg0, %c0_i32, %c0_i32_0, %c0_i32_1 : i32, i32, i32, i32
  }
  func.func @transform_1(%arg0: i32) -> (i32, i32, i32) {
    %c0_i32 = arith.constant 0 : i32
    %c0_i32_0 = arith.constant 0 : i32
    %c0_i32_1 = arith.constant 0 : i32
    return %arg0, %c0_i32, %c0_i32_0 : i32, i32, i32
  }
  func.func @transform_2(%arg0: i32) -> (i32, i32, i32) {
    %c0_i32 = arith.constant 0 : i32
    %c0_i32_0 = arith.constant 0 : i32
    %c0_i32_1 = arith.constant 0 : i32
    return %arg0, %c0_i32, %c0_i32_0 : i32, i32, i32
  }
  func.func @transform_3(%arg0: i32) -> (i32, i32) {
    %c0_i32 = arith.constant 0 : i32
    %c0_i32_0 = arith.constant 0 : i32
    %c0_i32_1 = arith.constant 0 : i32
    return %c0_i32, %c0_i32_0 : i32, i32
  }
  func.func @transform_4(%arg0: i32) -> (i32, i32, i32) {
    %c0_i32 = arith.constant 0 : i32
    %c0_i32_0 = arith.constant 0 : i32
    %c0_i32_1 = arith.constant 0 : i32
    return %arg0, %c0_i32, %c0_i32_0 : i32, i32, i32
  }
  func.func @transform_5(%arg0: i32) -> (i32, i32, i32) {
    %c0_i32 = arith.constant 0 : i32
    %c0_i32_0 = arith.constant 0 : i32
    %c0_i32_1 = arith.constant 0 : i32
    return %arg0, %c0_i32, %c0_i32_0 : i32, i32, i32
  }
}

</mosaic_0001>

<bundles_post_ra>
// kernel: forward.1
= control target key start
LH: loop header
LB: loop body
LE: loop exit
PB: predicated region body
PF: predicated region fallthrough
CT: control target
= control target key end

     0   :  { %11 = vsyncpa [#allocation4], 0  ;;  %s18014_s0 = inlined_call_operand.hbm [shape: f32[2,6,4,16], index: 0, kind: input, shape index: {}]   ;;  %s18015_s1 = inlined_call_operand.vmem [shape: f32[2,1,32], index: 1, kind: input, shape index: {}]   ;;  %s18016_s2 = inlined_call_operand.vmem [shape: f32[2,1,3], index: 2, kind: input, shape index: {}]   ;;  %s18017_s3 = inlined_call_operand.hbm [shape: f32[1120,128], index: 3, kind: input, shape index: {}]   ;;  %s18018_s4 = inlined_call_operand.hbm [shape: f32[2,1,3], index: 4, kind: output, shape index: {0}]   ;;  %s18019_s5 = inlined_call_operand.hbm [shape: f32[2,1,3], index: 5, kind: output, shape index: {1}]  }
   0x1   :  { %13 = vsyncpa [#allocation4 + $0x1], 0 }
   0x2   :  { %14 = vsyncpa [#allocation7], 0 }
   0x3   :  { %15 = vsyncpa [#allocation5], 0 }
   0x4   :  { %17 = vsyncpa [#allocation5 + $0x1], 0 }
   0x5   :  { %18 = vsyncpa [#allocation10], 0 }
   0x6   :  { %20 = vsyncpa [#allocation10 + $0x1], 0  ;;  %s15963_s18 = smov 0   ;;  %s15965_s19 = smov 0  }
   0x7   :  { %s15967_s20 = smov 0   ;;  %s15969_s21 = smov 0  }
   0x8 LB: > { %s15984_s22 = sadd.s32 4294967295, %s15918_s21   ;;  %s13433_s23 = sadd.s32 4294967294, %s15918_s21   ;;  %s15918_s21 = sphi %s15969_s21, %s18045_s21   ;;  %s15914_s20 = sphi %s15967_s20, %s18044_s20   ;;  %s15910_s19 = sphi %s15965_s19, %s18043_s19   ;;  %s15906_s18 = sphi %s15963_s18, %s18042_s18  }
   0x9   : > { %p46_p0 = scmp.ne.s32.totalorder %s15910_s19, %s15906_s18  ;;  %p18020_p1 = scmp.eq.s32.totalorder %s15984_s22, 0 }
   0xa   : > { %p149_p3 = scmp.eq.s32.totalorder %s13433_s23, 1  ;;  %p13434_p5 = scmp.ge.s32.totalorder %s15918_s21, 1 }
   0xb   : > { %p15993_p4 = por %p18020_p1, %p46_p0  ;;  %p182_p7 = scmp.lt.s32.totalorder %s15918_s21, 3 }
   0xc   : > { %p15998_p6 = por %p149_p3, %p46_p0  ;;  %s15920_s27 = smov [#allocation6]  }
   0xd   : > { %s18023_s24 = scalar_select %p15993_p4, 1, 0 }
   0xe   : > { %s18024_s25 = scalar_select %p15998_p6, 1, 0 }
   0xf   : > { %p16003_p8 = pnand %p13434_p5, %p182_p7  ;;  %s194_s28 = sshll.u32 %s15920_s27, 4  ;;  %s16007_s28 = int_to_ptr.vmem [resolvable:$true] %s194_s28 }
  0x10   : > { %s16019_s30 = sadd.s32 1, %s15918_s21   ;;  %s33_s6 = sadd.s32 1, %s15914_s20 }
  0x11   : > { %s18025_s26 = scalar_select %p16003_p8, 1, 0 }
  0x12   : > { %p15434_p9 = pneg %p16003_p8  ;;  %s30_s7 = ssub.s32 %s15918_s21, %s16019_s30 }
  0x13   : > { %s15758_s10 = scalar_lea.hbm %s18017_s3, 17920 }
  0x14   : > { %p16014_p11 = pnand %p15434_p9, %p18020_p1  ;;  %p15759_p12 = scmp.ne.s32.totalorder %s18017_s3, %s15758_s10 }
  0x15   : > { %p15765_p5 = scmp.lt.u32.totalorder %s15758_s10, %s18017_s3 }
  0x16   : > { %p15760_p13 = pneg %p16014_p11 }
  0x18   : > { %p15761_p0 = pnand %p15760_p13, %p15759_p12 }
  0x1a   : > { %p15762_p3 = pneg %p15761_p0 }
  0x1c   : > { %p15767_p7 = pnand %p15765_p5, %p15762_p3 }
  0x1e   : > { %15770 = shalt.err (!%p15767_p7)
}
  0x1f   : > { %s15771_s15 = scalar_lea.vmem %s16007_s28, 17920  ;;  %p15779_p2 = scmp.lt.s32.totalorder %s16007_s28, %s16007_s28 }
  0x20   : > { %p15772_p9 = scmp.ne.s32.totalorder %s16007_s28, %s15771_s15  ;;  %p15780_p6 = scmp.lt.s32.totalorder %s15771_s15, %s15771_s15 }
  0x22   : > { %p15774_p10 = pnand %p15772_p9, %p15760_p13  ;;  %p15781_p4 = por %p15780_p6, %p15779_p2 }
  0x24   : > { %p15775_p1 = pneg %p15774_p10 }
  0x26   : > { %p15782_p8 = pnand %p15781_p4, %p15775_p1 }
  0x28   : > { %15785 = shalt.err (!%p15782_p8)
}
  0x29   : > { %s15921_s16 = smov 128   ;;  %s15922_s17 = smov 8  }
  0x2a   : > { %15437 = dma.hbm_to_vmem [thread:$0]  (!%p16014_p11), %s18017_s3, 17920, %s16007_s28, [#allocation7], %s15921_s16, %s15921_s16, %s15922_s17  }
  0x2b   : > { %p31_p2 = scmp.eq.s32.totalorder %s30_s7, 0  ;;  %p40_p1 = scmp.ne.s32.totalorder %s15914_s20, %s15910_s19 }
  0x2c   : > { %p41_p4 = scmp.eq.s32.totalorder %s15918_s21, 0  ;;  %p15450_p6 = scmp.lt.s32.totalorder %s15918_s21, 2 }
  0x2d   : > { %s16050_s8 = scalar_select %p31_p2, %s15914_s20, %s33_s6  }
  0x2e   : > { %p42_p8 = por %p41_p4, %p40_p1  ;;  %p18027_p10 = scmp.eq.s32.totalorder %s15984_s22, 1 }
  0x2f   : > { %s208_s10 = sand.u32 1, %s15914_s20   ;;  %s15422_s11 = smul.u32 384, %s15918_s21 }
  0x30   : > { %p16054_p12 = por %p18027_p10, %p40_p1  ;;  %s15421_s12 = smul.u32 24, %s208_s10 }
  0x31   : > { %s16063_s14 = scalar_lea.hbm %s18014_s0, %s15422_s11  ;;  %p16065_p11 = pnand %p15450_p6, %p42_p8 }
  0x32   : > { %s212_s6 = scalar_lea.vmem [#allocation3], %s15421_s12  ;;  %s16071_s15 = scalar_lea.sflag [#allocation4], %s208_s10 }
  0x33   : > { %s219_s7 = sshll.u32 %s212_s6, 4  ;;  %s15786_s16 = scalar_lea.hbm %s16063_s14, 384  ;;  %s16069_s7 = int_to_ptr.vmem [resolvable:$true] %s219_s7 }
  0x34   : > { %p15787_p13 = scmp.ne.s32.totalorder %s16063_s14, %s15786_s16  ;;  %p15788_p0 = pneg %p16065_p11 }
  0x35   : > { %s15791_s27 = scalar_lea.hbm %s18014_s0, 768  ;;  %p15792_p7 = scmp.lt.u32.totalorder %s16063_s14, %s18014_s0 }
  0x36   : > { %p15789_p3 = pnand %p15788_p0, %p15787_p13  ;;  %p15793_p9 = scmp.lt.u32.totalorder %s15791_s27, %s15786_s16 }
  0x37   : > { %p15795_p1 = scmp.lt.u32.totalorder %s15786_s16, %s16063_s14 }
  0x38   : > { %p15790_p5 = pneg %p15789_p3  ;;  %p15794_p2 = por %p15793_p9, %p15792_p7 }
  0x3a   : > { %p15796_p4 = por %p15795_p1, %p15794_p2 }
  0x3c   : > { %p15797_p6 = pnand %p15796_p4, %p15790_p5 }
  0x3e   : > { %15800 = shalt.err (!%p15797_p6)
}
  0x3f   : > { %s15801_s10 = scalar_lea.vmem %s16069_s7, 384  ;;  %s15923_s12 = smov [#allocation3]  }
  0x40   : > { %p15802_p8 = scmp.ne.s32.totalorder %s16069_s7, %s15801_s10  ;;  %s15806_s13 = sshll.u32 %s15923_s12, 4  ;;  %s15807_s13 = int_to_ptr.vmem [resolvable:$false] %s15806_s13 }
  0x41   : > { %s15808_s6 = scalar_lea.vmem %s15807_s13, 768  ;;  %p15809_p3 = scmp.lt.s32.totalorder %s16069_s7, %s15807_s13 }
  0x42   : > { %p15804_p10 = pnand %p15802_p8, %p15788_p0  ;;  %p15810_p7 = scmp.lt.s32.totalorder %s15808_s6, %s15801_s10 }
  0x44   : > { %p15805_p13 = pneg %p15804_p10  ;;  %p15811_p9 = por %p15810_p7, %p15809_p3 }
  0x46   : > { %p15812_p2 = pnand %p15811_p9, %p15805_p13 }
  0x48   : > { %15815 = shalt.err (!%p15812_p2)
}
  0x49   : > { %s15924_s16 = smov 64   ;;  %s15925_s17 = smov 4  }
  0x4a   : > { %15441 = dma.hbm_to_vmem [thread:$0]  (!%p16065_p11), %s16063_s14, 384, %s16069_s7, %s16071_s15, %s15924_s16, %s15924_s16, %s15925_s17  }
  0x4b   : > { %p18030_p0 = scmp.ne.s32.totalorder %s18025_s26, 0 }
  0x4c   : > { %s16102_s23 = sand.u32 (!%p18030_p0), 1, %s15910_s19   ;;  %p18031_p5 = scmp.ne.s32.totalorder (!%p18030_p0), %s18023_s24, 0 }
  0x4d   : > { %243 = sbr.rel (%p18030_p0) target bundleno = 12709 (0x31a5), region = 36  ;;  %s246_s11 = scalar_lea.sflag (!%p18030_p0), [#allocation4], %s16102_s23 }
  0x4e   : > { %s15423_s27 = smul.u32 (!%p18030_p0), 24, %s16102_s23 }
  0x50   : > { %s249_s29 = scalar_lea.vmem (!%p18030_p0), [#allocation3], %s15423_s27 }
  0x54   : > { %15889 = dma.done.wait (%p18031_p5), %s246_s11, 384  }
  0x55   : > { %15891 = vsyncadd (%p18031_p5), %s246_s11, 4294966912  ;;  %p18032_p1 = scmp.eq.s32.totalorder %s15984_s22, 0 }
  0x57   : > { %15893 = dma.done.wait (%p18032_p1), [#allocation7], 17920   ;;  %p18033_p11 = pmov %p18032_p1 }
  0x58   : > { %v15926_v0 = vmov 0.0|0.0   ;;  %vm15927_vm0 = vmmov 0   ;;  %v15928_v1 = vmov 0.0   ;;  %v301_v2 = vld [vmem:[#allocation6] sm:$0xff]  ;;  %v302_v3 = vld [vmem:[#allocation6 + $0x8] sm:$0xff]  ;;  %vm317_vm1 = vcmask 130048  }
  0x59   : > { %15895 = vsyncadd (%p18033_p11), [#allocation7], 4294949376  ;;  %15148 = vmatprep.subr.bf16.mxu0 %v15926_v0  ;;  %14178 = vmatprep.mubr.msk.f32.mxu0 %vm15927_vm0, %v15928_v1  ;;  %v15149_v4 = vpack.c.bf16 %v302_v3, %v301_v2  ;;  %v15495_v5 = vld [vmem:[%s249_s29] sm:$0xff]   ;;  %v15496_v6 = vld [vmem:[%s249_s29 + $0x8] sm:$0xff]   ;;  %vm464_vm2 = vcmask 261120   ;;  %v420_v49 = vlaneseq  ;;  %vm1802_vm7 = vcmask 1043456  }
  0x5a   : > { %15151 = vmatprep.subr.bf16.mxu1 %v15926_v0  ;;  %14195 = vmatprep.mubr.msk.f32.mxu1 %vm15927_vm0, %v15928_v1  ;;  %v15497_v7 = vld [vmem:[%s249_s29 + $0x10] sm:$0xff]   ;;  %v447_v9 = vld [vmem:[#allocation6 + $0xa8] sm:$0xff]  ;;  %v448_v14 = vld [vmem:[#allocation6 + $0xb0] sm:$0xff]  ;;  %vm1209_vm8 = vcmask 27648   ;;  %vm1798_vm9 = vcmask 31744   ;;  %p289_p4 = scmp.lt.s32.totalorder %s15984_s22, 1 }
  0x5b   : > { %15150 = vmatpush3.bf16.msra.mxu0 %v15149_v4  ;;  %v446_v8 = vld [vmem:[#allocation6 + $0xa0] sm:$0xff]  ;;  %v561_v12 = vld [vmem:[#allocation6 + $0xc8] sm:$0xff]  ;;  %v449_v15 = vld [vmem:[#allocation6 + $0xb8] sm:$0xff]  ;;  %v16179_v50 = vand.u32 127, %v420_v49  ;;  %s13766_s12 = sshll.u32 %s15984_s22, 4  ;;  %s288_s13 = scalar_lea.vmem [#allocation9], %s16102_s23 }
  0x5c   : > { %15157 = vmatprep.subr.bf16.mxu0 %v15926_v0  ;;  %v560_v10 = vld [vmem:[#allocation6 + $0xc0] sm:$0xff]  ;;  %v15152_v11 = vpack.c.bf16 %v447_v9, %v446_v8  ;;  %v562_v16 = vld [vmem:[#allocation6 + $0xd0] sm:$0xff]  ;;  %v15155_v17 = vpack.c.bf16 %v449_v15, %v448_v14  ;;  %v563_v18 = vld [vmem:[#allocation6 + $0xd8] sm:$0xff]  ;;  %s17680_s24 = scalar_select %p289_p4, %s15984_s22, 1 }
  0x5d   : > { %v15158_v13 = vpack.c.bf16 %v561_v12, %v560_v10  ;;  %v15161_v19 = vpack.c.bf16 %v563_v18, %v562_v16  ;;  %v13440_v20 = vld [vmem:[#allocation6 + $0x99] ss:$0 sm:$0xff]  ;;  %v413_v24 = vld [vmem:[#allocation6 + $0x70] sm:$0xf]  ;;  %v655_v27 = vld [vmem:[#allocation6 + $0xe0] sm:$0xff]  ;;  %vm423_vm3 = vcmp.lt.s32.totalorder %v16179_v50, 8  ;;  %s17937_s29 = scalar_lea.hbm %s18019_s5, %s13766_s12  ;;  %s17944_s26 = scalar_lea.hbm %s18018_s4, %s13766_s12 }
  0x5e   : > { %14179 = vmatmul.mubr.msk.f32.vlgmr.msra.gmra.mrb[0].mxu0 %vm317_vm1, %v15495_v5  ;;  %15153 = vmatpush3.bf16.msra.mxu1 %v15152_v11  ;;  %v656_v28 = vld [vmem:[#allocation6 + $0xe8] sm:$0xff]  ;;  %v657_v37 = vld [vmem:[#allocation6 + $0xf0] sm:$0xff]  ;;  %v658_v38 = vld [vmem:[#allocation6 + $0xf8] sm:$0xff]  ;;  %v16185_v53 = vsel %vm423_vm3, 0.35355338, %v15928_v1  ;;  %vm428_vm4 = vcmp.ge.s32.totalorder %v16179_v50, 8  ;;  %s291_s28 = scalar_lea.vmem %s18015_s1, %s17680_s24  ;;  %s294_s10 = scalar_lea.vmem %s18016_s2, %s17680_s24 }
  0x5f   : > { %14181 = vmatprep.mubr.msk.f32.mxu0 %vm15927_vm0, %v15928_v1  ;;  %15159 = vmatpush3.bf16.msra.mxu0 %v15158_v13  ;;  %v15164_v35 = vpack.c.bf16 %v656_v28, %v655_v27  ;;  %v15167_v45 = vpack.c.bf16 %v658_v38, %v657_v37  ;;  %v13448_v51 = vld [vmem:[#allocation6 + $0x180] ss:$0 sm:$0xff]  ;;  %v13452_v52 = vld [vmem:[#allocation6 + $0x181] ss:$0 sm:$0xff]  ;;  %vm429_vm5 = vcmp.lt.s32.totalorder %v16179_v50, 16  ;;  %vm434_vm10 = vcmp.ge.s32.totalorder %v16179_v50, 16 }
  0x60   : > { %15154 = vmatprep.subr.bf16.mxu1 %v15926_v0  ;;  %15160 = vmatprep.subr.bf16.mxu0 %v15926_v0  ;;  %vm16241_vm6 = vmand %vm428_vm4, %vm429_vm5  ;;  %vm435_vm11 = vcmp.lt.s32.totalorder %v16179_v50, 24  ;;  %vm440_vm13 = vcmp.ge.s32.totalorder %v16179_v50, 24  ;;  %vm441_vm14 = vcmp.lt.s32.totalorder %v16179_v50, 32  ;;  %vm10416_vm4 = vcmask 1042434   ;;  %s13311_s6 = sshll.u32 %s288_s13, 4  ;;  %s282_s16 = scalar_lea.vmem [#allocation8], %s16102_s23  ;;  %s17939_s6 = int_to_ptr.vmem [resolvable:$true] %s13311_s6 }
  0x61   : > { %vm16529_vm12 = vmand %vm434_vm10, %vm435_vm11  ;;  %vm10418_vm5 = vcmask 1043459   ;;  %vm11205_vm10 = vcmask 1046528   ;;  %vm11102_vm11 = vcmask 55296   ;;  %s13298_s17 = sshll.u32 %s282_s16, 4  ;;  %s13286_s14 = scalar_lea.sflag [#allocation10], %s16102_s23  ;;  %s17946_s17 = int_to_ptr.vmem [resolvable:$true] %s13298_s17 }
  0x62   : > { %14182 = vmatmul.mubr.msk.f32.gmra.mrb[2].mxu0 %vm317_vm1, %v15496_v6  ;;  %15156 = vmatpush3.bf16.msra.mxu1 %v15155_v17  ;;  %vm16648_vm15 = vmand %vm440_vm13, %vm441_vm14  ;;  %vm11766_vm13 = vcmask 260096   ;;  %s15931_s7 = smov [#allocation9]  }
  0x63   : > { %14184 = vmatprep.mubr.msk.f32.mxu0 %vm15927_vm0, %v15928_v1  ;;  %15162 = vmatpush3.bf16.msra.mxu0 %v15161_v19  ;;  %s15820_s15 = sshll.u32 %s15931_s7, 4  ;;  %s15821_s15 = int_to_ptr.vmem [resolvable:$false] %s15820_s15 }
  0x64   : > { %15163 = vmatprep.subr.bf16.mxu1 %v15926_v0  ;;  %14238 = vmatprep.subr.mxu0 %v15928_v1  ;;  %p15823_p13 = scmp.lt.s32.totalorder %s17939_s6, %s15821_s15 }
  0x66   : > { %14185 = vmatmul.mubr.msk.f32.gmra.mrb[4].mxu0 %vm317_vm1, %v15497_v7  ;;  %vm5110_vm1 = vcmask 523264  }
  0x67   : > { %14212 = vmatprep.mubr.msk.f32.mxu0 %vm15927_vm0, %v15928_v1 }
 0x131   : > { %v390_v21 = vpop.f32.mrb[0].mxu0 }
 0x132   : > { %v391_v22 = vadd.f32 %v13440_v20, %v390_v21  ;;  %v14180_v23 = vpop.f32.mrb[1].mxu0 }
 0x134   : > { %v407_v25 = vcombine.high %v391_v22, %v391_v22  ;;  %v16131_v29 = vadd.f32 %v413_v24, %v391_v22 }
 0x135   : > { %v395_v26 = vpop.f32.mrb[2].mxu0 }
 0x136   : > { %v16133_v30 = vadd.f32 %v413_v24, %v407_v25  ;;  %v396_v31 = vadd.f32 %v13440_v20, %v395_v26  ;;  %v14183_v32 = vpop.f32.mrb[3].mxu0  ;;  %v13456_v25 = vld [vmem:[#allocation6 + $0x182] ss:$0 sm:$0xff] }
 0x138   : > { %v461_v33 = vcombine.low %v16131_v29, %v16133_v30  ;;  %v408_v34 = vcombine.high %v396_v31, %v396_v31  ;;  %v16137_v39 = vadd.f32 %v413_v24, %v396_v31 }
 0x139   : > { %v400_v36 = vpop.f32.mrb[4].mxu0 }
 0x13a   : > { %v16139_v40 = vadd.f32 %v413_v24, %v408_v34  ;;  %v401_v41 = vadd.f32 %v13440_v20, %v400_v36  ;;  %v14186_v42 = vpop.f32.mrb[5].mxu0  ;;  %14196 = vmatmul.mubr.msk.f32.vlgmr.msra.gmra.mrb[0].mxu1 %vm464_vm2, %v461_v33  ;;  %14213 = vmatmul.mubr.msk.f32.vlgmr.msra.gmra.mrb[6].mxu0 %vm464_vm2, %v461_v33 }
 0x13b   : > { %14198 = vmatprep.mubr.msk.f32.mxu1 %vm15927_vm0, %v15928_v1  ;;  %14215 = vmatprep.mubr.msk.f32.mxu0 %vm15927_vm0, %v15928_v1 }
 0x13c   : > { %v462_v43 = vcombine.low %v16137_v39, %v16139_v40  ;;  %v409_v44 = vcombine.high %v401_v41, %v401_v41  ;;  %15165 = vmatpush3.bf16.msra.mxu1 %v15164_v35  ;;  %v16150_v46 = vadd.f32 %v413_v24, %v401_v41  ;;  %v16315_v41 = vsel %vm16241_vm6, 1.0, %v15928_v1 }
 0x13d   : > { %15166 = vmatprep.subr.bf16.mxu1 %v15926_v0 }
 0x13e   : > { %v16152_v47 = vadd.f32 %v413_v24, %v409_v44  ;;  %14199 = vmatmul.mubr.msk.f32.gmra.mrb[2].mxu1 %vm464_vm2, %v462_v43  ;;  %14216 = vmatmul.mubr.msk.f32.gmra.mrb[8].mxu0 %vm464_vm2, %v462_v43  ;;  %v16270_v24 = vsel %vm16241_vm6, 0.35355338, %v15928_v1  ;;  %vm10420_vm6 = vcmask 1044484  }
 0x13f   : > { %14201 = vmatprep.mubr.msk.f32.mxu1 %vm15927_vm0, %v15928_v1  ;;  %14218 = vmatprep.mubr.msk.f32.mxu0 %vm15927_vm0, %v15928_v1 }
 0x140   : > { %v463_v48 = vcombine.low %v16150_v46, %v16152_v47  ;;  %15168 = vmatpush3.bf16.msra.mxu1 %v15167_v45 }
 0x141   : > { %14248 = vmatprep.subr.mxu1 %v15928_v1 }
 0x142   : > { %14202 = vmatmul.mubr.msk.f32.gmra.mrb[4].mxu1 %vm464_vm2, %v463_v48  ;;  %14219 = vmatmul.mubr.msk.f32.gmra.mrb[10].mxu0 %vm464_vm2, %v463_v48 }
 0x143   : > { %14229 = vmatprep.mubr.msk.f32.mxu1 %vm15927_vm0, %v15928_v1  ;;  %14240 = vmatprep.mubr.msk.f32.mxu0 %vm15927_vm0, %v15928_v1 }
 0x146   : > { %14230 = vmatmul.mubr.msk.f32.vlgmr.msra.gmra.mrb[6].mxu1 %vm464_vm2, %v461_v33 }
 0x147   : > { %14232 = vmatprep.mubr.msk.f32.mxu1 %vm15927_vm0, %v15928_v1 }
 0x14a   : > { %14233 = vmatmul.mubr.msk.f32.gmra.mrb[8].mxu1 %vm464_vm2, %v462_v43 }
 0x14b   : > { %14235 = vmatprep.mubr.msk.f32.mxu1 %vm15927_vm0, %v15928_v1 }
 0x14e   : > { %14236 = vmatmul.mubr.msk.f32.gmra.mrb[10].mxu1 %vm464_vm2, %v463_v48 }
 0x14f   : > { %14250 = vmatprep.mubr.msk.f32.mxu1 %vm15927_vm0, %v15928_v1 }
 0x20d   : > { %v537_v54 = vpop.f32.mrb[0].mxu1  ;;  %v635_v55 = vpop.f32.mrb[6].mxu0 }
 0x20e   : > { %v16187_v56 = vadd.f32 %v13448_v51, %v537_v54  ;;  %v16189_v57 = vadd.f32 %v13452_v52, %v635_v55  ;;  %v14197_v58 = vpop.f32.mrb[1].mxu1  ;;  %v14214_v59 = vpop.f32.mrb[7].mxu0 }
 0x210   : > { %v753_v60 = vmul.f32 %v16187_v56, %v16185_v53  ;;  %14239 = vmatpush3.xpose.msk.msra.mxu0 %vm464_vm2, %v16189_v57  ;;  %v16197_v61 = vcombine.high %v16187_v56, %v16187_v56  ;;  %v16206_v6 = vcombine.high %v16189_v57, %v16189_v57  ;;  %v1282_v28 = vmul.f32 %v16187_v56, %v16270_v24 }
 0x211   : > { %v542_v62 = vpop.f32.mrb[2].mxu1  ;;  %v640_v63 = vpop.f32.mrb[8].mxu0  ;;  %14243 = vmatprep.subr.mxu0 %v15928_v1 }
 0x212   : > { %v16200_v2 = vadd.f32 %v13448_v51, %v542_v62  ;;  %v16202_v3 = vadd.f32 %v13452_v52, %v640_v63  ;;  %v14200_v4 = vpop.f32.mrb[3].mxu1  ;;  %v14217_v5 = vpop.f32.mrb[9].mxu0  ;;  %v754_v11 = vmul.f32 %v16197_v61, %v16185_v53  ;;  %v1283_v34 = vmul.f32 %v16197_v61, %v16270_v24 }
 0x213   : > { %14241 = vmatmul.mubr.msk.f32.vlgmr.msra.gmra.mrb[12].mxu0 %vm464_vm2, %v753_v60 }
 0x214   : > { %v755_v7 = vmul.f32 %v16200_v2, %v16185_v53  ;;  %14244 = vmatpush3.xpose.msk.msra.mxu0 %vm464_vm2, %v16206_v6  ;;  %14249 = vmatpush3.xpose.msk.msra.mxu1 %vm464_vm2, %v16202_v3  ;;  %v16219_v8 = vcombine.high %v16200_v2, %v16200_v2  ;;  %v16233_v16 = vcombine.high %v16202_v3, %v16202_v3 }
 0x215   : > { %v547_v9 = vpop.f32.mrb[4].mxu1  ;;  %v645_v10 = vpop.f32.mrb[10].mxu0  ;;  %14245 = vmatprep.mubr.msk.f32.mxu0 %vm15927_vm0, %v15928_v1  ;;  %14253 = vmatprep.subr.mxu0 %v15928_v1  ;;  %v1284_v35 = vmul.f32 %v16200_v2, %v16270_v24 }
 0x216   : > { %v16226_v12 = vadd.f32 %v13448_v51, %v547_v9  ;;  %v16228_v13 = vadd.f32 %v13452_v52, %v645_v10  ;;  %v14203_v14 = vpop.f32.mrb[5].mxu1  ;;  %v14220_v15 = vpop.f32.mrb[11].mxu0  ;;  %14258 = vmatprep.subr.mxu1 %v15928_v1  ;;  %v756_v21 = vmul.f32 %v16219_v8, %v16185_v53  ;;  %v1285_v42 = vmul.f32 %v16219_v8, %v16270_v24 }
 0x217   : > { %14246 = vmatmul.mubr.msk.f32.vlgmr.msra.gmra.mrb[14].mxu0 %vm464_vm2, %v754_v11  ;;  %14251 = vmatmul.mubr.msk.f32.vlgmr.msra.gmra.mrb[12].mxu1 %vm464_vm2, %v755_v7 }
 0x218   : > { %14254 = vmatpush3.xpose.msk.msra.mxu0 %vm464_vm2, %v16233_v16  ;;  %14259 = vmatpush3.xpose.msk.msra.mxu1 %vm464_vm2, %v16228_v13  ;;  %v757_v18 = vmul.f32 %v16226_v12, %v16185_v53  ;;  %v16253_v19 = vcombine.high %v16226_v12, %v16226_v12  ;;  %v16265_v23 = vcombine.high %v16228_v13, %v16228_v13 }
 0x219   : > { %v730_v20 = vpop.f32.mrb[6].mxu1  ;;  %14255 = vmatprep.mubr.msk.f32.mxu0 %vm15927_vm0, %v15928_v1  ;;  %14260 = vmatprep.mubr.msk.f32.mxu1 %vm15927_vm0, %v15928_v1  ;;  %v1286_v43 = vmul.f32 %v16226_v12, %v16270_v24 }
 0x21a   : > { %v14231_v22 = vpop.f32.mrb[7].mxu1  ;;  %14263 = vmatprep.subr.mxu0 %v15928_v1  ;;  %14268 = vmatprep.subr.mxu1 %v15928_v1  ;;  %v758_v27 = vmul.f32 %v16253_v19, %v16185_v53  ;;  %v16304_v36 = vadd.f32 %v13456_v25, %v730_v20  ;;  %v1287_v48 = vmul.f32 %v16253_v19, %v16270_v24 }
 0x21b   : > { %14256 = vmatmul.mubr.msk.f32.vlgmr.msra.gmra.mrb[16].mxu0 %vm464_vm2, %v756_v21  ;;  %14261 = vmatmul.mubr.msk.f32.vlgmr.msra.gmra.mrb[14].mxu1 %vm464_vm2, %v757_v18 }
 0x21c   : > { %14264 = vmatpush3.xpose.msk.msra.mxu0 %vm464_vm2, %v16265_v23  ;;  %14269 = vmatpush3.xpose.msk.msra.mxu1 %vm464_vm2, %v16189_v57  ;;  %v16331_v44 = vcombine.high %v16304_v36, %v16304_v36  ;;  %v1792_v45 = vmul.f32 %v16315_v41, %v16304_v36 }
 0x21d   : > { %v735_v26 = vpop.f32.mrb[8].mxu1  ;;  %14265 = vmatprep.mubr.msk.f32.mxu0 %vm15927_vm0, %v15928_v1  ;;  %14270 = vmatprep.mubr.msk.f32.mxu1 %vm15927_vm0, %v15928_v1 }
 0x21e   : > { %v16286_v31 = vadd.f32 %v13456_v25, %v735_v26  ;;  %v14234_v32 = vpop.f32.mrb[9].mxu1  ;;  %14273 = vmatprep.subr.mxu0 %v15928_v1  ;;  %14278 = vmatprep.subr.mxu1 %v15928_v1  ;;  %v1793_v51 = vmul.f32 %v16315_v41, %v16331_v44 }
 0x21f   : > { %14266 = vmatmul.mubr.msk.f32.vlgmr.msra.gmra.mrb[18].mxu0 %vm464_vm2, %v758_v27  ;;  %14271 = vmatmul.mubr.msk.f32.vlgmr.msra.gmra.mrb[16].mxu1 %vm464_vm2, %v1282_v28 }
 0x220   : > { %14274 = vmatpush3.xpose.msk.msra.mxu0 %vm464_vm2, %v16206_v6  ;;  %14279 = vmatpush3.xpose.msk.msra.mxu1 %vm464_vm2, %v16202_v3 }
 0x221   : > { %v740_v33 = vpop.f32.mrb[10].mxu1  ;;  %14275 = vmatprep.mubr.msk.f32.mxu0 %vm15927_vm0, %v15928_v1  ;;  %14280 = vmatprep.mubr.msk.f32.mxu1 %vm15927_vm0, %v15928_v1 }
 0x222   : > { %v16306_v37 = vadd.f32 %v13456_v25, %v740_v33  ;;  %v14237_v38 = vpop.f32.mrb[11].mxu1  ;;  %14283 = vmatprep.subr.mxu0 %v15928_v1  ;;  %14288 = vmatprep.subr.mxu1 %v15928_v1 }
 0x223   : > { %14276 = vmatmul.mubr.msk.f32.vlgmr.msra.gmra.mrb[20].mxu0 %vm464_vm2, %v1283_v34  ;;  %14281 = vmatmul.mubr.msk.f32.vlgmr.msra.gmra.mrb[18].mxu1 %vm464_vm2, %v1284_v35 }
 0x224   : > { %14284 = vmatpush3.xpose.msk.msra.mxu0 %vm464_vm2, %v16233_v16  ;;  %14289 = vmatpush3.xpose.msk.msra.mxu1 %vm464_vm2, %v16228_v13 }
 0x225   : > { %14285 = vmatprep.mubr.msk.f32.mxu0 %vm15927_vm0, %v15928_v1  ;;  %14290 = vmatprep.mubr.msk.f32.mxu1 %vm15927_vm0, %v15928_v1 }
 0x226   : > { %14293 = vmatprep.subr.mxu0 %v15928_v1  ;;  %14298 = vmatprep.subr.mxu1 %v15928_v1 }
 0x227   : > { %14286 = vmatmul.mubr.msk.f32.vlgmr.msra.gmra.mrb[22].mxu0 %vm464_vm2, %v1285_v42  ;;  %14291 = vmatmul.mubr.msk.f32.vlgmr.msra.gmra.mrb[20].mxu1 %vm464_vm2, %v1286_v43 }
 0x228   : > { %14294 = vmatpush3.xpose.msk.msra.mxu0 %vm464_vm2, %v16265_v23  ;;  %14299 = vmatpush3.msk.msra.mxu1 %vm1802_vm7, %v1792_v45 }
 0x229   : > { %14295 = vmatprep.mubr.msk.f32.mxu0 %vm15927_vm0, %v15928_v1  ;;  %14303 = vmatprep.subr.mxu0 %v15928_v1 }
 0x22a   : > { %14300 = vmatprep.mubr.msk.f32.mxu1 %vm15927_vm0, %v15928_v1  ;;  %14308 = vmatprep.subr.mxu1 %v15928_v1 }
 0x22b   : > { %14296 = vmatmul.mubr.msk.f32.vlgmr.msra.gmra.mrb[24].mxu0 %vm464_vm2, %v1287_v48 }
 0x22c   : > { %14304 = vmatpush3.msk.msra.mxu0 %vm1802_vm7, %v1793_v51  ;;  %14305 = vmatprep.mubr.msk.f32.mxu0 %vm15927_vm0, %v15928_v1 }
 0x22d   : > { %14313 = vmatprep.subr.mxu0 %v15928_v1 }
 0x2e6   : > { %v16357_v52 = vpop.f32.mrb[12].mxu0 }
 0x2e7   : > { %v14242_v54 = vpop.f32.mrb[13].mxu0  ;;  %v1210_v38 = vsel %vm1209_vm8, %v16357_v52, -inf }
 0x2ea   : > { %v16359_v55 = vpop.f32.mrb[14].mxu0  ;;  %v16361_v58 = vpop.f32.mrb[12].mxu1 }
 0x2eb   : > { %v14247_v59 = vpop.f32.mrb[15].mxu0  ;;  %v14252_v60 = vpop.f32.mrb[13].mxu1  ;;  %v1216_v43 = vsel %vm1209_vm8, %v16361_v58, -inf  ;;  %v1213_v45 = vsel %vm1209_vm8, %v16359_v55, -inf }
 0x2ee   : > { %v16363_v62 = vpop.f32.mrb[16].mxu0  ;;  %v16365_v63 = vpop.f32.mrb[14].mxu1 }
 0x2ef   : > { %v14257_v4 = vpop.f32.mrb[17].mxu0  ;;  %v14262_v5 = vpop.f32.mrb[15].mxu1  ;;  %v1222_v48 = vsel %vm1209_vm8, %v16365_v63, -inf  ;;  %v1219_v51 = vsel %vm1209_vm8, %v16363_v62, -inf }
 0x2f2   : > { %v16367_v7 = vpop.f32.mrb[18].mxu0  ;;  %v1357_v9 = vpop.f32.mrb[16].mxu1 }
 0x2f3   : > { %v14267_v10 = vpop.f32.mrb[19].mxu0  ;;  %v14272_v11 = vpop.f32.mrb[17].mxu1  ;;  %v1726_v14 = vsel %vm1209_vm8, %v1357_v9, -inf  ;;  %v1225_v54 = vsel %vm1209_vm8, %v16367_v7, -inf }
 0x2f4   : > { %1727 = vmax.xlane.f32.xlu0 %v1726_v14 }
 0x2f6   : > { %v1430_v15 = vpop.f32.mrb[20].mxu0  ;;  %v1503_v17 = vpop.f32.mrb[18].mxu1 }
 0x2f7   : > { %v14277_v18 = vpop.f32.mrb[21].mxu0  ;;  %v14282_v20 = vpop.f32.mrb[19].mxu1  ;;  %v1732_v21 = vsel %vm1209_vm8, %v1503_v17, -inf  ;;  %v1729_v22 = vsel %vm1209_vm8, %v1430_v15, -inf }
 0x2f8   : > { %1733 = vmax.xlane.f32.xlu1 %v1732_v21  ;;  %1730 = vmax.xlane.f32.xlu0 %v1729_v22 }
 0x2fa   : > { %v1576_v25 = vpop.f32.mrb[22].mxu0  ;;  %v1649_v26 = vpop.f32.mrb[20].mxu1 }
 0x2fb   : > { %v14287_v27 = vpop.f32.mrb[23].mxu0  ;;  %v14292_v28 = vpop.f32.mrb[21].mxu1  ;;  %v1738_v32 = vsel %vm1209_vm8, %v1649_v26, -inf  ;;  %v1735_v33 = vsel %vm1209_vm8, %v1576_v25, -inf }
 0x2fc   : > { %1739 = vmax.xlane.f32.xlu0 %v1738_v32  ;;  %1736 = vmax.xlane.f32.xlu1 %v1735_v33 }
 0x2fe   : > { %v1722_v34 = vpop.f32.mrb[24].mxu0 }
 0x2ff   : > { %v14297_v35 = vpop.f32.mrb[25].mxu0  ;;  %v1741_v42 = vsel %vm1209_vm8, %v1722_v34, -inf }
 0x300   : > { %1211 = vmax.xlane.f32.xlu0 %v1210_v38  ;;  %1742 = vmax.xlane.f32.xlu1 %v1741_v42 }
 0x304   : > { %1217 = vmax.xlane.f32.xlu0 %v1216_v43  ;;  %1214 = vmax.xlane.f32.xlu1 %v1213_v45 }
 0x308   : > { %1223 = vmax.xlane.f32.xlu0 %v1222_v48  ;;  %1220 = vmax.xlane.f32.xlu1 %v1219_v51 }
 0x30c   : > { %1226 = vmax.xlane.f32.xlu1 %v1225_v54 }
 0x381   : > { %v1728_v59 = vpop.xlane.xlu0 %1727 }
 0x382   : > { %v1744_v60 = vsub.f32 %v1357_v9, %v1728_v59 }
 0x384   : > { %v1750_v4 = vmul.f32 1.442695, %v1744_v60 }
 0x385   : > { %v1734_v5 = vpop.xlane.xlu1 %1733  ;;  %v1731_v10 = vpop.xlane.xlu0 %1730 }
 0x386   : > { %15498 = vpow2.f32 %v1750_v4  ;;  %v1746_v11 = vsub.f32 %v1503_v17, %v1734_v5  ;;  %v1745_v14 = vsub.f32 %v1430_v15, %v1731_v10 }
 0x388   : > { %v1754_v18 = vmul.f32 1.442695, %v1746_v11  ;;  %v1752_v20 = vmul.f32 1.442695, %v1745_v14 }
 0x389   : > { %v1740_v21 = vpop.xlane.xlu0 %1739  ;;  %v1737_v22 = vpop.xlane.xlu1 %1736 }
 0x38a   : > { %15500 = vpow2.f32 %v1754_v18  ;;  %v1748_v27 = vsub.f32 %v1649_v26, %v1740_v21  ;;  %v1747_v28 = vsub.f32 %v1576_v25, %v1737_v22 }
 0x38b   : > { %15502 = vpow2.f32 %v1752_v20 }
 0x38c   : > { %v1758_v32 = vmul.f32 1.442695, %v1748_v27  ;;  %v1756_v33 = vmul.f32 1.442695, %v1747_v28 }
 0x38d   : > { %v1212_v35 = vpop.xlane.xlu0 %1211  ;;  %v1743_v38 = vpop.xlane.xlu1 %1742 }
 0x38e   : > { %15504 = vpow2.f32 %v1758_v32  ;;  %v1228_v9 = vsub.f32 %v16357_v52, %v1212_v35  ;;  %v1749_v42 = vsub.f32 %v1722_v34, %v1743_v38 }
 0x38f   : > { %15506 = vpow2.f32 %v1756_v33 }
 0x390   : > { %v16388_v43 = vpop.eup %15498  ;;  %v1234_v15 = vmul.f32 1.442695, %v1228_v9  ;;  %v1760_v17 = vmul.f32 1.442695, %v1749_v42 }
 0x391   : > { %v1218_v45 = vpop.xlane.xlu0 %1217  ;;  %v1215_v48 = vpop.xlane.xlu1 %1214  ;;  %v1762_v26 = vsel %vm1209_vm8, %v16388_v43, 0.0 }
 0x392   : > { %15508 = vpow2.f32 %v1234_v15  ;;  %v1230_v25 = vsub.f32 %v16361_v58, %v1218_v45  ;;  %v1229_v51 = vsub.f32 %v16359_v55, %v1215_v48  ;;  %1763 = vadd.xlane.f32.xlu0 %v1762_v26 }
 0x393   : > { %15510 = vpow2.f32 %v1760_v17 }
 0x394   : > { %v16394_v54 = vpop.eup %15500  ;;  %v1238_v52 = vmul.f32 1.442695, %v1230_v25  ;;  %v1236_v34 = vmul.f32 1.442695, %v1229_v51 }
 0x395   : > { %v16396_v59 = vpop.eup %15502  ;;  %v1224_v60 = vpop.xlane.xlu0 %1223  ;;  %v1768_v5 = vsel %vm1209_vm8, %v16394_v54, 0.0 }
 0x396   : > { %v1221_v4 = vpop.xlane.xlu1 %1220  ;;  %15512 = vpow2.f32 %v1238_v52  ;;  %v1232_v10 = vsub.f32 %v16365_v63, %v1224_v60  ;;  %1769 = vadd.xlane.f32.xlu0 %v1768_v5  ;;  %v1765_v55 = vsel %vm1209_vm8, %v16396_v59, 0.0 }
 0x397   : > { %v1231_v58 = vsub.f32 %v16363_v62, %v1221_v4  ;;  %15514 = vpow2.f32 %v1236_v34  ;;  %1766 = vadd.xlane.f32.xlu1 %v1765_v55 }
 0x398   : > { %v16404_v11 = vpop.eup %15504  ;;  %v1242_v14 = vmul.f32 1.442695, %v1232_v10 }
 0x399   : > { %v1240_v18 = vmul.f32 1.442695, %v1231_v58  ;;  %v16406_v20 = vpop.eup %15506  ;;  %v1774_v22 = vsel %vm1209_vm8, %v16404_v11, 0.0 }
 0x39a   : > { %v1227_v21 = vpop.xlane.xlu1 %1226  ;;  %15516 = vpow2.f32 %v1242_v14  ;;  %1775 = vadd.xlane.f32.xlu0 %v1774_v22  ;;  %v1771_v62 = vsel %vm1209_vm8, %v16406_v20, 0.0  ;;  %v1794_v14 = vmul.f32 %v16315_v41, %v16286_v31 }
 0x39b   : > { %v1233_v63 = vsub.f32 %v16367_v7, %v1227_v21  ;;  %15518 = vpow2.f32 %v1240_v18  ;;  %1772 = vadd.xlane.f32.xlu1 %v1771_v62  ;;  %v16446_v18 = vcombine.high %v16286_v31, %v16286_v31 }
 0x39c   : > { %v16413_v27 = vpop.eup %15508 }
 0x39d   : > { %v1244_v28 = vmul.f32 1.442695, %v1233_v63  ;;  %v16415_v32 = vpop.eup %15510  ;;  %v1246_v33 = vsel %vm1209_vm8, %v16413_v27, 0.0 }
 0x39e   : > { %1247 = vadd.xlane.f32.xlu0 %v1246_v33  ;;  %v1777_v35 = vsel %vm1209_vm8, %v16415_v32, 0.0  ;;  %v1796_v33 = vmul.f32 %v16315_v41, %v16306_v37 }
 0x39f   : > { %15520 = vpow2.f32 %v1244_v28  ;;  %1778 = vadd.xlane.f32.xlu1 %v1777_v35  ;;  %v16459_v35 = vcombine.high %v16306_v37, %v16306_v37 }
 0x3a0   : > { %v16421_v7 = vpop.eup %15512 }
 0x3a1   : > { %v16423_v38 = vpop.eup %15514  ;;  %v1252_v9 = vsel %vm1209_vm8, %v16421_v7, 0.0 }
 0x3a2   : > { %1253 = vadd.xlane.f32.xlu0 %v1252_v9  ;;  %v1249_v42 = vsel %vm1209_vm8, %v16423_v38, 0.0  ;;  %v1795_v9 = vmul.f32 %v16315_v41, %v16446_v18 }
 0x3a3   : > { %1250 = vadd.xlane.f32.xlu1 %v1249_v42 }
 0x3a4   : > { %v16429_v15 = vpop.eup %15516 }
 0x3a5   : > { %v16431_v17 = vpop.eup %15518  ;;  %v1258_v45 = vsel %vm1209_vm8, %v16429_v15, 0.0 }
 0x3a6   : > { %1259 = vadd.xlane.f32.xlu0 %v1258_v45  ;;  %v1255_v48 = vsel %vm1209_vm8, %v16431_v17, 0.0 }
 0x3a7   : > { %1256 = vadd.xlane.f32.xlu1 %v1255_v48 }
 0x3a9   : > { %v16437_v26 = vpop.eup %15520 }
 0x3aa   : > { %v1261_v25 = vsel %vm1209_vm8, %v16437_v26, 0.0 }
 0x3ab   : > { %1262 = vadd.xlane.f32.xlu1 %v1261_v25 }
 0x41f   : > { %v1764_v51 = vpop.xlane.xlu0 %1763 }
 0x420   : > { %15522 = vrcp.f32 %v1764_v51 }
 0x423   : > { %v1770_v52 = vpop.xlane.xlu0 %1769 }
 0x424   : > { %15524 = vrcp.f32 %v1770_v52  ;;  %v1767_v34 = vpop.xlane.xlu1 %1766 }
 0x425   : > { %15526 = vrcp.f32 %v1767_v34 }
 0x427   : > { %v1776_v60 = vpop.xlane.xlu0 %1775 }
 0x428   : > { %15528 = vrcp.f32 %v1776_v60  ;;  %v1773_v4 = vpop.xlane.xlu1 %1772 }
 0x429   : > { %15530 = vrcp.f32 %v1773_v4 }
 0x42a   : > { %v15523_v5 = vpop.eup %15522 }
 0x42b   : > { %v1248_v10 = vpop.xlane.xlu0 %1247  ;;  %v1781_v58 = vmul.f32 %v15523_v5, %v16388_v43 }
 0x42c   : > { %15532 = vrcp.f32 %v1248_v10  ;;  %v1779_v55 = vpop.xlane.xlu1 %1778 }
 0x42d   : > { %15534 = vrcp.f32 %v1779_v55  ;;  %14301 = vmatmul.mubr.msk.f32.vlgmr.msra.gmra.mrb[22].mxu1 %vm1798_vm9, %v1781_v58 }
 0x42e   : > { %v15525_v21 = vpop.eup %15524  ;;  %14309 = vmatpush3.msk.msra.mxu1 %vm1802_vm7, %v1794_v14  ;;  %14310 = vmatprep.mubr.msk.f32.mxu1 %vm15927_vm0, %v15928_v1 }
 0x42f   : > { %v15527_v22 = vpop.eup %15526  ;;  %v1254_v43 = vpop.xlane.xlu0 %1253  ;;  %14318 = vmatprep.subr.mxu1 %v15928_v1  ;;  %v1785_v63 = vmul.f32 %v15525_v21, %v16394_v54  ;;  %v16467_v54 = vsel %vm423_vm3, 1.0, %v15928_v1  ;;  %vm10414_vm3 = vcmask 1041409  }
 0x430   : > { %15536 = vrcp.f32 %v1254_v43  ;;  %v1251_v62 = vpop.xlane.xlu1 %1250  ;;  %v1783_v28 = vmul.f32 %v15527_v22, %v16396_v59  ;;  %v1276_v52 = vmul.f32 %v16467_v54, %v16304_v36  ;;  %v1278_v10 = vmul.f32 %v16467_v54, %v16286_v31 }
 0x431   : > { %15538 = vrcp.f32 %v1251_v62  ;;  %14311 = vmatmul.mubr.msk.f32.vlgmr.msra.gmra.mrb[24].mxu1 %vm1798_vm9, %v1785_v63  ;;  %v1277_v58 = vmul.f32 %v16467_v54, %v16331_v44  ;;  %v1280_v21 = vmul.f32 %v16467_v54, %v16306_v37  ;;  %v1279_v22 = vmul.f32 %v16467_v54, %v16446_v18 }
 0x432   : > { %v15529_v42 = vpop.eup %15528  ;;  %14306 = vmatmul.mubr.msk.f32.vlgmr.msra.gmra.mrb[26].mxu0 %vm1798_vm9, %v1783_v28  ;;  %14319 = vmatpush3.msk.msra.mxu1 %vm1802_vm7, %v1796_v33  ;;  %v1281_v28 = vmul.f32 %v16467_v54, %v16459_v35 }
 0x433   : > { %v15531_v59 = vpop.eup %15530  ;;  %14314 = vmatpush3.msk.msra.mxu0 %vm1802_vm7, %v1795_v9  ;;  %v1260_v45 = vpop.xlane.xlu0 %1259  ;;  %14315 = vmatprep.mubr.msk.f32.mxu0 %vm15927_vm0, %v15928_v1  ;;  %v1789_v48 = vmul.f32 %v15529_v42, %v16404_v11  ;;  %v1797_v11 = vmul.f32 %v16315_v41, %v16459_v35 }
 0x434   : > { %15540 = vrcp.f32 %v1260_v45  ;;  %v1257_v25 = vpop.xlane.xlu1 %1256  ;;  %14320 = vmatprep.mubr.msk.f32.mxu1 %vm15927_vm0, %v15928_v1  ;;  %14323 = vmatprep.subr.mxu0 %v15928_v1  ;;  %v1787_v51 = vmul.f32 %v15531_v59, %v16406_v20  ;;  %v16575_v59 = vsel %vm16529_vm12, 1.0, %v15928_v1 }
 0x435   : > { %15542 = vrcp.f32 %v1257_v25  ;;  %14328 = vmatprep.subr.mxu1 %v15928_v1  ;;  %14321 = vmatmul.mubr.msk.f32.vlgmr.msra.gmra.mrb[26].mxu1 %vm1798_vm9, %v1789_v48  ;;  %v3222_v25 = vmul.f32 %v16575_v59, %v16304_v36 }
 0x436   : > { %v15533_v34 = vpop.eup %15532  ;;  %14316 = vmatmul.mubr.msk.f32.vlgmr.msra.gmra.mrb[28].mxu0 %vm1798_vm9, %v1787_v51  ;;  %14329 = vmatpush3.msk.msra.mxu1 %vm1802_vm7, %v1276_v52  ;;  %v3223_v52 = vmul.f32 %v16575_v59, %v16331_v44 }
 0x437   : > { %v15535_v60 = vpop.eup %15534  ;;  %14324 = vmatpush3.msk.msra.mxu0 %vm1802_vm7, %v1797_v11  ;;  %14325 = vmatprep.mubr.msk.f32.mxu0 %vm15927_vm0, %v15928_v1  ;;  %v1265_v20 = vmul.f32 %v15533_v34, %v16413_v27 }
 0x438   : > { %v1263_v4 = vpop.xlane.xlu1 %1262  ;;  %14330 = vmatprep.mubr.msk.f32.mxu1 %vm15927_vm0, %v15928_v1  ;;  %14333 = vmatprep.subr.mxu0 %v15928_v1  ;;  %v1791_v5 = vmul.f32 %v15535_v60, %v16415_v32 }
 0x439   : > { %15544 = vrcp.f32 %v1263_v4  ;;  %14338 = vmatprep.subr.mxu1 %v15928_v1  ;;  %14331 = vmatmul.mubr.msk.f32.vlgmr.msra.gmra.mrb[22].mxu1 %vm1798_vm9, %v1265_v20 }
 0x43a   : > { %v15537_v27 = vpop.eup %15536  ;;  %14326 = vmatmul.mubr.msk.f32.vlgmr.msra.gmra.mrb[30].mxu0 %vm1798_vm9, %v1791_v5  ;;  %14339 = vmatpush3.msk.msra.mxu1 %vm1802_vm7, %v1278_v10 }
 0x43b   : > { %v15539_v55 = vpop.eup %15538  ;;  %14334 = vmatpush3.msk.msra.mxu0 %vm1802_vm7, %v1277_v58  ;;  %14335 = vmatprep.mubr.msk.f32.mxu0 %vm15927_vm0, %v15928_v1  ;;  %v1269_v32 = vmul.f32 %v15537_v27, %v16421_v7 }
 0x43c   : > { %14340 = vmatprep.mubr.msk.f32.mxu1 %vm15927_vm0, %v15928_v1  ;;  %14343 = vmatprep.subr.mxu0 %v15928_v1  ;;  %v1267_v14 = vmul.f32 %v15539_v55, %v16423_v38 }
 0x43d   : > { %14348 = vmatprep.subr.mxu1 %v15928_v1  ;;  %14341 = vmatmul.mubr.msk.f32.vlgmr.msra.gmra.mrb[24].mxu1 %vm1798_vm9, %v1269_v32 }
 0x43e   : > { %v15541_v7 = vpop.eup %15540  ;;  %14336 = vmatmul.mubr.msk.f32.vlgmr.msra.gmra.mrb[26].mxu0 %vm1798_vm9, %v1267_v14  ;;  %14349 = vmatpush3.msk.msra.mxu1 %vm1802_vm7, %v1280_v21 }
 0x43f   : > { %v15543_v38 = vpop.eup %15542  ;;  %14344 = vmatpush3.msk.msra.mxu0 %vm1802_vm7, %v1279_v22  ;;  %14345 = vmatprep.mubr.msk.f32.mxu0 %vm15927_vm0, %v15928_v1  ;;  %v1273_v43 = vmul.f32 %v15541_v7, %v16429_v15 }
 0x440   : > { %14350 = vmatprep.mubr.msk.f32.mxu1 %vm15927_vm0, %v15928_v1  ;;  %14353 = vmatprep.subr.mxu0 %v15928_v1  ;;  %v1271_v63 = vmul.f32 %v15543_v38, %v16431_v17  ;;  %v16546_v17 = vsel %vm16529_vm12, 0.35355338, %v15928_v1  ;;  %vm11201_vm12 = vcmask 56320  }
 0x441   : > { %14351 = vmatmul.mubr.msk.f32.vlgmr.msra.gmra.mrb[26].mxu1 %vm1798_vm9, %v1273_v43  ;;  %14358 = vmatprep.subr.mxu1 %v15928_v1  ;;  %v2712_v9 = vmul.f32 %v16187_v56, %v16546_v17  ;;  %v2713_v42 = vmul.f32 %v16197_v61, %v16546_v17  ;;  %v2716_v45 = vmul.f32 %v16226_v12, %v16546_v17 }
 0x442   : > { %14346 = vmatmul.mubr.msk.f32.vlgmr.msra.gmra.mrb[28].mxu0 %vm1798_vm9, %v1271_v63  ;;  %14360 = vmatprep.mubr.msk.f32.mxu1 %vm15927_vm0, %v15928_v1  ;;  %v2715_v48 = vmul.f32 %v16219_v8, %v16546_v17  ;;  %v2717_v51 = vmul.f32 %v16253_v19, %v16546_v17 }
 0x443   : > { %v15545_v15 = vpop.eup %15544  ;;  %14354 = vmatpush3.msk.msra.mxu0 %vm1802_vm7, %v1281_v28  ;;  %14355 = vmatprep.mubr.msk.f32.mxu0 %vm15927_vm0, %v15928_v1 }
 0x444   : > { %v1275_v33 = vmul.f32 %v15545_v15, %v16437_v26  ;;  %14363 = vmatprep.subr.mxu0 %v15928_v1  ;;  %v2714_v26 = vmul.f32 %v16200_v2, %v16546_v17 }
 0x445   : > { %14359 = vmatpush3.xpose.msk.msra.mxu1 %vm464_vm2, %v16189_v57 }
 0x446   : > { %14356 = vmatmul.mubr.msk.f32.vlgmr.msra.gmra.mrb[30].mxu0 %vm1798_vm9, %v1275_v33  ;;  %14368 = vmatprep.subr.mxu1 %v15928_v1 }
 0x447   : > { %14365 = vmatprep.mubr.msk.f32.mxu0 %vm15927_vm0, %v15928_v1 }
 0x448   : > { %14361 = vmatmul.mubr.msk.f32.vlgmr.msra.gmra.mrb[28].mxu1 %vm464_vm2, %v2712_v9 }
 0x449   : > { %14369 = vmatpush3.xpose.msk.msra.mxu1 %vm464_vm2, %v16202_v3  ;;  %14370 = vmatprep.mubr.msk.f32.mxu1 %vm15927_vm0, %v15928_v1 }
 0x44a   : > { %14364 = vmatpush3.xpose.msk.msra.mxu0 %vm464_vm2, %v16206_v6  ;;  %14378 = vmatprep.subr.mxu1 %v15928_v1 }
 0x44b   : > { %14373 = vmatprep.subr.mxu0 %v15928_v1 }
 0x44c   : > { %14371 = vmatmul.mubr.msk.f32.vlgmr.msra.gmra.mrb[30].mxu1 %vm464_vm2, %v2714_v26 }
 0x44d   : > { %14366 = vmatmul.mubr.msk.f32.vlgmr.msra.gmra.mrb[32].mxu0 %vm464_vm2, %v2713_v42  ;;  %14379 = vmatpush3.xpose.msk.msra.mxu1 %vm464_vm2, %v16228_v13 }
 0x44e   : > { %14374 = vmatpush3.xpose.msk.msra.mxu0 %vm464_vm2, %v16233_v16  ;;  %14375 = vmatprep.mubr.msk.f32.mxu0 %vm15927_vm0, %v15928_v1 }
 0x44f   : > { %14380 = vmatprep.mubr.msk.f32.mxu1 %vm15927_vm0, %v15928_v1  ;;  %14383 = vmatprep.subr.mxu0 %v15928_v1 }
 0x450   : > { %14381 = vmatmul.mubr.msk.f32.vlgmr.msra.gmra.mrb[32].mxu1 %vm464_vm2, %v2716_v45  ;;  %14388 = vmatprep.subr.mxu1 %v15928_v1 }
 0x451   : > { %14376 = vmatmul.mubr.msk.f32.vlgmr.msra.gmra.mrb[34].mxu0 %vm464_vm2, %v2715_v48  ;;  %14389 = vmatpush3.msk.msra.mxu1 %vm1802_vm7, %v3222_v25 }
 0x452   : > { %14384 = vmatpush3.xpose.msk.msra.mxu0 %vm464_vm2, %v16265_v23  ;;  %14385 = vmatprep.mubr.msk.f32.mxu0 %vm15927_vm0, %v15928_v1 }
 0x453   : > { %14393 = vmatprep.subr.mxu0 %v15928_v1  ;;  %14390 = vmatprep.mubr.msk.f32.mxu1 %vm15927_vm0, %v15928_v1 }
 0x454   : > { %14398 = vmatprep.subr.mxu1 %v15928_v1 }
 0x455   : > { %14386 = vmatmul.mubr.msk.f32.vlgmr.msra.gmra.mrb[36].mxu0 %vm464_vm2, %v2717_v51 }
 0x456   : > { %14394 = vmatpush3.msk.msra.mxu0 %vm1802_vm7, %v3223_v52  ;;  %14395 = vmatprep.mubr.msk.f32.mxu0 %vm15927_vm0, %v15928_v1 }
 0x457   : > { %14403 = vmatprep.subr.mxu0 %v15928_v1 }
 0x51b   : > { %v2787_v11 = vpop.f32.mrb[28].mxu1 }
 0x51c   : > { %v14362_v34 = vpop.f32.mrb[29].mxu1  ;;  %v3156_v60 = vsel %vm1209_vm8, %v2787_v11, -inf }
 0x51d   : > { %3157 = vmax.xlane.f32.xlu0 %v3156_v60 }
 0x51f   : > { %v2933_v20 = vpop.f32.mrb[30].mxu1 }
 0x520   : > { %v2860_v4 = vpop.f32.mrb[32].mxu0  ;;  %v14372_v5 = vpop.f32.mrb[31].mxu1  ;;  %v3162_v10 = vsel %vm1209_vm8, %v2933_v20, -inf }
 0x521   : > { %v14367_v58 = vpop.f32.mrb[33].mxu0  ;;  %3163 = vmax.xlane.f32.xlu0 %v3162_v10  ;;  %v3159_v27 = vsel %vm1209_vm8, %v2860_v4, -inf }
 0x522   : > { %3160 = vmax.xlane.f32.xlu1 %v3159_v27 }
 0x523   : > { %v3079_v55 = vpop.f32.mrb[32].mxu1 }
 0x524   : > { %v3006_v32 = vpop.f32.mrb[34].mxu0  ;;  %v14382_v14 = vpop.f32.mrb[33].mxu1  ;;  %v3168_v21 = vsel %vm1209_vm8, %v3079_v55, -inf }
 0x525   : > { %v14377_v22 = vpop.f32.mrb[35].mxu0  ;;  %3169 = vmax.xlane.f32.xlu0 %v3168_v21  ;;  %v3165_v7 = vsel %vm1209_vm8, %v3006_v32, -inf }
 0x526   : > { %3166 = vmax.xlane.f32.xlu1 %v3165_v7 }
 0x528   : > { %v3152_v38 = vpop.f32.mrb[36].mxu0 }
 0x529   : > { %v14387_v43 = vpop.f32.mrb[37].mxu0  ;;  %v3171_v63 = vsel %vm1209_vm8, %v3152_v38, -inf }
 0x52a   : > { %3172 = vmax.xlane.f32.xlu1 %v3171_v63 }
 0x5aa   : > { %v3158_v62 = vpop.xlane.xlu0 %3157 }
 0x5ab   : > { %v3174_v28 = vsub.f32 %v2787_v11, %v3158_v62 }
 0x5ad   : > { %v3180_v15 = vmul.f32 1.442695, %v3174_v28 }
 0x5ae   : > { %v3164_v33 = vpop.xlane.xlu0 %3163 }
 0x5af   : > { %15546 = vpow2.f32 %v3180_v15  ;;  %v3176_v9 = vsub.f32 %v2933_v20, %v3164_v33  ;;  %v3161_v26 = vpop.xlane.xlu1 %3160 }
 0x5b0   : > { %v3175_v42 = vsub.f32 %v2860_v4, %v3161_v26 }
 0x5b1   : > { %v3184_v45 = vmul.f32 1.442695, %v3176_v9 }
 0x5b2   : > { %v3182_v48 = vmul.f32 1.442695, %v3175_v42  ;;  %v3170_v25 = vpop.xlane.xlu0 %3169 }
 0x5b3   : > { %15548 = vpow2.f32 %v3184_v45  ;;  %v3178_v51 = vsub.f32 %v3079_v55, %v3170_v25  ;;  %v3167_v52 = vpop.xlane.xlu1 %3166 }
 0x5b4   : > { %15550 = vpow2.f32 %v3182_v48  ;;  %v3177_v34 = vsub.f32 %v3006_v32, %v3167_v52  ;;  %v3224_v48 = vmul.f32 %v16575_v59, %v16286_v31 }
 0x5b5   : > { %v3188_v60 = vmul.f32 1.442695, %v3178_v51 }
 0x5b6   : > { %v3186_v5 = vmul.f32 1.442695, %v3177_v34 }
 0x5b7   : > { %15552 = vpow2.f32 %v3188_v60  ;;  %v3173_v10 = vpop.xlane.xlu1 %3172  ;;  %v3226_v60 = vmul.f32 %v16575_v59, %v16306_v37 }
 0x5b8   : > { %15554 = vpow2.f32 %v3186_v5  ;;  %v3179_v11 = vsub.f32 %v3152_v38, %v3173_v10  ;;  %v3225_v5 = vmul.f32 %v16575_v59, %v16446_v18 }
 0x5b9   : > { %v15547_v58 = vpop.eup %15546 }
 0x5ba   : > { %v3190_v27 = vmul.f32 1.442695, %v3179_v11  ;;  %v3192_v20 = vsel %vm1209_vm8, %v15547_v58, 0.0 }
 0x5bb   : > { %3193 = vadd.xlane.f32.xlu0 %v3192_v20  ;;  %v3227_v20 = vmul.f32 %v16575_v59, %v16459_v35 }
 0x5bc   : > { %15556 = vpow2.f32 %v3190_v27 }
 0x5bd   : > { %v15549_v4 = vpop.eup %15548 }
 0x5be   : > { %v15551_v14 = vpop.eup %15550  ;;  %v3198_v21 = vsel %vm1209_vm8, %v15549_v4, 0.0 }
 0x5bf   : > { %3199 = vadd.xlane.f32.xlu0 %v3198_v21  ;;  %v3195_v55 = vsel %vm1209_vm8, %v15551_v14, 0.0 }
 0x5c0   : > { %3196 = vadd.xlane.f32.xlu1 %v3195_v55 }
 0x5c1   : > { %v15553_v32 = vpop.eup %15552 }
 0x5c2   : > { %v15555_v22 = vpop.eup %15554  ;;  %v3204_v7 = vsel %vm1209_vm8, %v15553_v32, 0.0 }
 0x5c3   : > { %3205 = vadd.xlane.f32.xlu0 %v3204_v7  ;;  %v3201_v38 = vsel %vm1209_vm8, %v15555_v22, 0.0 }
 0x5c4   : > { %3202 = vadd.xlane.f32.xlu1 %v3201_v38 }
 0x5c6   : > { %v15557_v43 = vpop.eup %15556 }
 0x5c7   : > { %v3207_v63 = vsel %vm1209_vm8, %v15557_v43, 0.0 }
 0x5c8   : > { %3208 = vadd.xlane.f32.xlu1 %v3207_v63 }
 0x648   : > { %v3194_v62 = vpop.xlane.xlu0 %3193 }
 0x649   : > { %15558 = vrcp.f32 %v3194_v62 }
 0x64c   : > { %v3200_v28 = vpop.xlane.xlu0 %3199 }
 0x64d   : > { %15560 = vrcp.f32 %v3200_v28  ;;  %v3197_v15 = vpop.xlane.xlu1 %3196 }
 0x64e   : > { %15562 = vrcp.f32 %v3197_v15 }
 0x650   : > { %v3206_v33 = vpop.xlane.xlu0 %3205 }
 0x651   : > { %15564 = vrcp.f32 %v3206_v33  ;;  %v3203_v9 = vpop.xlane.xlu1 %3202 }
 0x652   : > { %15566 = vrcp.f32 %v3203_v9 }
 0x653   : > { %v15559_v26 = vpop.eup %15558 }
 0x654   : > { %v3211_v42 = vmul.f32 %v15559_v26, %v15547_v58 }
 0x655   : > { %v3209_v45 = vpop.xlane.xlu1 %3208 }
 0x656   : > { %15568 = vrcp.f32 %v3209_v45  ;;  %14391 = vmatmul.mubr.msk.f32.vlgmr.msra.gmra.mrb[22].mxu1 %vm1798_vm9, %v3211_v42 }
 0x657   : > { %v15561_v25 = vpop.eup %15560  ;;  %14399 = vmatpush3.msk.msra.mxu1 %vm1802_vm7, %v3224_v48  ;;  %14400 = vmatprep.mubr.msk.f32.mxu1 %vm15927_vm0, %v15928_v1 }
 0x658   : > { %v15563_v51 = vpop.eup %15562  ;;  %14408 = vmatprep.subr.mxu1 %v15928_v1  ;;  %v3215_v52 = vmul.f32 %v15561_v25, %v15549_v4 }
 0x659   : > { %v3213_v34 = vmul.f32 %v15563_v51, %v15551_v14  ;;  %v16665_v14 = vsel %vm16648_vm15, 0.35355338, %v15928_v1 }
 0x65a   : > { %14401 = vmatmul.mubr.msk.f32.vlgmr.msra.gmra.mrb[24].mxu1 %vm1798_vm9, %v3215_v52  ;;  %v3690_v55 = vmul.f32 %v16187_v56, %v16665_v14  ;;  %v3691_v56 = vmul.f32 %v16197_v61, %v16665_v14  ;;  %v3694_v61 = vmul.f32 %v16226_v12, %v16665_v14 }
 0x65b   : > { %v15565_v10 = vpop.eup %15564  ;;  %14396 = vmatmul.mubr.msk.f32.vlgmr.msra.gmra.mrb[26].mxu0 %vm1798_vm9, %v3213_v34  ;;  %14409 = vmatpush3.msk.msra.mxu1 %vm1802_vm7, %v3226_v60 }
 0x65c   : > { %v15567_v11 = vpop.eup %15566  ;;  %14404 = vmatpush3.msk.msra.mxu0 %vm1802_vm7, %v3225_v5  ;;  %14405 = vmatprep.mubr.msk.f32.mxu0 %vm15927_vm0, %v15928_v1  ;;  %v3219_v58 = vmul.f32 %v15565_v10, %v15553_v32 }
 0x65d   : > { %14410 = vmatprep.mubr.msk.f32.mxu1 %vm15927_vm0, %v15928_v1  ;;  %14413 = vmatprep.subr.mxu0 %v15928_v1  ;;  %v3217_v27 = vmul.f32 %v15567_v11, %v15555_v22 }
 0x65e   : > { %14411 = vmatmul.mubr.msk.f32.vlgmr.msra.gmra.mrb[26].mxu1 %vm1798_vm9, %v3219_v58  ;;  %14418 = vmatprep.subr.mxu1 %v15928_v1 }
 0x65f   : > { %14406 = vmatmul.mubr.msk.f32.vlgmr.msra.gmra.mrb[28].mxu0 %vm1798_vm9, %v3217_v27  ;;  %14420 = vmatprep.mubr.msk.f32.mxu1 %vm15927_vm0, %v15928_v1 }
 0x660   : > { %v15569_v4 = vpop.eup %15568  ;;  %14414 = vmatpush3.msk.msra.mxu0 %vm1802_vm7, %v3227_v20  ;;  %14415 = vmatprep.mubr.msk.f32.mxu0 %vm15927_vm0, %v15928_v1 }
 0x661   : > { %v3221_v21 = vmul.f32 %v15569_v4, %v15557_v43  ;;  %14423 = vmatprep.subr.mxu0 %v15928_v1 }
 0x662   : > { %14419 = vmatpush3.xpose.msk.msra.mxu1 %vm464_vm2, %v16189_v57  ;;  %v3692_v57 = vmul.f32 %v16200_v2, %v16665_v14  ;;  %v3693_v2 = vmul.f32 %v16219_v8, %v16665_v14  ;;  %v3695_v8 = vmul.f32 %v16253_v19, %v16665_v14 }
 0x663   : > { %14416 = vmatmul.mubr.msk.f32.vlgmr.msra.gmra.mrb[30].mxu0 %vm1798_vm9, %v3221_v21  ;;  %14428 = vmatprep.subr.mxu1 %v15928_v1 }
 0x664   : > { %14425 = vmatprep.mubr.msk.f32.mxu0 %vm15927_vm0, %v15928_v1 }
 0x665   : > { %14421 = vmatmul.mubr.msk.f32.vlgmr.msra.gmra.mrb[34].mxu1 %vm464_vm2, %v3690_v55 }
 0x666   : > { %14429 = vmatpush3.xpose.msk.msra.mxu1 %vm464_vm2, %v16202_v3  ;;  %14430 = vmatprep.mubr.msk.f32.mxu1 %vm15927_vm0, %v15928_v1  ;;  %v16693_v3 = vsel %vm16648_vm15, 1.0, %v15928_v1 }
 0x667   : > { %14424 = vmatpush3.xpose.msk.msra.mxu0 %vm464_vm2, %v16206_v6  ;;  %14438 = vmatprep.subr.mxu1 %v15928_v1  ;;  %v4200_v6 = vmul.f32 %v16693_v3, %v16304_v36  ;;  %v4201_v12 = vmul.f32 %v16693_v3, %v16331_v44 }
 0x668   : > { %14433 = vmatprep.subr.mxu0 %v15928_v1 }
 0x669   : > { %14431 = vmatmul.mubr.msk.f32.vlgmr.msra.gmra.mrb[36].mxu1 %vm464_vm2, %v3692_v57 }
 0x66a   : > { %14426 = vmatmul.mubr.msk.f32.vlgmr.msra.gmra.mrb[38].mxu0 %vm464_vm2, %v3691_v56  ;;  %14439 = vmatpush3.xpose.msk.msra.mxu1 %vm464_vm2, %v16228_v13 }
 0x66b   : > { %14434 = vmatpush3.xpose.msk.msra.mxu0 %vm464_vm2, %v16233_v16  ;;  %14435 = vmatprep.mubr.msk.f32.mxu0 %vm15927_vm0, %v15928_v1 }
 0x66c   : > { %14440 = vmatprep.mubr.msk.f32.mxu1 %vm15927_vm0, %v15928_v1  ;;  %14443 = vmatprep.subr.mxu0 %v15928_v1 }
 0x66d   : > { %14441 = vmatmul.mubr.msk.f32.vlgmr.msra.gmra.mrb[38].mxu1 %vm464_vm2, %v3694_v61  ;;  %14448 = vmatprep.subr.mxu1 %v15928_v1 }
 0x66e   : > { %14436 = vmatmul.mubr.msk.f32.vlgmr.msra.gmra.mrb[40].mxu0 %vm464_vm2, %v3693_v2  ;;  %14449 = vmatpush3.msk.msra.mxu1 %vm1802_vm7, %v4200_v6 }
 0x66f   : > { %14444 = vmatpush3.xpose.msk.msra.mxu0 %vm464_vm2, %v16265_v23  ;;  %14445 = vmatprep.mubr.msk.f32.mxu0 %vm15927_vm0, %v15928_v1 }
 0x670   : > { %14453 = vmatprep.subr.mxu0 %v15928_v1  ;;  %14450 = vmatprep.mubr.msk.f32.mxu1 %vm15927_vm0, %v15928_v1 }
 0x671   : > { %14458 = vmatprep.subr.mxu1 %v15928_v1 }
 0x672   : > { %14446 = vmatmul.mubr.msk.f32.vlgmr.msra.gmra.mrb[42].mxu0 %vm464_vm2, %v3695_v8 }
 0x673   : > { %14454 = vmatpush3.msk.msra.mxu0 %vm1802_vm7, %v4201_v12  ;;  %14455 = vmatprep.mubr.msk.f32.mxu0 %vm15927_vm0, %v15928_v1 }
 0x674   : > { %14463 = vmatprep.subr.mxu0 %v15928_v1 }
 0x738   : > { %v3765_v13 = vpop.f32.mrb[34].mxu1 }
 0x739   : > { %v14422_v16 = vpop.f32.mrb[35].mxu1  ;;  %v4134_v19 = vsel %vm1209_vm8, %v3765_v13, -inf }
 0x73a   : > { %4135 = vmax.xlane.f32.xlu0 %v4134_v19 }
 0x73c   : > { %v3911_v23 = vpop.f32.mrb[36].mxu1 }
 0x73d   : > { %v3838_v36 = vpop.f32.mrb[38].mxu0  ;;  %v14432_v32 = vpop.f32.mrb[37].mxu1  ;;  %v4140_v44 = vsel %vm1209_vm8, %v3911_v23, -inf }
 0x73e   : > { %v14427_v22 = vpop.f32.mrb[39].mxu0  ;;  %4141 = vmax.xlane.f32.xlu0 %v4140_v44  ;;  %v4137_v7 = vsel %vm1209_vm8, %v3838_v36, -inf }
 0x73f   : > { %4138 = vmax.xlane.f32.xlu1 %v4137_v7 }
 0x740   : > { %v4057_v38 = vpop.f32.mrb[38].mxu1 }
 0x741   : > { %v3984_v43 = vpop.f32.mrb[40].mxu0  ;;  %v14442_v63 = vpop.f32.mrb[39].mxu1  ;;  %v4146_v62 = vsel %vm1209_vm8, %v4057_v38, -inf }
 0x742   : > { %v14437_v28 = vpop.f32.mrb[41].mxu0  ;;  %4147 = vmax.xlane.f32.xlu0 %v4146_v62  ;;  %v4143_v15 = vsel %vm1209_vm8, %v3984_v43, -inf }
 0x743   : > { %4144 = vmax.xlane.f32.xlu1 %v4143_v15  ;;  %v4202_v28 = vmul.f32 %v16693_v3, %v16286_v31  ;;  %v4203_v31 = vmul.f32 %v16693_v3, %v16446_v18  ;;  %v4205_v18 = vmul.f32 %v16693_v3, %v16459_v35  ;;  %v4668_v35 = vld [vmem:[#allocation6 + $0x100] sm:$0xff] }
 0x745   : > { %v4130_v33 = vpop.f32.mrb[42].mxu0 }
 0x746   : > { %v14447_v9 = vpop.f32.mrb[43].mxu0  ;;  %v4149_v26 = vsel %vm1209_vm8, %v4130_v33, -inf }
 0x747   : > { %4150 = vmax.xlane.f32.xlu1 %v4149_v26 }
 0x7c7   : > { %v4136_v42 = vpop.xlane.xlu0 %4135 }
 0x7c8   : > { %v4152_v45 = vsub.f32 %v3765_v13, %v4136_v42  ;;  %v4204_v42 = vmul.f32 %v16693_v3, %v16306_v37 }
 0x7ca   : > { %v4158_v48 = vmul.f32 1.442695, %v4152_v45 }
 0x7cb   : > { %v4142_v25 = vpop.xlane.xlu0 %4141 }
 0x7cc   : > { %15570 = vpow2.f32 %v4158_v48  ;;  %v4154_v51 = vsub.f32 %v3911_v23, %v4142_v25  ;;  %v4139_v52 = vpop.xlane.xlu1 %4138 }
 0x7cd   : > { %v4153_v34 = vsub.f32 %v3838_v36, %v4139_v52 }
 0x7ce   : > { %v4162_v60 = vmul.f32 1.442695, %v4154_v51 }
 0x7cf   : > { %v4160_v5 = vmul.f32 1.442695, %v4153_v34  ;;  %v4148_v10 = vpop.xlane.xlu0 %4147  ;;  %v4669_v34 = vld [vmem:[#allocation6 + $0x108] sm:$0xff] }
 0x7d0   : > { %15572 = vpow2.f32 %v4162_v60  ;;  %v4156_v11 = vsub.f32 %v4057_v38, %v4148_v10  ;;  %v4145_v58 = vpop.xlane.xlu1 %4144  ;;  %v15170_v60 = vpack.c.bf16 %v4669_v34, %v4668_v35  ;;  %v4671_v10 = vld [vmem:[#allocation6 + $0x118] sm:$0xff] }
 0x7d1   : > { %15574 = vpow2.f32 %v4160_v5  ;;  %v4155_v27 = vsub.f32 %v3984_v43, %v4145_v58  ;;  %v4670_v5 = vld [vmem:[#allocation6 + $0x110] sm:$0xff] }
 0x7d2   : > { %v4166_v50 = vmul.f32 1.442695, %v4156_v11  ;;  %v15173_v11 = vpack.c.bf16 %v4671_v10, %v4670_v5 }
 0x7d3   : > { %v4164_v20 = vmul.f32 1.442695, %v4155_v27 }
 0x7d4   : > { %15576 = vpow2.f32 %v4166_v50  ;;  %v4151_v4 = vpop.xlane.xlu1 %4150 }
 0x7d5   : > { %15578 = vpow2.f32 %v4164_v20  ;;  %v4157_v21 = vsub.f32 %v4130_v33, %v4151_v4 }
 0x7d6   : > { %v15571_v55 = vpop.eup %15570 }
 0x7d7   : > { %v4168_v57 = vmul.f32 1.442695, %v4157_v21  ;;  %v4170_v56 = vsel %vm1209_vm8, %v15571_v55, 0.0 }
 0x7d8   : > { %4171 = vadd.xlane.f32.xlu0 %v4170_v56 }
 0x7d9   : > { %15580 = vpow2.f32 %v4168_v57 }
 0x7da   : > { %v15573_v61 = vpop.eup %15572 }
 0x7db   : > { %v15575_v2 = vpop.eup %15574  ;;  %v4176_v6 = vsel %vm1209_vm8, %v15573_v61, 0.0 }
 0x7dc   : > { %4177 = vadd.xlane.f32.xlu0 %v4176_v6  ;;  %v4173_v8 = vsel %vm1209_vm8, %v15575_v2, 0.0 }
 0x7dd   : > { %4174 = vadd.xlane.f32.xlu1 %v4173_v8 }
 0x7de   : > { %v15577_v12 = vpop.eup %15576 }
 0x7df   : > { %v15579_v13 = vpop.eup %15578  ;;  %v4182_v16 = vsel %vm1209_vm8, %v15577_v12, 0.0 }
 0x7e0   : > { %4183 = vadd.xlane.f32.xlu0 %v4182_v16  ;;  %v4179_v19 = vsel %vm1209_vm8, %v15579_v13, 0.0  ;;  %v13556_v16 = vld [vmem:[#allocation6 + $0x183] ss:$0 sm:$0xff] }
 0x7e1   : > { %4180 = vadd.xlane.f32.xlu1 %v4179_v19 }
 0x7e3   : > { %v15581_v23 = vpop.eup %15580 }
 0x7e4   : > { %v4185_v36 = vsel %vm1209_vm8, %v15581_v23, 0.0 }
 0x7e5   : > { %4186 = vadd.xlane.f32.xlu1 %v4185_v36 }
 0x865   : > { %v4172_v32 = vpop.xlane.xlu0 %4171 }
 0x866   : > { %15582 = vrcp.f32 %v4172_v32 }
 0x869   : > { %v4178_v44 = vpop.xlane.xlu0 %4177 }
 0x86a   : > { %15584 = vrcp.f32 %v4178_v44  ;;  %v4175_v22 = vpop.xlane.xlu1 %4174 }
 0x86b   : > { %15586 = vrcp.f32 %v4175_v22 }
 0x86d   : > { %v4184_v7 = vpop.xlane.xlu0 %4183 }
 0x86e   : > { %15588 = vrcp.f32 %v4184_v7  ;;  %v4181_v38 = vpop.xlane.xlu1 %4180 }
 0x86f   : > { %15590 = vrcp.f32 %v4181_v38 }
 0x870   : > { %v15583_v43 = vpop.eup %15582 }
 0x871   : > { %v4189_v63 = vmul.f32 %v15583_v43, %v15571_v55 }
 0x872   : > { %v4187_v62 = vpop.xlane.xlu1 %4186 }
 0x873   : > { %15592 = vrcp.f32 %v4187_v62  ;;  %14451 = vmatmul.mubr.msk.f32.vlgmr.msra.gmra.mrb[22].mxu1 %vm1798_vm9, %v4189_v63 }
 0x874   : > { %v15585_v15 = vpop.eup %15584  ;;  %14459 = vmatpush3.msk.msra.mxu1 %vm1802_vm7, %v4202_v28  ;;  %14460 = vmatprep.mubr.msk.f32.mxu1 %vm15927_vm0, %v15928_v1 }
 0x875   : > { %v15587_v33 = vpop.eup %15586  ;;  %14468 = vmatprep.subr.mxu1 %v15928_v1  ;;  %v4193_v9 = vmul.f32 %v15585_v15, %v15573_v61 }
 0x876   : > { %v4191_v26 = vmul.f32 %v15587_v33, %v15575_v2 }
 0x877   : > { %14461 = vmatmul.mubr.msk.f32.vlgmr.msra.gmra.mrb[24].mxu1 %vm1798_vm9, %v4193_v9 }
 0x878   : > { %v15589_v45 = vpop.eup %15588  ;;  %14456 = vmatmul.mubr.msk.f32.vlgmr.msra.gmra.mrb[26].mxu0 %vm1798_vm9, %v4191_v26  ;;  %14469 = vmatpush3.msk.msra.mxu1 %vm1802_vm7, %v4204_v42 }
 0x879   : > { %v15591_v48 = vpop.eup %15590  ;;  %14464 = vmatpush3.msk.msra.mxu0 %vm1802_vm7, %v4203_v31  ;;  %14465 = vmatprep.mubr.msk.f32.mxu0 %vm15927_vm0, %v15928_v1  ;;  %v4197_v25 = vmul.f32 %v15589_v45, %v15577_v12 }
 0x87a   : > { %14470 = vmatprep.mubr.msk.f32.mxu1 %vm15927_vm0, %v15928_v1  ;;  %14473 = vmatprep.subr.mxu0 %v15928_v1  ;;  %v4195_v37 = vmul.f32 %v15591_v48, %v15579_v13 }
 0x87b   : > { %14471 = vmatmul.mubr.msk.f32.vlgmr.msra.gmra.mrb[26].mxu1 %vm1798_vm9, %v4197_v25  ;;  %15169 = vmatprep.subr.bf16.mxu1 %v15926_v0 }
 0x87c   : > { %14466 = vmatmul.mubr.msk.f32.vlgmr.msra.gmra.mrb[28].mxu0 %vm1798_vm9, %v4195_v37  ;;  %14486 = vmatprep.mubr.msk.f32.mxu1 %vm15927_vm0, %v15928_v1 }
 0x87d   : > { %v15593_v51 = vpop.eup %15592  ;;  %14474 = vmatpush3.msk.msra.mxu0 %vm1802_vm7, %v4205_v18  ;;  %14475 = vmatprep.mubr.msk.f32.mxu0 %vm15927_vm0, %v15928_v1 }
 0x87e   : > { %v4199_v52 = vmul.f32 %v15593_v51, %v15581_v23  ;;  %15175 = vmatprep.subr.bf16.mxu0 %v15926_v0  ;;  %15171 = vmatpush3.bf16.msra.mxu1 %v15170_v60  ;;  %v15930_v51 = vmov 1985246804  }
 0x87f   : > { %15172 = vmatprep.subr.bf16.mxu1 %v15926_v0 }
 0x880   : > { %14476 = vmatmul.mubr.msk.f32.vlgmr.msra.gmra.mrb[30].mxu0 %vm1798_vm9, %v4199_v52  ;;  %v4825_v52 = vunpack.c.l.s4 %v15930_v51 }
 0x881   : > { %14503 = vmatprep.mubr.msk.f32.mxu0 %vm15927_vm0, %v15928_v1 }
 0x882   : > { %15174 = vmatpush3.bf16.msra.mxu1 %v15173_v11  ;;  %v4826_v34 = vunpack.c.0.s8 %v4825_v52 }
 0x883   : > { %15181 = vmatprep.subr.bf16.mxu1 %v15926_v0 }
 0x946   : > { %v4278_v58 = vpop.f32.mrb[22].mxu1 }
 0x947   : > { %v14452_v27 = vpop.f32.mrb[23].mxu1 }
 0x94a   : > { %v4430_v50 = vpop.f32.mrb[24].mxu1 }
 0x94b   : > { %v4354_v20 = vpop.f32.mrb[26].mxu0  ;;  %v14462_v4 = vpop.f32.mrb[25].mxu1 }
 0x94c   : > { %v4683_v21 = vcombine.low %v4278_v58, %v4354_v20  ;;  %v14457_v55 = vpop.f32.mrb[27].mxu0 }
 0x94e   : > { %14487 = vmatmul.mubr.msk.f32.vlgmr.msra.gmra.mrb[40].mxu1 %vm464_vm2, %v4683_v21  ;;  %v4582_v57 = vpop.f32.mrb[26].mxu1 }
 0x94f   : > { %v4506_v56 = vpop.f32.mrb[28].mxu0  ;;  %v14472_v61 = vpop.f32.mrb[27].mxu1  ;;  %14489 = vmatprep.mubr.msk.f32.mxu1 %vm15927_vm0, %v15928_v1 }
 0x950   : > { %v4684_v2 = vcombine.low %v4430_v50, %v4506_v56  ;;  %v14467_v6 = vpop.f32.mrb[29].mxu0 }
 0x952   : > { %14490 = vmatmul.mubr.msk.f32.gmra.mrb[42].mxu1 %vm464_vm2, %v4684_v2 }
 0x953   : > { %v4658_v8 = vpop.f32.mrb[30].mxu0  ;;  %14492 = vmatprep.mubr.msk.f32.mxu1 %vm15927_vm0, %v15928_v1 }
 0x954   : > { %v4685_v12 = vcombine.low %v4582_v57, %v4658_v8  ;;  %v14477_v13 = vpop.f32.mrb[31].mxu0 }
 0x956   : > { %14493 = vmatmul.mubr.msk.f32.gmra.mrb[44].mxu1 %vm464_vm2, %v4685_v12 }
 0x957   : > { %14528 = vmatprep.mubr.msk.f32.mxu1 %vm15927_vm0, %v15928_v1 }
 0xa21   : > { %v4758_v19 = vpop.f32.mrb[40].mxu1 }
 0xa22   : > { %v4759_v23 = vadd.f32 %v13556_v16, %v4758_v19  ;;  %v14488_v36 = vpop.f32.mrb[41].mxu1 }
 0xa24   : > { %v4775_v32 = vcombine.high %v4759_v23, %v4759_v23  ;;  %v4781_v22 = vadd.f32 %v4759_v23, %v16131_v29 }
 0xa25   : > { %v4763_v44 = vpop.f32.mrb[42].mxu1 }
 0xa26   : > { %v4764_v7 = vadd.f32 %v13556_v16, %v4763_v44  ;;  %v14491_v38 = vpop.f32.mrb[43].mxu1  ;;  %v4782_v43 = vadd.f32 %v4775_v32, %v16133_v30 }
 0xa28   : > { %v4776_v63 = vcombine.high %v4764_v7, %v4764_v7  ;;  %v4795_v62 = vcombine.low %v4781_v22, %v4782_v43  ;;  %v4783_v15 = vadd.f32 %v4764_v7, %v16137_v39  ;;  %v15929_v39 = vmov 839922192  }
 0xa29   : > { %v4768_v28 = vpop.f32.mrb[44].mxu1  ;;  %v4818_v18 = vunpack.c.l.s4 %v15929_v39 }
 0xa2a   : > { %v4769_v33 = vadd.f32 %v13556_v16, %v4768_v28  ;;  %v14494_v9 = vpop.f32.mrb[45].mxu1  ;;  %v4801_v26 = vsel %vm464_vm2, %v4795_v62, 0.0  ;;  %v4784_v42 = vadd.f32 %v4776_v63, %v16139_v40  ;;  %v16799_v40 = vshrl.u32 %v420_v49, 7  ;;  %v4990_v63 = vld [vmem:[#allocation6 + $0x120] sm:$0xff]  ;;  %v4991_v62 = vld [vmem:[#allocation6 + $0x128] sm:$0xff] }
 0xa2b   : > { %4802 = vadd.xlane.f32.xlu0 %v4801_v26  ;;  %v4819_v35 = vunpack.c.0.s8 %v4818_v18  ;;  %v15176_v28 = vpack.c.bf16 %v4991_v62, %v4990_v63  ;;  %v5097_v26 = vld [vmem:[#allocation6 + $0x140] sm:$0xff] }
 0xa2c   : > { %v4777_v31 = vcombine.high %v4769_v33, %v4769_v33  ;;  %v4796_v45 = vcombine.low %v4783_v15, %v4784_v42  ;;  %v4785_v29 = vadd.f32 %v4769_v33, %v16150_v46  ;;  %v16805_v60 = vsub.s32 %v4826_v34, %v16799_v40  ;;  %v4993_v33 = vld [vmem:[#allocation6 + $0x138] sm:$0xff] }
 0xa2d   : > { %v16802_v46 = vsub.s32 %v4819_v35, %v16799_v40  ;;  %15177 = vmatpush3.bf16.msra.mxu0 %v15176_v28 }
 0xa2e   : > { %v4804_v48 = vsel %vm464_vm2, %v4796_v45, 0.0  ;;  %v4786_v30 = vadd.f32 %v4777_v31, %v16152_v47  ;;  %15178 = vmatprep.subr.bf16.mxu0 %v15926_v0  ;;  %v5099_v31 = vld [vmem:[#allocation6 + $0x150] sm:$0xff] }
 0xa2f   : > { %4805 = vadd.xlane.f32.xlu1 %v4804_v48 }
 0xa30   : > { %v4797_v25 = vcombine.low %v4785_v29, %v4786_v30 }
 0xa32   : > { %v4807_v37 = vsel %vm464_vm2, %v4797_v25, 0.0  ;;  %v5102_v25 = vld [vmem:[#allocation6 + $0x168] sm:$0xff] }
 0xa33   : > { %4808 = vadd.xlane.f32.xlu0 %v4807_v37 }
 0xab8   : > { %v4803_v47 = vpop.xlane.xlu0 %4802 }
 0xab9   : > { %v4811_v5 = vmul.f32 0.03125, %v4803_v47 }
 0xabb   : > { %v4823_v10 = vrot.slane %v4811_v5, %v16802_v46  ;;  %v4830_v11 = vrot.slane %v4811_v5, %v16805_v60 }
 0xabc   : > { %v4806_v58 = vpop.xlane.xlu1 %4805 }
 0xabd   : > { %v16809_v27 = vsub.f32 %v4781_v22, %v4823_v10  ;;  %v16811_v50 = vsub.f32 %v4782_v43, %v4830_v11  ;;  %v4812_v49 = vmul.f32 0.03125, %v4806_v58  ;;  %v13560_v11 = vld [vmem:[#allocation6 + $0x186] ss:$0 sm:$0xff] }
 0xabf   : > { %v4837_v20 = vrot.slane %v4812_v49, %v16802_v46  ;;  %v4844_v4 = vrot.slane %v4812_v49, %v16805_v60  ;;  %v4871_v21 = vmul.f32 %v16809_v27, %v16809_v27  ;;  %v4872_v55 = vmul.f32 %v16811_v50, %v16811_v50  ;;  %v13561_v49 = vld [vmem:[#allocation6 + $0x187] ss:$0 sm:$0xff] }
 0xac0   : > { %v4809_v57 = vpop.xlane.xlu0 %4808 }
 0xac1   : > { %v16819_v56 = vsub.f32 %v4783_v15, %v4837_v20  ;;  %v16821_v61 = vsub.f32 %v4784_v42, %v4844_v4  ;;  %v4813_v2 = vmul.f32 0.03125, %v4809_v57  ;;  %v4883_v6 = vcombine.low %v4871_v21, %v4872_v55  ;;  %v4992_v15 = vld [vmem:[#allocation6 + $0x130] sm:$0xff]  ;;  %v5098_v42 = vld [vmem:[#allocation6 + $0x148] sm:$0xff] }
 0xac2   : > { %v15179_v9 = vpack.c.bf16 %v4993_v33, %v4992_v15  ;;  %v15182_v45 = vpack.c.bf16 %v5098_v42, %v5097_v26  ;;  %v4969_v21 = vcombine.high %v13560_v11, %v13560_v11 }
 0xac3   : > { %v4851_v8 = vrot.slane %v4813_v2, %v16802_v46  ;;  %v4858_v12 = vrot.slane %v4813_v2, %v16805_v60  ;;  %v4889_v13 = vsel %vm464_vm2, %v4883_v6, 0.0  ;;  %v4873_v16 = vmul.f32 %v16819_v56, %v16819_v56 }
 0xac4   : > { %4890 = vadd.xlane.f32.xlu1 %v4889_v13  ;;  %v4874_v19 = vmul.f32 %v16821_v61, %v16821_v61  ;;  %15180 = vmatpush3.bf16.msra.mxu0 %v15179_v9  ;;  %v4982_v2 = vcombine.high %v13561_v49, %v13561_v49 }
 0xac5   : > { %v16830_v23 = vsub.f32 %v4785_v29, %v4851_v8  ;;  %v16832_v36 = vsub.f32 %v4786_v30, %v4858_v12  ;;  %15193 = vmatprep.subr.bf16.mxu0 %v15926_v0  ;;  %v5100_v29 = vld [vmem:[#allocation6 + $0x158] sm:$0xff]  ;;  %15183 = vmatpush3.bf16.msra.mxu1 %v15182_v45  ;;  %v5101_v30 = vld [vmem:[#allocation6 + $0x160] sm:$0xff] }
 0xac6   : > { %v4884_v32 = vcombine.low %v4873_v16, %v4874_v19  ;;  %v15185_v48 = vpack.c.bf16 %v5100_v29, %v5099_v31  ;;  %15184 = vmatprep.subr.bf16.mxu1 %v15926_v0  ;;  %v15188_v37 = vpack.c.bf16 %v5102_v25, %v5101_v30  ;;  %v13562_v29 = vld [vmem:[#allocation6 + $0x184] ss:$0 sm:$0xff] }
 0xac7   : > { %v4875_v44 = vmul.f32 %v16830_v23, %v16830_v23  ;;  %v4876_v22 = vmul.f32 %v16832_v36, %v16832_v36 }
 0xac8   : > { %v4892_v7 = vsel %vm464_vm2, %v4884_v32, 0.0 }
 0xac9   : > { %4893 = vadd.xlane.f32.xlu0 %v4892_v7  ;;  %v4885_v38 = vcombine.low %v4875_v44, %v4876_v22  ;;  %15186 = vmatpush3.bf16.msra.mxu1 %v15185_v48 }
 0xaca   : > { %15187 = vmatprep.subr.bf16.mxu1 %v15926_v0 }
 0xacb   : > { %v4895_v43 = vsel %vm464_vm2, %v4885_v38, 0.0 }
 0xacc   : > { %4896 = vadd.xlane.f32.xlu1 %v4895_v43 }
 0xacd   : > { %15189 = vmatpush3.bf16.msra.mxu1 %v15188_v37 }
 0xace   : > { %15190 = vmatprep.subr.bf16.mxu1 %v15926_v0 }
 0xb51   : > { %v4891_v39 = vpop.xlane.xlu1 %4890 }
 0xb52   : > { %v4898_v18 = vmul.f32 0.03125, %v4891_v39 }
 0xb54   : > { %v4901_v51 = vadd.f32 1e-05, %v4898_v18 }
 0xb56   : > { %15594 = vrsqrt.f32 %v4901_v51  ;;  %v4894_v52 = vpop.xlane.xlu0 %4893 }
 0xb57   : > { %v4899_v35 = vmul.f32 0.03125, %v4894_v52 }
 0xb59   : > { %v4902_v34 = vadd.f32 1e-05, %v4899_v35  ;;  %v4897_v47 = vpop.xlane.xlu1 %4896 }
 0xb5a   : > { %v4900_v5 = vmul.f32 0.03125, %v4897_v47 }
 0xb5b   : > { %15596 = vrsqrt.f32 %v4902_v34 }
 0xb5c   : > { %v4903_v10 = vadd.f32 1e-05, %v4900_v5 }
 0xb5e   : > { %15598 = vrsqrt.f32 %v4903_v10  ;;  %v13566_v10 = vld [vmem:[#allocation6 + $0x185] ss:$0 sm:$0xff] }
 0xb60   : > { %v15595_v58 = vpop.eup %15594 }
 0xb61   : > { %v4916_v20 = vrot.slane %v15595_v58, %v16802_v46  ;;  %v4923_v4 = vrot.slane %v15595_v58, %v16805_v60 }
 0xb63   : > { %v4958_v55 = vmul.f32 %v4916_v20, %v16809_v27  ;;  %v4959_v57 = vmul.f32 %v4923_v4, %v16811_v50 }
 0xb65   : > { %v15597_v6 = vpop.eup %15596  ;;  %v4971_v8 = vmul.f32 %v13560_v11, %v4958_v55  ;;  %v4972_v12 = vmul.f32 %v4969_v21, %v4959_v57 }
 0xb66   : > { %v4930_v13 = vrot.slane %v15597_v6, %v16802_v46  ;;  %v4937_v16 = vrot.slane %v15597_v6, %v16805_v60 }
 0xb67   : > { %v4984_v19 = vadd.f32 %v13561_v49, %v4971_v8  ;;  %v4985_v32 = vadd.f32 %v4982_v2, %v4972_v12 }
 0xb68   : > { %v15599_v44 = vpop.eup %15598  ;;  %v4960_v22 = vmul.f32 %v4930_v13, %v16819_v56  ;;  %v4961_v7 = vmul.f32 %v4937_v16, %v16821_v61 }
 0xb69   : > { %v4944_v38 = vrot.slane %v15599_v44, %v16802_v46  ;;  %v4951_v27 = vrot.slane %v15599_v44, %v16805_v60  ;;  %v5005_v50 = vcombine.low %v4984_v19, %v4985_v32 }
 0xb6a   : > { %v4973_v43 = vmul.f32 %v13560_v11, %v4960_v22  ;;  %v4974_v63 = vmul.f32 %v4969_v21, %v4961_v7 }
 0xb6b   : > { %14504 = vmatmul.mubr.msk.f32.vlgmr.msra.gmra.mrb[44].mxu0 %vm464_vm2, %v5005_v50  ;;  %v4962_v62 = vmul.f32 %v4944_v38, %v16830_v23  ;;  %v4963_v28 = vmul.f32 %v4951_v27, %v16832_v36  ;;  %v5103_v23 = vld [vmem:[#allocation6 + $0x170] sm:$0xff]  ;;  %v5104_v36 = vld [vmem:[#allocation6 + $0x178] sm:$0xff] }
 0xb6c   : > { %14506 = vmatprep.mubr.msk.f32.mxu0 %vm15927_vm0, %v15928_v1  ;;  %v4986_v15 = vadd.f32 %v13561_v49, %v4973_v43  ;;  %v4987_v56 = vadd.f32 %v4982_v2, %v4974_v63  ;;  %v15191_v45 = vpack.c.bf16 %v5104_v36, %v5103_v23 }
 0xb6d   : > { %v4975_v33 = vmul.f32 %v13560_v11, %v4962_v62  ;;  %v4976_v61 = vmul.f32 %v4969_v21, %v4963_v28 }
 0xb6e   : > { %v5006_v9 = vcombine.low %v4986_v15, %v4987_v56  ;;  %15192 = vmatpush3.bf16.msra.mxu1 %v15191_v45 }
 0xb6f   : > { %v4988_v26 = vadd.f32 %v13561_v49, %v4975_v33  ;;  %v4989_v42 = vadd.f32 %v4982_v2, %v4976_v61  ;;  %15205 = vmatprep.subr.bf16.mxu1 %v15926_v0 }
 0xb70   : > { %14507 = vmatmul.mubr.msk.f32.gmra.mrb[46].mxu0 %vm464_vm2, %v5006_v9 }
 0xb71   : > { %14509 = vmatprep.mubr.msk.f32.mxu0 %vm15927_vm0, %v15928_v1  ;;  %v5007_v31 = vcombine.low %v4988_v26, %v4989_v42 }
 0xb74   : > { %14510 = vmatmul.mubr.msk.f32.gmra.mrb[48].mxu0 %vm464_vm2, %v5007_v31 }
 0xb75   : > { %14545 = vmatprep.mubr.msk.f32.mxu0 %vm15927_vm0, %v15928_v1 }
 0xc3e   : > { %v5080_v48 = vpop.f32.mrb[44].mxu0 }
 0xc3f   : > { %v5081_v30 = vadd.f32 %v13562_v29, %v5080_v48  ;;  %v14505_v25 = vpop.f32.mrb[45].mxu0 }
 0xc41   : > { %v5094_v37 = vmax.f32 %v5081_v30, 0.0 }
 0xc43   : > { %v5085_v39 = vpop.f32.mrb[46].mxu0  ;;  %14529 = vmatmul.mubr.msk.f32.vlgmr.msra.gmra.mrb[46].mxu1 %vm5110_vm1, %v5094_v37 }
 0xc44   : > { %v5086_v18 = vadd.f32 %v13562_v29, %v5085_v39  ;;  %v14508_v51 = vpop.f32.mrb[47].mxu0  ;;  %14531 = vmatprep.mubr.msk.f32.mxu1 %vm15927_vm0, %v15928_v1 }
 0xc46   : > { %v5095_v52 = vmax.f32 %v5086_v18, 0.0 }
 0xc47   : > { %v5090_v35 = vpop.f32.mrb[48].mxu0 }
 0xc48   : > { %v5091_v34 = vadd.f32 %v13562_v29, %v5090_v35  ;;  %v14511_v47 = vpop.f32.mrb[49].mxu0  ;;  %14532 = vmatmul.mubr.msk.f32.gmra.mrb[48].mxu1 %vm5110_vm1, %v5095_v52 }
 0xc49   : > { %14534 = vmatprep.mubr.msk.f32.mxu1 %vm15927_vm0, %v15928_v1 }
 0xc4a   : > { %v5096_v5 = vmax.f32 %v5091_v34, 0.0 }
 0xc4c   : > { %14535 = vmatmul.mubr.msk.f32.gmra.mrb[50].mxu1 %vm5110_vm1, %v5096_v5 }
 0xc4d   : > { %14579 = vmatprep.mubr.msk.f32.mxu1 %vm15927_vm0, %v15928_v1 }
 0xd16   : > { %v5186_v11 = vpop.f32.mrb[46].mxu1 }
 0xd17   : > { %v5187_v58 = vadd.f32 %v13566_v10, %v5186_v11  ;;  %v14530_v49 = vpop.f32.mrb[47].mxu1 }
 0xd19   : > { %v5203_v20 = vcombine.high %v5187_v58, %v5187_v58  ;;  %v5209_v4 = vadd.f32 %v5187_v58, %v4984_v19 }
 0xd1b   : > { %v5191_v21 = vpop.f32.mrb[48].mxu1  ;;  %v5210_v55 = vadd.f32 %v5203_v20, %v4985_v32  ;;  %v5417_v20 = vld [vmem:[#allocation6 + $0x190] sm:$0xff] }
 0xd1c   : > { %v5192_v57 = vadd.f32 %v13566_v10, %v5191_v21  ;;  %v14533_v2 = vpop.f32.mrb[49].mxu1  ;;  %v5625_v21 = vld [vmem:[#allocation6 + $0x1d0] sm:$0xff] }
 0xd1d   : > { %v5223_v6 = vcombine.low %v5209_v4, %v5210_v55 }
 0xd1e   : > { %v5204_v8 = vcombine.high %v5192_v57, %v5192_v57  ;;  %v5211_v16 = vadd.f32 %v5192_v57, %v4986_v15  ;;  %v5626_v57 = vld [vmem:[#allocation6 + $0x1d8] sm:$0xff] }
 0xd1f   : > { %v5196_v12 = vpop.f32.mrb[50].mxu1  ;;  %v5229_v13 = vsel %vm464_vm2, %v5223_v6, 0.0  ;;  %v15206_v2 = vpack.c.bf16 %v5626_v57, %v5625_v21  ;;  %v5419_v6 = vld [vmem:[#allocation6 + $0x1a0] sm:$0xff]  ;;  %v5533_v21 = vld [vmem:[#allocation6 + $0x1c8] sm:$0xff] }
 0xd20   : > { %v5197_v44 = vadd.f32 %v13566_v10, %v5196_v12  ;;  %v14536_v22 = vpop.f32.mrb[51].mxu1  ;;  %5230 = vadd.xlane.f32.xlu0 %v5229_v13  ;;  %v5212_v7 = vadd.f32 %v5204_v8, %v4987_v56  ;;  %v5420_v8 = vld [vmem:[#allocation6 + $0x1a8] sm:$0xff]  ;;  %v5627_v12 = vld [vmem:[#allocation6 + $0x1e0] sm:$0xff] }
 0xd21   : > { %15207 = vmatpush3.bf16.msra.mxu1 %v15206_v2  ;;  %v15197_v13 = vpack.c.bf16 %v5420_v8, %v5419_v6 }
 0xd22   : > { %v5205_v38 = vcombine.high %v5197_v44, %v5197_v44  ;;  %v5224_v27 = vcombine.low %v5211_v16, %v5212_v7  ;;  %v5213_v50 = vadd.f32 %v5197_v44, %v4988_v26  ;;  %15208 = vmatprep.subr.bf16.mxu1 %v15926_v0 }
 0xd24   : > { %v5232_v43 = vsel %vm464_vm2, %v5224_v27, 0.0  ;;  %v5214_v19 = vadd.f32 %v5205_v38, %v4989_v42 }
 0xd25   : > { %5233 = vadd.xlane.f32.xlu1 %v5232_v43 }
 0xd26   : > { %v5225_v32 = vcombine.low %v5213_v50, %v5214_v19 }
 0xd28   : > { %v5235_v63 = vsel %vm464_vm2, %v5225_v32, 0.0 }
 0xd29   : > { %5236 = vadd.xlane.f32.xlu0 %v5235_v63 }
 0xdad   : > { %v5231_v62 = vpop.xlane.xlu0 %5230 }
 0xdae   : > { %v5238_v28 = vmul.f32 0.03125, %v5231_v62  ;;  %v13570_v62 = vld [vmem:[#allocation6 + $0x188] ss:$0 sm:$0xff] }
 0xdb0   : > { %v5250_v33 = vrot.slane %v5238_v28, %v16802_v46  ;;  %v5257_v15 = vrot.slane %v5238_v28, %v16805_v60 }
 0xdb2   : > { %v16881_v61 = vsub.f32 %v5209_v4, %v5250_v33  ;;  %v16883_v56 = vsub.f32 %v5210_v55, %v5257_v15  ;;  %v5234_v9 = vpop.xlane.xlu1 %5233  ;;  %v5418_v4 = vld [vmem:[#allocation6 + $0x198] sm:$0xff]  ;;  %v13571_v33 = vld [vmem:[#allocation6 + $0x189] ss:$0 sm:$0xff]  ;;  %v5396_v15 = vcombine.high %v13570_v62, %v13570_v62 }
 0xdb3   : > { %v5239_v26 = vmul.f32 0.03125, %v5234_v9  ;;  %v15194_v55 = vpack.c.bf16 %v5418_v4, %v5417_v20  ;;  %v5532_v4 = vld [vmem:[#allocation6 + $0x1c0] sm:$0xff] }
 0xdb4   : > { %v5298_v42 = vmul.f32 %v16881_v61, %v16881_v61  ;;  %v5299_v31 = vmul.f32 %v16883_v56, %v16883_v56  ;;  %v15203_v8 = vpack.c.bf16 %v5533_v21, %v5532_v4 }
 0xdb5   : > { %v5264_v23 = vrot.slane %v5239_v26, %v16802_v46  ;;  %v5271_v36 = vrot.slane %v5239_v26, %v16805_v60  ;;  %15195 = vmatpush3.bf16.msra.mxu0 %v15194_v55 }
 0xdb6   : > { %v5237_v45 = vpop.xlane.xlu0 %5236  ;;  %v5310_v29 = vcombine.low %v5298_v42, %v5299_v31  ;;  %15196 = vmatprep.subr.bf16.mxu0 %v15926_v0  ;;  %v5409_v42 = vcombine.high %v13571_v33, %v13571_v33 }
 0xdb7   : > { %v16891_v48 = vsub.f32 %v5211_v16, %v5264_v23  ;;  %v16893_v30 = vsub.f32 %v5212_v7, %v5271_v36  ;;  %v5240_v25 = vmul.f32 0.03125, %v5237_v45  ;;  %v5628_v16 = vld [vmem:[#allocation6 + $0x1e8] sm:$0xff] }
 0xdb8   : > { %v5316_v37 = vsel %vm464_vm2, %v5310_v29, 0.0  ;;  %v15209_v44 = vpack.c.bf16 %v5628_v16, %v5627_v12 }
 0xdb9   : > { %v5278_v39 = vrot.slane %v5240_v25, %v16802_v46  ;;  %v5285_v18 = vrot.slane %v5240_v25, %v16805_v60  ;;  %5317 = vadd.xlane.f32.xlu1 %v5316_v37  ;;  %v5300_v51 = vmul.f32 %v16891_v48, %v16891_v48  ;;  %v5301_v52 = vmul.f32 %v16893_v30, %v16893_v30 }
 0xdba   : > { %15198 = vmatpush3.bf16.msra.mxu0 %v15197_v13  ;;  %15210 = vmatpush3.bf16.msra.mxu1 %v15209_v44 }
 0xdbb   : > { %v16902_v35 = vsub.f32 %v5213_v50, %v5278_v39  ;;  %v16904_v34 = vsub.f32 %v5214_v19, %v5285_v18  ;;  %v5311_v47 = vcombine.low %v5300_v51, %v5301_v52  ;;  %15199 = vmatprep.subr.bf16.mxu0 %v15926_v0  ;;  %14593 = vmatprep.subr.mxu1 %v15928_v1  ;;  %v5530_v39 = vld [vmem:[#allocation6 + $0x1b0] sm:$0xff]  ;;  %v5531_v18 = vld [vmem:[#allocation6 + $0x1b8] sm:$0xff] }
 0xdbd   : > { %v5319_v5 = vsel %vm464_vm2, %v5311_v47, 0.0  ;;  %v5302_v10 = vmul.f32 %v16902_v35, %v16902_v35  ;;  %v5303_v11 = vmul.f32 %v16904_v34, %v16904_v34 }
 0xdbe   : > { %5320 = vadd.xlane.f32.xlu0 %v5319_v5 }
 0xdbf   : > { %v5312_v58 = vcombine.low %v5302_v10, %v5303_v11  ;;  %v15200_v10 = vpack.c.bf16 %v5531_v18, %v5530_v39 }
 0xdc1   : > { %v5322_v49 = vsel %vm464_vm2, %v5312_v58, 0.0 }
 0xdc2   : > { %5323 = vadd.xlane.f32.xlu1 %v5322_v49 }
 0xe46   : > { %v5318_v22 = vpop.xlane.xlu1 %5317 }
 0xe47   : > { %v5325_v7 = vmul.f32 0.03125, %v5318_v22 }
 0xe49   : > { %v5328_v38 = vadd.f32 1e-05, %v5325_v7 }
 0xe4b   : > { %15600 = vrsqrt.f32 %v5328_v38  ;;  %v5321_v27 = vpop.xlane.xlu0 %5320  ;;  %v16977_v38 = vld [vmem:[#allocation6 + $0x272] ss:$0 sm:$0xff] }
 0xe4c   : > { %v5326_v50 = vmul.f32 0.03125, %v5321_v27 }
 0xe4e   : > { %v5329_v43 = vadd.f32 1e-05, %v5326_v50 }
 0xe4f   : > { %v5324_v19 = vpop.xlane.xlu1 %5323 }
 0xe50   : > { %15602 = vrsqrt.f32 %v5329_v43  ;;  %v5327_v32 = vmul.f32 0.03125, %v5324_v19 }
 0xe52   : > { %v5330_v63 = vadd.f32 1e-05, %v5327_v32 }
 0xe54   : > { %15604 = vrsqrt.f32 %v5330_v63  ;;  %v13572_v63 = vld [vmem:[#allocation6 + $0x270] ss:$0 sm:$0xff] }
 0xe55   : > { %v15601_v28 = vpop.eup %15600 }
 0xe56   : > { %v5343_v9 = vrot.slane %v15601_v28, %v16802_v46  ;;  %v5350_v26 = vrot.slane %v15601_v28, %v16805_v60 }
 0xe58   : > { %v5385_v31 = vmul.f32 %v5343_v9, %v16881_v61  ;;  %v5386_v23 = vmul.f32 %v5350_v26, %v16883_v56 }
 0xe5a   : > { %v15603_v36 = vpop.eup %15602  ;;  %v5398_v45 = vmul.f32 %v13570_v62, %v5385_v31  ;;  %v5399_v29 = vmul.f32 %v5396_v15, %v5386_v23 }
 0xe5b   : > { %v5357_v25 = vrot.slane %v15603_v36, %v16802_v46  ;;  %v5364_v37 = vrot.slane %v15603_v36, %v16805_v60 }
 0xe5c   : > { %v16922_v51 = vadd.f32 %v13571_v33, %v5398_v45  ;;  %v16924_v52 = vadd.f32 %v5409_v42, %v5399_v29 }
 0xe5d   : > { %v5387_v47 = vmul.f32 %v5357_v25, %v16891_v48  ;;  %v5388_v5 = vmul.f32 %v5364_v37, %v16893_v30 }
 0xe5e   : > { %v15605_v61 = vpop.eup %15604  ;;  %v5432_v56 = vcombine.low %v16922_v51, %v16924_v52 }
 0xe5f   : > { %v5371_v11 = vrot.slane %v15605_v61, %v16802_v46  ;;  %v5378_v58 = vrot.slane %v15605_v61, %v16805_v60  ;;  %v5400_v49 = vmul.f32 %v13570_v62, %v5387_v47  ;;  %v5401_v20 = vmul.f32 %v5396_v15, %v5388_v5 }
 0xe60   : > { %14546 = vmatmul.mubr.msk.f32.vlgmr.msra.gmra.mrb[50].mxu0 %vm464_vm2, %v5432_v56  ;;  %14580 = vmatmul.mubr.msk.f32.vlgmr.msra.gmra.mrb[52].mxu1 %vm464_vm2, %v5432_v56 }
 0xe61   : > { %14548 = vmatprep.mubr.msk.f32.mxu0 %vm15927_vm0, %v15928_v1  ;;  %14582 = vmatprep.mubr.msk.f32.mxu1 %vm15927_vm0, %v15928_v1  ;;  %v16938_v48 = vadd.f32 %v13571_v33, %v5400_v49  ;;  %v16940_v30 = vadd.f32 %v5409_v42, %v5401_v20  ;;  %v5389_v55 = vmul.f32 %v5371_v11, %v16902_v35 }
 0xe62   : > { %15201 = vmatpush3.bf16.msra.mxu0 %v15200_v10  ;;  %v5390_v57 = vmul.f32 %v5378_v58, %v16904_v34 }
 0xe63   : > { %v5433_v2 = vcombine.low %v16938_v48, %v16940_v30  ;;  %v5402_v6 = vmul.f32 %v13570_v62, %v5389_v55  ;;  %15202 = vmatprep.subr.bf16.mxu0 %v15926_v0 }
 0xe64   : > { %v5403_v12 = vmul.f32 %v5396_v15, %v5390_v57 }
 0xe65   : > { %14549 = vmatmul.mubr.msk.f32.gmra.mrb[52].mxu0 %vm464_vm2, %v5433_v2  ;;  %14583 = vmatmul.mubr.msk.f32.gmra.mrb[54].mxu1 %vm464_vm2, %v5433_v2  ;;  %v16949_v13 = vadd.f32 %v13571_v33, %v5402_v6 }
 0xe66   : > { %14551 = vmatprep.mubr.msk.f32.mxu0 %vm15927_vm0, %v15928_v1  ;;  %14585 = vmatprep.mubr.msk.f32.mxu1 %vm15927_vm0, %v15928_v1  ;;  %v16955_v35 = vadd.f32 %v5409_v42, %v5403_v12  ;;  %v13576_v42 = vld [vmem:[#allocation6 + $0x271] ss:$0 sm:$0xff] }
 0xe67   : > { %15204 = vmatpush3.bf16.msra.mxu0 %v15203_v8 }
 0xe68   : > { %v5434_v34 = vcombine.low %v16949_v13, %v16955_v35  ;;  %14588 = vmatprep.subr.mxu0 %v15928_v1 }
 0xe6a   : > { %14552 = vmatmul.mubr.msk.f32.gmra.mrb[54].mxu0 %vm464_vm2, %v5434_v34  ;;  %14586 = vmatmul.mubr.msk.f32.gmra.mrb[56].mxu1 %vm464_vm2, %v5434_v34 }
 0xe6b   : > { %14562 = vmatprep.mubr.msk.f32.mxu0 %vm15927_vm0, %v15928_v1  ;;  %14595 = vmatprep.mubr.msk.f32.mxu1 %vm15927_vm0, %v15928_v1 }
 0xe6e   : > { %14563 = vmatmul.mubr.msk.f32.vlgmr.msra.gmra.mrb[56].mxu0 %vm464_vm2, %v5432_v56 }
 0xe6f   : > { %14565 = vmatprep.mubr.msk.f32.mxu0 %vm15927_vm0, %v15928_v1 }
 0xe72   : > { %14566 = vmatmul.mubr.msk.f32.gmra.mrb[58].mxu0 %vm464_vm2, %v5433_v2 }
 0xe73   : > { %14568 = vmatprep.mubr.msk.f32.mxu0 %vm15927_vm0, %v15928_v1 }
 0xe76   : > { %14569 = vmatmul.mubr.msk.f32.gmra.mrb[60].mxu0 %vm464_vm2, %v5434_v34 }
 0xe77   : > { %14590 = vmatprep.mubr.msk.f32.mxu0 %vm15927_vm0, %v15928_v1 }
 0xf33   : > { %v5507_v16 = vpop.f32.mrb[50].mxu0  ;;  %v16975_v44 = vpop.f32.mrb[52].mxu1 }
 0xf34   : > { %v14547_v22 = vpop.f32.mrb[51].mxu0  ;;  %v14581_v7 = vpop.f32.mrb[53].mxu1  ;;  %v16985_v26 = vadd.f32 %v13572_v63, %v5507_v16  ;;  %v17082_v12 = vadd.f32 %v16977_v38, %v16975_v44 }
 0xf36   : > { %v16991_v45 = vcombine.high %v16985_v26, %v16985_v26  ;;  %v5723_v37 = vmul.f32 %v16985_v26, %v16185_v53  ;;  %v6251_v6 = vmul.f32 %v16985_v26, %v16270_v24  ;;  %v17102_v44 = vcombine.high %v17082_v12, %v17082_v12 }
 0xf37   : > { %v6761_v7 = vmul.f32 %v16315_v41, %v17082_v12 }
 0xf38   : > { %v5512_v27 = vpop.f32.mrb[52].mxu0  ;;  %v5705_v50 = vpop.f32.mrb[54].mxu1  ;;  %v5724_v56 = vmul.f32 %v16991_v45, %v16185_v53  ;;  %v6252_v8 = vmul.f32 %v16991_v45, %v16270_v24 }
 0xf39   : > { %v16980_v43 = vadd.f32 %v16977_v38, %v5705_v50  ;;  %v14550_v19 = vpop.f32.mrb[53].mxu0  ;;  %v14584_v32 = vpop.f32.mrb[55].mxu1  ;;  %v16993_v29 = vadd.f32 %v13572_v63, %v5512_v27  ;;  %v6762_v27 = vmul.f32 %v16315_v41, %v17102_v44 }
 0xf3b   : > { %v17010_v5 = vcombine.high %v16993_v29, %v16993_v29  ;;  %v5725_v58 = vmul.f32 %v16993_v29, %v16185_v53  ;;  %v6253_v34 = vmul.f32 %v16993_v29, %v16270_v24 }
 0xf3d   : > { %v5517_v62 = vpop.f32.mrb[54].mxu0  ;;  %v5710_v28 = vpop.f32.mrb[56].mxu1  ;;  %v5726_v21 = vmul.f32 %v17010_v5, %v16185_v53  ;;  %v6254_v16 = vmul.f32 %v17010_v5, %v16270_v24 }
 0xf3e   : > { %v16983_v33 = vadd.f32 %v16977_v38, %v5710_v28  ;;  %v14553_v15 = vpop.f32.mrb[55].mxu0  ;;  %v14587_v9 = vpop.f32.mrb[57].mxu1  ;;  %v17012_v61 = vadd.f32 %v13572_v63, %v5517_v62 }
 0xf40   : > { %v17038_v4 = vcombine.high %v17012_v61, %v17012_v61  ;;  %v5727_v57 = vmul.f32 %v17012_v61, %v16185_v53  ;;  %v6255_v22 = vmul.f32 %v17012_v61, %v16270_v24 }
 0xf41   : > { %v5605_v31 = vpop.f32.mrb[56].mxu0 }
 0xf42   : > { %v16987_v23 = vadd.f32 %v13576_v42, %v5605_v31  ;;  %v14564_v36 = vpop.f32.mrb[57].mxu0  ;;  %v5728_v2 = vmul.f32 %v17038_v4, %v16185_v53  ;;  %v6256_v38 = vmul.f32 %v17038_v4, %v16270_v24 }
 0xf44   : > { %14589 = vmatpush3.xpose.msk.msra.mxu0 %vm464_vm2, %v16987_v23  ;;  %v16999_v25 = vcombine.high %v16987_v23, %v16987_v23 }
 0xf45   : > { %v5610_v39 = vpop.f32.mrb[58].mxu0  ;;  %14598 = vmatprep.subr.mxu0 %v15928_v1 }
 0xf46   : > { %v17004_v18 = vadd.f32 %v13576_v42, %v5610_v39  ;;  %v14567_v47 = vpop.f32.mrb[59].mxu0  ;;  %14594 = vmatpush3.xpose.msk.msra.mxu1 %vm464_vm2, %v16999_v25 }
 0xf47   : > { %14591 = vmatmul.mubr.msk.f32.vlgmr.msra.gmra.mrb[62].mxu0 %vm464_vm2, %v5723_v37  ;;  %14603 = vmatprep.subr.mxu1 %v15928_v1 }
 0xf48   : > { %14599 = vmatpush3.xpose.msk.msra.mxu0 %vm464_vm2, %v17004_v18  ;;  %14600 = vmatprep.mubr.msk.f32.mxu0 %vm15927_vm0, %v15928_v1  ;;  %v17024_v10 = vcombine.high %v17004_v18, %v17004_v18 }
 0xf49   : > { %v5615_v11 = vpop.f32.mrb[60].mxu0  ;;  %14596 = vmatmul.mubr.msk.f32.vlgmr.msra.gmra.mrb[58].mxu1 %vm464_vm2, %v5724_v56  ;;  %14608 = vmatprep.subr.mxu0 %v15928_v1 }
 0xf4a   : > { %v17030_v49 = vadd.f32 %v13576_v42, %v5615_v11  ;;  %v14570_v20 = vpop.f32.mrb[61].mxu0  ;;  %14604 = vmatpush3.xpose.msk.msra.mxu1 %vm464_vm2, %v17024_v10  ;;  %14605 = vmatprep.mubr.msk.f32.mxu1 %vm15927_vm0, %v15928_v1 }
 0xf4b   : > { %14601 = vmatmul.mubr.msk.f32.vlgmr.msra.gmra.mrb[64].mxu0 %vm464_vm2, %v5725_v58  ;;  %14613 = vmatprep.subr.mxu1 %v15928_v1 }
 0xf4c   : > { %14609 = vmatpush3.xpose.msk.msra.mxu0 %vm464_vm2, %v17030_v49  ;;  %14610 = vmatprep.mubr.msk.f32.mxu0 %vm15927_vm0, %v15928_v1  ;;  %v17050_v55 = vcombine.high %v17030_v49, %v17030_v49 }
 0xf4d   : > { %14606 = vmatmul.mubr.msk.f32.vlgmr.msra.gmra.mrb[60].mxu1 %vm464_vm2, %v5726_v21  ;;  %14618 = vmatprep.subr.mxu0 %v15928_v1 }
 0xf4e   : > { %14614 = vmatpush3.xpose.msk.msra.mxu1 %vm464_vm2, %v17050_v55  ;;  %14615 = vmatprep.mubr.msk.f32.mxu1 %vm15927_vm0, %v15928_v1 }
 0xf4f   : > { %14611 = vmatmul.mubr.msk.f32.vlgmr.msra.gmra.mrb[66].mxu0 %vm464_vm2, %v5727_v57  ;;  %14623 = vmatprep.subr.mxu1 %v15928_v1 }
 0xf50   : > { %14619 = vmatpush3.xpose.msk.msra.mxu0 %vm464_vm2, %v16987_v23  ;;  %14620 = vmatprep.mubr.msk.f32.mxu0 %vm15927_vm0, %v15928_v1 }
 0xf51   : > { %14616 = vmatmul.mubr.msk.f32.vlgmr.msra.gmra.mrb[62].mxu1 %vm464_vm2, %v5728_v2  ;;  %14628 = vmatprep.subr.mxu0 %v15928_v1 }
 0xf52   : > { %14624 = vmatpush3.xpose.msk.msra.mxu1 %vm464_vm2, %v16999_v25  ;;  %14625 = vmatprep.mubr.msk.f32.mxu1 %vm15927_vm0, %v15928_v1 }
 0xf53   : > { %14621 = vmatmul.mubr.msk.f32.vlgmr.msra.gmra.mrb[68].mxu0 %vm464_vm2, %v6251_v6  ;;  %14633 = vmatprep.subr.mxu1 %v15928_v1 }
 0xf54   : > { %14629 = vmatpush3.xpose.msk.msra.mxu0 %vm464_vm2, %v17004_v18  ;;  %14630 = vmatprep.mubr.msk.f32.mxu0 %vm15927_vm0, %v15928_v1 }
 0xf55   : > { %14626 = vmatmul.mubr.msk.f32.vlgmr.msra.gmra.mrb[64].mxu1 %vm464_vm2, %v6252_v8  ;;  %14638 = vmatprep.subr.mxu0 %v15928_v1 }
 0xf56   : > { %14634 = vmatpush3.xpose.msk.msra.mxu1 %vm464_vm2, %v17024_v10  ;;  %14635 = vmatprep.mubr.msk.f32.mxu1 %vm15927_vm0, %v15928_v1 }
 0xf57   : > { %14631 = vmatmul.mubr.msk.f32.vlgmr.msra.gmra.mrb[70].mxu0 %vm464_vm2, %v6253_v34  ;;  %14643 = vmatprep.subr.mxu1 %v15928_v1 }
 0xf58   : > { %14639 = vmatpush3.xpose.msk.msra.mxu0 %vm464_vm2, %v17030_v49  ;;  %14640 = vmatprep.mubr.msk.f32.mxu0 %vm15927_vm0, %v15928_v1 }
 0xf59   : > { %14636 = vmatmul.mubr.msk.f32.vlgmr.msra.gmra.mrb[66].mxu1 %vm464_vm2, %v6254_v16  ;;  %14648 = vmatprep.subr.mxu0 %v15928_v1 }
 0xf5a   : > { %14644 = vmatpush3.xpose.msk.msra.mxu1 %vm464_vm2, %v17050_v55  ;;  %14645 = vmatprep.mubr.msk.f32.mxu1 %vm15927_vm0, %v15928_v1 }
 0xf5b   : > { %14641 = vmatmul.mubr.msk.f32.vlgmr.msra.gmra.mrb[72].mxu0 %vm464_vm2, %v6255_v22  ;;  %14653 = vmatprep.subr.mxu1 %v15928_v1 }
 0xf5c   : > { %14649 = vmatpush3.msk.msra.mxu0 %vm1802_vm7, %v6761_v7  ;;  %14650 = vmatprep.mubr.msk.f32.mxu0 %vm15927_vm0, %v15928_v1 }
 0xf5d   : > { %14646 = vmatmul.mubr.msk.f32.vlgmr.msra.gmra.mrb[68].mxu1 %vm464_vm2, %v6256_v38  ;;  %14658 = vmatprep.subr.mxu0 %v15928_v1 }
 0xf5e   : > { %14654 = vmatpush3.msk.msra.mxu1 %vm1802_vm7, %v6762_v27  ;;  %14655 = vmatprep.mubr.msk.f32.mxu1 %vm15927_vm0, %v15928_v1 }
 0xf5f   : > { %14663 = vmatprep.subr.mxu1 %v15928_v1 }
0x101a   : > { %v17133_v50 = vpop.f32.mrb[62].mxu0 }
0x101b   : > { %v14592_v19 = vpop.f32.mrb[63].mxu0 }
0x101c   : > { %v17135_v32 = vpop.f32.mrb[58].mxu1 }
0x101d   : > { %v14597_v63 = vpop.f32.mrb[59].mxu1 }
0x101e   : > { %v17137_v62 = vpop.f32.mrb[64].mxu0  ;;  %v6179_v63 = vsel %vm1209_vm8, %v17133_v50, -inf }
0x101f   : > { %v14602_v28 = vpop.f32.mrb[65].mxu0 }
0x1020   : > { %v17139_v15 = vpop.f32.mrb[60].mxu1  ;;  %v6182_v28 = vsel %vm1209_vm8, %v17135_v32, -inf }
0x1021   : > { %v14607_v9 = vpop.f32.mrb[61].mxu1 }
0x1022   : > { %v17141_v42 = vpop.f32.mrb[66].mxu0  ;;  %v6185_v9 = vsel %vm1209_vm8, %v17137_v62, -inf }
0x1023   : > { %v14612_v31 = vpop.f32.mrb[67].mxu0 }
0x1024   : > { %v17143_v36 = vpop.f32.mrb[62].mxu1  ;;  %v6188_v31 = vsel %vm1209_vm8, %v17139_v15, -inf }
0x1025   : > { %v14617_v37 = vpop.f32.mrb[63].mxu1 }
0x1026   : > { %v6326_v39 = vpop.f32.mrb[68].mxu0  ;;  %v6191_v37 = vsel %vm1209_vm8, %v17141_v42, -inf }
0x1027   : > { %v14622_v47 = vpop.f32.mrb[69].mxu0  ;;  %v6695_v56 = vsel %vm1209_vm8, %v6326_v39, -inf }
0x1028   : > { %v6399_v11 = vpop.f32.mrb[64].mxu1  ;;  %6696 = vmax.xlane.f32.xlu0 %v6695_v56  ;;  %v6194_v47 = vsel %vm1209_vm8, %v17143_v36, -inf }
0x1029   : > { %v14627_v58 = vpop.f32.mrb[65].mxu1  ;;  %v6698_v20 = vsel %vm1209_vm8, %v6399_v11, -inf }
0x102a   : > { %6699 = vmax.xlane.f32.xlu1 %v6698_v20  ;;  %v6472_v21 = vpop.f32.mrb[70].mxu0 }
0x102b   : > { %v14632_v57 = vpop.f32.mrb[71].mxu0  ;;  %v6701_v2 = vsel %vm1209_vm8, %v6472_v21, -inf }
0x102c   : > { %v6545_v6 = vpop.f32.mrb[66].mxu1  ;;  %6702 = vmax.xlane.f32.xlu0 %v6701_v2 }
0x102d   : > { %v14637_v8 = vpop.f32.mrb[67].mxu1  ;;  %v6704_v34 = vsel %vm1209_vm8, %v6545_v6, -inf }
0x102e   : > { %6705 = vmax.xlane.f32.xlu1 %v6704_v34  ;;  %v6618_v16 = vpop.f32.mrb[72].mxu0 }
0x102f   : > { %v14642_v22 = vpop.f32.mrb[73].mxu0  ;;  %v6707_v7 = vsel %vm1209_vm8, %v6618_v16, -inf }
0x1030   : > { %v6691_v38 = vpop.f32.mrb[68].mxu1  ;;  %6708 = vmax.xlane.f32.xlu0 %v6707_v7 }
0x1031   : > { %v14647_v27 = vpop.f32.mrb[69].mxu1  ;;  %v6710_v19 = vsel %vm1209_vm8, %v6691_v38, -inf }
0x1032   : > { %6711 = vmax.xlane.f32.xlu1 %v6710_v19 }
0x1034   : > { %6180 = vmax.xlane.f32.xlu0 %v6179_v63 }
0x1036   : > { %6183 = vmax.xlane.f32.xlu1 %v6182_v28 }
0x1038   : > { %6186 = vmax.xlane.f32.xlu0 %v6185_v9 }
0x103a   : > { %6189 = vmax.xlane.f32.xlu1 %v6188_v31 }
0x103c   : > { %6192 = vmax.xlane.f32.xlu0 %v6191_v37 }
0x103e   : > { %6195 = vmax.xlane.f32.xlu1 %v6194_v47 }
0x10b5   : > { %v6697_v56 = vpop.xlane.xlu0 %6696 }
0x10b6   : > { %v6713_v58 = vsub.f32 %v6326_v39, %v6697_v56 }
0x10b7   : > { %v6700_v20 = vpop.xlane.xlu1 %6699 }
0x10b8   : > { %v6719_v57 = vmul.f32 1.442695, %v6713_v58  ;;  %v6714_v2 = vsub.f32 %v6399_v11, %v6700_v20 }
0x10b9   : > { %v6703_v8 = vpop.xlane.xlu0 %6702 }
0x10ba   : > { %15606 = vpow2.f32 %v6719_v57  ;;  %v6721_v34 = vmul.f32 1.442695, %v6714_v2  ;;  %v6715_v22 = vsub.f32 %v6472_v21, %v6703_v8 }
0x10bb   : > { %v6706_v7 = vpop.xlane.xlu1 %6705 }
0x10bc   : > { %15608 = vpow2.f32 %v6721_v34  ;;  %v6723_v27 = vmul.f32 1.442695, %v6715_v22  ;;  %v6716_v19 = vsub.f32 %v6545_v6, %v6706_v7 }
0x10bd   : > { %v6709_v63 = vpop.xlane.xlu0 %6708 }
0x10be   : > { %15610 = vpow2.f32 %v6723_v27  ;;  %v6725_v28 = vmul.f32 1.442695, %v6716_v19  ;;  %v6717_v9 = vsub.f32 %v6618_v16, %v6709_v63 }
0x10bf   : > { %v6712_v31 = vpop.xlane.xlu1 %6711 }
0x10c0   : > { %15612 = vpow2.f32 %v6725_v28  ;;  %v6727_v37 = vmul.f32 1.442695, %v6717_v9  ;;  %v6718_v47 = vsub.f32 %v6691_v38, %v6712_v31 }
0x10c1   : > { %v6181_v39 = vpop.xlane.xlu0 %6180 }
0x10c2   : > { %15614 = vpow2.f32 %v6727_v37  ;;  %v6729_v56 = vmul.f32 1.442695, %v6718_v47  ;;  %v6197_v11 = vsub.f32 %v17133_v50, %v6181_v39 }
0x10c3   : > { %v6184_v58 = vpop.xlane.xlu1 %6183 }
0x10c4   : > { %v17164_v20 = vpop.eup %15606  ;;  %15616 = vpow2.f32 %v6729_v56  ;;  %v6203_v21 = vmul.f32 1.442695, %v6197_v11  ;;  %v6198_v6 = vsub.f32 %v17135_v32, %v6184_v58 }
0x10c5   : > { %v6187_v57 = vpop.xlane.xlu0 %6186  ;;  %v6731_v16 = vsel %vm1209_vm8, %v17164_v20, 0.0 }
0x10c6   : > { %v17169_v2 = vpop.eup %15608  ;;  %15618 = vpow2.f32 %v6203_v21  ;;  %v6205_v38 = vmul.f32 1.442695, %v6198_v6  ;;  %v6199_v8 = vsub.f32 %v17137_v62, %v6187_v57  ;;  %6732 = vadd.xlane.f32.xlu0 %v6731_v16 }
0x10c7   : > { %v6190_v34 = vpop.xlane.xlu1 %6189  ;;  %v6734_v50 = vsel %vm1209_vm8, %v17169_v2, 0.0 }
0x10c8   : > { %v17174_v22 = vpop.eup %15610  ;;  %15620 = vpow2.f32 %v6205_v38  ;;  %v6207_v7 = vmul.f32 1.442695, %v6199_v8  ;;  %v6200_v32 = vsub.f32 %v17139_v15, %v6190_v34  ;;  %6735 = vadd.xlane.f32.xlu1 %v6734_v50 }
0x10c9   : > { %v6193_v27 = vpop.xlane.xlu0 %6192  ;;  %v6737_v19 = vsel %vm1209_vm8, %v17174_v22, 0.0 }
0x10ca   : > { %v17179_v63 = vpop.eup %15612  ;;  %15622 = vpow2.f32 %v6207_v7  ;;  %v6209_v62 = vmul.f32 1.442695, %v6200_v32  ;;  %v6201_v28 = vsub.f32 %v17141_v42, %v6193_v27  ;;  %6738 = vadd.xlane.f32.xlu0 %v6737_v19 }
0x10cb   : > { %v6196_v9 = vpop.xlane.xlu1 %6195  ;;  %v6740_v31 = vsel %vm1209_vm8, %v17179_v63, 0.0 }
0x10cc   : > { %v17184_v37 = vpop.eup %15614  ;;  %15624 = vpow2.f32 %v6209_v62  ;;  %v6211_v15 = vmul.f32 1.442695, %v6201_v28  ;;  %v6202_v47 = vsub.f32 %v17143_v36, %v6196_v9  ;;  %6741 = vadd.xlane.f32.xlu1 %v6740_v31 }
0x10cd   : > { %v6743_v39 = vsel %vm1209_vm8, %v17184_v37, 0.0 }
0x10ce   : > { %v17189_v56 = vpop.eup %15616  ;;  %15626 = vpow2.f32 %v6211_v15  ;;  %v6213_v11 = vmul.f32 1.442695, %v6202_v47  ;;  %6744 = vadd.xlane.f32.xlu0 %v6743_v39  ;;  %v17219_v47 = vcombine.high %v16980_v43, %v16980_v43 }
0x10cf   : > { %v6746_v42 = vsel %vm1209_vm8, %v17189_v56, 0.0 }
0x10d0   : > { %v17193_v58 = vpop.eup %15618  ;;  %15628 = vpow2.f32 %v6213_v11  ;;  %6747 = vadd.xlane.f32.xlu1 %v6746_v42 }
0x10d1   : > { %v6215_v21 = vsel %vm1209_vm8, %v17193_v58, 0.0 }
0x10d2   : > { %v17197_v36 = vpop.eup %15620  ;;  %6216 = vadd.xlane.f32.xlu0 %v6215_v21  ;;  %v6763_v21 = vmul.f32 %v16315_v41, %v16980_v43 }
0x10d3   : > { %v6218_v6 = vsel %vm1209_vm8, %v17197_v36, 0.0 }
0x10d4   : > { %v17201_v57 = vpop.eup %15622  ;;  %6219 = vadd.xlane.f32.xlu1 %v6218_v6 }
0x10d5   : > { %v6221_v16 = vsel %vm1209_vm8, %v17201_v57, 0.0 }
0x10d6   : > { %v17205_v38 = vpop.eup %15624  ;;  %6222 = vadd.xlane.f32.xlu0 %v6221_v16 }
0x10d7   : > { %v6224_v8 = vsel %vm1209_vm8, %v17205_v38, 0.0 }
0x10d8   : > { %v17209_v34 = vpop.eup %15626  ;;  %6225 = vadd.xlane.f32.xlu1 %v6224_v8 }
0x10d9   : > { %v6227_v50 = vsel %vm1209_vm8, %v17209_v34, 0.0 }
0x10da   : > { %v17213_v7 = vpop.eup %15628  ;;  %6228 = vadd.xlane.f32.xlu0 %v6227_v50  ;;  %v17228_v50 = vcombine.high %v16983_v33, %v16983_v33 }
0x10db   : > { %v6230_v32 = vsel %vm1209_vm8, %v17213_v7, 0.0 }
0x10dc   : > { %6231 = vadd.xlane.f32.xlu1 %v6230_v32 }
0x1153   : > { %v6733_v27 = vpop.xlane.xlu0 %6732 }
0x1154   : > { %15630 = vrcp.f32 %v6733_v27 }
0x1155   : > { %v6736_v19 = vpop.xlane.xlu1 %6735 }
0x1156   : > { %15632 = vrcp.f32 %v6736_v19  ;;  %v6765_v19 = vmul.f32 %v16315_v41, %v16983_v33 }
0x1157   : > { %v6739_v62 = vpop.xlane.xlu0 %6738 }
0x1158   : > { %15634 = vrcp.f32 %v6739_v62 }
0x1159   : > { %v6742_v28 = vpop.xlane.xlu1 %6741 }
0x115a   : > { %15636 = vrcp.f32 %v6742_v28 }
0x115b   : > { %v6745_v9 = vpop.xlane.xlu0 %6744 }
0x115c   : > { %15638 = vrcp.f32 %v6745_v9  ;;  %v6766_v9 = vmul.f32 %v16315_v41, %v17228_v50 }
0x115d   : > { %v6748_v31 = vpop.xlane.xlu1 %6747 }
0x115e   : > { %v15631_v15 = vpop.eup %15630  ;;  %15640 = vrcp.f32 %v6748_v31 }
0x115f   : > { %v6750_v39 = vmul.f32 %v15631_v15, %v17164_v20  ;;  %v6217_v11 = vpop.xlane.xlu0 %6216  ;;  %v6764_v20 = vmul.f32 %v16315_v41, %v17219_v47 }
0x1160   : > { %v15633_v42 = vpop.eup %15632  ;;  %15642 = vrcp.f32 %v6217_v11 }
0x1161   : > { %v6752_v6 = vmul.f32 %v15633_v42, %v17169_v2  ;;  %v6220_v16 = vpop.xlane.xlu1 %6219  ;;  %14651 = vmatmul.mubr.msk.f32.vlgmr.msra.gmra.mrb[74].mxu0 %vm1798_vm9, %v6750_v39  ;;  %v6245_v39 = vmul.f32 %v16467_v54, %v17082_v12 }
0x1162   : > { %v15635_v8 = vpop.eup %15634  ;;  %15644 = vrcp.f32 %v6220_v16  ;;  %14659 = vmatpush3.msk.msra.mxu0 %vm1802_vm7, %v6763_v21  ;;  %14660 = vmatprep.mubr.msk.f32.mxu0 %vm15927_vm0, %v15928_v1  ;;  %v6246_v21 = vmul.f32 %v16467_v54, %v17102_v44  ;;  %v6247_v16 = vmul.f32 %v16467_v54, %v16980_v43 }
0x1163   : > { %v6754_v32 = vmul.f32 %v15635_v8, %v17174_v22  ;;  %14656 = vmatmul.mubr.msk.f32.vlgmr.msra.gmra.mrb[70].mxu1 %vm1798_vm9, %v6752_v6  ;;  %v6223_v2 = vpop.xlane.xlu0 %6222  ;;  %14668 = vmatprep.subr.mxu0 %v15928_v1 }
0x1164   : > { %v15637_v27 = vpop.eup %15636  ;;  %14664 = vmatpush3.msk.msra.mxu1 %vm1802_vm7, %v6764_v20  ;;  %15646 = vrcp.f32 %v6223_v2  ;;  %14665 = vmatprep.mubr.msk.f32.mxu1 %vm15927_vm0, %v15928_v1  ;;  %v6248_v20 = vmul.f32 %v16467_v54, %v17219_v47  ;;  %v6249_v2 = vmul.f32 %v16467_v54, %v16983_v33 }
0x1165   : > { %v6756_v62 = vmul.f32 %v15637_v27, %v17179_v63  ;;  %v6226_v28 = vpop.xlane.xlu1 %6225  ;;  %14661 = vmatmul.mubr.msk.f32.vlgmr.msra.gmra.mrb[76].mxu0 %vm1798_vm9, %v6754_v32  ;;  %14673 = vmatprep.subr.mxu1 %v15928_v1 }
0x1166   : > { %v15639_v22 = vpop.eup %15638  ;;  %15648 = vrcp.f32 %v6226_v28  ;;  %14669 = vmatpush3.msk.msra.mxu0 %vm1802_vm7, %v6765_v19  ;;  %14670 = vmatprep.mubr.msk.f32.mxu0 %vm15927_vm0, %v15928_v1  ;;  %v6250_v19 = vmul.f32 %v16467_v54, %v17228_v50 }
0x1167   : > { %v6758_v31 = vmul.f32 %v15639_v22, %v17184_v37  ;;  %14666 = vmatmul.mubr.msk.f32.vlgmr.msra.gmra.mrb[72].mxu1 %vm1798_vm9, %v6756_v62  ;;  %v6229_v63 = vpop.xlane.xlu0 %6228  ;;  %14678 = vmatprep.subr.mxu0 %v15928_v1  ;;  %v7681_v22 = vmul.f32 %v16993_v29, %v16546_v17 }
0x1168   : > { %v15641_v15 = vpop.eup %15640  ;;  %14674 = vmatpush3.msk.msra.mxu1 %vm1802_vm7, %v6766_v9  ;;  %15650 = vrcp.f32 %v6229_v63  ;;  %14675 = vmatprep.mubr.msk.f32.mxu1 %vm15927_vm0, %v15928_v1  ;;  %v7682_v9 = vmul.f32 %v17010_v5, %v16546_v17  ;;  %v8189_v63 = vmul.f32 %v16575_v59, %v17082_v12 }
0x1169   : > { %v6760_v11 = vmul.f32 %v15641_v15, %v17189_v56  ;;  %v6232_v42 = vpop.xlane.xlu1 %6231  ;;  %14671 = vmatmul.mubr.msk.f32.vlgmr.msra.gmra.mrb[78].mxu0 %vm1798_vm9, %v6758_v31  ;;  %14683 = vmatprep.subr.mxu1 %v15928_v1  ;;  %v7683_v31 = vmul.f32 %v17012_v61, %v16546_v17  ;;  %v7684_v15 = vmul.f32 %v17038_v4, %v16546_v17 }
0x116a   : > { %v15643_v37 = vpop.eup %15642  ;;  %15652 = vrcp.f32 %v6232_v42  ;;  %14679 = vmatpush3.msk.msra.mxu0 %vm1802_vm7, %v6245_v39  ;;  %14680 = vmatprep.mubr.msk.f32.mxu0 %vm15927_vm0, %v15928_v1  ;;  %v8190_v39 = vmul.f32 %v16575_v59, %v17102_v44 }
0x116b   : > { %v6234_v6 = vmul.f32 %v15643_v37, %v17193_v58  ;;  %14676 = vmatmul.mubr.msk.f32.vlgmr.msra.gmra.mrb[74].mxu1 %vm1798_vm9, %v6760_v11  ;;  %14688 = vmatprep.subr.mxu0 %v15928_v1 }
0x116c   : > { %v15645_v56 = vpop.eup %15644  ;;  %14684 = vmatpush3.msk.msra.mxu1 %vm1802_vm7, %v6246_v21  ;;  %14685 = vmatprep.mubr.msk.f32.mxu1 %vm15927_vm0, %v15928_v1 }
0x116d   : > { %v6236_v8 = vmul.f32 %v15645_v56, %v17197_v36  ;;  %14681 = vmatmul.mubr.msk.f32.vlgmr.msra.gmra.mrb[74].mxu0 %vm1798_vm9, %v6234_v6  ;;  %14693 = vmatprep.subr.mxu1 %v15928_v1 }
0x116e   : > { %v15647_v58 = vpop.eup %15646  ;;  %14689 = vmatpush3.msk.msra.mxu0 %vm1802_vm7, %v6247_v16  ;;  %14690 = vmatprep.mubr.msk.f32.mxu0 %vm15927_vm0, %v15928_v1 }
0x116f   : > { %v6238_v32 = vmul.f32 %v15647_v58, %v17201_v57  ;;  %14686 = vmatmul.mubr.msk.f32.vlgmr.msra.gmra.mrb[70].mxu1 %vm1798_vm9, %v6236_v8  ;;  %14698 = vmatprep.subr.mxu0 %v15928_v1 }
0x1170   : > { %v15649_v36 = vpop.eup %15648  ;;  %14694 = vmatpush3.msk.msra.mxu1 %vm1802_vm7, %v6248_v20  ;;  %14695 = vmatprep.mubr.msk.f32.mxu1 %vm15927_vm0, %v15928_v1 }
0x1171   : > { %v6240_v27 = vmul.f32 %v15649_v36, %v17205_v38  ;;  %14691 = vmatmul.mubr.msk.f32.vlgmr.msra.gmra.mrb[76].mxu0 %vm1798_vm9, %v6238_v32  ;;  %14703 = vmatprep.subr.mxu1 %v15928_v1 }
0x1172   : > { %v15651_v57 = vpop.eup %15650  ;;  %14699 = vmatpush3.msk.msra.mxu0 %vm1802_vm7, %v6249_v2  ;;  %14700 = vmatprep.mubr.msk.f32.mxu0 %vm15927_vm0, %v15928_v1 }
0x1173   : > { %v6242_v62 = vmul.f32 %v15651_v57, %v17209_v34  ;;  %14696 = vmatmul.mubr.msk.f32.vlgmr.msra.gmra.mrb[72].mxu1 %vm1798_vm9, %v6240_v27  ;;  %14708 = vmatprep.subr.mxu0 %v15928_v1  ;;  %v7679_v34 = vmul.f32 %v16985_v26, %v16546_v17 }
0x1174   : > { %v15653_v38 = vpop.eup %15652  ;;  %14704 = vmatpush3.msk.msra.mxu1 %vm1802_vm7, %v6250_v19  ;;  %14705 = vmatprep.mubr.msk.f32.mxu1 %vm15927_vm0, %v15928_v1 }
0x1175   : > { %v6244_v28 = vmul.f32 %v15653_v38, %v17213_v7  ;;  %14701 = vmatmul.mubr.msk.f32.vlgmr.msra.gmra.mrb[78].mxu0 %vm1798_vm9, %v6242_v62  ;;  %14713 = vmatprep.subr.mxu1 %v15928_v1  ;;  %v7680_v7 = vmul.f32 %v16991_v45, %v16546_v17 }
0x1176   : > { %14710 = vmatprep.mubr.msk.f32.mxu0 %vm15927_vm0, %v15928_v1 }
0x1177   : > { %14706 = vmatmul.mubr.msk.f32.vlgmr.msra.gmra.mrb[74].mxu1 %vm1798_vm9, %v6244_v28 }
0x1178   : > { %14715 = vmatprep.mubr.msk.f32.mxu1 %vm15927_vm0, %v15928_v1 }
0x1179   : > { %14709 = vmatpush3.xpose.msk.msra.mxu0 %vm464_vm2, %v16987_v23 }
0x117a   : > { %14718 = vmatprep.subr.mxu0 %v15928_v1 }
0x117b   : > { %14714 = vmatpush3.xpose.msk.msra.mxu1 %vm464_vm2, %v16999_v25 }
0x117c   : > { %14711 = vmatmul.mubr.msk.f32.vlgmr.msra.gmra.mrb[80].mxu0 %vm464_vm2, %v7679_v34  ;;  %14723 = vmatprep.subr.mxu1 %v15928_v1 }
0x117d   : > { %14719 = vmatpush3.xpose.msk.msra.mxu0 %vm464_vm2, %v17004_v18  ;;  %14720 = vmatprep.mubr.msk.f32.mxu0 %vm15927_vm0, %v15928_v1 }
0x117e   : > { %14716 = vmatmul.mubr.msk.f32.vlgmr.msra.gmra.mrb[76].mxu1 %vm464_vm2, %v7680_v7  ;;  %14728 = vmatprep.subr.mxu0 %v15928_v1 }
0x117f   : > { %14724 = vmatpush3.xpose.msk.msra.mxu1 %vm464_vm2, %v17024_v10  ;;  %14725 = vmatprep.mubr.msk.f32.mxu1 %vm15927_vm0, %v15928_v1 }
0x1180   : > { %14721 = vmatmul.mubr.msk.f32.vlgmr.msra.gmra.mrb[82].mxu0 %vm464_vm2, %v7681_v22  ;;  %14733 = vmatprep.subr.mxu1 %v15928_v1 }
0x1181   : > { %14729 = vmatpush3.xpose.msk.msra.mxu0 %vm464_vm2, %v17030_v49  ;;  %14730 = vmatprep.mubr.msk.f32.mxu0 %vm15927_vm0, %v15928_v1 }
0x1182   : > { %14726 = vmatmul.mubr.msk.f32.vlgmr.msra.gmra.mrb[78].mxu1 %vm464_vm2, %v7682_v9  ;;  %14738 = vmatprep.subr.mxu0 %v15928_v1 }
0x1183   : > { %14734 = vmatpush3.xpose.msk.msra.mxu1 %vm464_vm2, %v17050_v55  ;;  %14735 = vmatprep.mubr.msk.f32.mxu1 %vm15927_vm0, %v15928_v1 }
0x1184   : > { %14731 = vmatmul.mubr.msk.f32.vlgmr.msra.gmra.mrb[84].mxu0 %vm464_vm2, %v7683_v31  ;;  %14743 = vmatprep.subr.mxu1 %v15928_v1 }
0x1185   : > { %14739 = vmatpush3.msk.msra.mxu0 %vm1802_vm7, %v8189_v63  ;;  %14740 = vmatprep.mubr.msk.f32.mxu0 %vm15927_vm0, %v15928_v1 }
0x1186   : > { %14736 = vmatmul.mubr.msk.f32.vlgmr.msra.gmra.mrb[80].mxu1 %vm464_vm2, %v7684_v15  ;;  %14748 = vmatprep.subr.mxu0 %v15928_v1 }
0x1187   : > { %14744 = vmatpush3.msk.msra.mxu1 %vm1802_vm7, %v8190_v39  ;;  %14745 = vmatprep.mubr.msk.f32.mxu1 %vm15927_vm0, %v15928_v1 }
0x1188   : > { %14753 = vmatprep.subr.mxu1 %v15928_v1 }
0x124f   : > { %v7754_v11 = vpop.f32.mrb[80].mxu0 }
0x1250   : > { %v14712_v42 = vpop.f32.mrb[81].mxu0  ;;  %v8123_v37 = vsel %vm1209_vm8, %v7754_v11, -inf }
0x1251   : > { %v7827_v21 = vpop.f32.mrb[76].mxu1  ;;  %8124 = vmax.xlane.f32.xlu0 %v8123_v37 }
0x1252   : > { %v14717_v6 = vpop.f32.mrb[77].mxu1  ;;  %v8126_v56 = vsel %vm1209_vm8, %v7827_v21, -inf }
0x1253   : > { %8127 = vmax.xlane.f32.xlu1 %v8126_v56  ;;  %v7900_v16 = vpop.f32.mrb[82].mxu0 }
0x1254   : > { %v14722_v8 = vpop.f32.mrb[83].mxu0  ;;  %v8129_v58 = vsel %vm1209_vm8, %v7900_v16, -inf }
0x1255   : > { %v7973_v20 = vpop.f32.mrb[78].mxu1  ;;  %8130 = vmax.xlane.f32.xlu0 %v8129_v58 }
0x1256   : > { %v14727_v32 = vpop.f32.mrb[79].mxu1  ;;  %v8132_v36 = vsel %vm1209_vm8, %v7973_v20, -inf }
0x1257   : > { %8133 = vmax.xlane.f32.xlu1 %v8132_v36  ;;  %v8046_v2 = vpop.f32.mrb[84].mxu0 }
0x1258   : > { %v14732_v27 = vpop.f32.mrb[85].mxu0  ;;  %v8135_v57 = vsel %vm1209_vm8, %v8046_v2, -inf }
0x1259   : > { %v8119_v19 = vpop.f32.mrb[80].mxu1  ;;  %8136 = vmax.xlane.f32.xlu0 %v8135_v57 }
0x125a   : > { %v14737_v62 = vpop.f32.mrb[81].mxu1  ;;  %v8138_v38 = vsel %vm1209_vm8, %v8119_v19, -inf }
0x125b   : > { %8139 = vmax.xlane.f32.xlu1 %v8138_v38 }
0x12de   : > { %v8125_v28 = vpop.xlane.xlu0 %8124 }
0x12df   : > { %v8141_v34 = vsub.f32 %v7754_v11, %v8125_v28 }
0x12e0   : > { %v8128_v7 = vpop.xlane.xlu1 %8127 }
0x12e1   : > { %v8147_v22 = vmul.f32 1.442695, %v8141_v34  ;;  %v8142_v9 = vsub.f32 %v7827_v21, %v8128_v7 }
0x12e2   : > { %v8131_v31 = vpop.xlane.xlu0 %8130 }
0x12e3   : > { %15654 = vpow2.f32 %v8147_v22  ;;  %v8149_v63 = vmul.f32 1.442695, %v8142_v9  ;;  %v8143_v15 = vsub.f32 %v7900_v16, %v8131_v31 }
0x12e4   : > { %v8134_v39 = vpop.xlane.xlu1 %8133 }
0x12e5   : > { %15656 = vpow2.f32 %v8149_v63  ;;  %v8151_v42 = vmul.f32 1.442695, %v8143_v15  ;;  %v8144_v37 = vsub.f32 %v7973_v20, %v8134_v39 }
0x12e6   : > { %v8137_v6 = vpop.xlane.xlu0 %8136 }
0x12e7   : > { %15658 = vpow2.f32 %v8151_v42  ;;  %v8153_v56 = vmul.f32 1.442695, %v8144_v37  ;;  %v8145_v8 = vsub.f32 %v8046_v2, %v8137_v6 }
0x12e8   : > { %v8140_v58 = vpop.xlane.xlu1 %8139 }
0x12e9   : > { %15660 = vpow2.f32 %v8153_v56  ;;  %v8155_v32 = vmul.f32 1.442695, %v8145_v8  ;;  %v8146_v36 = vsub.f32 %v8119_v19, %v8140_v58  ;;  %v8191_v56 = vmul.f32 %v16575_v59, %v16980_v43 }
0x12eb   : > { %15662 = vpow2.f32 %v8155_v32  ;;  %v8157_v11 = vmul.f32 1.442695, %v8146_v36  ;;  %v8192_v32 = vmul.f32 %v16575_v59, %v17219_v47 }
0x12ed   : > { %v15655_v27 = vpop.eup %15654  ;;  %15664 = vpow2.f32 %v8157_v11 }
0x12ee   : > { %v8159_v21 = vsel %vm1209_vm8, %v15655_v27, 0.0 }
0x12ef   : > { %v15657_v57 = vpop.eup %15656  ;;  %8160 = vadd.xlane.f32.xlu0 %v8159_v21 }
0x12f0   : > { %v8162_v16 = vsel %vm1209_vm8, %v15657_v57, 0.0 }
0x12f1   : > { %v15659_v62 = vpop.eup %15658  ;;  %8163 = vadd.xlane.f32.xlu1 %v8162_v16  ;;  %v8194_v16 = vmul.f32 %v16575_v59, %v17228_v50 }
0x12f2   : > { %v8165_v20 = vsel %vm1209_vm8, %v15659_v62, 0.0 }
0x12f3   : > { %v15661_v38 = vpop.eup %15660  ;;  %8166 = vadd.xlane.f32.xlu0 %v8165_v20 }
0x12f4   : > { %v8168_v2 = vsel %vm1209_vm8, %v15661_v38, 0.0 }
0x12f5   : > { %v15663_v28 = vpop.eup %15662  ;;  %8169 = vadd.xlane.f32.xlu1 %v8168_v2  ;;  %v8657_v2 = vmul.f32 %v16985_v26, %v16665_v14  ;;  %v8659_v26 = vmul.f32 %v16993_v29, %v16665_v14  ;;  %v9167_v29 = vmul.f32 %v16693_v3, %v17082_v12 }
0x12f6   : > { %v8171_v19 = vsel %vm1209_vm8, %v15663_v28, 0.0 }
0x12f7   : > { %v15665_v34 = vpop.eup %15664  ;;  %8172 = vadd.xlane.f32.xlu0 %v8171_v19 }
0x12f8   : > { %v8174_v7 = vsel %vm1209_vm8, %v15665_v34, 0.0 }
0x12f9   : > { %8175 = vadd.xlane.f32.xlu1 %v8174_v7 }
0x137c   : > { %v8161_v22 = vpop.xlane.xlu0 %8160 }
0x137d   : > { %15666 = vrcp.f32 %v8161_v22 }
0x137e   : > { %v8164_v9 = vpop.xlane.xlu1 %8163 }
0x137f   : > { %15668 = vrcp.f32 %v8164_v9 }
0x1380   : > { %v8167_v31 = vpop.xlane.xlu0 %8166 }
0x1381   : > { %15670 = vrcp.f32 %v8167_v31 }
0x1382   : > { %v8170_v63 = vpop.xlane.xlu1 %8169 }
0x1383   : > { %15672 = vrcp.f32 %v8170_v63 }
0x1384   : > { %v8173_v15 = vpop.xlane.xlu0 %8172 }
0x1385   : > { %15674 = vrcp.f32 %v8173_v15 }
0x1386   : > { %v8176_v39 = vpop.xlane.xlu1 %8175 }
0x1387   : > { %v15667_v42 = vpop.eup %15666  ;;  %15676 = vrcp.f32 %v8176_v39 }
0x1388   : > { %v8178_v37 = vmul.f32 %v15667_v42, %v15655_v27  ;;  %v8193_v27 = vmul.f32 %v16575_v59, %v16983_v33 }
0x1389   : > { %v15669_v6 = vpop.eup %15668 }
0x138a   : > { %v8180_v8 = vmul.f32 %v15669_v6, %v15657_v57  ;;  %14741 = vmatmul.mubr.msk.f32.vlgmr.msra.gmra.mrb[74].mxu0 %vm1798_vm9, %v8178_v37 }
0x138b   : > { %v15671_v58 = vpop.eup %15670  ;;  %14749 = vmatpush3.msk.msra.mxu0 %vm1802_vm7, %v8191_v56  ;;  %14750 = vmatprep.mubr.msk.f32.mxu0 %vm15927_vm0, %v15928_v1 }
0x138c   : > { %v8182_v36 = vmul.f32 %v15671_v58, %v15659_v62  ;;  %14746 = vmatmul.mubr.msk.f32.vlgmr.msra.gmra.mrb[70].mxu1 %vm1798_vm9, %v8180_v8  ;;  %14758 = vmatprep.subr.mxu0 %v15928_v1 }
0x138d   : > { %v15673_v11 = vpop.eup %15672  ;;  %14754 = vmatpush3.msk.msra.mxu1 %vm1802_vm7, %v8192_v32  ;;  %14755 = vmatprep.mubr.msk.f32.mxu1 %vm15927_vm0, %v15928_v1 }
0x138e   : > { %v8184_v21 = vmul.f32 %v15673_v11, %v15661_v38  ;;  %14751 = vmatmul.mubr.msk.f32.vlgmr.msra.gmra.mrb[76].mxu0 %vm1798_vm9, %v8182_v36  ;;  %14763 = vmatprep.subr.mxu1 %v15928_v1 }
0x138f   : > { %v15675_v57 = vpop.eup %15674  ;;  %14759 = vmatpush3.msk.msra.mxu0 %vm1802_vm7, %v8193_v27  ;;  %14760 = vmatprep.mubr.msk.f32.mxu0 %vm15927_vm0, %v15928_v1 }
0x1390   : > { %v8186_v62 = vmul.f32 %v15675_v57, %v15663_v28  ;;  %14756 = vmatmul.mubr.msk.f32.vlgmr.msra.gmra.mrb[72].mxu1 %vm1798_vm9, %v8184_v21  ;;  %14768 = vmatprep.subr.mxu0 %v15928_v1  ;;  %v8658_v28 = vmul.f32 %v16991_v45, %v16665_v14  ;;  %v8661_v45 = vmul.f32 %v17012_v61, %v16665_v14 }
0x1391   : > { %v15677_v20 = vpop.eup %15676  ;;  %14764 = vmatpush3.msk.msra.mxu1 %vm1802_vm7, %v8194_v16  ;;  %14765 = vmatprep.mubr.msk.f32.mxu1 %vm15927_vm0, %v15928_v1 }
0x1392   : > { %v8188_v38 = vmul.f32 %v15677_v20, %v15665_v34  ;;  %14761 = vmatmul.mubr.msk.f32.vlgmr.msra.gmra.mrb[78].mxu0 %vm1798_vm9, %v8186_v62  ;;  %14773 = vmatprep.subr.mxu1 %v15928_v1 }
0x1393   : > { %14770 = vmatprep.mubr.msk.f32.mxu0 %vm15927_vm0, %v15928_v1 }
0x1394   : > { %14766 = vmatmul.mubr.msk.f32.vlgmr.msra.gmra.mrb[74].mxu1 %vm1798_vm9, %v8188_v38 }
0x1395   : > { %14775 = vmatprep.mubr.msk.f32.mxu1 %vm15927_vm0, %v15928_v1 }
0x1396   : > { %14769 = vmatpush3.xpose.msk.msra.mxu0 %vm464_vm2, %v16987_v23  ;;  %v8660_v23 = vmul.f32 %v17010_v5, %v16665_v14 }
0x1397   : > { %14778 = vmatprep.subr.mxu0 %v15928_v1 }
0x1398   : > { %14774 = vmatpush3.xpose.msk.msra.mxu1 %vm464_vm2, %v16999_v25  ;;  %v8662_v25 = vmul.f32 %v17038_v4, %v16665_v14 }
0x1399   : > { %14771 = vmatmul.mubr.msk.f32.vlgmr.msra.gmra.mrb[86].mxu0 %vm464_vm2, %v8657_v2  ;;  %14783 = vmatprep.subr.mxu1 %v15928_v1 }
0x139a   : > { %14779 = vmatpush3.xpose.msk.msra.mxu0 %vm464_vm2, %v17004_v18  ;;  %14780 = vmatprep.mubr.msk.f32.mxu0 %vm15927_vm0, %v15928_v1  ;;  %v9168_v18 = vmul.f32 %v16693_v3, %v17102_v44 }
0x139b   : > { %14776 = vmatmul.mubr.msk.f32.vlgmr.msra.gmra.mrb[82].mxu1 %vm464_vm2, %v8658_v28  ;;  %14788 = vmatprep.subr.mxu0 %v15928_v1 }
0x139c   : > { %14784 = vmatpush3.xpose.msk.msra.mxu1 %vm464_vm2, %v17024_v10  ;;  %14785 = vmatprep.mubr.msk.f32.mxu1 %vm15927_vm0, %v15928_v1 }
0x139d   : > { %14781 = vmatmul.mubr.msk.f32.vlgmr.msra.gmra.mrb[88].mxu0 %vm464_vm2, %v8659_v26  ;;  %14793 = vmatprep.subr.mxu1 %v15928_v1 }
0x139e   : > { %14789 = vmatpush3.xpose.msk.msra.mxu0 %vm464_vm2, %v17030_v49  ;;  %14790 = vmatprep.mubr.msk.f32.mxu0 %vm15927_vm0, %v15928_v1 }
0x139f   : > { %14786 = vmatmul.mubr.msk.f32.vlgmr.msra.gmra.mrb[84].mxu1 %vm464_vm2, %v8660_v23  ;;  %14798 = vmatprep.subr.mxu0 %v15928_v1 }
0x13a0   : > { %14794 = vmatpush3.xpose.msk.msra.mxu1 %vm464_vm2, %v17050_v55  ;;  %14795 = vmatprep.mubr.msk.f32.mxu1 %vm15927_vm0, %v15928_v1 }
0x13a1   : > { %14791 = vmatmul.mubr.msk.f32.vlgmr.msra.gmra.mrb[90].mxu0 %vm464_vm2, %v8661_v45  ;;  %14803 = vmatprep.subr.mxu1 %v15928_v1 }
0x13a2   : > { %14799 = vmatpush3.msk.msra.mxu0 %vm1802_vm7, %v9167_v29  ;;  %14800 = vmatprep.mubr.msk.f32.mxu0 %vm15927_vm0, %v15928_v1 }
0x13a3   : > { %14796 = vmatmul.mubr.msk.f32.vlgmr.msra.gmra.mrb[86].mxu1 %vm464_vm2, %v8662_v25  ;;  %14808 = vmatprep.subr.mxu0 %v15928_v1 }
0x13a4   : > { %14804 = vmatpush3.msk.msra.mxu1 %vm1802_vm7, %v9168_v18  ;;  %14805 = vmatprep.mubr.msk.f32.mxu1 %vm15927_vm0, %v15928_v1 }
0x13a5   : > { %14813 = vmatprep.subr.mxu1 %v15928_v1 }
0x146c   : > { %v8732_v5 = vpop.f32.mrb[86].mxu0 }
0x146d   : > { %v14772_v61 = vpop.f32.mrb[87].mxu0  ;;  %v9101_v10 = vsel %vm1209_vm8, %v8732_v5, -inf }
0x146e   : > { %v8805_v49 = vpop.f32.mrb[82].mxu1  ;;  %9102 = vmax.xlane.f32.xlu0 %v9101_v10 }
0x146f   : > { %v14777_v4 = vpop.f32.mrb[83].mxu1  ;;  %v9104_v55 = vsel %vm1209_vm8, %v8805_v49, -inf }
0x1470   : > { %9105 = vmax.xlane.f32.xlu1 %v9104_v55  ;;  %v8878_v12 = vpop.f32.mrb[88].mxu0 }
0x1471   : > { %v14782_v44 = vpop.f32.mrb[89].mxu0  ;;  %v9107_v19 = vsel %vm1209_vm8, %v8878_v12, -inf }
0x1472   : > { %v8951_v34 = vpop.f32.mrb[84].mxu1  ;;  %9108 = vmax.xlane.f32.xlu0 %v9107_v19 }
0x1473   : > { %v14787_v7 = vpop.f32.mrb[85].mxu1  ;;  %v9110_v22 = vsel %vm1209_vm8, %v8951_v34, -inf }
0x1474   : > { %9111 = vmax.xlane.f32.xlu1 %v9110_v22  ;;  %v9024_v9 = vpop.f32.mrb[90].mxu0 }
0x1475   : > { %v14792_v31 = vpop.f32.mrb[91].mxu0  ;;  %v9113_v63 = vsel %vm1209_vm8, %v9024_v9, -inf }
0x1476   : > { %v9097_v15 = vpop.f32.mrb[86].mxu1  ;;  %9114 = vmax.xlane.f32.xlu0 %v9113_v63 }
0x1477   : > { %v14797_v39 = vpop.f32.mrb[87].mxu1  ;;  %v9116_v42 = vsel %vm1209_vm8, %v9097_v15, -inf }
0x1478   : > { %9117 = vmax.xlane.f32.xlu1 %v9116_v42  ;;  %v9169_v39 = vmul.f32 %v16693_v3, %v16980_v43 }
0x14fb   : > { %v9103_v37 = vpop.xlane.xlu0 %9102 }
0x14fc   : > { %v9119_v6 = vsub.f32 %v8732_v5, %v9103_v37 }
0x14fd   : > { %v9106_v56 = vpop.xlane.xlu1 %9105 }
0x14fe   : > { %v9125_v8 = vmul.f32 1.442695, %v9119_v6  ;;  %v9120_v58 = vsub.f32 %v8805_v49, %v9106_v56  ;;  %v9170_v6 = vmul.f32 %v16693_v3, %v17219_v47 }
0x14ff   : > { %v9109_v32 = vpop.xlane.xlu0 %9108 }
0x1500   : > { %15678 = vpow2.f32 %v9125_v8  ;;  %v9127_v36 = vmul.f32 1.442695, %v9120_v58  ;;  %v9121_v11 = vsub.f32 %v8878_v12, %v9109_v32  ;;  %v9635_v8 = vld [vmem:[#allocation6 + $0x1f0] sm:$0xff]  ;;  %v9636_v58 = vld [vmem:[#allocation6 + $0x1f8] sm:$0xff]  ;;  %v9171_v32 = vmul.f32 %v16693_v3, %v16983_v33 }
0x1501   : > { %v9112_v27 = vpop.xlane.xlu1 %9111 }
0x1502   : > { %15680 = vpow2.f32 %v9127_v36  ;;  %v9129_v21 = vmul.f32 1.442695, %v9121_v11  ;;  %v9122_v57 = vsub.f32 %v8951_v34, %v9112_v27  ;;  %v9172_v11 = vmul.f32 %v16693_v3, %v17228_v50  ;;  %v9637_v50 = vld [vmem:[#allocation6 + $0x200] sm:$0xff] }
0x1503   : > { %v9115_v16 = vpop.xlane.xlu0 %9114  ;;  %v15212_v27 = vpack.c.bf16 %v9636_v58, %v9635_v8 }
0x1504   : > { %15682 = vpow2.f32 %v9129_v21  ;;  %v9131_v62 = vmul.f32 1.442695, %v9122_v57  ;;  %v9123_v20 = vsub.f32 %v9024_v9, %v9115_v16  ;;  %v9638_v16 = vld [vmem:[#allocation6 + $0x208] sm:$0xff] }
0x1505   : > { %v9118_v38 = vpop.xlane.xlu1 %9117 }
0x1506   : > { %15684 = vpow2.f32 %v9131_v62  ;;  %v9133_v2 = vmul.f32 1.442695, %v9123_v20  ;;  %v9124_v28 = vsub.f32 %v9097_v15, %v9118_v38  ;;  %v15215_v62 = vpack.c.bf16 %v9638_v16, %v9637_v50 }
0x1508   : > { %15686 = vpow2.f32 %v9133_v2  ;;  %v9135_v26 = vmul.f32 1.442695, %v9124_v28 }
0x150a   : > { %v15679_v23 = vpop.eup %15678  ;;  %15688 = vpow2.f32 %v9135_v26 }
0x150b   : > { %v9137_v45 = vsel %vm1209_vm8, %v15679_v23, 0.0 }
0x150c   : > { %v15681_v29 = vpop.eup %15680  ;;  %9138 = vadd.xlane.f32.xlu0 %v9137_v45 }
0x150d   : > { %v9140_v25 = vsel %vm1209_vm8, %v15681_v29, 0.0 }
0x150e   : > { %v15683_v18 = vpop.eup %15682  ;;  %9141 = vadd.xlane.f32.xlu1 %v9140_v25 }
0x150f   : > { %v9143_v5 = vsel %vm1209_vm8, %v15683_v18, 0.0 }
0x1510   : > { %v15685_v61 = vpop.eup %15684  ;;  %9144 = vadd.xlane.f32.xlu0 %v9143_v5 }
0x1511   : > { %v9146_v10 = vsel %vm1209_vm8, %v15685_v61, 0.0 }
0x1512   : > { %v15687_v49 = vpop.eup %15686  ;;  %9147 = vadd.xlane.f32.xlu1 %v9146_v10 }
0x1513   : > { %v9149_v4 = vsel %vm1209_vm8, %v15687_v49, 0.0 }
0x1514   : > { %v15689_v55 = vpop.eup %15688  ;;  %9150 = vadd.xlane.f32.xlu0 %v9149_v4 }
0x1515   : > { %v9152_v12 = vsel %vm1209_vm8, %v15689_v55, 0.0  ;;  %vm10425_vm8 = vcmask 259072  }
0x1516   : > { %9153 = vadd.xlane.f32.xlu1 %v9152_v12 }
0x1599   : > { %v9139_v44 = vpop.xlane.xlu0 %9138 }
0x159a   : > { %15690 = vrcp.f32 %v9139_v44 }
0x159b   : > { %v9142_v19 = vpop.xlane.xlu1 %9141 }
0x159c   : > { %15692 = vrcp.f32 %v9142_v19 }
0x159d   : > { %v9145_v34 = vpop.xlane.xlu0 %9144 }
0x159e   : > { %15694 = vrcp.f32 %v9145_v34 }
0x159f   : > { %v9148_v7 = vpop.xlane.xlu1 %9147 }
0x15a0   : > { %15696 = vrcp.f32 %v9148_v7 }
0x15a1   : > { %v9151_v22 = vpop.xlane.xlu0 %9150 }
0x15a2   : > { %15698 = vrcp.f32 %v9151_v22 }
0x15a3   : > { %v9154_v9 = vpop.xlane.xlu1 %9153 }
0x15a4   : > { %v15691_v31 = vpop.eup %15690  ;;  %15700 = vrcp.f32 %v9154_v9 }
0x15a5   : > { %v9156_v63 = vmul.f32 %v15691_v31, %v15679_v23 }
0x15a6   : > { %v15693_v15 = vpop.eup %15692 }
0x15a7   : > { %v9158_v42 = vmul.f32 %v15693_v15, %v15681_v29  ;;  %14801 = vmatmul.mubr.msk.f32.vlgmr.msra.gmra.mrb[74].mxu0 %vm1798_vm9, %v9156_v63 }
0x15a8   : > { %v15695_v37 = vpop.eup %15694  ;;  %14809 = vmatpush3.msk.msra.mxu0 %vm1802_vm7, %v9169_v39  ;;  %14810 = vmatprep.mubr.msk.f32.mxu0 %vm15927_vm0, %v15928_v1 }
0x15a9   : > { %v9160_v56 = vmul.f32 %v15695_v37, %v15683_v18  ;;  %14806 = vmatmul.mubr.msk.f32.vlgmr.msra.gmra.mrb[70].mxu1 %vm1798_vm9, %v9158_v42  ;;  %14818 = vmatprep.subr.mxu0 %v15928_v1 }
0x15aa   : > { %v15697_v43 = vpop.eup %15696  ;;  %14814 = vmatpush3.msk.msra.mxu1 %vm1802_vm7, %v9170_v6  ;;  %14815 = vmatprep.mubr.msk.f32.mxu1 %vm15927_vm0, %v15928_v1 }
0x15ab   : > { %v9162_v47 = vmul.f32 %v15697_v43, %v15685_v61  ;;  %14811 = vmatmul.mubr.msk.f32.vlgmr.msra.gmra.mrb[76].mxu0 %vm1798_vm9, %v9160_v56  ;;  %14823 = vmatprep.subr.mxu1 %v15928_v1 }
0x15ac   : > { %v15699_v36 = vpop.eup %15698  ;;  %14819 = vmatpush3.msk.msra.mxu0 %vm1802_vm7, %v9171_v32  ;;  %14820 = vmatprep.mubr.msk.f32.mxu0 %vm15927_vm0, %v15928_v1 }
0x15ad   : > { %v9164_v21 = vmul.f32 %v15699_v36, %v15687_v49  ;;  %14816 = vmatmul.mubr.msk.f32.vlgmr.msra.gmra.mrb[72].mxu1 %vm1798_vm9, %v9162_v47  ;;  %15211 = vmatprep.subr.bf16.mxu0 %v15926_v0 }
0x15ae   : > { %v15701_v33 = vpop.eup %15700  ;;  %14824 = vmatpush3.msk.msra.mxu1 %vm1802_vm7, %v9172_v11  ;;  %14825 = vmatprep.mubr.msk.f32.mxu1 %vm15927_vm0, %v15928_v1  ;;  %vm10422_vm7 = vcmask 1045509  }
0x15af   : > { %v9166_v57 = vmul.f32 %v15701_v33, %v15689_v55  ;;  %14821 = vmatmul.mubr.msk.f32.vlgmr.msra.gmra.mrb[78].mxu0 %vm1798_vm9, %v9164_v21  ;;  %15217 = vmatprep.subr.bf16.mxu1 %v15926_v0  ;;  %v13680_v55 = vld [vmem:[#allocation6 + $0x273] ss:$0 sm:$0xff] }
0x15b0   : > { %15213 = vmatpush3.bf16.msra.mxu0 %v15212_v27  ;;  %14836 = vmatprep.mubr.msk.f32.mxu0 %vm15927_vm0, %v15928_v1 }
0x15b1   : > { %14826 = vmatmul.mubr.msk.f32.vlgmr.msra.gmra.mrb[74].mxu1 %vm1798_vm9, %v9166_v57  ;;  %15214 = vmatprep.subr.bf16.mxu0 %v15926_v0  ;;  %vm10779_vm9 = vcmask 253952  }
0x15b2   : > { %14853 = vmatprep.mubr.msk.f32.mxu1 %vm15927_vm0, %v15928_v1 }
0x15b4   : > { %15216 = vmatpush3.bf16.msra.mxu0 %v15215_v62 }
0x15b5   : > { %15223 = vmatprep.subr.bf16.mxu0 %v15926_v0 }
0x167a   : > { %v9245_v20 = vpop.f32.mrb[74].mxu0 }
0x167b   : > { %v14802_v38 = vpop.f32.mrb[75].mxu0 }
0x167c   : > { %v9321_v2 = vpop.f32.mrb[70].mxu1 }
0x167d   : > { %v9650_v28 = vcombine.low %v9245_v20, %v9321_v2  ;;  %v14807_v26 = vpop.f32.mrb[71].mxu1 }
0x167e   : > { %v9397_v23 = vpop.f32.mrb[76].mxu0 }
0x167f   : > { %v14812_v45 = vpop.f32.mrb[77].mxu0  ;;  %14837 = vmatmul.mubr.msk.f32.vlgmr.msra.gmra.mrb[92].mxu0 %vm464_vm2, %v9650_v28 }
0x1680   : > { %v9473_v29 = vpop.f32.mrb[72].mxu1  ;;  %14839 = vmatprep.mubr.msk.f32.mxu0 %vm15927_vm0, %v15928_v1 }
0x1681   : > { %v9651_v25 = vcombine.low %v9397_v23, %v9473_v29  ;;  %v14817_v18 = vpop.f32.mrb[73].mxu1 }
0x1682   : > { %v9549_v5 = vpop.f32.mrb[78].mxu0 }
0x1683   : > { %v14822_v61 = vpop.f32.mrb[79].mxu0  ;;  %14840 = vmatmul.mubr.msk.f32.gmra.mrb[94].mxu0 %vm464_vm2, %v9651_v25 }
0x1684   : > { %v9625_v10 = vpop.f32.mrb[74].mxu1  ;;  %14842 = vmatprep.mubr.msk.f32.mxu0 %vm15927_vm0, %v15928_v1 }
0x1685   : > { %v9652_v49 = vcombine.low %v9549_v5, %v9625_v10  ;;  %v14827_v4 = vpop.f32.mrb[75].mxu1 }
0x1687   : > { %14843 = vmatmul.mubr.msk.f32.gmra.mrb[96].mxu0 %vm464_vm2, %v9652_v49 }
0x1688   : > { %14878 = vmatprep.mubr.msk.f32.mxu0 %vm15927_vm0, %v15928_v1 }
0x1752   : > { %v9725_v12 = vpop.f32.mrb[92].mxu0 }
0x1753   : > { %v9726_v44 = vadd.f32 %v13680_v55, %v9725_v12  ;;  %v14838_v19 = vpop.f32.mrb[93].mxu0 }
0x1755   : > { %v9742_v34 = vcombine.high %v9726_v44, %v9726_v44  ;;  %v9748_v22 = vadd.f32 %v9726_v44, %v16922_v51 }
0x1756   : > { %v9730_v7 = vpop.f32.mrb[94].mxu0 }
0x1757   : > { %v9749_v9 = vadd.f32 %v9742_v34, %v16924_v52  ;;  %v9731_v31 = vadd.f32 %v13680_v55, %v9730_v7  ;;  %v14841_v63 = vpop.f32.mrb[95].mxu0  ;;  %v9956_v34 = vld [vmem:[#allocation6 + $0x210] sm:$0xff]  ;;  %v9957_v7 = vld [vmem:[#allocation6 + $0x218] sm:$0xff] }
0x1759   : > { %v9743_v15 = vcombine.high %v9731_v31, %v9731_v31  ;;  %v9762_v39 = vcombine.low %v9748_v22, %v9749_v9  ;;  %v9750_v37 = vadd.f32 %v9731_v31, %v16938_v48  ;;  %v9959_v31 = vld [vmem:[#allocation6 + $0x228] sm:$0xff] }
0x175a   : > { %v9735_v42 = vpop.f32.mrb[96].mxu0 }
0x175b   : > { %v9751_v6 = vadd.f32 %v9743_v15, %v16940_v30  ;;  %v9736_v56 = vadd.f32 %v13680_v55, %v9735_v42  ;;  %v14844_v8 = vpop.f32.mrb[97].mxu0  ;;  %v9768_v58 = vsel %vm464_vm2, %v9762_v39, 0.0  ;;  %v10063_v15 = vld [vmem:[#allocation6 + $0x230] sm:$0xff]  ;;  %v10064_v39 = vld [vmem:[#allocation6 + $0x238] sm:$0xff]  ;;  %v10065_v42 = vld [vmem:[#allocation6 + $0x240] sm:$0xff] }
0x175c   : > { %9769 = vadd.xlane.f32.xlu0 %v9768_v58  ;;  %v10067_v8 = vld [vmem:[#allocation6 + $0x250] sm:$0xff]  ;;  %v10068_v58 = vld [vmem:[#allocation6 + $0x258] sm:$0xff] }
0x175d   : > { %v9744_v43 = vcombine.high %v9736_v56, %v9736_v56  ;;  %v9763_v32 = vcombine.low %v9750_v37, %v9751_v6  ;;  %v9752_v51 = vadd.f32 %v9736_v56, %v16949_v13 }
0x175f   : > { %v9753_v52 = vadd.f32 %v9744_v43, %v16955_v35  ;;  %v9771_v47 = vsel %vm464_vm2, %v9763_v32, 0.0  ;;  %v15230_v43 = vpack.c.bf16 %v10068_v58, %v10067_v8 }
0x1760   : > { %9772 = vadd.xlane.f32.xlu1 %v9771_v47 }
0x1761   : > { %v9764_v36 = vcombine.low %v9752_v51, %v9753_v52 }
0x1763   : > { %v9774_v11 = vsel %vm464_vm2, %v9764_v36, 0.0 }
0x1764   : > { %9775 = vadd.xlane.f32.xlu0 %v9774_v11 }
0x17e9   : > { %v9770_v48 = vpop.xlane.xlu0 %9769 }
0x17ea   : > { %v9777_v30 = vmul.f32 0.03125, %v9770_v48 }
0x17ec   : > { %v9789_v27 = vrot.slane %v9777_v30, %v16802_v46  ;;  %v9796_v21 = vrot.slane %v9777_v30, %v16805_v60 }
0x17ed   : > { %v9773_v33 = vpop.xlane.xlu1 %9772 }
0x17ee   : > { %v17539_v57 = vsub.f32 %v9748_v22, %v9789_v27  ;;  %v17541_v50 = vsub.f32 %v9749_v9, %v9796_v21  ;;  %v9778_v13 = vmul.f32 0.03125, %v9773_v33  ;;  %v15218_v22 = vpack.c.bf16 %v9957_v7, %v9956_v34  ;;  %v9958_v9 = vld [vmem:[#allocation6 + $0x220] sm:$0xff]  ;;  %v13684_v21 = vld [vmem:[#allocation6 + $0x276] ss:$0 sm:$0xff] }
0x17ef   : > { %v15221_v63 = vpack.c.bf16 %v9959_v31, %v9958_v9 }
0x17f0   : > { %v9803_v35 = vrot.slane %v9778_v13, %v16802_v46  ;;  %v9810_v16 = vrot.slane %v9778_v13, %v16805_v60  ;;  %v9837_v62 = vmul.f32 %v17539_v57, %v17539_v57  ;;  %v9838_v20 = vmul.f32 %v17541_v50, %v17541_v50  ;;  %15219 = vmatpush3.bf16.msra.mxu1 %v15218_v22  ;;  %v13685_v13 = vld [vmem:[#allocation6 + $0x277] ss:$0 sm:$0xff] }
0x17f1   : > { %v9776_v38 = vpop.xlane.xlu0 %9775  ;;  %15220 = vmatprep.subr.bf16.mxu1 %v15926_v0 }
0x17f2   : > { %v17549_v2 = vsub.f32 %v9750_v37, %v9803_v35  ;;  %v17551_v28 = vsub.f32 %v9751_v6, %v9810_v16  ;;  %v9779_v26 = vmul.f32 0.03125, %v9776_v38  ;;  %v9849_v23 = vcombine.low %v9837_v62, %v9838_v20  ;;  %v10066_v6 = vld [vmem:[#allocation6 + $0x248] sm:$0xff] }
0x17f3   : > { %v15224_v37 = vpack.c.bf16 %v10064_v39, %v10063_v15  ;;  %v15227_v56 = vpack.c.bf16 %v10066_v6, %v10065_v42  ;;  %v9935_v62 = vcombine.high %v13684_v21, %v13684_v21  ;;  %v13686_v6 = vld [vmem:[#allocation6 + $0x274] ss:$0 sm:$0xff] }
0x17f4   : > { %v9817_v45 = vrot.slane %v9779_v26, %v16802_v46  ;;  %v9824_v29 = vrot.slane %v9779_v26, %v16805_v60  ;;  %v9855_v25 = vsel %vm464_vm2, %v9849_v23, 0.0  ;;  %v9839_v18 = vmul.f32 %v17549_v2, %v17549_v2  ;;  %15222 = vmatpush3.bf16.msra.mxu1 %v15221_v63 }
0x17f5   : > { %9856 = vadd.xlane.f32.xlu1 %v9855_v25  ;;  %v9840_v5 = vmul.f32 %v17551_v28, %v17551_v28  ;;  %15235 = vmatprep.subr.bf16.mxu1 %v15926_v0  ;;  %v9948_v26 = vcombine.high %v13685_v13, %v13685_v13 }
0x17f6   : > { %v17560_v61 = vsub.f32 %v9752_v51, %v9817_v45  ;;  %v17562_v10 = vsub.f32 %v9753_v52, %v9824_v29  ;;  %15225 = vmatpush3.bf16.msra.mxu0 %v15224_v37 }
0x17f7   : > { %v9850_v49 = vcombine.low %v9839_v18, %v9840_v5  ;;  %15226 = vmatprep.subr.bf16.mxu0 %v15926_v0 }
0x17f8   : > { %v9841_v4 = vmul.f32 %v17560_v61, %v17560_v61  ;;  %v9842_v55 = vmul.f32 %v17562_v10, %v17562_v10 }
0x17f9   : > { %v9858_v12 = vsel %vm464_vm2, %v9850_v49, 0.0 }
0x17fa   : > { %9859 = vadd.xlane.f32.xlu0 %v9858_v12  ;;  %v9851_v44 = vcombine.low %v9841_v4, %v9842_v55  ;;  %15228 = vmatpush3.bf16.msra.mxu0 %v15227_v56 }
0x17fb   : > { %15229 = vmatprep.subr.bf16.mxu0 %v15926_v0 }
0x17fc   : > { %v9861_v19 = vsel %vm464_vm2, %v9851_v44, 0.0 }
0x17fd   : > { %9862 = vadd.xlane.f32.xlu1 %v9861_v19 }
0x17fe   : > { %15231 = vmatpush3.bf16.msra.mxu0 %v15230_v43 }
0x17ff   : > { %15232 = vmatprep.subr.bf16.mxu0 %v15926_v0 }
0x1882   : > { %v9857_v32 = vpop.xlane.xlu1 %9856 }
0x1883   : > { %v9864_v51 = vmul.f32 0.03125, %v9857_v32 }
0x1885   : > { %v9867_v52 = vadd.f32 1e-05, %v9864_v51 }
0x1887   : > { %15702 = vrsqrt.f32 %v9867_v52  ;;  %v9860_v47 = vpop.xlane.xlu0 %9859 }
0x1888   : > { %v9865_v36 = vmul.f32 0.03125, %v9860_v47 }
0x188a   : > { %v9868_v11 = vadd.f32 1e-05, %v9865_v36  ;;  %v9863_v48 = vpop.xlane.xlu1 %9862 }
0x188b   : > { %v9866_v30 = vmul.f32 0.03125, %v9863_v48 }
0x188c   : > { %15704 = vrsqrt.f32 %v9868_v11 }
0x188d   : > { %v9869_v27 = vadd.f32 1e-05, %v9866_v30 }
0x188f   : > { %15706 = vrsqrt.f32 %v9869_v27  ;;  %v13690_v27 = vld [vmem:[#allocation6 + $0x275] ss:$0 sm:$0xff] }
0x1891   : > { %v15703_v33 = vpop.eup %15702 }
0x1892   : > { %v9882_v35 = vrot.slane %v15703_v33, %v16802_v46  ;;  %v9889_v16 = vrot.slane %v15703_v33, %v16805_v60 }
0x1894   : > { %v9924_v20 = vmul.f32 %v9882_v35, %v17539_v57  ;;  %v9925_v38 = vmul.f32 %v9889_v16, %v17541_v50 }
0x1896   : > { %v15705_v23 = vpop.eup %15704  ;;  %v9937_v45 = vmul.f32 %v13684_v21, %v9924_v20  ;;  %v9938_v29 = vmul.f32 %v9935_v62, %v9925_v38 }
0x1897   : > { %v9896_v25 = vrot.slane %v15705_v23, %v16802_v46  ;;  %v9903_v18 = vrot.slane %v15705_v23, %v16805_v60 }
0x1898   : > { %v9950_v5 = vadd.f32 %v13685_v13, %v9937_v45  ;;  %v9951_v49 = vadd.f32 %v9948_v26, %v9938_v29 }
0x1899   : > { %v15707_v4 = vpop.eup %15706  ;;  %v9926_v55 = vmul.f32 %v9896_v25, %v17549_v2  ;;  %v9927_v12 = vmul.f32 %v9903_v18, %v17551_v28 }
0x189a   : > { %v9910_v44 = vrot.slane %v15707_v4, %v16802_v46  ;;  %v9917_v57 = vrot.slane %v15707_v4, %v16805_v60  ;;  %v9971_v50 = vcombine.low %v9950_v5, %v9951_v49 }
0x189b   : > { %v9939_v19 = vmul.f32 %v13684_v21, %v9926_v55  ;;  %v9940_v34 = vmul.f32 %v9935_v62, %v9927_v12 }
0x189c   : > { %14854 = vmatmul.mubr.msk.f32.vlgmr.msra.gmra.mrb[88].mxu1 %vm464_vm2, %v9971_v50  ;;  %v9928_v7 = vmul.f32 %v9910_v44, %v17560_v61  ;;  %v9929_v22 = vmul.f32 %v9917_v57, %v17562_v10  ;;  %v10069_v61 = vld [vmem:[#allocation6 + $0x260] sm:$0xff]  ;;  %v10070_v10 = vld [vmem:[#allocation6 + $0x268] sm:$0xff] }
0x189d   : > { %14856 = vmatprep.mubr.msk.f32.mxu1 %vm15927_vm0, %v15928_v1  ;;  %v9952_v9 = vadd.f32 %v13685_v13, %v9939_v19  ;;  %v9953_v2 = vadd.f32 %v9948_v26, %v9940_v34  ;;  %v15233_v37 = vpack.c.bf16 %v10070_v10, %v10069_v61 }
0x189e   : > { %v9941_v31 = vmul.f32 %v13684_v21, %v9928_v7  ;;  %v9942_v28 = vmul.f32 %v9935_v62, %v9929_v22 }
0x189f   : > { %v9972_v63 = vcombine.low %v9952_v9, %v9953_v2  ;;  %15234 = vmatpush3.bf16.msra.mxu0 %v15233_v37 }
0x18a0   : > { %v9954_v15 = vadd.f32 %v13685_v13, %v9941_v31  ;;  %v9955_v39 = vadd.f32 %v9948_v26, %v9942_v28  ;;  %15247 = vmatprep.subr.bf16.mxu0 %v15926_v0 }
0x18a1   : > { %14857 = vmatmul.mubr.msk.f32.gmra.mrb[90].mxu1 %vm464_vm2, %v9972_v63 }
0x18a2   : > { %14859 = vmatprep.mubr.msk.f32.mxu1 %vm15927_vm0, %v15928_v1  ;;  %v9973_v42 = vcombine.low %v9954_v15, %v9955_v39 }
0x18a5   : > { %14860 = vmatmul.mubr.msk.f32.gmra.mrb[92].mxu1 %vm464_vm2, %v9973_v42 }
0x18a6   : > { %14895 = vmatprep.mubr.msk.f32.mxu1 %vm15927_vm0, %v15928_v1 }
0x196f   : > { %v10046_v56 = vpop.f32.mrb[88].mxu1 }
0x1970   : > { %v10047_v8 = vadd.f32 %v13686_v6, %v10046_v56  ;;  %v14855_v58 = vpop.f32.mrb[89].mxu1 }
0x1972   : > { %v10060_v43 = vmax.f32 %v10047_v8, 0.0 }
0x1974   : > { %v10051_v32 = vpop.f32.mrb[90].mxu1  ;;  %14879 = vmatmul.mubr.msk.f32.vlgmr.msra.gmra.mrb[98].mxu0 %vm5110_vm1, %v10060_v43 }
0x1975   : > { %v10052_v51 = vadd.f32 %v13686_v6, %v10051_v32  ;;  %v14858_v52 = vpop.f32.mrb[91].mxu1  ;;  %14881 = vmatprep.mubr.msk.f32.mxu0 %vm15927_vm0, %v15928_v1 }
0x1977   : > { %v10061_v47 = vmax.f32 %v10052_v51, 0.0 }
0x1978   : > { %v10056_v36 = vpop.f32.mrb[92].mxu1 }
0x1979   : > { %v10057_v11 = vadd.f32 %v13686_v6, %v10056_v36  ;;  %v14861_v48 = vpop.f32.mrb[93].mxu1  ;;  %14882 = vmatmul.mubr.msk.f32.gmra.mrb[100].mxu0 %vm5110_vm1, %v10061_v47 }
0x197a   : > { %14884 = vmatprep.mubr.msk.f32.mxu0 %vm15927_vm0, %v15928_v1 }
0x197b   : > { %v10062_v30 = vmax.f32 %v10057_v11, 0.0 }
0x197d   : > { %14885 = vmatmul.mubr.msk.f32.gmra.mrb[102].mxu0 %vm5110_vm1, %v10062_v30 }
0x197e   : > { %14917 = vmatprep.mubr.msk.f32.mxu0 %vm15927_vm0, %v15928_v1 }
0x1a47   : > { %v10151_v21 = vpop.f32.mrb[98].mxu0 }
0x1a48   : > { %v10152_v33 = vadd.f32 %v13690_v27, %v10151_v21  ;;  %v14880_v13 = vpop.f32.mrb[99].mxu0 }
0x1a4a   : > { %v10168_v35 = vcombine.high %v10152_v33, %v10152_v33  ;;  %v10174_v16 = vadd.f32 %v10152_v33, %v9950_v5 }
0x1a4c   : > { %v10175_v62 = vadd.f32 %v10168_v35, %v9951_v49  ;;  %v10156_v20 = vpop.f32.mrb[100].mxu0 }
0x1a4d   : > { %v10157_v38 = vadd.f32 %v13690_v27, %v10156_v20  ;;  %v14883_v26 = vpop.f32.mrb[101].mxu0 }
0x1a4e   : > { %v10188_v23 = vcombine.low %v10174_v16, %v10175_v62 }
0x1a4f   : > { %v10169_v45 = vcombine.high %v10157_v38, %v10157_v38  ;;  %v10176_v18 = vadd.f32 %v10157_v38, %v9952_v9 }
0x1a50   : > { %v10161_v29 = vpop.f32.mrb[102].mxu0  ;;  %v10194_v25 = vsel %vm464_vm2, %v10188_v23, 0.0 }
0x1a51   : > { %v10177_v4 = vadd.f32 %v10169_v45, %v9953_v2  ;;  %v10162_v55 = vadd.f32 %v13690_v27, %v10161_v29  ;;  %v14886_v12 = vpop.f32.mrb[103].mxu0  ;;  %10195 = vadd.xlane.f32.xlu0 %v10194_v25  ;;  %v13694_v25 = vld [vmem:[#allocation6 + $0x278] ss:$0 sm:$0xff] }
0x1a53   : > { %v10170_v44 = vcombine.high %v10162_v55, %v10162_v55  ;;  %v10189_v57 = vcombine.low %v10176_v18, %v10177_v4  ;;  %v10178_v50 = vadd.f32 %v10162_v55, %v9954_v15 }
0x1a55   : > { %v10179_v19 = vadd.f32 %v10170_v44, %v9955_v39  ;;  %v10197_v5 = vsel %vm464_vm2, %v10189_v57, 0.0  ;;  %v10361_v44 = vcombine.high %v13694_v25, %v13694_v25 }
0x1a56   : > { %10198 = vadd.xlane.f32.xlu1 %v10197_v5 }
0x1a57   : > { %v10190_v49 = vcombine.low %v10178_v50, %v10179_v19 }
0x1a59   : > { %v10200_v34 = vsel %vm464_vm2, %v10190_v49, 0.0 }
0x1a5a   : > { %10201 = vadd.xlane.f32.xlu0 %v10200_v34 }
0x1ade   : > { %v10196_v7 = vpop.xlane.xlu0 %10195 }
0x1adf   : > { %v10203_v22 = vmul.f32 0.03125, %v10196_v7 }
0x1ae1   : > { %v10215_v31 = vrot.slane %v10203_v22, %v16802_v46  ;;  %v10222_v9 = vrot.slane %v10203_v22, %v16805_v60 }
0x1ae3   : > { %v10257_v2 = vsub.f32 %v10174_v16, %v10215_v31  ;;  %v10258_v28 = vsub.f32 %v10175_v62, %v10222_v9  ;;  %v10199_v63 = vpop.xlane.xlu1 %10198  ;;  %v17623_v31 = vsub.s32 0, %v16799_v40 }
0x1ae4   : > { %v10204_v42 = vmul.f32 0.03125, %v10199_v63 }
0x1ae5   : > { %v10263_v61 = vmul.f32 %v10257_v2, %v10257_v2  ;;  %v10264_v15 = vmul.f32 %v10258_v28, %v10258_v28 }
0x1ae6   : > { %v10229_v39 = vrot.slane %v10204_v42, %v16802_v46  ;;  %v10236_v10 = vrot.slane %v10204_v42, %v16805_v60 }
0x1ae7   : > { %v10202_v37 = vpop.xlane.xlu0 %10201  ;;  %v10275_v6 = vcombine.low %v10263_v61, %v10264_v15 }
0x1ae8   : > { %v10259_v56 = vsub.f32 %v10176_v18, %v10229_v39  ;;  %v10260_v8 = vsub.f32 %v10177_v4, %v10236_v10  ;;  %v10205_v58 = vmul.f32 0.03125, %v10202_v37  ;;  %v13695_v4 = vld [vmem:[#allocation6 + $0x279] ss:$0 sm:$0xff] }
0x1ae9   : > { %v10281_v43 = vsel %vm464_vm2, %v10275_v6, 0.0 }
0x1aea   : > { %v10243_v32 = vrot.slane %v10205_v58, %v16802_v46  ;;  %v10250_v51 = vrot.slane %v10205_v58, %v16805_v60  ;;  %10282 = vadd.xlane.f32.xlu1 %v10281_v43  ;;  %v10265_v52 = vmul.f32 %v10259_v56, %v10259_v56  ;;  %v10266_v47 = vmul.f32 %v10260_v8, %v10260_v8 }
0x1aec   : > { %v10261_v36 = vsub.f32 %v10178_v50, %v10243_v32  ;;  %v10262_v11 = vsub.f32 %v10179_v19, %v10250_v51  ;;  %v10276_v48 = vcombine.low %v10265_v52, %v10266_v47  ;;  %v10374_v19 = vcombine.high %v13695_v4, %v13695_v4 }
0x1aee   : > { %v10284_v30 = vsel %vm464_vm2, %v10276_v48, 0.0  ;;  %v10267_v27 = vmul.f32 %v10261_v36, %v10261_v36  ;;  %v10268_v21 = vmul.f32 %v10262_v11, %v10262_v11 }
0x1aef   : > { %10285 = vadd.xlane.f32.xlu0 %v10284_v30 }
0x1af0   : > { %v10277_v33 = vcombine.low %v10267_v27, %v10268_v21 }
0x1af2   : > { %v10287_v13 = vsel %vm464_vm2, %v10277_v33, 0.0 }
0x1af3   : > { %10288 = vadd.xlane.f32.xlu1 %v10287_v13 }
0x1b77   : > { %v10283_v35 = vpop.xlane.xlu1 %10282 }
0x1b78   : > { %v10290_v16 = vmul.f32 0.03125, %v10283_v35 }
0x1b7a   : > { %v10293_v62 = vadd.f32 1e-05, %v10290_v16 }
0x1b7c   : > { %15708 = vrsqrt.f32 %v10293_v62  ;;  %v10286_v20 = vpop.xlane.xlu0 %10285 }
0x1b7d   : > { %v10291_v38 = vmul.f32 0.03125, %v10286_v20 }
0x1b7f   : > { %v10294_v26 = vadd.f32 1e-05, %v10291_v38 }
0x1b80   : > { %v10289_v23 = vpop.xlane.xlu1 %10288 }
0x1b81   : > { %15710 = vrsqrt.f32 %v10294_v26  ;;  %v10292_v45 = vmul.f32 0.03125, %v10289_v23 }
0x1b83   : > { %v10295_v29 = vadd.f32 1e-05, %v10292_v45 }
0x1b85   : > { %15712 = vrsqrt.f32 %v10295_v29 }
0x1b86   : > { %v15709_v18 = vpop.eup %15708 }
0x1b87   : > { %v10308_v55 = vrot.slane %v15709_v18, %v16802_v46  ;;  %v10315_v12 = vrot.slane %v15709_v18, %v16805_v60 }
0x1b89   : > { %v10350_v57 = vmul.f32 %v10308_v55, %v10257_v2  ;;  %v10351_v50 = vmul.f32 %v10315_v12, %v10258_v28 }
0x1b8b   : > { %v15711_v5 = vpop.eup %15710  ;;  %v10363_v49 = vmul.f32 %v13694_v25, %v10350_v57  ;;  %v10364_v34 = vmul.f32 %v10361_v44, %v10351_v50 }
0x1b8c   : > { %v10322_v7 = vrot.slane %v15711_v5, %v16802_v46  ;;  %v10329_v22 = vrot.slane %v15711_v5, %v16805_v60 }
0x1b8d   : > { %v10376_v9 = vadd.f32 %v13695_v4, %v10363_v49  ;;  %v10377_v63 = vadd.f32 %v10374_v19, %v10364_v34 }
0x1b8e   : > { %v10352_v42 = vmul.f32 %v10322_v7, %v10259_v56  ;;  %v10353_v61 = vmul.f32 %v10329_v22, %v10260_v8 }
0x1b8f   : > { %v15713_v15 = vpop.eup %15712  ;;  %v10393_v37 = vrot.slane %v10376_v9, %v17623_v31  ;;  %v10397_v6 = vrot.slane %v10377_v63, %v17623_v31 }
0x1b90   : > { %v10365_v39 = vmul.f32 %v13694_v25, %v10352_v42  ;;  %v10336_v2 = vrot.slane %v15713_v15, %v16802_v46  ;;  %v10343_v28 = vrot.slane %v15713_v15, %v16805_v60  ;;  %v10366_v10 = vmul.f32 %v10361_v44, %v10353_v61 }
0x1b91   : > { %v10415_v47 = vsel %vm10414_vm3, %v10397_v6, %v10393_v37  ;;  %v10585_v6 = vld [vmem:[#allocation6 + $0x10] sm:$0xff] }
0x1b92   : > { %v10354_v58 = vmul.f32 %v10336_v2, %v10261_v36  ;;  %v10355_v43 = vmul.f32 %v10343_v28, %v10262_v11  ;;  %v10378_v40 = vadd.f32 %v13695_v4, %v10365_v39  ;;  %v10379_v32 = vadd.f32 %v10374_v19, %v10366_v10 }
0x1b94   : > { %v10367_v51 = vmul.f32 %v13694_v25, %v10354_v58  ;;  %v10368_v56 = vmul.f32 %v10361_v44, %v10355_v43  ;;  %v10401_v8 = vrot.slane %v10378_v40, %v17623_v31  ;;  %v10405_v52 = vrot.slane %v10379_v32, %v17623_v31  ;;  %v10586_v58 = vld [vmem:[#allocation6 + $0x18] sm:$0xff] }
0x1b95   : > { %v15236_v43 = vpack.c.bf16 %v10586_v58, %v10585_v6 }
0x1b96   : > { %v10380_v48 = vadd.f32 %v13695_v4, %v10367_v51  ;;  %v10381_v30 = vadd.f32 %v10374_v19, %v10368_v56  ;;  %v10417_v27 = vsel %vm10416_vm4, %v10401_v8, %v10415_v47  ;;  %v10663_v56 = vld [vmem:[#allocation6 + $0x30] sm:$0xff]  ;;  %v10664_v8 = vld [vmem:[#allocation6 + $0x38] sm:$0xff]  ;;  %v10665_v47 = vld [vmem:[#allocation6 + $0x40] sm:$0xff] }
0x1b97   : > { %v10419_v21 = vsel %vm10418_vm5, %v10405_v52, %v10417_v27  ;;  %15237 = vmatpush3.bf16.msra.mxu1 %v15236_v43  ;;  %v15242_v52 = vpack.c.bf16 %v10664_v8, %v10663_v56 }
0x1b98   : > { %v10409_v36 = vrot.slane %v10380_v48, %v17623_v31  ;;  %v10413_v11 = vrot.slane %v10381_v30, %v17623_v31  ;;  %15238 = vmatprep.subr.bf16.mxu1 %v15926_v0 }
0x1b9a   : > { %v10421_v33 = vsel %vm10420_vm6, %v10409_v36, %v10419_v21 }
0x1b9b   : > { %v10423_v13 = vsel %vm10422_vm7, %v10413_v11, %v10421_v33  ;;  %v13696_v33 = vld [vmem:[#allocation6 + $0x27a] ss:$0 sm:$0xff] }
0x1b9c   : > { %v10426_v35 = vsel %vm10425_vm8, %v10423_v13, 0.0  ;;  %v10545_v13 = vcombine.high %v13696_v33, %v13696_v33 }
0x1b9d   : > { %10427 = vadd.xlane.f32.xlu0 %v10426_v35  ;;  %v13697_v35 = vld [vmem:[#allocation6 + $0x27b] ss:$0 sm:$0xff] }
0x1c2a   : > { %v10428_v16 = vpop.xlane.xlu0 %10427 }
0x1c2b   : > { %v10429_v62 = vmul.f32 0.03125, %v10428_v16 }
0x1c2d   : > { %v10437_v20 = vrot.slane %v10429_v62, %v16802_v46  ;;  %v10444_v38 = vrot.slane %v10429_v62, %v16805_v60 }
0x1c2f   : > { %v10445_v26 = vrot.slane %v10437_v20, 1  ;;  %v10446_v23 = vrot.slane %v10437_v20, 2  ;;  %v10447_v45 = vrot.slane %v10437_v20, 3  ;;  %v10448_v29 = vrot.slane %v10444_v38, 1 }
0x1c30   : > { %v17641_v25 = vsub.f32 %v10376_v9, %v10437_v20  ;;  %v17643_v18 = vsub.f32 %v10380_v48, %v10444_v38  ;;  %v10666_v48 = vld [vmem:[#allocation6 + $0x48] sm:$0xff]  ;;  %v10546_v38 = vrot.slane %v13696_v33, 1 }
0x1c31   : > { %v17645_v4 = vsub.f32 %v10377_v63, %v10445_v26  ;;  %v17647_v55 = vsub.f32 %v10378_v40, %v10446_v23  ;;  %v17649_v12 = vsub.f32 %v10379_v32, %v10447_v45  ;;  %v17651_v44 = vsub.f32 %v10381_v30, %v10448_v29  ;;  %v10587_v40 = vld [vmem:[#allocation6 + $0x20] sm:$0xff]  ;;  %v10588_v32 = vld [vmem:[#allocation6 + $0x28] sm:$0xff] }
0x1c32   : > { %v10461_v57 = vmul.f32 %v17641_v25, %v17641_v25  ;;  %v10465_v49 = vmul.f32 %v17643_v18, %v17643_v18  ;;  %v15239_v51 = vpack.c.bf16 %v10588_v32, %v10587_v40  ;;  %v10584_v30 = vld [vmem:[%s291_s28] sm:$0x1]  ;;  %v15245_v27 = vpack.c.bf16 %v10666_v48, %v10665_v47  ;;  %s15816_s28 = scalar_lea.vmem %s17939_s6, 16 }
0x1c33   : > { %v10462_v50 = vmul.f32 %v17645_v4, %v17645_v4  ;;  %v10463_v19 = vmul.f32 %v17647_v55, %v17647_v55  ;;  %v10464_v5 = vmul.f32 %v17649_v12, %v17649_v12  ;;  %v10466_v34 = vmul.f32 %v17651_v44, %v17651_v44  ;;  %p15817_p6 = scmp.ne.s32.totalorder %s17939_s6, %s15816_s28 }
0x1c34   : > { %v10476_v7 = vrot.slane %v10461_v57, %v17623_v31  ;;  %v10492_v61 = vrot.slane %v10465_v49, %v17623_v31  ;;  %15240 = vmatpush3.bf16.msra.mxu1 %v15239_v51  ;;  %v10547_v26 = vrot.slane %v13696_v33, 2  ;;  %v10548_v23 = vrot.slane %v13696_v33, 3 }
0x1c35   : > { %v10480_v22 = vrot.slane %v10462_v50, %v17623_v31  ;;  %v10484_v9 = vrot.slane %v10463_v19, %v17623_v31  ;;  %v10488_v63 = vrot.slane %v10464_v5, %v17623_v31  ;;  %v10496_v39 = vrot.slane %v10466_v34, %v17623_v31  ;;  %15241 = vmatprep.subr.bf16.mxu1 %v15926_v0  ;;  %p15818_p8 = pnand %p15817_p6, %p16054_p12 }
0x1c36   : > { %v10549_v45 = vrot.slane %v10545_v13, 1  ;;  %v10567_v29 = vcombine.high %v13697_v35, %v13697_v35  ;;  %v10568_v57 = vrot.slane %v13697_v35, 1 }
0x1c37   : > { %v10497_v42 = vsel %vm10414_vm3, %v10480_v22, %v10476_v7  ;;  %14896 = vmatmul.mubr.msk.f32.vlgmr.msra.gmra.mrb[94].mxu1 %vm464_vm2, %v10584_v30  ;;  %v10569_v22 = vrot.slane %v13697_v35, 2  ;;  %v10589_v30 = vld [vmem:[#allocation6 + $0x9a] sm:$0x1]  ;;  %p15819_p10 = pneg %p15818_p8 }
0x1c38   : > { %v10498_v15 = vsel %vm10416_vm4, %v10484_v9, %v10497_v42  ;;  %15243 = vmatpush3.bf16.msra.mxu1 %v15242_v52  ;;  %14906 = vmatprep.mubr.msk.f32.mxu1 %vm15927_vm0, %v15928_v1  ;;  %v10570_v9 = vrot.slane %v13697_v35, 3 }
0x1c39   : > { %v10499_v2 = vsel %vm10418_vm5, %v10488_v63, %v10498_v15  ;;  %15244 = vmatprep.subr.bf16.mxu1 %v15926_v0 }
0x1c3a   : > { %v10500_v28 = vsel %vm10420_vm6, %v10492_v61, %v10499_v2 }
0x1c3b   : > { %v10501_v10 = vsel %vm10422_vm7, %v10496_v39, %v10500_v28  ;;  %v10571_v39 = vrot.slane %v10567_v29, 1 }
0x1c3c   : > { %v10503_v37 = vsel %vm10425_vm8, %v10501_v10, 0.0  ;;  %15246 = vmatpush3.bf16.msra.mxu1 %v15245_v27 }
0x1c3d   : > { %10504 = vadd.xlane.f32.xlu1 %v10503_v37  ;;  %15253 = vmatprep.subr.bf16.mxu1 %v15926_v0 }
0x1cca   : > { %v10505_v36 = vpop.xlane.xlu1 %10504 }
0x1ccb   : > { %v10506_v11 = vmul.f32 0.03125, %v10505_v36 }
0x1ccd   : > { %v10507_v21 = vadd.f32 1e-05, %v10506_v11 }
0x1ccf   : > { %15714 = vrsqrt.f32 %v10507_v21  ;;  %v10785_v21 = vld [vmem:[#allocation6 + $0x280] sm:$0xff] }
0x1cd9   : > { %v15715_v16 = vpop.eup %15714 }
0x1cda   : > { %v10516_v62 = vrot.slane %v15715_v16, %v16802_v46  ;;  %v10523_v20 = vrot.slane %v15715_v16, %v16805_v60  ;;  %v10787_v16 = vld [vmem:[#allocation6 + $0x290] sm:$0xff] }
0x1cdc   : > { %v10524_v50 = vrot.slane %v10516_v62, 1  ;;  %v10525_v19 = vrot.slane %v10516_v62, 2  ;;  %v10526_v5 = vrot.slane %v10516_v62, 3  ;;  %v10527_v49 = vrot.slane %v10523_v20, 1 }
0x1cdd   : > { %v10534_v34 = vmul.f32 %v10516_v62, %v17641_v25  ;;  %v10538_v7 = vmul.f32 %v10523_v20, %v17643_v18  ;;  %v10788_v62 = vld [vmem:[#allocation6 + $0x298] sm:$0xff] }
0x1cde   : > { %v10535_v46 = vmul.f32 %v10524_v50, %v17645_v4  ;;  %v10536_v60 = vmul.f32 %v10525_v19, %v17647_v55  ;;  %v10537_v63 = vmul.f32 %v10526_v5, %v17649_v12  ;;  %v10539_v42 = vmul.f32 %v10527_v49, %v17651_v44  ;;  %v10946_v5 = vld [vmem:[#allocation6 + $0x2c0] sm:$0xff]  ;;  %v10947_v49 = vld [vmem:[#allocation6 + $0x2c8] sm:$0xff] }
0x1cdf   : > { %v10556_v61 = vmul.f32 %v13696_v33, %v10534_v34  ;;  %v10560_v15 = vmul.f32 %v10545_v13, %v10538_v7  ;;  %v10867_v33 = vld [vmem:[#allocation6 + $0x2a0] sm:$0xff]  ;;  %v10783_v34 = vld [vmem:[#allocation6 + $0x88] sm:$0x7f] }
0x1ce0   : > { %v10557_v2 = vmul.f32 %v10546_v38, %v10535_v46  ;;  %v10558_v28 = vmul.f32 %v10547_v26, %v10536_v60  ;;  %v10559_v10 = vmul.f32 %v10548_v23, %v10537_v63  ;;  %v10561_v37 = vmul.f32 %v10549_v45, %v10539_v42  ;;  %v10869_v38 = vld [vmem:[#allocation6 + $0x2b0] sm:$0xff]  ;;  %v10870_v26 = vld [vmem:[#allocation6 + $0x2b8] sm:$0xff]  ;;  %v13701_v42 = vld [vmem:[#allocation6 + $0x360] ss:$0 sm:$0xff] }
0x1ce1   : > { %v10578_v25 = vadd.f32 %v13697_v35, %v10556_v61  ;;  %v10582_v43 = vadd.f32 %v10567_v29, %v10560_v15  ;;  %v10868_v35 = vld [vmem:[#allocation6 + $0x2a8] sm:$0xff]  ;;  %v15251_v23 = vpack.c.bf16 %v10788_v62, %v10787_v16  ;;  %v15257_v45 = vpack.c.bf16 %v10870_v26, %v10869_v38  ;;  %v13699_v29 = vld [vmem:[#allocation6 + $0x9b] ss:$0 sm:$0xff]  ;;  %v10948_v46 = vld [vmem:[#allocation6 + $0x2d0] sm:$0xff] }
0x1ce2   : > { %v10579_v6 = vadd.f32 %v10568_v57, %v10557_v2  ;;  %v10580_v18 = vadd.f32 %v10569_v22, %v10558_v28  ;;  %v10581_v58 = vadd.f32 %v10570_v9, %v10559_v10  ;;  %v10583_v40 = vadd.f32 %v10571_v39, %v10561_v37  ;;  %v10949_v60 = vld [vmem:[#allocation6 + $0x2d8] sm:$0xff]  ;;  %v13703_v61 = vld [vmem:[#allocation6 + $0x361] ss:$0 sm:$0xff] }
0x1ce3   : > { %v10681_v4 = vrot.slane %v10578_v25, %v17623_v31  ;;  %v10697_v51 = vrot.slane %v10582_v43, %v17623_v31  ;;  %v15254_v20 = vpack.c.bf16 %v10868_v35, %v10867_v33  ;;  %v15260_v22 = vpack.c.bf16 %v10947_v49, %v10946_v5 }
0x1ce4   : > { %v10685_v55 = vrot.slane %v10579_v6, %v17623_v31  ;;  %v10689_v12 = vrot.slane %v10580_v18, %v17623_v31  ;;  %v10693_v44 = vrot.slane %v10581_v58, %v17623_v31  ;;  %v10701_v8 = vrot.slane %v10583_v40, %v17623_v31  ;;  %v10786_v31 = vld [vmem:[#allocation6 + $0x288] sm:$0xff]  ;;  %v13705_v6 = vld [vmem:[#allocation6 + $0x362] ss:$0 sm:$0xff] }
0x1ce5   : > { %v15248_v13 = vpack.c.bf16 %v10786_v31, %v10785_v21  ;;  %v15263_v63 = vpack.c.bf16 %v10949_v60, %v10948_v46  ;;  %v11682_v46 = vld [vmem:[#allocation6 + $0x2e8] sm:$0xff]  ;;  %v11683_v60 = vld [vmem:[#allocation6 + $0x2f0] sm:$0xff] }
0x1ce6   : > { %v10702_v32 = vsel %vm10414_vm3, %v10685_v55, %v10681_v4 }
0x1ce7   : > { %v10703_v56 = vsel %vm10416_vm4, %v10689_v12, %v10702_v32  ;;  %15249 = vmatpush3.bf16.msra.mxu0 %v15248_v13 }
0x1ce8   : > { %v10704_v52 = vsel %vm10418_vm5, %v10693_v44, %v10703_v56  ;;  %15250 = vmatprep.subr.bf16.mxu0 %v15926_v0 }
0x1ce9   : > { %v10705_v47 = vsel %vm10420_vm6, %v10697_v51, %v10704_v52 }
0x1cea   : > { %v10706_v48 = vsel %vm10422_vm7, %v10701_v8, %v10705_v47 }
0x1ceb   : > { %14907 = vmatmul.mubr.msk.f32.vlgmr.msra.gmra.mrb[96].mxu1 %vm464_vm2, %v10706_v48  ;;  %15252 = vmatpush3.bf16.msra.mxu0 %v15251_v23 }
0x1cec   : > { %14928 = vmatprep.mubr.msk.f32.mxu1 %vm15927_vm0, %v15928_v1  ;;  %15255 = vmatpush3.bf16.msra.mxu1 %v15254_v20 }
0x1ced   : > { %15256 = vmatprep.subr.bf16.mxu1 %v15926_v0  ;;  %15259 = vmatprep.subr.bf16.mxu0 %v15926_v0 }
0x1cf0   : > { %15258 = vmatpush3.bf16.msra.mxu1 %v15257_v45 }
0x1cf1   : > { %14942 = vmatprep.subr.mxu1 %v15928_v1 }
0x1d0a   : > { %v10659_v27 = vpop.f32.mrb[94].mxu1 }
0x1d0b   : > { %v10660_v36 = vadd.f32 %v10659_v27, %v10589_v30  ;;  %v14897_v11 = vpop.f32.mrb[95].mxu1 }
0x1d0d   : > { %10780 = vst.msk [vmem:[#allocation2] sm:$0x1] %vm10779_vm9, %v10660_v36 }
0x1dbe   : > { %v10775_v57 = vpop.f32.mrb[96].mxu1 }
0x1dbf   : > { %v10776_v50 = vadd.f32 %v13699_v29, %v10775_v57  ;;  %v14908_v19 = vpop.f32.mrb[97].mxu1 }
0x1dc1   : > { %10781 = vst.msk [vmem:[#allocation2 + $0x1] sm:$0x3f] %vm10425_vm8, %v10776_v50 }
0x1dc8   : > { %v10782_v7 = vld [vmem:[#allocation2] sm:$0x7f] }
0x1dc9   : > { %v17720_v9 = vadd.f32 %v10783_v34, %v10782_v7 }
0x1dcb   : > { %14918 = vmatmul.mubr.msk.f32.vlgmr.msra.gmra.mrb[104].mxu0 %vm464_vm2, %v17720_v9  ;;  %14929 = vmatmul.mubr.msk.f32.vlgmr.msra.gmra.mrb[98].mxu1 %vm464_vm2, %v17720_v9 }
0x1dcc   : > { %15261 = vmatpush3.bf16.msra.mxu0 %v15260_v22  ;;  %14939 = vmatprep.mubr.msk.f32.mxu0 %vm15927_vm0, %v15928_v1  ;;  %v11681_v22 = vld [vmem:[#allocation6 + $0x2e0] sm:$0xff] }
0x1dcd   : > { %15262 = vmatprep.subr.bf16.mxu0 %v15926_v0  ;;  %14944 = vmatprep.mubr.msk.f32.mxu1 %vm15927_vm0, %v15928_v1 }
0x1dd0   : > { %15264 = vmatpush3.bf16.msra.mxu0 %v15263_v63  ;;  %v15266_v63 = vpack.c.bf16 %v11682_v46, %v11681_v22  ;;  %v13726_v46 = vld [vmem:[#allocation6 + $0x367] ss:$0 sm:$0xff] }
0x1dd1   : > { %14952 = vmatprep.subr.mxu0 %v15928_v1 }
0x1dd3   : > { %14940 = vmatmul.mubr.msk.f32.vlgmr.msra.gmra.mrb[106].mxu0 %vm464_vm2, %v17720_v9 }
0x1dd4   : > { %14954 = vmatprep.mubr.msk.f32.mxu0 %vm15927_vm0, %v15928_v1 }
0x1e9e   : > { %v10863_v15 = vpop.f32.mrb[104].mxu0  ;;  %v10942_v39 = vpop.f32.mrb[98].mxu1 }
0x1e9f   : > { %v10864_v2 = vadd.f32 %v13701_v42, %v10863_v15  ;;  %v10943_v28 = vadd.f32 %v13703_v61, %v10942_v39  ;;  %v14919_v10 = vpop.f32.mrb[105].mxu0  ;;  %v14930_v37 = vpop.f32.mrb[99].mxu1  ;;  %v11684_v42 = vld [vmem:[#allocation6 + $0x2f8] sm:$0xff] }
0x1ea0   : > { %v15269_v61 = vpack.c.bf16 %v11684_v42, %v11683_v60  ;;  %v11879_v42 = vld [vmem:[#allocation6 + $0x350] sm:$0xff] }
0x1ea1   : > { %v11025_v25 = vmul.f32 %v10864_v2, %v16185_v53  ;;  %14943 = vmatpush3.xpose.msk.msra.mxu1 %vm464_vm2, %v10943_v28  ;;  %v11115_v18 = vmul.f32 %v10864_v2, %v16270_v24  ;;  %v11355_v55 = vmul.f32 %v10864_v2, %v16546_v17  ;;  %v11518_v12 = vmul.f32 %v10864_v2, %v16665_v14 }
0x1ea2   : > { %14947 = vmatprep.subr.mxu1 %v15928_v1 }
0x1ea4   : > { %14945 = vmatmul.mubr.msk.f32.vlgmr.msra.gmra.mrb[100].mxu1 %vm464_vm2, %v11025_v25 }
0x1ea5   : > { %14948 = vmatpush3.xpose.msk.msra.mxu1 %vm464_vm2, %v10943_v28  ;;  %14949 = vmatprep.mubr.msk.f32.mxu1 %vm15927_vm0, %v15928_v1 }
0x1ea6   : > { %v11021_v58 = vpop.f32.mrb[106].mxu0  ;;  %14962 = vmatprep.subr.mxu1 %v15928_v1 }
0x1ea7   : > { %v17745_v43 = vadd.f32 %v13705_v6, %v11021_v58  ;;  %v14941_v40 = vpop.f32.mrb[107].mxu0 }
0x1ea8   : > { %14950 = vmatmul.mubr.msk.f32.vlgmr.msra.gmra.mrb[102].mxu1 %vm464_vm2, %v11115_v18 }
0x1ea9   : > { %v11200_v4 = vmul.f32 %v16315_v41, %v17745_v43  ;;  %14963 = vmatpush3.xpose.msk.msra.mxu1 %vm464_vm2, %v10943_v28  ;;  %14964 = vmatprep.mubr.msk.f32.mxu1 %vm15927_vm0, %v15928_v1  ;;  %v11114_v37 = vmul.f32 %v16467_v54, %v17745_v43  ;;  %v11440_v58 = vmul.f32 %v16575_v59, %v17745_v43 }
0x1eaa   : > { %14972 = vmatprep.subr.mxu1 %v15928_v1 }
0x1eab   : > { %14953 = vmatpush3.msk.msra.mxu0 %vm11205_vm10, %v11200_v4 }
0x1eac   : > { %14965 = vmatmul.mubr.msk.f32.vlgmr.msra.gmra.mrb[104].mxu1 %vm464_vm2, %v11355_v55  ;;  %14957 = vmatprep.subr.mxu0 %v15928_v1  ;;  %v11603_v55 = vmul.f32 %v16693_v3, %v17745_v43  ;;  %v13723_v43 = vld [vmem:[#allocation6 + $0x363] ss:$0 sm:$0xff] }
0x1ead   : > { %14973 = vmatpush3.xpose.msk.msra.mxu1 %vm464_vm2, %v10943_v28  ;;  %14974 = vmatprep.mubr.msk.f32.mxu1 %vm15927_vm0, %v15928_v1 }
0x1eae   : > { %15265 = vmatprep.subr.bf16.mxu1 %v15926_v0 }
0x1eb0   : > { %14975 = vmatmul.mubr.msk.f32.vlgmr.msra.gmra.mrb[106].mxu1 %vm464_vm2, %v11518_v12 }
0x1eb1   : > { %14990 = vmatprep.mubr.msk.f32.mxu1 %vm15927_vm0, %v15928_v1  ;;  %15267 = vmatpush3.bf16.msra.mxu1 %v15266_v63 }
0x1eb2   : > { %15268 = vmatprep.subr.bf16.mxu1 %v15926_v0 }
0x1eb5   : > { %15270 = vmatpush3.bf16.msra.mxu1 %v15269_v61  ;;  %v11880_v61 = vld [vmem:[#allocation6 + $0x358] sm:$0xff] }
0x1eb6   : > { %15277 = vmatprep.subr.bf16.mxu1 %v15926_v0 }
0x1f77   : > { %v11098_v44 = vpop.f32.mrb[100].mxu1 }
0x1f78   : > { %v14946_v32 = vpop.f32.mrb[101].mxu1  ;;  %v11103_v51 = vsel %vm11102_vm11, %v11098_v44, -inf }
0x1f79   : > { %11104 = vmax.xlane.f32.xlu1 %v11103_v51 }
0x1f7b   : > { %v11185_v56 = vpop.f32.mrb[102].mxu1 }
0x1f7c   : > { %v14951_v8 = vpop.f32.mrb[103].mxu1  ;;  %v11189_v52 = vsel %vm11102_vm11, %v11185_v56, -inf }
0x1f7d   : > { %11190 = vmax.xlane.f32.xlu0 %v11189_v52 }
0x1f7f   : > { %v11425_v47 = vpop.f32.mrb[104].mxu1 }
0x1f80   : > { %v14966_v48 = vpop.f32.mrb[105].mxu1  ;;  %v11429_v30 = vsel %vm11102_vm11, %v11425_v47, -inf }
0x1f81   : > { %11430 = vmax.xlane.f32.xlu0 %v11429_v30 }
0x1f83   : > { %v11588_v27 = vpop.f32.mrb[106].mxu1 }
0x1f84   : > { %v14976_v36 = vpop.f32.mrb[107].mxu1  ;;  %v11592_v11 = vsel %vm11102_vm11, %v11588_v27, -inf }
0x1f85   : > { %11593 = vmax.xlane.f32.xlu1 %v11592_v11 }
0x2006   : > { %v11105_v21 = vpop.xlane.xlu1 %11104 }
0x2007   : > { %v11106_v31 = vsub.f32 %v11098_v44, %v11105_v21 }
0x2009   : > { %v11107_v33 = vmul.f32 1.442695, %v11106_v31  ;;  %v11790_v31 = vld [vmem:[#allocation6 + $0x300] sm:$0xff] }
0x200a   : > { %v11191_v13 = vpop.xlane.xlu0 %11190 }
0x200b   : > { %15716 = vpow2.f32 %v11107_v33  ;;  %v11192_v35 = vsub.f32 %v11185_v56, %v11191_v13  ;;  %v11791_v33 = vld [vmem:[#allocation6 + $0x308] sm:$0xff] }
0x200c   : > { %v15272_v13 = vpack.c.bf16 %v11791_v33, %v11790_v31 }
0x200d   : > { %v11193_v16 = vmul.f32 1.442695, %v11192_v35  ;;  %v11792_v35 = vld [vmem:[#allocation6 + $0x310] sm:$0xff] }
0x200e   : > { %v11431_v62 = vpop.xlane.xlu0 %11430 }
0x200f   : > { %15718 = vpow2.f32 %v11193_v16  ;;  %v11432_v20 = vsub.f32 %v11425_v47, %v11431_v62  ;;  %v11793_v16 = vld [vmem:[#allocation6 + $0x318] sm:$0xff] }
0x2010   : > { %v15275_v62 = vpack.c.bf16 %v11793_v16, %v11792_v35 }
0x2011   : > { %v11433_v38 = vmul.f32 1.442695, %v11432_v20  ;;  %v11874_v20 = vld [vmem:[#allocation6 + $0x328] sm:$0xff] }
0x2012   : > { %v11594_v26 = vpop.xlane.xlu1 %11593 }
0x2013   : > { %15720 = vpow2.f32 %v11433_v38  ;;  %v11595_v23 = vsub.f32 %v11588_v27, %v11594_v26  ;;  %v11875_v38 = vld [vmem:[#allocation6 + $0x330] sm:$0xff] }
0x2015   : > { %v15717_v45 = vpop.eup %15716  ;;  %v11596_v29 = vmul.f32 1.442695, %v11595_v23  ;;  %v11876_v23 = vld [vmem:[#allocation6 + $0x338] sm:$0xff] }
0x2016   : > { %v11109_v57 = vsel %vm11102_vm11, %v15717_v45, 0.0 }
0x2017   : > { %15722 = vpow2.f32 %v11596_v29  ;;  %11110 = vadd.xlane.f32.xlu1 %v11109_v57  ;;  %v11877_v29 = vld [vmem:[#allocation6 + $0x340] sm:$0xff]  ;;  %v11878_v57 = vld [vmem:[#allocation6 + $0x348] sm:$0xff] }
0x2019   : > { %v15719_v50 = vpop.eup %15718 }
0x201a   : > { %v11195_v19 = vsel %vm11102_vm11, %v15719_v50, 0.0 }
0x201b   : > { %11196 = vadd.xlane.f32.xlu0 %v11195_v19 }
0x201d   : > { %v15721_v5 = vpop.eup %15720 }
0x201e   : > { %v11435_v49 = vsel %vm11102_vm11, %v15721_v5, 0.0 }
0x201f   : > { %11436 = vadd.xlane.f32.xlu0 %v11435_v49 }
0x2021   : > { %v15723_v34 = vpop.eup %15722 }
0x2022   : > { %v11598_v7 = vsel %vm11102_vm11, %v15723_v34, 0.0 }
0x2023   : > { %11599 = vadd.xlane.f32.xlu1 %v11598_v7  ;;  %v13725_v7 = vld [vmem:[#allocation6 + $0x366] ss:$0 sm:$0xff] }
0x20a4   : > { %v11111_v39 = vpop.xlane.xlu1 %11110 }
0x20a8   : > { %v11197_v15 = vpop.xlane.xlu0 %11196 }
0x20a9   : > { %15724 = vrcp.f32 %v11197_v15  ;;  %v15287_v15 = vpack.c.bf16 %v11880_v61, %v11879_v42 }
0x20aa   : > { %15726 = vrcp.f32 %v11111_v39  ;;  %v13727_v39 = vld [vmem:[#allocation6 + $0x364] ss:$0 sm:$0xff] }
0x20ac   : > { %v11437_v10 = vpop.xlane.xlu0 %11436 }
0x20ad   : > { %15728 = vrcp.f32 %v11437_v10 }
0x20b0   : > { %v11600_v18 = vpop.xlane.xlu1 %11599 }
0x20b1   : > { %15730 = vrcp.f32 %v11600_v18 }
0x20b3   : > { %v15725_v2 = vpop.eup %15724 }
0x20b4   : > { %v11199_v28 = vmul.f32 %v15725_v2, %v15719_v50  ;;  %v15727_v25 = vpop.eup %15726  ;;  %v15284_v50 = vpack.c.bf16 %v11878_v57, %v11877_v29  ;;  %v12069_v57 = vld [vmem:[#allocation6 + $0x3a0] sm:$0xff] }
0x20b5   : > { %v11113_v6 = vmul.f32 %v15727_v25, %v15717_v45  ;;  %v15281_v45 = vpack.c.bf16 %v11876_v23, %v11875_v38  ;;  %v13729_v25 = vld [vmem:[#allocation6 + $0x365] ss:$0 sm:$0xff]  ;;  %v12068_v38 = vld [vmem:[#allocation6 + $0x398] sm:$0xff] }
0x20b6   : > { %14955 = vmatmul.mubr.msk.f32.vlgmr.msra.gmra.mrb[108].mxu0 %vm11201_vm12, %v11199_v28 }
0x20b7   : > { %14958 = vmatpush3.msk.msra.mxu0 %vm11205_vm10, %v11114_v37  ;;  %14959 = vmatprep.mubr.msk.f32.mxu0 %vm15927_vm0, %v15928_v1  ;;  %v15729_v40 = vpop.eup %15728 }
0x20b8   : > { %14967 = vmatprep.subr.mxu0 %v15928_v1  ;;  %v11439_v4 = vmul.f32 %v15729_v40, %v15721_v5 }
0x20bb   : > { %v15731_v12 = vpop.eup %15730 }
0x20bc   : > { %v11602_v44 = vmul.f32 %v15731_v12, %v15723_v34 }
0x20be   : > { %14960 = vmatmul.mubr.msk.f32.vlgmr.msra.gmra.mrb[108].mxu0 %vm11201_vm12, %v11113_v6 }
0x20bf   : > { %14968 = vmatpush3.msk.msra.mxu0 %vm11205_vm10, %v11440_v58  ;;  %14969 = vmatprep.mubr.msk.f32.mxu0 %vm15927_vm0, %v15928_v1 }
0x20c0   : > { %14977 = vmatprep.subr.mxu0 %v15928_v1 }
0x20c6   : > { %14970 = vmatmul.mubr.msk.f32.vlgmr.msra.gmra.mrb[108].mxu0 %vm11201_vm12, %v11439_v4 }
0x20c7   : > { %14978 = vmatpush3.msk.msra.mxu0 %vm11205_vm10, %v11603_v55  ;;  %14979 = vmatprep.mubr.msk.f32.mxu0 %vm15927_vm0, %v15928_v1 }
0x20c8   : > { %15271 = vmatprep.subr.bf16.mxu0 %v15926_v0 }
0x20ce   : > { %14980 = vmatmul.mubr.msk.f32.vlgmr.msra.gmra.mrb[108].mxu0 %vm11201_vm12, %v11602_v44 }
0x20cf   : > { %15001 = vmatprep.mubr.msk.f32.mxu0 %vm15927_vm0, %v15928_v1  ;;  %15273 = vmatpush3.bf16.msra.mxu0 %v15272_v13 }
0x20d0   : > { %15274 = vmatprep.subr.bf16.mxu0 %v15926_v0 }
0x20d3   : > { %15276 = vmatpush3.bf16.msra.mxu0 %v15275_v62  ;;  %v13731_v62 = vld [vmem:[#allocation6 + $0x368] ss:$0 sm:$0xff] }
0x20d4   : > { %15289 = vmatprep.subr.bf16.mxu0 %v15926_v0 }
0x21a1   : > { %v11676_v32 = vpop.f32.mrb[108].mxu0 }
0x21a2   : > { %v14981_v51 = vpop.f32.mrb[109].mxu0  ;;  %14991 = vmatmul.mubr.msk.f32.vlgmr.msra.gmra.mrb[108].mxu1 %vm464_vm2, %v11676_v32 }
0x21a3   : > { %15020 = vmatprep.mubr.msk.f32.mxu1 %vm15927_vm0, %v15928_v1 }
0x2275   : > { %v11759_v56 = vpop.f32.mrb[108].mxu1 }
0x2276   : > { %v11760_v8 = vadd.f32 %v13723_v43, %v11759_v56  ;;  %v14992_v52 = vpop.f32.mrb[109].mxu1  ;;  %v11985_v43 = vld [vmem:[#allocation6 + $0x370] sm:$0xff]  ;;  %v11986_v56 = vld [vmem:[#allocation6 + $0x378] sm:$0xff] }
0x2277   : > { %v12146_v52 = vld [vmem:[#allocation6 + $0x3b0] sm:$0xff] }
0x2278   : > { %v11763_v47 = vadd.f32 %v11760_v8, %v17720_v9  ;;  %v11873_v9 = vld [vmem:[#allocation6 + $0x320] sm:$0xff]  ;;  %v15290_v8 = vpack.c.bf16 %v11986_v56, %v11985_v43 }
0x2279   : > { %v15278_v26 = vpack.c.bf16 %v11874_v20, %v11873_v9  ;;  %v12067_v20 = vld [vmem:[#allocation6 + $0x390] sm:$0xff] }
0x227a   : > { %v11767_v48 = vsel %vm11766_vm13, %v11763_v47, 0.0 }
0x227b   : > { %11768 = vadd.xlane.f32.xlu0 %v11767_v48  ;;  %15279 = vmatpush3.bf16.msra.mxu1 %v15278_v26  ;;  %v13732_v26 = vld [vmem:[#allocation6 + $0x369] ss:$0 sm:$0xff] }
0x227c   : > { %15280 = vmatprep.subr.bf16.mxu1 %v15926_v0 }
0x227f   : > { %15282 = vmatpush3.bf16.msra.mxu1 %v15281_v45  ;;  %v15296_v45 = vpack.c.bf16 %v12068_v38, %v12067_v20  ;;  %v12879_v20 = vld [vmem:[#allocation6 + $0x3d8] sm:$0xff]  ;;  %v12880_v38 = vld [vmem:[#allocation6 + $0x3e0] sm:$0xff] }
0x2280   : > { %15283 = vmatprep.subr.bf16.mxu1 %v15926_v0 }
0x2283   : > { %15285 = vmatpush3.bf16.msra.mxu1 %v15284_v50  ;;  %v12070_v50 = vld [vmem:[#allocation6 + $0x3a8] sm:$0xff] }
0x2284   : > { %15286 = vmatprep.subr.bf16.mxu1 %v15926_v0 }
0x2287   : > { %15288 = vmatpush3.bf16.msra.mxu1 %v15287_v15 }
0x2288   : > { %15301 = vmatprep.subr.bf16.mxu1 %v15926_v0 }
0x2308   : > { %v11769_v30 = vpop.xlane.xlu0 %11768 }
0x2309   : > { %v11770_v27 = vmul.f32 0.03125, %v11769_v30  ;;  %v11987_v30 = vld [vmem:[#allocation6 + $0x380] sm:$0xff] }
0x230b   : > { %v11771_v36 = vsub.f32 %v11763_v47, %v11770_v27  ;;  %v12147_v47 = vld [vmem:[#allocation6 + $0x3b8] sm:$0xff]  ;;  %v11988_v27 = vld [vmem:[#allocation6 + $0x388] sm:$0xff] }
0x230c   : > { %v15302_v48 = vpack.c.bf16 %v12147_v47, %v12146_v52 }
0x230d   : > { %v11772_v11 = vmul.f32 %v11771_v36, %v11771_v36 }
0x230f   : > { %v11773_v21 = vsel %vm11766_vm13, %v11772_v11, 0.0  ;;  %v15293_v11 = vpack.c.bf16 %v11988_v27, %v11987_v30 }
0x2310   : > { %11774 = vadd.xlane.f32.xlu1 %v11773_v21  ;;  %v12149_v21 = vld [vmem:[#allocation6 + $0x3c8] sm:$0xff] }
0x239d   : > { %v11775_v19 = vpop.xlane.xlu1 %11774 }
0x239e   : > { %v11776_v5 = vmul.f32 0.03125, %v11775_v19  ;;  %v15299_v19 = vpack.c.bf16 %v12070_v50, %v12069_v57 }
0x23a0   : > { %v11777_v49 = vadd.f32 1e-05, %v11776_v5 }
0x23a2   : > { %15732 = vrsqrt.f32 %v11777_v49 }
0x23ac   : > { %v15733_v34 = vpop.eup %15732 }
0x23ad   : > { %v11779_v22 = vmul.f32 %v15733_v34, %v11771_v36  ;;  %v12148_v36 = vld [vmem:[#allocation6 + $0x3c0] sm:$0xff] }
0x23ae   : > { %v15305_v31 = vpack.c.bf16 %v12149_v21, %v12148_v36 }
0x23af   : > { %v11784_v60 = vmul.f32 %v13725_v7, %v11779_v22  ;;  %v13733_v22 = vld [vmem:[#allocation6 + $0x450] ss:$0 sm:$0xff] }
0x23b1   : > { %v11789_v63 = vadd.f32 %v13726_v46, %v11784_v60  ;;  %v13737_v46 = vld [vmem:[#allocation6 + $0x452] ss:$0 sm:$0xff]  ;;  %v13735_v60 = vld [vmem:[#allocation6 + $0x451] ss:$0 sm:$0xff] }
0x23b3   : > { %15002 = vmatmul.mubr.msk.f32.vlgmr.msra.gmra.mrb[110].mxu0 %vm464_vm2, %v11789_v63 }
0x23b4   : > { %15031 = vmatprep.mubr.msk.f32.mxu0 %vm15927_vm0, %v15928_v1  ;;  %15291 = vmatpush3.bf16.msra.mxu0 %v15290_v8 }
0x23b5   : > { %15292 = vmatprep.subr.bf16.mxu0 %v15926_v0 }
0x23b8   : > { %15294 = vmatpush3.bf16.msra.mxu0 %v15293_v11 }
0x23b9   : > { %15295 = vmatprep.subr.bf16.mxu0 %v15926_v0 }
0x2486   : > { %v11868_v2 = vpop.f32.mrb[110].mxu0 }
0x2487   : > { %v11869_v28 = vadd.f32 %v13727_v39, %v11868_v2  ;;  %v15003_v10 = vpop.f32.mrb[111].mxu0 }
0x2489   : > { %v11872_v37 = vmax.f32 %v11869_v28, 0.0 }
0x248b   : > { %15021 = vmatmul.mubr.msk.f32.vlgmr.msra.gmra.mrb[110].mxu1 %vm5110_vm1, %v11872_v37 }
0x248c   : > { %15053 = vmatprep.mubr.msk.f32.mxu1 %vm15927_vm0, %v15928_v1  ;;  %15303 = vmatpush3.bf16.msra.mxu1 %v15302_v48 }
0x248d   : > { %15304 = vmatprep.subr.bf16.mxu1 %v15926_v0 }
0x2490   : > { %15306 = vmatpush3.bf16.msra.mxu1 %v15305_v31 }
0x2491   : > { %15061 = vmatprep.subr.mxu1 %v15928_v1 }
0x255e   : > { %v11955_v6 = vpop.f32.mrb[110].mxu1 }
0x255f   : > { %v11956_v18 = vadd.f32 %v13729_v25, %v11955_v6  ;;  %v15022_v58 = vpop.f32.mrb[111].mxu1 }
0x2561   : > { %v11959_v40 = vadd.f32 %v11956_v18, %v11789_v63 }
0x2563   : > { %v11962_v4 = vsel %vm11766_vm13, %v11959_v40, 0.0 }
0x2564   : > { %11963 = vadd.xlane.f32.xlu0 %v11962_v4 }
0x25f1   : > { %v11964_v55 = vpop.xlane.xlu0 %11963 }
0x25f2   : > { %v11965_v12 = vmul.f32 0.03125, %v11964_v55 }
0x25f4   : > { %v11966_v44 = vsub.f32 %v11959_v40, %v11965_v12 }
0x25f6   : > { %v11967_v32 = vmul.f32 %v11966_v44, %v11966_v44 }
0x25f8   : > { %v11968_v51 = vsel %vm11766_vm13, %v11967_v32, 0.0 }
0x25f9   : > { %11969 = vadd.xlane.f32.xlu1 %v11968_v51 }
0x2686   : > { %v11970_v33 = vpop.xlane.xlu1 %11969 }
0x2687   : > { %v11971_v13 = vmul.f32 0.03125, %v11970_v33 }
0x2689   : > { %v11972_v35 = vadd.f32 1e-05, %v11971_v13 }
0x268b   : > { %15734 = vrsqrt.f32 %v11972_v35 }
0x2695   : > { %v15735_v16 = vpop.eup %15734 }
0x2696   : > { %v11974_v9 = vmul.f32 %v15735_v16, %v11966_v44 }
0x2698   : > { %v11979_v23 = vmul.f32 %v13731_v62, %v11974_v9  ;;  %v12878_v9 = vld [vmem:[#allocation6 + $0x3d0] sm:$0xff] }
0x269a   : > { %v17824_v29 = vadd.f32 %v13732_v26, %v11979_v23  ;;  %v15308_v26 = vpack.c.bf16 %v12879_v20, %v12878_v9  ;;  %v12881_v23 = vld [vmem:[#allocation6 + $0x3e8] sm:$0xff] }
0x269c   : > { %15032 = vmatmul.mubr.msk.f32.vlgmr.msra.gmra.mrb[112].mxu0 %vm464_vm2, %v17824_v29  ;;  %15054 = vmatmul.mubr.msk.f32.vlgmr.msra.gmra.mrb[112].mxu1 %vm464_vm2, %v17824_v29 }
0x269d   : > { %15297 = vmatpush3.bf16.msra.mxu0 %v15296_v45  ;;  %15042 = vmatprep.mubr.msk.f32.mxu0 %vm15927_vm0, %v15928_v1  ;;  %v15311_v45 = vpack.c.bf16 %v12881_v23, %v12880_v38  ;;  %v13761_v23 = vld [vmem:[#allocation6 + $0x455] ss:$0 sm:$0xff] }
0x269e   : > { %15298 = vmatprep.subr.bf16.mxu0 %v15926_v0  ;;  %15063 = vmatprep.mubr.msk.f32.mxu1 %vm15927_vm0, %v15928_v1 }
0x26a1   : > { %15300 = vmatpush3.bf16.msra.mxu0 %v15299_v19 }
0x26a2   : > { %15056 = vmatprep.subr.mxu0 %v15928_v1 }
0x26a4   : > { %15043 = vmatmul.mubr.msk.f32.vlgmr.msra.gmra.mrb[114].mxu0 %vm464_vm2, %v17824_v29 }
0x26a5   : > { %15058 = vmatprep.mubr.msk.f32.mxu0 %vm15927_vm0, %v15928_v1 }
0x276f   : > { %v12063_v5 = vpop.f32.mrb[112].mxu0  ;;  %v12221_v49 = vpop.f32.mrb[112].mxu1 }
0x2770   : > { %v15033_v34 = vpop.f32.mrb[113].mxu0  ;;  %v15055_v7 = vpop.f32.mrb[113].mxu1  ;;  %v12064_v63 = vadd.f32 %v13733_v22, %v12063_v5  ;;  %v17840_v61 = vadd.f32 %v13737_v46, %v12221_v49 }
0x2772   : > { %v12225_v2 = vmul.f32 %v12064_v63, %v16185_v53  ;;  %v12314_v28 = vmul.f32 %v12064_v63, %v16270_v24  ;;  %v12399_v10 = vmul.f32 %v16315_v41, %v17840_v61  ;;  %v12552_v37 = vmul.f32 %v12064_v63, %v16546_v17 }
0x2773   : > { %v12715_v53 = vmul.f32 %v12064_v63, %v16665_v14  ;;  %v12313_v34 = vmul.f32 %v16467_v54, %v17840_v61 }
0x2777   : > { %v12142_v42 = vpop.f32.mrb[114].mxu0 }
0x2778   : > { %v12143_v15 = vadd.f32 %v13735_v60, %v12142_v42  ;;  %v15044_v39 = vpop.f32.mrb[115].mxu0  ;;  %v12637_v60 = vmul.f32 %v16575_v59, %v17840_v61  ;;  %v12800_v42 = vmul.f32 %v16693_v3, %v17840_v61  ;;  %v13755_v3 = vld [vmem:[#allocation6 + $0x453] ss:$0 sm:$0xff] }
0x277a   : > { %15057 = vmatpush3.xpose.msk.msra.mxu0 %vm464_vm2, %v12143_v15  ;;  %15062 = vmatpush3.xpose.msk.msra.mxu1 %vm464_vm2, %v12143_v15 }
0x277b   : > { %15066 = vmatprep.subr.mxu0 %v15928_v1  ;;  %15076 = vmatprep.subr.mxu1 %v15928_v1 }
0x277d   : > { %15059 = vmatmul.mubr.msk.f32.vlgmr.msra.gmra.mrb[116].mxu0 %vm464_vm2, %v12225_v2  ;;  %15064 = vmatmul.mubr.msk.f32.vlgmr.msra.gmra.mrb[114].mxu1 %vm464_vm2, %v12314_v28 }
0x277e   : > { %15067 = vmatpush3.msk.msra.mxu0 %vm11205_vm10, %v12399_v10  ;;  %15077 = vmatpush3.xpose.msk.msra.mxu1 %vm464_vm2, %v12143_v15 }
0x277f   : > { %15078 = vmatprep.mubr.msk.f32.mxu1 %vm15927_vm0, %v15928_v1  ;;  %15086 = vmatprep.subr.mxu1 %v15928_v1 }
0x2780   : > { %15068 = vmatprep.mubr.msk.f32.mxu0 %vm15927_vm0, %v15928_v1  ;;  %15071 = vmatprep.subr.mxu0 %v15928_v1 }
0x2781   : > { %15079 = vmatmul.mubr.msk.f32.vlgmr.msra.gmra.mrb[116].mxu1 %vm464_vm2, %v12552_v37 }
0x2782   : > { %15087 = vmatpush3.xpose.msk.msra.mxu1 %vm464_vm2, %v12143_v15  ;;  %15088 = vmatprep.mubr.msk.f32.mxu1 %vm15927_vm0, %v15928_v1 }
0x2783   : > { %15307 = vmatprep.subr.bf16.mxu1 %v15926_v0 }
0x2785   : > { %15089 = vmatmul.mubr.msk.f32.vlgmr.msra.gmra.mrb[118].mxu1 %vm464_vm2, %v12715_v53 }
0x2786   : > { %15104 = vmatprep.mubr.msk.f32.mxu1 %vm15927_vm0, %v15928_v1  ;;  %15309 = vmatpush3.bf16.msra.mxu1 %v15308_v26 }
0x2787   : > { %15310 = vmatprep.subr.bf16.mxu1 %v15926_v0 }
0x278a   : > { %15312 = vmatpush3.bf16.msra.mxu1 %v15311_v45 }
0x278b   : > { %15319 = vmatprep.subr.bf16.mxu1 %v15926_v0 }
0x2850   : > { %v12298_v24 = vpop.f32.mrb[116].mxu0  ;;  %v12384_v41 = vpop.f32.mrb[114].mxu1 }
0x2851   : > { %v15060_v17 = vpop.f32.mrb[117].mxu0  ;;  %v15065_v25 = vpop.f32.mrb[115].mxu1  ;;  %v12388_v6 = vsel %vm11102_vm11, %v12384_v41, -inf  ;;  %v12302_v18 = vsel %vm11102_vm11, %v12298_v24, -inf }
0x2852   : > { %12389 = vmax.xlane.f32.xlu0 %v12388_v6  ;;  %12303 = vmax.xlane.f32.xlu1 %v12302_v18  ;;  %v12986_v18 = vld [vmem:[#allocation6 + $0x3f0] sm:$0xff] }
0x2854   : > { %v12622_v58 = vpop.f32.mrb[116].mxu1 }
0x2855   : > { %v15080_v40 = vpop.f32.mrb[117].mxu1  ;;  %v12626_v14 = vsel %vm11102_vm11, %v12622_v58, -inf }
0x2856   : > { %12627 = vmax.xlane.f32.xlu0 %v12626_v14  ;;  %v12988_v14 = vld [vmem:[#allocation6 + $0x400] sm:$0xff] }
0x2858   : > { %v12785_v4 = vpop.f32.mrb[118].mxu1 }
0x2859   : > { %v15090_v55 = vpop.f32.mrb[119].mxu1  ;;  %v12789_v12 = vsel %vm11102_vm11, %v12785_v4, -inf }
0x285a   : > { %12790 = vmax.xlane.f32.xlu1 %v12789_v12  ;;  %v13070_v12 = vld [vmem:[#allocation6 + $0x418] sm:$0xff] }
0x28df   : > { %v12390_v44 = vpop.xlane.xlu0 %12389  ;;  %v12304_v32 = vpop.xlane.xlu1 %12303 }
0x28e0   : > { %v12391_v51 = vsub.f32 %v12384_v41, %v12390_v44  ;;  %v12305_v43 = vsub.f32 %v12298_v24, %v12304_v32  ;;  %v13071_v44 = vld [vmem:[#allocation6 + $0x420] sm:$0xff] }
0x28e2   : > { %v12392_v56 = vmul.f32 1.442695, %v12391_v51  ;;  %v12306_v8 = vmul.f32 1.442695, %v12305_v43  ;;  %v13072_v51 = vld [vmem:[#allocation6 + $0x428] sm:$0xff] }
0x28e3   : > { %v12628_v52 = vpop.xlane.xlu0 %12627  ;;  %v15323_v43 = vpack.c.bf16 %v13072_v51, %v13071_v44 }
0x28e4   : > { %15736 = vpow2.f32 %v12392_v56  ;;  %v12629_v47 = vsub.f32 %v12622_v58, %v12628_v52  ;;  %v12987_v58 = vld [vmem:[#allocation6 + $0x3f8] sm:$0xff]  ;;  %v13073_v56 = vld [vmem:[#allocation6 + $0x430] sm:$0xff] }
0x28e5   : > { %15738 = vpow2.f32 %v12306_v8  ;;  %v15314_v40 = vpack.c.bf16 %v12987_v58, %v12986_v18  ;;  %v13074_v8 = vld [vmem:[#allocation6 + $0x438] sm:$0xff] }
0x28e6   : > { %v12630_v48 = vmul.f32 1.442695, %v12629_v47  ;;  %v15326_v52 = vpack.c.bf16 %v13074_v8, %v13073_v56 }
0x28e7   : > { %v12791_v30 = vpop.xlane.xlu1 %12790 }
0x28e8   : > { %15740 = vpow2.f32 %v12630_v48  ;;  %v12792_v27 = vsub.f32 %v12785_v4, %v12791_v30  ;;  %v12989_v4 = vld [vmem:[#allocation6 + $0x408] sm:$0xff] }
0x28e9   : > { %v15317_v55 = vpack.c.bf16 %v12989_v4, %v12988_v14 }
0x28ea   : > { %v12793_v36 = vmul.f32 1.442695, %v12792_v27 }
0x28ec   : > { %15742 = vpow2.f32 %v12793_v36  ;;  %v13757_v36 = vld [vmem:[#allocation6 + $0x456] ss:$0 sm:$0xff] }
0x28ee   : > { %v15737_v11 = vpop.eup %15736 }
0x28ef   : > { %v15739_v21 = vpop.eup %15738  ;;  %v12394_v31 = vsel %vm11102_vm11, %v15737_v11, 0.0 }
0x28f0   : > { %12395 = vadd.xlane.f32.xlu0 %v12394_v31  ;;  %v12308_v33 = vsel %vm11102_vm11, %v15739_v21, 0.0 }
0x28f1   : > { %12309 = vadd.xlane.f32.xlu1 %v12308_v33 }
0x28f2   : > { %v15741_v13 = vpop.eup %15740 }
0x28f3   : > { %v12632_v35 = vsel %vm11102_vm11, %v15741_v13, 0.0 }
0x28f4   : > { %12633 = vadd.xlane.f32.xlu0 %v12632_v35  ;;  %v13076_v35 = vld [vmem:[#allocation6 + $0x448] sm:$0xff] }
0x28f6   : > { %v15743_v16 = vpop.eup %15742 }
0x28f7   : > { %v12795_v62 = vsel %vm11102_vm11, %v15743_v16, 0.0 }
0x28f8   : > { %12796 = vadd.xlane.f32.xlu1 %v12795_v62  ;;  %v13759_v62 = vld [vmem:[#allocation6 + $0x454] ss:$0 sm:$0xff] }
0x297d   : > { %v12396_v57 = vpop.xlane.xlu0 %12395 }
0x297e   : > { %15744 = vrcp.f32 %v12396_v57  ;;  %v12310_v50 = vpop.xlane.xlu1 %12309 }
0x297f   : > { %15746 = vrcp.f32 %v12310_v50 }
0x2981   : > { %v12634_v49 = vpop.xlane.xlu0 %12633 }
0x2982   : > { %15748 = vrcp.f32 %v12634_v49 }
0x2985   : > { %v12797_v46 = vpop.xlane.xlu1 %12796 }
0x2986   : > { %15750 = vrcp.f32 %v12797_v46 }
0x2988   : > { %v15745_v19 = vpop.eup %15744 }
0x2989   : > { %v12398_v5 = vmul.f32 %v15745_v19, %v15737_v11  ;;  %v15747_v7 = vpop.eup %15746 }
0x298a   : > { %v12312_v22 = vmul.f32 %v15747_v7, %v15739_v21  ;;  %v13758_v21 = vld [vmem:[#allocation6 + $0x457] ss:$0 sm:$0xff] }
0x298b   : > { %15069 = vmatmul.mubr.msk.f32.vlgmr.msra.gmra.mrb[118].mxu0 %vm11201_vm12, %v12398_v5 }
0x298c   : > { %15072 = vmatpush3.msk.msra.mxu0 %vm11205_vm10, %v12313_v34  ;;  %15073 = vmatprep.mubr.msk.f32.mxu0 %vm15927_vm0, %v15928_v1  ;;  %v15749_v54 = vpop.eup %15748 }
0x298d   : > { %15081 = vmatprep.subr.mxu0 %v15928_v1  ;;  %v12636_v63 = vmul.f32 %v15749_v54, %v15741_v13  ;;  %v13075_v13 = vld [vmem:[#allocation6 + $0x440] sm:$0xff] }
0x2990   : > { %v15751_v59 = vpop.eup %15750 }
0x2991   : > { %v12799_v15 = vmul.f32 %v15751_v59, %v15743_v16  ;;  %v15329_v16 = vpack.c.bf16 %v13076_v35, %v13075_v13 }
0x2993   : > { %15074 = vmatmul.mubr.msk.f32.vlgmr.msra.gmra.mrb[118].mxu0 %vm11201_vm12, %v12312_v22 }
0x2994   : > { %15082 = vmatpush3.msk.msra.mxu0 %vm11205_vm10, %v12637_v60  ;;  %15083 = vmatprep.mubr.msk.f32.mxu0 %vm15927_vm0, %v15928_v1 }
0x2995   : > { %15091 = vmatprep.subr.mxu0 %v15928_v1 }
0x299b   : > { %15084 = vmatmul.mubr.msk.f32.vlgmr.msra.gmra.mrb[118].mxu0 %vm11201_vm12, %v12636_v63 }
0x299c   : > { %15092 = vmatpush3.msk.msra.mxu0 %vm11205_vm10, %v12800_v42  ;;  %15093 = vmatprep.mubr.msk.f32.mxu0 %vm15927_vm0, %v15928_v1  ;;  %v13763_v42 = vld [vmem:[#allocation6 + $0x458] ss:$0 sm:$0xff] }
0x299d   : > { %15313 = vmatprep.subr.bf16.mxu0 %v15926_v0 }
0x29a3   : > { %15094 = vmatmul.mubr.msk.f32.vlgmr.msra.gmra.mrb[118].mxu0 %vm11201_vm12, %v12799_v15  ;;  %v13764_v15 = vld [vmem:[#allocation6 + $0x459] ss:$0 sm:$0xff] }
0x29a4   : > { %15115 = vmatprep.mubr.msk.f32.mxu0 %vm15927_vm0, %v15928_v1  ;;  %15315 = vmatpush3.bf16.msra.mxu0 %v15314_v40 }
0x29a5   : > { %15316 = vmatprep.subr.bf16.mxu0 %v15926_v0 }
0x29a8   : > { %15318 = vmatpush3.bf16.msra.mxu0 %v15317_v55  ;;  %v13181_v55 = vld [vmem:[#allocation6 + $0x45a] sm:$0x1] }
0x29a9   : > { %15331 = vmatprep.subr.bf16.mxu0 %v15926_v0 }
0x2a76   : > { %v12873_v39 = vpop.f32.mrb[118].mxu0 }
0x2a77   : > { %v15095_v2 = vpop.f32.mrb[119].mxu0  ;;  %15105 = vmatmul.mubr.msk.f32.vlgmr.msra.gmra.mrb[120].mxu1 %vm464_vm2, %v12873_v39 }
0x2a78   : > { %15134 = vmatprep.mubr.msk.f32.mxu1 %vm15927_vm0, %v15928_v1 }
0x2b4a   : > { %v12956_v61 = vpop.f32.mrb[120].mxu1 }
0x2b4b   : > { %v12957_v28 = vadd.f32 %v13755_v3, %v12956_v61  ;;  %v15106_v10 = vpop.f32.mrb[121].mxu1 }
0x2b4d   : > { %v12960_v37 = vadd.f32 %v12957_v28, %v17824_v29  ;;  %v13069_v29 = vld [vmem:[#allocation6 + $0x410] sm:$0xff] }
0x2b4e   : > { %v15320_v32 = vpack.c.bf16 %v13070_v12, %v13069_v29  ;;  %v13182_v12 = vld [vmem:[#allocation6 + $0x45b] sm:$0x1] }
0x2b4f   : > { %v12963_v53 = vsel %vm11766_vm13, %v12960_v37, 0.0 }
0x2b50   : > { %12964 = vadd.xlane.f32.xlu0 %v12963_v53  ;;  %15321 = vmatpush3.bf16.msra.mxu1 %v15320_v32 }
0x2b51   : > { %15322 = vmatprep.subr.bf16.mxu1 %v15926_v0 }
0x2b54   : > { %15324 = vmatpush3.bf16.msra.mxu1 %v15323_v43  ;;  %v13278_v43 = vld [vmem:[%s294_s10] sm:$0x1]  ;;  %s15822_s10 = scalar_lea.vmem %s15821_s15, 32 }
0x2b55   : > { %15325 = vmatprep.subr.bf16.mxu1 %v15926_v0  ;;  %p15824_p3 = scmp.lt.s32.totalorder %s15822_s10, %s15816_s28 }
0x2b57   : > { %p15825_p7 = por %p15824_p3, %p15823_p13 }
0x2b58   : > { %15327 = vmatpush3.bf16.msra.mxu1 %v15326_v52 }
0x2b59   : > { %15328 = vmatprep.subr.bf16.mxu1 %v15926_v0  ;;  %p15826_p9 = pnand %p15825_p7, %p15819_p10 }
0x2b5c   : > { %15330 = vmatpush3.bf16.msra.mxu1 %v15329_v16 }
0x2bdd   : > { %v12965_v24 = vpop.xlane.xlu0 %12964 }
0x2bde   : > { %v12966_v41 = vmul.f32 0.03125, %v12965_v24  ;;  %v13198_v24 = vld [vmem:[#allocation6 + $0x50] sm:$0xff] }
0x2be0   : > { %v12967_v17 = vsub.f32 %v12960_v37, %v12966_v41  ;;  %v13199_v41 = vld [vmem:[#allocation6 + $0x58] sm:$0xff] }
0x2be2   : > { %v12968_v25 = vmul.f32 %v12967_v17, %v12967_v17 }
0x2be4   : > { %v12969_v6 = vsel %vm11766_vm13, %v12968_v25, 0.0  ;;  %v13200_v25 = vld [vmem:[#allocation6 + $0x60] sm:$0xff] }
0x2be5   : > { %12970 = vadd.xlane.f32.xlu1 %v12969_v6  ;;  %v13201_v6 = vld [vmem:[#allocation6 + $0x68] sm:$0xff] }
0x2be6   : > { %v15335_v18 = vpack.c.bf16 %v13201_v6, %v13200_v25 }
0x2c72   : > { %v12971_v47 = vpop.xlane.xlu1 %12970 }
0x2c73   : > { %v12972_v48 = vmul.f32 0.03125, %v12971_v47 }
0x2c75   : > { %v12973_v30 = vadd.f32 1e-05, %v12972_v48 }
0x2c77   : > { %15752 = vrsqrt.f32 %v12973_v30 }
0x2c81   : > { %v15753_v27 = vpop.eup %15752 }
0x2c82   : > { %v12975_v11 = vmul.f32 %v15753_v27, %v12967_v17  ;;  %v15332_v17 = vpack.c.bf16 %v13199_v41, %v13198_v24 }
0x2c84   : > { %v12980_v31 = vmul.f32 %v13757_v36, %v12975_v11 }
0x2c86   : > { %v12985_v33 = vadd.f32 %v13758_v21, %v12980_v31 }
0x2c88   : > { %15116 = vmatmul.mubr.msk.f32.vlgmr.msra.gmra.mrb[120].mxu0 %vm464_vm2, %v12985_v33 }
0x2c89   : > { %15145 = vmatprep.mubr.msk.f32.mxu0 %vm15927_vm0, %v15928_v1  ;;  %15333 = vmatpush3.bf16.msra.mxu0 %v15332_v17  ;;  %vm13276_vm0 = vcmask 16384  }
0x2c8a   : > { %15334 = vmatprep.subr.bf16.mxu0 %v15926_v0  ;;  %v13202_v0 = vld [vmem:[#allocation6 + $0x9c] sm:$0x1] }
0x2c8d   : > { %15336 = vmatpush3.bf16.msra.mxu0 %v15335_v18 }
0x2d5b   : > { %v13064_v9 = vpop.f32.mrb[120].mxu0 }
0x2d5c   : > { %v13065_v20 = vadd.f32 %v13759_v62, %v13064_v9  ;;  %v15117_v38 = vpop.f32.mrb[121].mxu0 }
0x2d5e   : > { %v13068_v26 = vmax.f32 %v13065_v20, 0.0 }
0x2d60   : > { %15135 = vmatmul.mubr.msk.f32.vlgmr.msra.gmra.mrb[122].mxu1 %vm5110_vm1, %v13068_v26 }
0x2e33   : > { %v13151_v45 = vpop.f32.mrb[122].mxu1 }
0x2e34   : > { %v13152_v57 = vadd.f32 %v13761_v23, %v13151_v45  ;;  %v15136_v50 = vpop.f32.mrb[123].mxu1 }
0x2e36   : > { %v13155_v19 = vadd.f32 %v13152_v57, %v12985_v33 }
0x2e38   : > { %v13158_v5 = vsel %vm11766_vm13, %v13155_v19, 0.0 }
0x2e39   : > { %13159 = vadd.xlane.f32.xlu0 %v13158_v5 }
0x2ec6   : > { %v13160_v1 = vpop.xlane.xlu0 %13159 }
0x2ec7   : > { %v13161_v49 = vmul.f32 0.03125, %v13160_v1 }
0x2ec9   : > { %v13162_v34 = vsub.f32 %v13155_v19, %v13161_v49 }
0x2ecb   : > { %v13163_v7 = vmul.f32 %v13162_v34, %v13162_v34 }
0x2ecd   : > { %v13164_v22 = vsel %vm11766_vm13, %v13163_v7, 0.0 }
0x2ece   : > { %13165 = vadd.xlane.f32.xlu1 %v13164_v22 }
0x2f5b   : > { %v13166_v46 = vpop.xlane.xlu1 %13165 }
0x2f5c   : > { %v13167_v60 = vmul.f32 0.03125, %v13166_v46 }
0x2f5e   : > { %v13168_v54 = vadd.f32 1e-05, %v13167_v60 }
0x2f60   : > { %15754 = vrsqrt.f32 %v13168_v54 }
0x2f6a   : > { %v15755_v63 = vpop.eup %15754 }
0x2f6b   : > { %v13170_v59 = vmul.f32 %v15755_v63, %v13162_v34 }
0x2f6d   : > { %v13175_v39 = vmul.f32 %v13763_v42, %v13170_v59 }
0x2f6f   : > { %v13180_v2 = vadd.f32 %v13764_v15, %v13175_v39 }
0x2f71   : > { %v13183_v3 = vsel %vm10779_vm9, %v13180_v2, 0.0 }
0x2f72   : > { %13184 = vadd.xlane.f32.xlu0 %v13183_v3 }
0x2fff   : > { %v13185_v61 = vpop.xlane.xlu0 %13184 }
0x3000   : > { %v13186_v28 = vmul.f32 0.03125, %v13185_v61 }
0x3002   : > { %v13187_v10 = vsub.f32 %v13180_v2, %v13186_v28 }
0x3004   : > { %v13188_v37 = vmul.f32 %v13187_v10, %v13187_v10 }
0x3006   : > { %v13189_v53 = vsel %vm10779_vm9, %v13188_v37, 0.0 }
0x3007   : > { %13190 = vadd.xlane.f32.xlu1 %v13189_v53 }
0x3094   : > { %v13191_v58 = vpop.xlane.xlu1 %13190 }
0x3095   : > { %v13192_v40 = vmul.f32 0.03125, %v13191_v58 }
0x3097   : > { %v13193_v14 = vadd.f32 1e-05, %v13192_v40 }
0x3099   : > { %15756 = vrsqrt.f32 %v13193_v14 }
0x30a3   : > { %v15757_v4 = vpop.eup %15756 }
0x30a4   : > { %v13195_v29 = vmul.f32 %v15757_v4, %v13187_v10 }
0x30a6   : > { %v13196_v44 = vmul.f32 %v13195_v29, %v13181_v55 }
0x30a8   : > { %v13197_v32 = vadd.f32 %v13196_v44, %v13182_v12 }
0x30aa   : > { %15146 = vmatmul.mubr.msk.f32.vlgmr.msra.gmra.mrb[122].mxu0 %vm464_vm2, %v13197_v32 }
0x317d   : > { %v13272_v51 = vpop.f32.mrb[122].mxu0 }
0x317e   : > { %v13273_v56 = vadd.f32 %v13272_v51, %v13202_v0  ;;  %v15147_v8 = vpop.f32.mrb[123].mxu0 }
0x3180   : > { %v13279_v52 = vadd.f32 %v13278_v43, %v13273_v56  ;;  %13277 = vst.msk [vmem:[%s288_s13] sm:$0x1] %vm13276_vm0, %v13273_v56 }
0x3181   : > { %15829 = shalt.err (!%p15826_p9)
}
0x3182   : > { %s15830_s12 = scalar_lea.hbm %s17937_s29, 16  ;;  %s15834_s11 = scalar_lea.hbm %s18019_s5, 32 }
0x3183   : > { %p15831_p2 = scmp.ne.s32.totalorder %s17937_s29, %s15830_s12  ;;  %p15835_p1 = scmp.lt.u32.totalorder %s17937_s29, %s18019_s5 }
0x3184   : > { %p15836_p11 = scmp.lt.u32.totalorder %s15834_s11, %s15830_s12  ;;  %p15838_p6 = scmp.lt.u32.totalorder %s15830_s12, %s17937_s29 }
0x3185   : > { %p15832_p0 = pnand %p15831_p2, %p16054_p12 }
0x3186   : > { %p15837_p4 = por %p15836_p11, %p15835_p1 }
0x3187   : > { %p15833_p5 = pneg %p15832_p0 }
0x3188   : > { %p15839_p8 = por %p15838_p6, %p15837_p4 }
0x318a   : > { %p15840_p10 = pnand %p15839_p8, %p15833_p5 }
0x318c   : > { %15843 = shalt.err (!%p15840_p10)
}
0x318d   : > { %15431 = dma.vmem_to_hbm [thread:$0]  (%p16054_p12), %s17939_s6, 16, %s17937_s29, %s13286_s14   ;;  %13280 = vst.msk [vmem:[%s282_s16] sm:$0x1] %vm13276_vm0, %v13279_v52 }
0x318e   : > { %s13282_s28 = scalar_lea.sflag [#allocation5], %s16102_s23  ;;  %s15844_s7 = scalar_lea.vmem %s17946_s17, 16 }
0x318f   : > { %p15845_p13 = scmp.ne.s32.totalorder %s17946_s17, %s15844_s7  ;;  %s15932_s15 = smov [#allocation8]  }
0x3190   : > { %s15848_s10 = sshll.u32 %s15932_s15, 4  ;;  %s15849_s10 = int_to_ptr.vmem [resolvable:$false] %s15848_s10 }
0x3191   : > { %p15846_p3 = pnand %p15845_p13, %p16054_p12  ;;  %s15850_s12 = scalar_lea.vmem %s15849_s10, 32 }
0x3192   : > { %p15851_p9 = scmp.lt.s32.totalorder %s17946_s17, %s15849_s10  ;;  %p15852_p2 = scmp.lt.s32.totalorder %s15850_s12, %s15844_s7 }
0x3193   : > { %p15847_p7 = pneg %p15846_p3 }
0x3194   : > { %p15853_p0 = por %p15852_p2, %p15851_p9 }
0x3196   : > { %p15854_p5 = pnand %p15853_p0, %p15847_p7 }
0x3198   : > { %15857 = shalt.err (!%p15854_p5)
}
0x3199   : > { %s15858_s23 = scalar_lea.hbm %s17944_s26, 16  ;;  %s15862_s29 = scalar_lea.hbm %s18018_s4, 32 }
0x319a   : > { %p15859_p1 = scmp.ne.s32.totalorder %s17944_s26, %s15858_s23  ;;  %p15863_p6 = scmp.lt.u32.totalorder %s17944_s26, %s18018_s4 }
0x319b   : > { %p15864_p8 = scmp.lt.u32.totalorder %s15862_s29, %s15858_s23  ;;  %p15866_p13 = scmp.lt.u32.totalorder %s15858_s23, %s17944_s26 }
0x319c   : > { %p15860_p11 = pnand %p15859_p1, %p16054_p12 }
0x319d   : > { %p15865_p10 = por %p15864_p8, %p15863_p6 }
0x319e   : > { %p15861_p4 = pneg %p15860_p11 }
0x319f   : > { %p15867_p3 = por %p15866_p13, %p15865_p10 }
0x31a1   : > { %p15868_p7 = pnand %p15867_p3, %p15861_p4 }
0x31a3   : > { %15871 = shalt.err (!%p15868_p7)
}
0x31a4   : > { %15430 = dma.vmem_to_hbm [thread:$0]  (%p16054_p12), %s17946_s17, 16, %s17944_s26, %s13282_s28  }
0x31a5 PF: > { %s13323_s27 = sand.u32 1, %s15906_s18   ;;  %p18040_p9 = scmp.ne.s32.totalorder %s18024_s25, 0 }
0x31a6   : > { %p18041_p2 = scmp.ge.s32.totalorder %s15918_s21, 2  ;;  %s13324_s11 = scalar_lea.sflag [#allocation5], %s13323_s27 }
0x31a8   : > { %p15443_p0 = pnand %p18041_p2, %p18040_p9 }
0x31aa   : > { %15897 = dma.done.wait (!%p15443_p0), %s13324_s11, 16  }
0x31ab   : > { %15899 = vsyncadd (!%p15443_p0), %s13324_s11, 4294967280  ;;  %s13332_s22 = scalar_lea.sflag [#allocation10], %s13323_s27 }
0x31ac   : > { %15901 = dma.done.wait (!%p15443_p0), %s13332_s22, 16  }
0x31ad   : > { %15903 = vsyncadd (!%p15443_p0), %s13332_s22, 4294967280  ;;  %p23_p12 = scmp.ge.s32.totalorder %s16019_s30, 4   ;;  %s18042_s18 = smov %s15910_s19 }
0x31ae   : > { %s18043_s19 = smov %s15914_s20  ;;  %s18044_s20 = smov %s16050_s8 }
0x31af   : > { %s18045_s21 = smov %s16019_s30  ;;  %25 = sbr.rel (!%p23_p12) target bundleno = 8 (0x8), region = 108 }
0x31b6   :  { %13336 = vsyncpa [#allocation4], 1 }
0x31b7   :  { %13338 = vsyncpa [#allocation4 + $0x1], 1 }
0x31b8   :  { %13339 = vsyncpa [#allocation7], 1 }
0x31b9   :  { %13340 = vsyncpa [#allocation5], 1 }
0x31ba   :  { %13342 = vsyncpa [#allocation5 + $0x1], 1 }
0x31bb   :  { %13343 = vsyncpa [#allocation10], 1 }
0x31bc   :  { %13345 = vsyncpa [#allocation10 + $0x1], 1 }

</bundles_post_ra>
